<compile_context>
chip_gen: v7x
topology: tpu7x:2x2x1
jax: 0.10.0
libtpu: 0.0.40
codegen_flags: <defaults>
</compile_context>

<pallas_src>
import functools

import jax
import jax.numpy as jnp
from jax.experimental import pallas as pl
from jax.experimental.pallas import tpu as pltpu

NC = 3        # input channels
NDF = 64      # base feature width
LEAKY_SLOPE = 0.2
BN_EPS = 1e-5


# ---------------------------------------------------------------------------
# Pallas kernels
# ---------------------------------------------------------------------------
def _leaky(x):
    return jnp.where(x >= 0.0, x, LEAKY_SLOPE * x)


def _conv_fused_kernel(a_ref, b_ref, o_ref, acc_ref, *, epilogue):
    """o = epilogue(a @ b), K-tiled with an f32 VMEM accumulator.

    a: (tm, tk) bf16 im2col cols     b: (tk, tn) bf16 weights
    o: (tm, tn) bf16 activations     acc: (tm, tn) f32 scratch
    grid = (M//tm, Cout//tn, K//tk); K is the innermost ('arbitrary') axis.
    For epilogue == "bn_leaky" the caller guarantees tm == M so the
    per-channel batch statistics see every row.
    """
    k = pl.program_id(2)

    @pl.when(k == 0)
    def _init():
        acc_ref[...] = jnp.zeros_like(acc_ref)

    acc_ref[...] += jnp.dot(a_ref[...], b_ref[...],
                            preferred_element_type=jnp.float32)

    @pl.when(k == pl.num_programs(2) - 1)
    def _finalize():
        acc = acc_ref[...]
        if epilogue == "bn_leaky":
            # PyTorch training-mode BatchNorm2d (gamma=1, beta=0, biased var).
            mean = jnp.mean(acc, axis=0, keepdims=True)
            var = jnp.mean(jnp.square(acc - mean), axis=0, keepdims=True)
            acc = _leaky((acc - mean) * jax.lax.rsqrt(var + BN_EPS))
        elif epilogue == "leaky":
            acc = _leaky(acc)
        o_ref[...] = acc.astype(o_ref.dtype)


def _head_kernel(a_ref, w_ref, o_ref):
    """Final Conv(ndf*8 -> 1, 4, 1, 0) + Sigmoid as a per-sample dot product.

    a: (N, K) bf16 flattened layer-4 activations, w: (1, K) bf16, o: (N, 1) f32.
    """
    a = a_ref[...].astype(jnp.float32)
    w = w_ref[...].astype(jnp.float32)
    s = jnp.sum(a * w, axis=1, keepdims=True)          # (N, 1)
    # sigmoid(x) == 0.5 * (tanh(x/2) + 1): overflow-free, runs on the EUP.
    o_ref[...] = 0.5 * (jnp.tanh(0.5 * s) + 1.0)


# ---------------------------------------------------------------------------
# Pallas wrappers
# ---------------------------------------------------------------------------
def _pick_tile_m(m):
    for tm in (1024, 512, 256, 128, 64, 32, 16, 8):
        if m % tm == 0:
            return tm
    return m  # tiny M: single full block (allowed: equals full array dim)


def conv_fused(cols, w_mat, epilogue):
    """cols: (M, K) bf16, w_mat: (K, Cout) bf16 -> (M, Cout) bf16."""
    M, K = cols.shape
    Kb, Cout = w_mat.shape
    assert K == Kb
    if epilogue == "bn_leaky":
        tm = M                       # BN stats need every row in one block
    else:
        tm = _pick_tile_m(M)
    tn = 128 if Cout % 128 == 0 else Cout
    tk = 512 if K % 512 == 0 else K
    kernel = functools.partial(_conv_fused_kernel, epilogue=epilogue)
    return pl.pallas_call(
        kernel,
        out_shape=jax.ShapeDtypeStruct((M, Cout), jnp.bfloat16),
        grid=(M // tm, Cout // tn, K // tk),
        in_specs=[
            pl.BlockSpec((tm, tk), lambda m, j, k: (m, k)),
            pl.BlockSpec((tk, tn), lambda m, j, k: (k, j)),
        ],
        out_specs=pl.BlockSpec((tm, tn), lambda m, j, k: (m, j)),
        scratch_shapes=[pltpu.VMEM((tm, tn), jnp.float32)],
        compiler_params=pltpu.CompilerParams(
            dimension_semantics=("parallel", "parallel", "arbitrary"),
            vmem_limit_bytes=64 << 20),
    )(cols, w_mat)


def head_sigmoid(a, w):
    """a: (N, K) bf16, w: (1, K) bf16 -> sigmoid(per-sample dot) as (N, 1) f32."""
    N, K = a.shape
    return pl.pallas_call(
        _head_kernel,
        out_shape=jax.ShapeDtypeStruct((N, 1), jnp.float32),
        grid=(1,),
        in_specs=[
            pl.BlockSpec((N, K), lambda i: (0, 0)),
            pl.BlockSpec((1, K), lambda i: (0, 0)),
        ],
        out_specs=pl.BlockSpec((N, 1), lambda i: (0, 0)),
        compiler_params=pltpu.CompilerParams(
            vmem_limit_bytes=64 << 20),
    )(a, w)


# ---------------------------------------------------------------------------
# Conv layer = im2col (host-side glue) + fused Pallas kernel
# ---------------------------------------------------------------------------
def _im2col(x_nhwc, kh, kw, stride, pad):
    N, H, W, C = x_nhwc.shape
    xp = jnp.pad(x_nhwc, ((0, 0), (pad, pad), (pad, pad), (0, 0)))
    Ho = (H + 2 * pad - kh) // stride + 1
    Wo = (W + 2 * pad - kw) // stride + 1
    cols = []
    for di in range(kh):
        for dj in range(kw):
            cols.append(xp[:, di:di + (Ho - 1) * stride + 1:stride,
                           dj:dj + (Wo - 1) * stride + 1:stride, :])
    cols = jnp.stack(cols, axis=3)                    # (N, Ho, Wo, kh*kw, C)
    return cols.reshape(N * Ho * Wo, kh * kw * C), Ho, Wo


def conv_block(x_nhwc, w_mat, epilogue):
    """4x4 / stride-2 / pad-1 bias-free conv with fused epilogue -> NHWC bf16."""
    N = x_nhwc.shape[0]
    cols, Ho, Wo = _im2col(x_nhwc, 4, 4, 2, 1)
    y = conv_fused(cols, w_mat, epilogue)
    return y.reshape(N, Ho, Wo, w_mat.shape[1])


# ---------------------------------------------------------------------------
# Parameters
# ---------------------------------------------------------------------------
def init_params(key):
    """DCGAN-style N(0, 0.02) bias-free conv weights in PyTorch OIHW layout."""
    shapes = [
        (NDF, NC, 4, 4),
        (NDF * 2, NDF, 4, 4),
        (NDF * 4, NDF * 2, 4, 4),
        (NDF * 8, NDF * 4, 4, 4),
        (1, NDF * 8, 4, 4),
    ]
    keys = jax.random.split(key, len(shapes))
    return [0.02 * jax.random.normal(k, s, dtype=jnp.float32)
            for k, s in zip(keys, shapes)]


def _pad_axis_to(w, axis, target):
    pad = [(0, 0)] * w.ndim
    pad[axis] = (0, max(0, target - w.shape[axis]))
    return jnp.pad(w, pad)


def prepare_params(conv_ws):
    """OIHW f32 conv weights -> bf16 matmul matrices (rows = (kh, kw, Cin)).

    Conv1's Cout (and Conv2's Cin) are zero-padded up to a multiple of 128 so
    the largest layer stores lane-dense tiles; the padded channels multiply
    only zero weights downstream, so the result is unchanged.
    """
    w1, w2, w3, w4, w5 = conv_ws
    c_pad = -(-w1.shape[0] // 128) * 128              # round Cout of conv1 up
    w1 = _pad_axis_to(w1, 0, c_pad)
    w2 = _pad_axis_to(w2, 1, c_pad)

    def to_mat(w):  # OIHW -> ((kh*kw*Cin), Cout), matching im2col K ordering.
        cout = w.shape[0]
        return (jnp.transpose(w, (2, 3, 1, 0))        # (kh, kw, Cin, Cout)
                .reshape(-1, cout).astype(jnp.bfloat16))

    w5_vec = (jnp.transpose(w5, (2, 3, 1, 0))         # (4, 4, Cin, 1)
              .reshape(1, -1).astype(jnp.bfloat16))   # (1, kh*kw*Cin)
    return [to_mat(w1), to_mat(w2), to_mat(w3), to_mat(w4), w5_vec]


# ---------------------------------------------------------------------------
# Discriminator forward
# ---------------------------------------------------------------------------
@jax.jit
def discriminator_forward(x_nchw, prepared):
    w1m, w2m, w3m, w4m, w5v = prepared
    x = jnp.transpose(x_nchw, (0, 2, 3, 1)).astype(jnp.bfloat16)   # NCHW->NHWC

    x = conv_block(x, w1m, "leaky")        # (N, 32, 32, 128)  (64 real + 64 zero)
    x = conv_block(x, w2m, "bn_leaky")     # (N, 16, 16, 128)
    x = conv_block(x, w3m, "bn_leaky")     # (N,  8,  8, 256)
    x = conv_block(x, w4m, "bn_leaky")     # (N,  4,  4, 512)

    N, Ho, Wo, C = x.shape
    assert (Ho, Wo) == (4, 4), "final 4x4 valid conv expects a 4x4 spatial map"
    out = head_sigmoid(x.reshape(N, Ho * Wo * C), w5v)             # (N, 1)
    return out.reshape(N, 1, 1, 1)                                 # NCHW output


if __name__ == "__main__":
    key = jax.random.PRNGKey(0)
    k_params, k_x = jax.random.split(key)
    params = prepare_params(init_params(k_params))

    # DCGAN discriminator expects 64x64 RGB images, NCHW like PyTorch.
    x = jax.random.normal(k_x, (2, NC, 64, 64), dtype=jnp.float32)

    out = discriminator_forward(x, params)
    out = jax.block_until_ready(out)

    assert out.shape == (2, 1, 1, 1), out.shape
    assert bool(jnp.all(jnp.isfinite(out)))
    assert bool(jnp.all((out >= 0.0) & (out <= 1.0)))
    print("KERNEL_OK")
</pallas_src>

<mosaic_0001>
module attributes {stable_mosaic.version = 11 : i64} {
  func.func @_conv_fused_kernel(%arg0: i32, %arg1: i32, %arg2: i32, %arg3: memref<1024x48xbf16, #tpu.memory_space<vmem>>, %arg4: memref<48x128xbf16, #tpu.memory_space<vmem>>, %arg5: memref<1024x128xbf16, #tpu.memory_space<vmem>>, %arg6: memref<1024x128xf32, #tpu.memory_space<vmem>>) attributes {dimension_semantics = [#tpu.dimension_semantics<parallel>, #tpu.dimension_semantics<parallel>, #tpu.dimension_semantics<arbitrary>], iteration_bounds = array<i64: 2, 1, 1>, scalar_prefetch = 0 : i64, scratch_operands = 1 : i64, tpu.core_type = #tpu.core_type<tc>, window_params = [{transform_indices = @transform_0, window_bounds = array<i64: 1024, 48>}, {transform_indices = @transform_1, window_bounds = array<i64: 48, 128>}, {transform_indices = @transform_2, window_bounds = array<i64: 1024, 128>}]} {
    %c0_i32 = arith.constant 0 : i32
    %0 = arith.cmpi eq, %arg2, %c0_i32 : i32
    %1 = arith.extui %0 : i1 to i32
    %c0_i32_0 = arith.constant 0 : i32
    %2 = arith.cmpi ne, %1, %c0_i32_0 : i32
    scf.if %2 {
      %cst_10 = arith.constant 0.000000e+00 : f32
      %12 = vector.broadcast %cst_10 : f32 to vector<1024x128xf32>
      %c0_11 = arith.constant 0 : index
      %c0_12 = arith.constant 0 : index
      %13 = vector.load %arg6[%c0_11, %c0_12] : memref<1024x128xf32, #tpu.memory_space<vmem>>, vector<1024x128xf32>
      tpu.vector_store %arg6[%c0_11, %c0_12], %12 {strides = array<i32>} : memref<1024x128xf32, #tpu.memory_space<vmem>>, vector<1024x128xf32>,
    } else {
    }
    %c0 = arith.constant 0 : index
    %c0_1 = arith.constant 0 : index
    %3 = vector.load %arg6[%c0, %c0_1] : memref<1024x128xf32, #tpu.memory_space<vmem>>, vector<1024x128xf32>
    %c0_2 = arith.constant 0 : index
    %c0_3 = arith.constant 0 : index
    %4 = vector.load %arg3[%c0_2, %c0_3] : memref<1024x48xbf16, #tpu.memory_space<vmem>>, vector<1024x48xbf16>
    %c0_4 = arith.constant 0 : index
    %c0_5 = arith.constant 0 : index
    %5 = vector.load %arg4[%c0_4, %c0_5] : memref<48x128xbf16, #tpu.memory_space<vmem>>, vector<48x128xbf16>
    %cst = arith.constant dense<0.000000e+00> : vector<1024x128xf32>
    %6 = tpu.matmul %4, %5, %cst {dimension_numbers = #tpu.dot_dimension_numbers<[1], [0], [0], [1], [0, 0, 1, 1], [], []>} : vector<1024x48xbf16>, vector<48x128xbf16>, vector<1024x128xf32> -> vector<1024x128xf32>
    %7 = arith.addf %3, %6 : vector<1024x128xf32>
    %c0_6 = arith.constant 0 : index
    %c0_7 = arith.constant 0 : index
    %8 = vector.load %arg6[%c0_6, %c0_7] : memref<1024x128xf32, #tpu.memory_space<vmem>>, vector<1024x128xf32>
    tpu.vector_store %arg6[%c0_6, %c0_7], %7 {strides = array<i32>} : memref<1024x128xf32, #tpu.memory_space<vmem>>, vector<1024x128xf32>,
    %c0_i32_8 = arith.constant 0 : i32
    %9 = arith.cmpi eq, %arg2, %c0_i32_8 : i32
    %10 = arith.extui %9 : i1 to i32
    %c0_i32_9 = arith.constant 0 : i32
    %11 = arith.cmpi ne, %10, %c0_i32_9 : i32
    scf.if %11 {
      %c0_10 = arith.constant 0 : index
      %c0_11 = arith.constant 0 : index
      %12 = vector.load %arg6[%c0_10, %c0_11] : memref<1024x128xf32, #tpu.memory_space<vmem>>, vector<1024x128xf32>
      %cst_12 = arith.constant 0.000000e+00 : f32
      %13 = vector.broadcast %cst_12 : f32 to vector<1024x128xf32>
      %14 = arith.cmpf oge, %12, %13 : vector<1024x128xf32>
      %cst_13 = arith.constant 2.000000e-01 : f32
      %15 = vector.broadcast %cst_13 : f32 to vector<1024x128xf32>
      %16 = arith.mulf %15, %12 : vector<1024x128xf32>
      %17 = arith.select %14, %12, %16 : vector<1024x128xi1>, vector<1024x128xf32>
      %18 = arith.truncf %17 : vector<1024x128xf32> to vector<1024x128xbf16>
      %c0_14 = arith.constant 0 : index
      %c0_15 = arith.constant 0 : index
      %19 = vector.load %arg5[%c0_14, %c0_15] : memref<1024x128xbf16, #tpu.memory_space<vmem>>, vector<1024x128xbf16>
      tpu.vector_store %arg5[%c0_14, %c0_15], %18 {strides = array<i32>} : memref<1024x128xbf16, #tpu.memory_space<vmem>>, vector<1024x128xbf16>,
    } else {
    }
    return
  }
  func.func @transform_0(%arg0: i32, %arg1: i32, %arg2: i32) -> (i32, i32) {
    %c0_i32 = arith.constant 0 : i32
    return %arg0, %arg2 : i32, i32
  }
  func.func @transform_1(%arg0: i32, %arg1: i32, %arg2: i32) -> (i32, i32) {
    %c0_i32 = arith.constant 0 : i32
    return %arg2, %arg1 : i32, i32
  }
  func.func @transform_2(%arg0: i32, %arg1: i32, %arg2: i32) -> (i32, i32) {
    %c0_i32 = arith.constant 0 : i32
    return %arg0, %arg1 : i32, i32
  }
}

module attributes {stable_mosaic.version = 11 : i64} {
  func.func @_conv_fused_kernel(%arg0: i32, %arg1: i32, %arg2: i32, %arg3: memref<512x512xbf16, #tpu.memory_space<vmem>>, %arg4: memref<512x128xbf16, #tpu.memory_space<vmem>>, %arg5: memref<512x128xbf16, #tpu.memory_space<vmem>>, %arg6: memref<512x128xf32, #tpu.memory_space<vmem>>) attributes {dimension_semantics = [#tpu.dimension_semantics<parallel>, #tpu.dimension_semantics<parallel>, #tpu.dimension_semantics<arbitrary>], iteration_bounds = array<i64: 1, 1, 4>, scalar_prefetch = 0 : i64, scratch_operands = 1 : i64, tpu.core_type = #tpu.core_type<tc>, window_params = [{transform_indices = @transform_0, window_bounds = array<i64: 512, 512>}, {transform_indices = @transform_1, window_bounds = array<i64: 512, 128>}, {transform_indices = @transform_2, window_bounds = array<i64: 512, 128>}]} {
    %c0_i32 = arith.constant 0 : i32
    %0 = arith.cmpi eq, %arg2, %c0_i32 : i32
    %1 = arith.extui %0 : i1 to i32
    %c0_i32_0 = arith.constant 0 : i32
    %2 = arith.cmpi ne, %1, %c0_i32_0 : i32
    scf.if %2 {
      %cst_9 = arith.constant 0.000000e+00 : f32
      %12 = vector.broadcast %cst_9 : f32 to vector<512x128xf32>
      %c0_10 = arith.constant 0 : index
      %c0_11 = arith.constant 0 : index
      %13 = vector.load %arg6[%c0_10, %c0_11] : memref<512x128xf32, #tpu.memory_space<vmem>>, vector<512x128xf32>
      tpu.vector_store %arg6[%c0_10, %c0_11], %12 {strides = array<i32>} : memref<512x128xf32, #tpu.memory_space<vmem>>, vector<512x128xf32>,
    } else {
    }
    %c0 = arith.constant 0 : index
    %c0_1 = arith.constant 0 : index
    %3 = vector.load %arg6[%c0, %c0_1] : memref<512x128xf32, #tpu.memory_space<vmem>>, vector<512x128xf32>
    %c0_2 = arith.constant 0 : index
    %c0_3 = arith.constant 0 : index
    %4 = vector.load %arg3[%c0_2, %c0_3] : memref<512x512xbf16, #tpu.memory_space<vmem>>, vector<512x512xbf16>
    %c0_4 = arith.constant 0 : index
    %c0_5 = arith.constant 0 : index
    %5 = vector.load %arg4[%c0_4, %c0_5] : memref<512x128xbf16, #tpu.memory_space<vmem>>, vector<512x128xbf16>
    %cst = arith.constant dense<0.000000e+00> : vector<512x128xf32>
    %6 = tpu.matmul %4, %5, %cst {dimension_numbers = #tpu.dot_dimension_numbers<[1], [0], [0], [1], [0, 0, 1, 1], [], []>} : vector<512x512xbf16>, vector<512x128xbf16>, vector<512x128xf32> -> vector<512x128xf32>
    %7 = arith.addf %3, %6 : vector<512x128xf32>
    %c0_6 = arith.constant 0 : index
    %c0_7 = arith.constant 0 : index
    %8 = vector.load %arg6[%c0_6, %c0_7] : memref<512x128xf32, #tpu.memory_space<vmem>>, vector<512x128xf32>
    tpu.vector_store %arg6[%c0_6, %c0_7], %7 {strides = array<i32>} : memref<512x128xf32, #tpu.memory_space<vmem>>, vector<512x128xf32>,
    %c3_i32 = arith.constant 3 : i32
    %9 = arith.cmpi eq, %arg2, %c3_i32 : i32
    %10 = arith.extui %9 : i1 to i32
    %c0_i32_8 = arith.constant 0 : i32
    %11 = arith.cmpi ne, %10, %c0_i32_8 : i32
    scf.if %11 {
      %c0_9 = arith.constant 0 : index
      %c0_10 = arith.constant 0 : index
      %12 = vector.load %arg6[%c0_9, %c0_10] : memref<512x128xf32, #tpu.memory_space<vmem>>, vector<512x128xf32>
      %cst_11 = arith.constant dense<0.000000e+00> : vector<128xf32>
      %13 = vector.multi_reduction <add>, %12, %cst_11 [0] : vector<512x128xf32> to vector<128xf32>
      %14 = vector.shape_cast %13 : vector<128xf32> to vector<1x128xf32>
      %cst_12 = arith.constant 5.120000e+02 : f32
      %15 = vector.broadcast %cst_12 : f32 to vector<1x128xf32>
      %16 = arith.divf %14, %15 : vector<1x128xf32>
      %17 = vector.broadcast %16 : vector<1x128xf32> to vector<512x128xf32>
      %18 = arith.subf %12, %17 : vector<512x128xf32>
      %19 = arith.mulf %18, %18 : vector<512x128xf32>
      %cst_13 = arith.constant dense<0.000000e+00> : vector<128xf32>
      %20 = vector.multi_reduction <add>, %19, %cst_13 [0] : vector<512x128xf32> to vector<128xf32>
      %21 = vector.shape_cast %20 : vector<128xf32> to vector<1x128xf32>
      %cst_14 = arith.constant 5.120000e+02 : f32
      %22 = vector.broadcast %cst_14 : f32 to vector<1x128xf32>
      %23 = arith.divf %21, %22 : vector<1x128xf32>
      %24 = vector.broadcast %16 : vector<1x128xf32> to vector<512x128xf32>
      %25 = arith.subf %12, %24 : vector<512x128xf32>
      %cst_15 = arith.constant 9.99999974E-6 : f32
      %26 = vector.broadcast %cst_15 : f32 to vector<1x128xf32>
      %27 = arith.addf %23, %26 : vector<1x128xf32>
      %28 = math.rsqrt %27 : vector<1x128xf32>
      %29 = vector.broadcast %28 : vector<1x128xf32> to vector<512x128xf32>
      %30 = arith.mulf %25, %29 : vector<512x128xf32>
      %cst_16 = arith.constant 0.000000e+00 : f32
      %31 = vector.broadcast %cst_16 : f32 to vector<512x128xf32>
      %32 = arith.cmpf oge, %30, %31 : vector<512x128xf32>
      %cst_17 = arith.constant 2.000000e-01 : f32
      %33 = vector.broadcast %cst_17 : f32 to vector<512x128xf32>
      %34 = arith.mulf %33, %30 : vector<512x128xf32>
      %35 = arith.select %32, %30, %34 : vector<512x128xi1>, vector<512x128xf32>
      %36 = arith.truncf %35 : vector<512x128xf32> to vector<512x128xbf16>
      %c0_18 = arith.constant 0 : index
      %c0_19 = arith.constant 0 : index
      %37 = vector.load %arg5[%c0_18, %c0_19] : memref<512x128xbf16, #tpu.memory_space<vmem>>, vector<512x128xbf16>
      tpu.vector_store %arg5[%c0_18, %c0_19], %36 {strides = array<i32>} : memref<512x128xbf16, #tpu.memory_space<vmem>>, vector<512x128xbf16>,
    } else {
    }
    return
  }
  func.func @transform_0(%arg0: i32, %arg1: i32, %arg2: i32) -> (i32, i32) {
    %c0_i32 = arith.constant 0 : i32
    return %arg0, %arg2 : i32, i32
  }
  func.func @transform_1(%arg0: i32, %arg1: i32, %arg2: i32) -> (i32, i32) {
    %c0_i32 = arith.constant 0 : i32
    return %arg2, %arg1 : i32, i32
  }
  func.func @transform_2(%arg0: i32, %arg1: i32, %arg2: i32) -> (i32, i32) {
    %c0_i32 = arith.constant 0 : i32
    return %arg0, %arg1 : i32, i32
  }
}

module attributes {stable_mosaic.version = 11 : i64} {
  func.func @_conv_fused_kernel(%arg0: i32, %arg1: i32, %arg2: i32, %arg3: memref<128x512xbf16, #tpu.memory_space<vmem>>, %arg4: memref<512x128xbf16, #tpu.memory_space<vmem>>, %arg5: memref<128x128xbf16, #tpu.memory_space<vmem>>, %arg6: memref<128x128xf32, #tpu.memory_space<vmem>>) attributes {dimension_semantics = [#tpu.dimension_semantics<parallel>, #tpu.dimension_semantics<parallel>, #tpu.dimension_semantics<arbitrary>], iteration_bounds = array<i64: 1, 2, 4>, scalar_prefetch = 0 : i64, scratch_operands = 1 : i64, tpu.core_type = #tpu.core_type<tc>, window_params = [{transform_indices = @transform_0, window_bounds = array<i64: 128, 512>}, {transform_indices = @transform_1, window_bounds = array<i64: 512, 128>}, {transform_indices = @transform_2, window_bounds = array<i64: 128, 128>}]} {
    %c0_i32 = arith.constant 0 : i32
    %0 = arith.cmpi eq, %arg2, %c0_i32 : i32
    %1 = arith.extui %0 : i1 to i32
    %c0_i32_0 = arith.constant 0 : i32
    %2 = arith.cmpi ne, %1, %c0_i32_0 : i32
    scf.if %2 {
      %cst_9 = arith.constant 0.000000e+00 : f32
      %12 = vector.broadcast %cst_9 : f32 to vector<128x128xf32>
      %c0_10 = arith.constant 0 : index
      %c0_11 = arith.constant 0 : index
      %13 = vector.load %arg6[%c0_10, %c0_11] : memref<128x128xf32, #tpu.memory_space<vmem>>, vector<128x128xf32>
      tpu.vector_store %arg6[%c0_10, %c0_11], %12 {strides = array<i32>} : memref<128x128xf32, #tpu.memory_space<vmem>>, vector<128x128xf32>,
    } else {
    }
    %c0 = arith.constant 0 : index
    %c0_1 = arith.constant 0 : index
    %3 = vector.load %arg6[%c0, %c0_1] : memref<128x128xf32, #tpu.memory_space<vmem>>, vector<128x128xf32>
    %c0_2 = arith.constant 0 : index
    %c0_3 = arith.constant 0 : index
    %4 = vector.load %arg3[%c0_2, %c0_3] : memref<128x512xbf16, #tpu.memory_space<vmem>>, vector<128x512xbf16>
    %c0_4 = arith.constant 0 : index
    %c0_5 = arith.constant 0 : index
    %5 = vector.load %arg4[%c0_4, %c0_5] : memref<512x128xbf16, #tpu.memory_space<vmem>>, vector<512x128xbf16>
    %cst = arith.constant dense<0.000000e+00> : vector<128x128xf32>
    %6 = tpu.matmul %4, %5, %cst {dimension_numbers = #tpu.dot_dimension_numbers<[1], [0], [0], [1], [0, 0, 1, 1], [], []>} : vector<128x512xbf16>, vector<512x128xbf16>, vector<128x128xf32> -> vector<128x128xf32>
    %7 = arith.addf %3, %6 : vector<128x128xf32>
    %c0_6 = arith.constant 0 : index
    %c0_7 = arith.constant 0 : index
    %8 = vector.load %arg6[%c0_6, %c0_7] : memref<128x128xf32, #tpu.memory_space<vmem>>, vector<128x128xf32>
    tpu.vector_store %arg6[%c0_6, %c0_7], %7 {strides = array<i32>} : memref<128x128xf32, #tpu.memory_space<vmem>>, vector<128x128xf32>,
    %c3_i32 = arith.constant 3 : i32
    %9 = arith.cmpi eq, %arg2, %c3_i32 : i32
    %10 = arith.extui %9 : i1 to i32
    %c0_i32_8 = arith.constant 0 : i32
    %11 = arith.cmpi ne, %10, %c0_i32_8 : i32
    scf.if %11 {
      %c0_9 = arith.constant 0 : index
      %c0_10 = arith.constant 0 : index
      %12 = vector.load %arg6[%c0_9, %c0_10] : memref<128x128xf32, #tpu.memory_space<vmem>>, vector<128x128xf32>
      %cst_11 = arith.constant dense<0.000000e+00> : vector<128xf32>
      %13 = vector.multi_reduction <add>, %12, %cst_11 [0] : vector<128x128xf32> to vector<128xf32>
      %14 = vector.shape_cast %13 : vector<128xf32> to vector<1x128xf32>
      %cst_12 = arith.constant 1.280000e+02 : f32
      %15 = vector.broadcast %cst_12 : f32 to vector<1x128xf32>
      %16 = arith.divf %14, %15 : vector<1x128xf32>
      %17 = vector.broadcast %16 : vector<1x128xf32> to vector<128x128xf32>
      %18 = arith.subf %12, %17 : vector<128x128xf32>
      %19 = arith.mulf %18, %18 : vector<128x128xf32>
      %cst_13 = arith.constant dense<0.000000e+00> : vector<128xf32>
      %20 = vector.multi_reduction <add>, %19, %cst_13 [0] : vector<128x128xf32> to vector<128xf32>
      %21 = vector.shape_cast %20 : vector<128xf32> to vector<1x128xf32>
      %cst_14 = arith.constant 1.280000e+02 : f32
      %22 = vector.broadcast %cst_14 : f32 to vector<1x128xf32>
      %23 = arith.divf %21, %22 : vector<1x128xf32>
      %24 = vector.broadcast %16 : vector<1x128xf32> to vector<128x128xf32>
      %25 = arith.subf %12, %24 : vector<128x128xf32>
      %cst_15 = arith.constant 9.99999974E-6 : f32
      %26 = vector.broadcast %cst_15 : f32 to vector<1x128xf32>
      %27 = arith.addf %23, %26 : vector<1x128xf32>
      %28 = math.rsqrt %27 : vector<1x128xf32>
      %29 = vector.broadcast %28 : vector<1x128xf32> to vector<128x128xf32>
      %30 = arith.mulf %25, %29 : vector<128x128xf32>
      %cst_16 = arith.constant 0.000000e+00 : f32
      %31 = vector.broadcast %cst_16 : f32 to vector<128x128xf32>
      %32 = arith.cmpf oge, %30, %31 : vector<128x128xf32>
      %cst_17 = arith.constant 2.000000e-01 : f32
      %33 = vector.broadcast %cst_17 : f32 to vector<128x128xf32>
      %34 = arith.mulf %33, %30 : vector<128x128xf32>
      %35 = arith.select %32, %30, %34 : vector<128x128xi1>, vector<128x128xf32>
      %36 = arith.truncf %35 : vector<128x128xf32> to vector<128x128xbf16>
      %c0_18 = arith.constant 0 : index
      %c0_19 = arith.constant 0 : index
      %37 = vector.load %arg5[%c0_18, %c0_19] : memref<128x128xbf16, #tpu.memory_space<vmem>>, vector<128x128xbf16>
      tpu.vector_store %arg5[%c0_18, %c0_19], %36 {strides = array<i32>} : memref<128x128xbf16, #tpu.memory_space<vmem>>, vector<128x128xbf16>,
    } else {
    }
    return
  }
  func.func @transform_0(%arg0: i32, %arg1: i32, %arg2: i32) -> (i32, i32) {
    %c0_i32 = arith.constant 0 : i32
    return %arg0, %arg2 : i32, i32
  }
  func.func @transform_1(%arg0: i32, %arg1: i32, %arg2: i32) -> (i32, i32) {
    %c0_i32 = arith.constant 0 : i32
    return %arg2, %arg1 : i32, i32
  }
  func.func @transform_2(%arg0: i32, %arg1: i32, %arg2: i32) -> (i32, i32) {
    %c0_i32 = arith.constant 0 : i32
    return %arg0, %arg1 : i32, i32
  }
}

module attributes {stable_mosaic.version = 11 : i64} {
  func.func @_conv_fused_kernel(%arg0: i32, %arg1: i32, %arg2: i32, %arg3: memref<32x512xbf16, #tpu.memory_space<vmem>>, %arg4: memref<512x128xbf16, #tpu.memory_space<vmem>>, %arg5: memref<32x128xbf16, #tpu.memory_space<vmem>>, %arg6: memref<32x128xf32, #tpu.memory_space<vmem>>) attributes {dimension_semantics = [#tpu.dimension_semantics<parallel>, #tpu.dimension_semantics<parallel>, #tpu.dimension_semantics<arbitrary>], iteration_bounds = array<i64: 1, 4, 8>, scalar_prefetch = 0 : i64, scratch_operands = 1 : i64, tpu.core_type = #tpu.core_type<tc>, window_params = [{transform_indices = @transform_0, window_bounds = array<i64: 32, 512>}, {transform_indices = @transform_1, window_bounds = array<i64: 512, 128>}, {transform_indices = @transform_2, window_bounds = array<i64: 32, 128>}]} {
    %c0_i32 = arith.constant 0 : i32
    %0 = arith.cmpi eq, %arg2, %c0_i32 : i32
    %1 = arith.extui %0 : i1 to i32
    %c0_i32_0 = arith.constant 0 : i32
    %2 = arith.cmpi ne, %1, %c0_i32_0 : i32
    scf.if %2 {
      %cst_9 = arith.constant 0.000000e+00 : f32
      %12 = vector.broadcast %cst_9 : f32 to vector<32x128xf32>
      %c0_10 = arith.constant 0 : index
      %c0_11 = arith.constant 0 : index
      %13 = vector.load %arg6[%c0_10, %c0_11] : memref<32x128xf32, #tpu.memory_space<vmem>>, vector<32x128xf32>
      tpu.vector_store %arg6[%c0_10, %c0_11], %12 {strides = array<i32>} : memref<32x128xf32, #tpu.memory_space<vmem>>, vector<32x128xf32>,
    } else {
    }
    %c0 = arith.constant 0 : index
    %c0_1 = arith.constant 0 : index
    %3 = vector.load %arg6[%c0, %c0_1] : memref<32x128xf32, #tpu.memory_space<vmem>>, vector<32x128xf32>
    %c0_2 = arith.constant 0 : index
    %c0_3 = arith.constant 0 : index
    %4 = vector.load %arg3[%c0_2, %c0_3] : memref<32x512xbf16, #tpu.memory_space<vmem>>, vector<32x512xbf16>
    %c0_4 = arith.constant 0 : index
    %c0_5 = arith.constant 0 : index
    %5 = vector.load %arg4[%c0_4, %c0_5] : memref<512x128xbf16, #tpu.memory_space<vmem>>, vector<512x128xbf16>
    %cst = arith.constant dense<0.000000e+00> : vector<32x128xf32>
    %6 = tpu.matmul %4, %5, %cst {dimension_numbers = #tpu.dot_dimension_numbers<[1], [0], [0], [1], [0, 0, 1, 1], [], []>} : vector<32x512xbf16>, vector<512x128xbf16>, vector<32x128xf32> -> vector<32x128xf32>
    %7 = arith.addf %3, %6 : vector<32x128xf32>
    %c0_6 = arith.constant 0 : index
    %c0_7 = arith.constant 0 : index
    %8 = vector.load %arg6[%c0_6, %c0_7] : memref<32x128xf32, #tpu.memory_space<vmem>>, vector<32x128xf32>
    tpu.vector_store %arg6[%c0_6, %c0_7], %7 {strides = array<i32>} : memref<32x128xf32, #tpu.memory_space<vmem>>, vector<32x128xf32>,
    %c7_i32 = arith.constant 7 : i32
    %9 = arith.cmpi eq, %arg2, %c7_i32 : i32
    %10 = arith.extui %9 : i1 to i32
    %c0_i32_8 = arith.constant 0 : i32
    %11 = arith.cmpi ne, %10, %c0_i32_8 : i32
    scf.if %11 {
      %c0_9 = arith.constant 0 : index
      %c0_10 = arith.constant 0 : index
      %12 = vector.load %arg6[%c0_9, %c0_10] : memref<32x128xf32, #tpu.memory_space<vmem>>, vector<32x128xf32>
      %cst_11 = arith.constant dense<0.000000e+00> : vector<128xf32>
      %13 = vector.multi_reduction <add>, %12, %cst_11 [0] : vector<32x128xf32> to vector<128xf32>
      %14 = vector.shape_cast %13 : vector<128xf32> to vector<1x128xf32>
      %cst_12 = arith.constant 3.200000e+01 : f32
      %15 = vector.broadcast %cst_12 : f32 to vector<1x128xf32>
      %16 = arith.divf %14, %15 : vector<1x128xf32>
      %17 = vector.broadcast %16 : vector<1x128xf32> to vector<32x128xf32>
      %18 = arith.subf %12, %17 : vector<32x128xf32>
      %19 = arith.mulf %18, %18 : vector<32x128xf32>
      %cst_13 = arith.constant dense<0.000000e+00> : vector<128xf32>
      %20 = vector.multi_reduction <add>, %19, %cst_13 [0] : vector<32x128xf32> to vector<128xf32>
      %21 = vector.shape_cast %20 : vector<128xf32> to vector<1x128xf32>
      %cst_14 = arith.constant 3.200000e+01 : f32
      %22 = vector.broadcast %cst_14 : f32 to vector<1x128xf32>
      %23 = arith.divf %21, %22 : vector<1x128xf32>
      %24 = vector.broadcast %16 : vector<1x128xf32> to vector<32x128xf32>
      %25 = arith.subf %12, %24 : vector<32x128xf32>
      %cst_15 = arith.constant 9.99999974E-6 : f32
      %26 = vector.broadcast %cst_15 : f32 to vector<1x128xf32>
      %27 = arith.addf %23, %26 : vector<1x128xf32>
      %28 = math.rsqrt %27 : vector<1x128xf32>
      %29 = vector.broadcast %28 : vector<1x128xf32> to vector<32x128xf32>
      %30 = arith.mulf %25, %29 : vector<32x128xf32>
      %cst_16 = arith.constant 0.000000e+00 : f32
      %31 = vector.broadcast %cst_16 : f32 to vector<32x128xf32>
      %32 = arith.cmpf oge, %30, %31 : vector<32x128xf32>
      %cst_17 = arith.constant 2.000000e-01 : f32
      %33 = vector.broadcast %cst_17 : f32 to vector<32x128xf32>
      %34 = arith.mulf %33, %30 : vector<32x128xf32>
      %35 = arith.select %32, %30, %34 : vector<32x128xi1>, vector<32x128xf32>
      %36 = arith.truncf %35 : vector<32x128xf32> to vector<32x128xbf16>
      %c0_18 = arith.constant 0 : index
      %c0_19 = arith.constant 0 : index
      %37 = vector.load %arg5[%c0_18, %c0_19] : memref<32x128xbf16, #tpu.memory_space<vmem>>, vector<32x128xbf16>
      tpu.vector_store %arg5[%c0_18, %c0_19], %36 {strides = array<i32>} : memref<32x128xbf16, #tpu.memory_space<vmem>>, vector<32x128xbf16>,
    } else {
    }
    return
  }
  func.func @transform_0(%arg0: i32, %arg1: i32, %arg2: i32) -> (i32, i32) {
    %c0_i32 = arith.constant 0 : i32
    return %arg0, %arg2 : i32, i32
  }
  func.func @transform_1(%arg0: i32, %arg1: i32, %arg2: i32) -> (i32, i32) {
    %c0_i32 = arith.constant 0 : i32
    return %arg2, %arg1 : i32, i32
  }
  func.func @transform_2(%arg0: i32, %arg1: i32, %arg2: i32) -> (i32, i32) {
    %c0_i32 = arith.constant 0 : i32
    return %arg0, %arg1 : i32, i32
  }
}

module attributes {stable_mosaic.version = 11 : i64} {
  func.func @_head_kernel(%arg0: i32, %arg1: memref<2x8192xbf16, #tpu.memory_space<vmem>>, %arg2: memref<1x8192xbf16, #tpu.memory_space<vmem>>, %arg3: memref<2x1xf32, #tpu.memory_space<vmem>>) attributes {dimension_semantics = [#tpu.dimension_semantics<arbitrary>], iteration_bounds = array<i64: 1>, scalar_prefetch = 0 : i64, scratch_operands = 0 : i64, tpu.core_type = #tpu.core_type<tc>, window_params = [{pipeline_mode = #tpu.pipeline_mode<synchronous>, transform_indices = @transform_0, window_bounds = array<i64: 2, 8192>}, {pipeline_mode = #tpu.pipeline_mode<synchronous>, transform_indices = @transform_1, window_bounds = array<i64: 1, 8192>}, {pipeline_mode = #tpu.pipeline_mode<synchronous>, transform_indices = @transform_2, window_bounds = array<i64: 2, 1>}]} {
    %c0 = arith.constant 0 : index
    %c0_0 = arith.constant 0 : index
    %0 = vector.load %arg1[%c0, %c0_0] : memref<2x8192xbf16, #tpu.memory_space<vmem>>, vector<2x8192xbf16>
    %1 = arith.extf %0 : vector<2x8192xbf16> to vector<2x8192xf32>
    %c0_1 = arith.constant 0 : index
    %c0_2 = arith.constant 0 : index
    %2 = vector.load %arg2[%c0_1, %c0_2] : memref<1x8192xbf16, #tpu.memory_space<vmem>>, vector<1x8192xbf16>
    %3 = arith.extf %2 : vector<1x8192xbf16> to vector<1x8192xf32>
    %4 = vector.broadcast %3 : vector<1x8192xf32> to vector<2x8192xf32>
    %5 = arith.mulf %1, %4 : vector<2x8192xf32>
    %cst = arith.constant dense<0.000000e+00> : vector<2xf32>
    %6 = vector.multi_reduction <add>, %5, %cst [1] : vector<2x8192xf32> to vector<2xf32>
    %7 = vector.shape_cast %6 : vector<2xf32> to vector<2x1xf32>
    %cst_3 = arith.constant 5.000000e-01 : f32
    %8 = vector.broadcast %cst_3 : f32 to vector<2x1xf32>
    %9 = arith.mulf %8, %7 : vector<2x1xf32>
    %10 = math.tanh %9 : vector<2x1xf32>
    %cst_4 = arith.constant 1.000000e+00 : f32
    %11 = vector.broadcast %cst_4 : f32 to vector<2x1xf32>
    %12 = arith.addf %10, %11 : vector<2x1xf32>
    %cst_5 = arith.constant 5.000000e-01 : f32
    %13 = vector.broadcast %cst_5 : f32 to vector<2x1xf32>
    %14 = arith.mulf %13, %12 : vector<2x1xf32>
    %c0_6 = arith.constant 0 : index
    %c0_7 = arith.constant 0 : index
    %15 = vector.load %arg3[%c0_6, %c0_7] : memref<2x1xf32, #tpu.memory_space<vmem>>, vector<2x1xf32>
    tpu.vector_store %arg3[%c0_6, %c0_7], %14 {strides = array<i32>} : memref<2x1xf32, #tpu.memory_space<vmem>>, vector<2x1xf32>,
    return
  }
  func.func @transform_0(%arg0: i32) -> (i32, i32) {
    %c0_i32 = arith.constant 0 : i32
    %c0_i32_0 = arith.constant 0 : i32
    %c0_i32_1 = arith.constant 0 : i32
    return %c0_i32, %c0_i32_0 : i32, i32
  }
  func.func @transform_1(%arg0: i32) -> (i32, i32) {
    %c0_i32 = arith.constant 0 : i32
    %c0_i32_0 = arith.constant 0 : i32
    %c0_i32_1 = arith.constant 0 : i32
    return %c0_i32, %c0_i32_0 : i32, i32
  }
  func.func @transform_2(%arg0: i32) -> (i32, i32) {
    %c0_i32 = arith.constant 0 : i32
    %c0_i32_0 = arith.constant 0 : i32
    %c0_i32_1 = arith.constant 0 : i32
    return %c0_i32, %c0_i32_0 : i32, i32
  }
}

</mosaic_0001>

<bundles_post_ra>
// kernel: discriminator_forward.5
= control target key start
LH: loop header
LB: loop body
LE: loop exit
PB: predicated region body
PF: predicated region fallthrough
CT: control target
= control target key end

     0   :  { %7 = vsyncpa [#allocation4], 0  ;;  %s4965_s0 = inlined_call_operand.hbm [shape: bf16[2048,48], index: 0, kind: input, shape index: {}]   ;;  %s4966_s1 = inlined_call_operand.hbm [shape: bf16[48,128], index: 1, kind: input, shape index: {}]   ;;  %s4967_s2 = inlined_call_operand.hbm [shape: bf16[2048,128], index: 2, kind: output, shape index: {}]  }
   0x1   :  { %9 = vsyncpa [#allocation4 + $0x1], 0 }
   0x2   :  { %10 = vsyncpa [#allocation7], 0 }
   0x3   :  { %11 = vsyncpa [#allocation5], 0 }
   0x4   :  { %13 = vsyncpa [#allocation5 + $0x1], 0  ;;  %s4522_s9 = smov 0   ;;  %s4524_s10 = smov 0  }
   0x5   :  { %s4526_s11 = smov 0   ;;  %s4528_s12 = smov 0  }
   0x6   :  { %s4530_s13 = smov 0   ;;  %s4532_s14 = smov 0  }
   0x7 LB: > { %s3214_s15 = sadd.s32 4294967295, %s4498_s14   ;;  %s3215_s16 = sadd.s32 4294967294, %s4498_s14   ;;  %s4498_s14 = sphi %s4532_s14, %s19_s14   ;;  %s4494_s13 = sphi %s4530_s13, %s4991_s13   ;;  %s4490_s12 = sphi %s4528_s12, %s4990_s12   ;;  %s4486_s11 = sphi %s4526_s11, %s4989_s11   ;;  %s4482_s10 = sphi %s4524_s10, %s4988_s10   ;;  %s4478_s9 = sphi %s4522_s9, %s4987_s9  }
   0x8   : > { %p60_p0 = scmp.ne.s32.totalorder %s4482_s10, %s4478_s9  ;;  %p4556_p1 = scmp.eq.s32.totalorder %s3214_s15, 0 }
   0x9   : > { %p4560_p2 = scmp.eq.s32.totalorder %s3214_s15, 1  ;;  %p120_p3 = scmp.eq.s32.totalorder %s3215_s16, 1 }
   0xa   : > { %s4972_s17 = scalar_select %p4556_p1, 1, 0 }
   0xb   : > { %s4973_s18 = scalar_select %p4560_p2, 1, 0 }
   0xc   : > { %p4566_p4 = por %p4556_p1, %p60_p0  ;;  %p3216_p5 = scmp.ge.s32.totalorder %s4498_s14, 1 }
   0xd   : > { %p4571_p6 = por %p120_p3, %p60_p0  ;;  %p127_p7 = scmp.lt.s32.totalorder %s4498_s14, 3 }
   0xe   : > { %s4974_s19 = scalar_select %p4566_p4, 1, 0 }
   0xf   : > { %s4975_s20 = scalar_select %p4571_p6, 1, 0 }
  0x10   : > { %p4576_p8 = pnand %p3216_p5, %p127_p7  ;;  %s4500_s22 = smov [#allocation6]  }
  0x11   : > { %s143_s23 = sshll.u32 %s4500_s22, 4  ;;  %s38_s25 = sadd.s32 1, %s4494_s13  ;;  %s144_s23 = int_to_ptr.vmem [resolvable:$true] %s143_s23 }
  0x12   : > { %s4976_s21 = scalar_select %p4576_p8, 1, 0 }
  0x13   : > { %p4218_p9 = pneg %p4576_p8  ;;  %s4354_s28 = scalar_lea.hbm %s4966_s1, 384 }
  0x14   : > { %p4355_p12 = scmp.ne.s32.totalorder %s4966_s1, %s4354_s28  ;;  %p4361_p5 = scmp.lt.u32.totalorder %s4354_s28, %s4966_s1 }
  0x15   : > { %p4585_p11 = pnand %p4218_p9, %p4556_p1 }
  0x17   : > { %p4356_p13 = pneg %p4585_p11 }
  0x19   : > { %p4357_p0 = pnand %p4356_p13, %p4355_p12 }
  0x1b   : > { %p4358_p3 = pneg %p4357_p0 }
  0x1d   : > { %p4363_p7 = pnand %p4361_p5, %p4358_p3 }
  0x1f   : > { %4366 = shalt.err (!%p4363_p7)
}
  0x20   : > { %s4367_s5 = scalar_lea.vmem %s144_s23, 384  ;;  %p4375_p1 = scmp.lt.s32.totalorder %s144_s23, %s144_s23 }
  0x21   : > { %p4368_p9 = scmp.ne.s32.totalorder %s144_s23, %s4367_s5  ;;  %p4376_p4 = scmp.lt.s32.totalorder %s4367_s5, %s4367_s5 }
  0x23   : > { %p4370_p10 = pnand %p4368_p9, %p4356_p13  ;;  %p4377_p8 = por %p4376_p4, %p4375_p1 }
  0x25   : > { %p4371_p6 = pneg %p4370_p10 }
  0x27   : > { %p4378_p2 = pnand %p4377_p8, %p4371_p6 }
  0x29   : > { %4381 = shalt.err (!%p4378_p2)
}
  0x2a   : > { %s4501_s6 = smov 64   ;;  %s4502_s7 = smov 4  }
  0x2b   : > { %4221 = dma.hbm_to_vmem [thread:$0]  (!%p4585_p11), %s4966_s1, 384, %s144_s23, [#allocation7], %s4501_s6, %s4501_s6, %s4502_s7  }
  0x2c   : > { %p40_p1 = scmp.ge.s32.totalorder %s38_s25, 2  ;;  %s47_s16 = sadd.s32 1, %s4486_s11 }
  0x2d   : > { %p54_p2 = scmp.ne.s32.totalorder %s4486_s11, %s4482_s10  ;;  %p55_p4 = scmp.eq.s32.totalorder %s4498_s14, 0 }
  0x2e   : > { %s4993_s25 = smov (%p40_p1, %s38_s25), 0  ;;  %p4979_p8 = scmp.ne.s32.totalorder %s4973_s18, 0 }
  0x2f   : > { %p4615_p6 = por %p55_p4, %p54_p2  ;;  %s42_s26 = ssub.s32 %s4494_s13, %s4993_s25 }
  0x30   : > { %p4621_p10 = por %p4979_p8, %p54_p2  ;;  %p4231_p12 = scmp.lt.s32.totalorder %s4498_s14, 2 }
  0x31   : > { %p45_p11 = scmp.eq.s32.totalorder %s42_s26, 0  ;;  %s157_s23 = sand.u32 1, %s4486_s11  }
  0x32   : > { %s3219_s27 = sshll.u32 %s157_s23, 9  ;;  %s3490_s29 = sshll.u32 %s4494_s13, 13 }
  0x33   : > { %s4630_s28 = scalar_select %p45_p11, %s4486_s11, %s47_s16  }
  0x34   : > { %s4636_s4 = scalar_lea.hbm %s4965_s0, %s3490_s29  ;;  %s161_s18 = scalar_lea.vmem [#allocation3], %s3219_s27 }
  0x35   : > { %s169_s5 = sshll.u32 %s161_s18, 4  ;;  %p4642_p13 = pnand %p4231_p12, %p4615_p6  ;;  %s4638_s5 = int_to_ptr.vmem [resolvable:$true] %s169_s5 }
  0x36   : > { %s4646_s15 = scalar_lea.sflag [#allocation4], %s157_s23  ;;  %s4382_s16 = scalar_lea.hbm %s4636_s4, 8192 }
  0x37   : > { %p4383_p0 = scmp.ne.s32.totalorder %s4636_s4, %s4382_s16  ;;  %p4384_p3 = pneg %p4642_p13 }
  0x38   : > { %s4387_s22 = scalar_lea.hbm %s4965_s0, 16384  ;;  %p4388_p9 = scmp.lt.u32.totalorder %s4636_s4, %s4965_s0 }
  0x39   : > { %p4385_p5 = pnand %p4384_p3, %p4383_p0  ;;  %p4389_p1 = scmp.lt.u32.totalorder %s4387_s22, %s4382_s16 }
  0x3a   : > { %p4391_p4 = scmp.lt.u32.totalorder %s4382_s16, %s4636_s4 }
  0x3b   : > { %p4386_p7 = pneg %p4385_p5  ;;  %p4390_p2 = por %p4389_p1, %p4388_p9 }
  0x3d   : > { %p4392_p6 = por %p4391_p4, %p4390_p2 }
  0x3f   : > { %p4393_p8 = pnand %p4392_p6, %p4386_p7 }
  0x41   : > { %4396 = shalt.err (!%p4393_p8)
}
  0x42   : > { %s4397_s23 = scalar_lea.vmem %s4638_s5, 8192  ;;  %s4503_s3 = smov [#allocation3]  }
  0x43   : > { %p4398_p12 = scmp.ne.s32.totalorder %s4638_s5, %s4397_s23  ;;  %s4402_s18 = sshll.u32 %s4503_s3, 4  ;;  %s4403_s18 = int_to_ptr.vmem [resolvable:$false] %s4402_s18 }
  0x44   : > { %s4404_s26 = scalar_lea.vmem %s4403_s18, 16384  ;;  %p4405_p5 = scmp.lt.s32.totalorder %s4638_s5, %s4403_s18 }
  0x45   : > { %p4400_p11 = pnand %p4398_p12, %p4384_p3  ;;  %p4406_p9 = scmp.lt.s32.totalorder %s4404_s26, %s4397_s23 }
  0x47   : > { %p4401_p0 = pneg %p4400_p11  ;;  %p4407_p1 = por %p4406_p9, %p4405_p5 }
  0x49   : > { %p4408_p2 = pnand %p4407_p1, %p4401_p0 }
  0x4b   : > { %4411 = shalt.err (!%p4408_p2)
}
  0x4c   : > { %4225 = dma.hbm_to_vmem [thread:$0]  (!%p4642_p13), %s4636_s4, 8192, %s4638_s5, %s4646_s15, %s4501_s6, %s4501_s6, %s4502_s7  }
  0x4d   : > { %p4982_p3 = scmp.ne.s32.totalorder %s4976_s21, 0 }
  0x4e   : > { %s4680_s16 = sand.u32 (!%p4982_p3), 1, %s4482_s10   ;;  %p4983_p7 = scmp.ne.s32.totalorder (!%p4982_p3), %s4974_s19, 0 }
  0x4f   : > { %181 = sbr.rel (%p4982_p3) target bundleno = 460 (0x1cc), region = 28  ;;  %s3223_s27 = sshll.u32 (!%p4982_p3), %s4680_s16, 9 }
  0x50   : > { %s184_s22 = scalar_lea.sflag (!%p4982_p3), [#allocation4], %s4680_s16  ;;  %s4686_s8 = scalar_lea.vmem (!%p4982_p3), [#allocation3], %s3223_s27 }
  0x56   : > { %4465 = dma.done.wait (%p4983_p7), %s184_s22, 8192  }
  0x57   : > { %4467 = vsyncadd (%p4983_p7), %s184_s22, 4294959104  ;;  %p4984_p13 = scmp.ne.s32.totalorder %s4972_s17, 0 }
  0x59   : > { %4469 = dma.done.wait (%p4984_p13), [#allocation7], 384  }
  0x5a   : > { %4471 = vsyncadd (%p4984_p13), [#allocation7], 4294966912  ;;  %v4287_v0 = vld [vmem:[#allocation6] sm:$0xff]   ;;  %v4288_v1 = vld [vmem:[#allocation6 + $0x8] sm:$0xff]   ;;  %vm948_vm0 = vcmask 392192   ;;  %s4826_s17 = scalar_lea.vmem [#allocation8], %s3223_s27 }
  0x5b   : > { %4070 = vmatprep.subr.bf16.mxu0 %v4287_v0  ;;  %4204 = vmatprep.subr.bf16.mxu1 %v4287_v0  ;;  %v4289_v2 = vld [vmem:[#allocation6 + $0x10] sm:$0xff]   ;;  %v4290_v3 = vld [vmem:[%s4686_s8] sm:$0xff]   ;;  %v4292_v5 = vld [vmem:[%s4686_s8 + $0x8] sm:$0xff]   ;;  %s3619_s19 = sshll.u32 %s4490_s12, 13  ;;  %s3112_s21 = sshll.u32 %s4826_s17, 4  ;;  %s4912_s21 = int_to_ptr.vmem [resolvable:$true] %s3112_s21 }
  0x5c   : > { %4071 = vmatpush3.bf16.msra.mxu0 %v4287_v0  ;;  %4207 = vmatpush3.bf16.msra.mxu1 %v4287_v0  ;;  %v4291_v4 = vld [vmem:[%s4686_s8 + $0x100] sm:$0xff]   ;;  %v4293_v6 = vld [vmem:[%s4686_s8 + $0x108] sm:$0xff]   ;;  %v4294_v7 = vld [vmem:[%s4686_s8 + $0x10] sm:$0xff]   ;;  %s4910_s4 = scalar_lea.hbm %s4967_s2, %s3619_s19  ;;  %s3098_s5 = scalar_lea.sflag [#allocation5], %s4680_s16 }
  0x5d   : > { %4072 = vmatprep.subr.bf16.mxu0 %v4288_v1  ;;  %4205 = vmatprep.subr.bf16.mxu1 %v4288_v1  ;;  %v4295_v8 = vld [vmem:[%s4686_s8 + $0x110] sm:$0xff]   ;;  %v4296_v9 = vld [vmem:[%s4686_s8 + $0x18] sm:$0xff]   ;;  %v4298_v11 = vld [vmem:[%s4686_s8 + $0x20] sm:$0xff]   ;;  %s4412_s15 = scalar_lea.vmem %s4912_s21, 8192  ;;  %s4504_s12 = smov [#allocation8]  }
  0x5e   : > { %4076 = vmatprep.mubr.msk.bf16.mxu0 %vm948_vm0, %v4290_v3  ;;  %4140 = vmatprep.mubr.msk.bf16.mxu1 %vm948_vm0, %v4291_v4  ;;  %v4297_v10 = vld [vmem:[%s4686_s8 + $0x118] sm:$0xff]   ;;  %v4299_v12 = vld [vmem:[%s4686_s8 + $0x120] sm:$0xff]   ;;  %v4300_v13 = vld [vmem:[%s4686_s8 + $0x28] sm:$0xff]   ;;  %p4413_p4 = scmp.ne.s32.totalorder %s4912_s21, %s4412_s15  ;;  %s4416_s29 = sshll.u32 %s4504_s12, 4  ;;  %s4417_s29 = int_to_ptr.vmem [resolvable:$false] %s4416_s29 }
  0x5f   : > { %v4301_v14 = vld [vmem:[%s4686_s8 + $0x128] sm:$0xff]   ;;  %v4302_v15 = vld [vmem:[%s4686_s8 + $0x30] sm:$0xff]   ;;  %v4304_v17 = vld [vmem:[%s4686_s8 + $0x38] sm:$0xff]   ;;  %s4418_s30 = scalar_lea.vmem %s4417_s29, 16384  ;;  %p4419_p12 = scmp.lt.s32.totalorder %s4912_s21, %s4417_s29 }
  0x60   : > { %4073 = vmatpush3.bf16.msra.mxu0 %v4288_v1  ;;  %4208 = vmatpush3.bf16.msra.mxu1 %v4288_v1  ;;  %v4303_v16 = vld [vmem:[%s4686_s8 + $0x130] sm:$0xff]   ;;  %v4305_v18 = vld [vmem:[%s4686_s8 + $0x138] sm:$0xff]   ;;  %v4306_v19 = vld [vmem:[%s4686_s8 + $0x40] sm:$0xff]   ;;  %p4414_p6 = pnand %p4413_p4, %p4621_p10  ;;  %p4420_p11 = scmp.lt.s32.totalorder %s4418_s30, %s4412_s15 }
  0x61   : > { %4074 = vmatprep.subr.bf16.mxu0 %v4289_v2  ;;  %4206 = vmatprep.subr.bf16.mxu1 %v4289_v2  ;;  %v4307_v20 = vld [vmem:[%s4686_s8 + $0x140] sm:$0xff]   ;;  %v4308_v21 = vld [vmem:[%s4686_s8 + $0x48] sm:$0xff]   ;;  %v4310_v23 = vld [vmem:[%s4686_s8 + $0x50] sm:$0xff]  }
  0x62   : > { %v4309_v22 = vld [vmem:[%s4686_s8 + $0x148] sm:$0xff]   ;;  %v4311_v24 = vld [vmem:[%s4686_s8 + $0x150] sm:$0xff]   ;;  %v4312_v25 = vld [vmem:[%s4686_s8 + $0x58] sm:$0xff]   ;;  %p4415_p8 = pneg %p4414_p6  ;;  %p4421_p0 = por %p4420_p11, %p4419_p12 }
  0x63   : > { %v4313_v26 = vld [vmem:[%s4686_s8 + $0x158] sm:$0xff]   ;;  %v4314_v27 = vld [vmem:[%s4686_s8 + $0x60] sm:$0xff]   ;;  %v4316_v29 = vld [vmem:[%s4686_s8 + $0x68] sm:$0xff]  }
  0x64   : > { %4075 = vmatpush3.bf16.msra.mxu0 %v4289_v2  ;;  %4209 = vmatpush3.bf16.msra.mxu1 %v4289_v2  ;;  %v4315_v28 = vld [vmem:[%s4686_s8 + $0x160] sm:$0xff]   ;;  %v4317_v30 = vld [vmem:[%s4686_s8 + $0x168] sm:$0xff]   ;;  %v4318_v31 = vld [vmem:[%s4686_s8 + $0x70] sm:$0xff]   ;;  %p4422_p5 = pnand %p4421_p0, %p4415_p8 }
  0x65   : > { %v4319_v32 = vld [vmem:[%s4686_s8 + $0x170] sm:$0xff]   ;;  %v4320_v33 = vld [vmem:[%s4686_s8 + $0x78] sm:$0xff]   ;;  %v4322_v35 = vld [vmem:[%s4686_s8 + $0x80] sm:$0xff]  }
  0x66   : > { %v4321_v34 = vld [vmem:[%s4686_s8 + $0x178] sm:$0xff]   ;;  %v4323_v36 = vld [vmem:[%s4686_s8 + $0x180] sm:$0xff]   ;;  %v4324_v37 = vld [vmem:[%s4686_s8 + $0x88] sm:$0xff]  }
  0x67   : > { %4077 = vmatmul.mubr.msk.bf16.vlgmr.msra.gmra.mrb[0].mxu0 %vm948_vm0, %v4292_v5  ;;  %4141 = vmatmul.mubr.msk.bf16.vlgmr.msra.gmra.mrb[0].mxu1 %vm948_vm0, %v4293_v6  ;;  %v4325_v38 = vld [vmem:[%s4686_s8 + $0x188] sm:$0xff]   ;;  %v4326_v39 = vld [vmem:[%s4686_s8 + $0x90] sm:$0xff]   ;;  %v4328_v41 = vld [vmem:[%s4686_s8 + $0x98] sm:$0xff]  }
  0x68   : > { %4080 = vmatprep.mubr.msk.bf16.mxu0 %vm948_vm0, %v4294_v7  ;;  %4144 = vmatprep.mubr.msk.bf16.mxu1 %vm948_vm0, %v4295_v8  ;;  %v4327_v40 = vld [vmem:[%s4686_s8 + $0x190] sm:$0xff]   ;;  %v4329_v42 = vld [vmem:[%s4686_s8 + $0x198] sm:$0xff]   ;;  %v4330_v43 = vld [vmem:[%s4686_s8 + $0xa0] sm:$0xff]  }
  0x69   : > { %v4331_v44 = vld [vmem:[%s4686_s8 + $0x1a0] sm:$0xff]   ;;  %v4332_v45 = vld [vmem:[%s4686_s8 + $0xa8] sm:$0xff]   ;;  %v4334_v47 = vld [vmem:[%s4686_s8 + $0xb0] sm:$0xff]  }
  0x6a   : > { %v4333_v46 = vld [vmem:[%s4686_s8 + $0x1a8] sm:$0xff]   ;;  %v4335_v48 = vld [vmem:[%s4686_s8 + $0x1b0] sm:$0xff]   ;;  %v4336_v49 = vld [vmem:[%s4686_s8 + $0xb8] sm:$0xff]  }
  0x6b   : > { %v4337_v50 = vld [vmem:[%s4686_s8 + $0x1b8] sm:$0xff]   ;;  %v4338_v51 = vld [vmem:[%s4686_s8 + $0xc0] sm:$0xff]   ;;  %v4340_v53 = vld [vmem:[%s4686_s8 + $0xc8] sm:$0xff]  }
  0x6c   : > { %v4339_v52 = vld [vmem:[%s4686_s8 + $0x1c0] sm:$0xff]   ;;  %v4341_v54 = vld [vmem:[%s4686_s8 + $0x1c8] sm:$0xff]   ;;  %v4342_v55 = vld [vmem:[%s4686_s8 + $0xd0] sm:$0xff]  }
  0x6d   : > { %v4343_v56 = vld [vmem:[%s4686_s8 + $0x1d0] sm:$0xff]   ;;  %v4344_v57 = vld [vmem:[%s4686_s8 + $0xd8] sm:$0xff]   ;;  %v4346_v59 = vld [vmem:[%s4686_s8 + $0xe0] sm:$0xff]  }
  0x6e   : > { %v4345_v58 = vld [vmem:[%s4686_s8 + $0x1d8] sm:$0xff]   ;;  %v4347_v60 = vld [vmem:[%s4686_s8 + $0x1e0] sm:$0xff]   ;;  %v4348_v61 = vld [vmem:[%s4686_s8 + $0xe8] sm:$0xff]  }
  0x6f   : > { %4081 = vmatmul.mubr.msk.bf16.gmra.mrb[4].mxu0 %vm948_vm0, %v4296_v9  ;;  %4145 = vmatmul.mubr.msk.bf16.gmra.mrb[4].mxu1 %vm948_vm0, %v4297_v10  ;;  %v4349_v62 = vld [vmem:[%s4686_s8 + $0x1e8] sm:$0xff]   ;;  %v4350_v63 = vld [vmem:[%s4686_s8 + $0xf0] sm:$0xff]   ;;  %v4352_v1 = vld [vmem:[%s4686_s8 + $0xf8] sm:$0xff]  }
  0x70   : > { %4084 = vmatprep.mubr.msk.bf16.mxu0 %vm948_vm0, %v4298_v11  ;;  %4148 = vmatprep.mubr.msk.bf16.mxu1 %vm948_vm0, %v4299_v12  ;;  %v4351_v0 = vld [vmem:[%s4686_s8 + $0x1f0] sm:$0xff]   ;;  %v4353_v2 = vld [vmem:[%s4686_s8 + $0x1f8] sm:$0xff]  }
  0x77   : > { %4085 = vmatmul.mubr.msk.bf16.gmra.mrb[8].mxu0 %vm948_vm0, %v4300_v13  ;;  %4149 = vmatmul.mubr.msk.bf16.gmra.mrb[8].mxu1 %vm948_vm0, %v4301_v14 }
  0x78   : > { %4088 = vmatprep.mubr.msk.bf16.mxu0 %vm948_vm0, %v4302_v15  ;;  %4152 = vmatprep.mubr.msk.bf16.mxu1 %vm948_vm0, %v4303_v16 }
  0x7f   : > { %4089 = vmatmul.mubr.msk.bf16.gmra.mrb[12].mxu0 %vm948_vm0, %v4304_v17  ;;  %4153 = vmatmul.mubr.msk.bf16.gmra.mrb[12].mxu1 %vm948_vm0, %v4305_v18 }
  0x80   : > { %4092 = vmatprep.mubr.msk.bf16.mxu0 %vm948_vm0, %v4306_v19  ;;  %4156 = vmatprep.mubr.msk.bf16.mxu1 %vm948_vm0, %v4307_v20 }
  0x87   : > { %4093 = vmatmul.mubr.msk.bf16.gmra.mrb[16].mxu0 %vm948_vm0, %v4308_v21  ;;  %4157 = vmatmul.mubr.msk.bf16.gmra.mrb[16].mxu1 %vm948_vm0, %v4309_v22 }
  0x88   : > { %4096 = vmatprep.mubr.msk.bf16.mxu0 %vm948_vm0, %v4310_v23  ;;  %4160 = vmatprep.mubr.msk.bf16.mxu1 %vm948_vm0, %v4311_v24 }
  0x8f   : > { %4097 = vmatmul.mubr.msk.bf16.gmra.mrb[20].mxu0 %vm948_vm0, %v4312_v25  ;;  %4161 = vmatmul.mubr.msk.bf16.gmra.mrb[20].mxu1 %vm948_vm0, %v4313_v26 }
  0x90   : > { %4100 = vmatprep.mubr.msk.bf16.mxu0 %vm948_vm0, %v4314_v27  ;;  %4164 = vmatprep.mubr.msk.bf16.mxu1 %vm948_vm0, %v4315_v28 }
  0x97   : > { %4101 = vmatmul.mubr.msk.bf16.gmra.mrb[24].mxu0 %vm948_vm0, %v4316_v29  ;;  %4165 = vmatmul.mubr.msk.bf16.gmra.mrb[24].mxu1 %vm948_vm0, %v4317_v30 }
  0x98   : > { %4104 = vmatprep.mubr.msk.bf16.mxu0 %vm948_vm0, %v4318_v31  ;;  %4168 = vmatprep.mubr.msk.bf16.mxu1 %vm948_vm0, %v4319_v32 }
  0x9f   : > { %4105 = vmatmul.mubr.msk.bf16.gmra.mrb[28].mxu0 %vm948_vm0, %v4320_v33  ;;  %4169 = vmatmul.mubr.msk.bf16.gmra.mrb[28].mxu1 %vm948_vm0, %v4321_v34 }
  0xa0   : > { %4108 = vmatprep.mubr.msk.bf16.mxu0 %vm948_vm0, %v4322_v35  ;;  %4172 = vmatprep.mubr.msk.bf16.mxu1 %vm948_vm0, %v4323_v36 }
  0xa7   : > { %4109 = vmatmul.mubr.msk.bf16.gmra.mrb[32].mxu0 %vm948_vm0, %v4324_v37  ;;  %4173 = vmatmul.mubr.msk.bf16.gmra.mrb[32].mxu1 %vm948_vm0, %v4325_v38 }
  0xa8   : > { %4112 = vmatprep.mubr.msk.bf16.mxu0 %vm948_vm0, %v4326_v39  ;;  %4176 = vmatprep.mubr.msk.bf16.mxu1 %vm948_vm0, %v4327_v40 }
  0xaf   : > { %4113 = vmatmul.mubr.msk.bf16.gmra.mrb[36].mxu0 %vm948_vm0, %v4328_v41  ;;  %4177 = vmatmul.mubr.msk.bf16.gmra.mrb[36].mxu1 %vm948_vm0, %v4329_v42 }
  0xb0   : > { %4116 = vmatprep.mubr.msk.bf16.mxu0 %vm948_vm0, %v4330_v43  ;;  %4180 = vmatprep.mubr.msk.bf16.mxu1 %vm948_vm0, %v4331_v44 }
  0xb7   : > { %4117 = vmatmul.mubr.msk.bf16.gmra.mrb[40].mxu0 %vm948_vm0, %v4332_v45  ;;  %4181 = vmatmul.mubr.msk.bf16.gmra.mrb[40].mxu1 %vm948_vm0, %v4333_v46 }
  0xb8   : > { %4120 = vmatprep.mubr.msk.bf16.mxu0 %vm948_vm0, %v4334_v47  ;;  %4184 = vmatprep.mubr.msk.bf16.mxu1 %vm948_vm0, %v4335_v48 }
  0xbf   : > { %4121 = vmatmul.mubr.msk.bf16.gmra.mrb[44].mxu0 %vm948_vm0, %v4336_v49  ;;  %4185 = vmatmul.mubr.msk.bf16.gmra.mrb[44].mxu1 %vm948_vm0, %v4337_v50 }
  0xc0   : > { %4124 = vmatprep.mubr.msk.bf16.mxu0 %vm948_vm0, %v4338_v51  ;;  %4188 = vmatprep.mubr.msk.bf16.mxu1 %vm948_vm0, %v4339_v52 }
  0xc7   : > { %4125 = vmatmul.mubr.msk.bf16.gmra.mrb[48].mxu0 %vm948_vm0, %v4340_v53  ;;  %4189 = vmatmul.mubr.msk.bf16.gmra.mrb[48].mxu1 %vm948_vm0, %v4341_v54 }
  0xc8   : > { %4128 = vmatprep.mubr.msk.bf16.mxu0 %vm948_vm0, %v4342_v55  ;;  %4192 = vmatprep.mubr.msk.bf16.mxu1 %vm948_vm0, %v4343_v56 }
  0xcf   : > { %4129 = vmatmul.mubr.msk.bf16.gmra.mrb[52].mxu0 %vm948_vm0, %v4344_v57  ;;  %4193 = vmatmul.mubr.msk.bf16.gmra.mrb[52].mxu1 %vm948_vm0, %v4345_v58 }
  0xd0   : > { %4132 = vmatprep.mubr.msk.bf16.mxu0 %vm948_vm0, %v4346_v59  ;;  %4196 = vmatprep.mubr.msk.bf16.mxu1 %vm948_vm0, %v4347_v60 }
  0xd7   : > { %4133 = vmatmul.mubr.msk.bf16.gmra.mrb[56].mxu0 %vm948_vm0, %v4348_v61  ;;  %4197 = vmatmul.mubr.msk.bf16.gmra.mrb[56].mxu1 %vm948_vm0, %v4349_v62 }
  0xd8   : > { %4136 = vmatprep.mubr.msk.bf16.mxu0 %vm948_vm0, %v4350_v63  ;;  %4200 = vmatprep.mubr.msk.bf16.mxu1 %vm948_vm0, %v4351_v0 }
  0xdf   : > { %4137 = vmatmul.mubr.msk.bf16.gmra.mrb[60].mxu0 %vm948_vm0, %v4352_v1  ;;  %4201 = vmatmul.mubr.msk.bf16.gmra.mrb[60].mxu1 %vm948_vm0, %v4353_v2 }
 0x13a   : > { %v4078_v3 = vpop.f32.mrb[0].mxu0  ;;  %v4142_v4 = vpop.f32.mrb[0].mxu1 }
 0x13b   : > { %vm2075_vm1 = vcmp.ge.f32.partialorder %v4078_v3, 0.0  ;;  %v2203_v5 = vmul.f32 0.2, %v4078_v3  ;;  %v2267_v6 = vmul.f32 0.2, %v4142_v4  ;;  %vm2139_vm2 = vcmp.ge.f32.partialorder %v4142_v4, 0.0 }
 0x13c   : > { %v1175_v7 = vpop.f32.mrb[1].mxu0  ;;  %v1431_v8 = vpop.f32.mrb[1].mxu1 }
 0x13d   : > { %v2201_v9 = vmul.f32 0.2, %v1175_v7  ;;  %v4079_v10 = vpop.f32.mrb[2].mxu0  ;;  %v4143_v11 = vpop.f32.mrb[2].mxu1  ;;  %v2331_v12 = vsel %vm2075_vm1, %v4078_v3, %v2203_v5  ;;  %v2265_v13 = vmul.f32 0.2, %v1431_v8  ;;  %v2395_v15 = vsel %vm2139_vm2, %v4142_v4, %v2267_v6 }
 0x13e   : > { %vm2076_vm3 = vcmp.ge.f32.partialorder %v4079_v10, 0.0  ;;  %v2204_v14 = vmul.f32 0.2, %v4079_v10  ;;  %vm2073_vm4 = vcmp.ge.f32.partialorder %v1175_v7, 0.0  ;;  %vm2140_vm5 = vcmp.ge.f32.partialorder %v4143_v11, 0.0  ;;  %v1178_v17 = vpop.f32.mrb[3].mxu0 }
 0x13f   : > { %v2268_v16 = vmul.f32 0.2, %v4143_v11  ;;  %v1434_v18 = vpop.f32.mrb[3].mxu1  ;;  %vm2137_vm6 = vcmp.ge.f32.partialorder %v1431_v8, 0.0  ;;  %vm2074_vm7 = vcmp.ge.f32.partialorder %v1178_v17, 0.0  ;;  %v2329_v24 = vsel %vm2073_vm4, %v1175_v7, %v2201_v9 }
 0x140   : > { %v2332_v19 = vsel %vm2076_vm3, %v4079_v10, %v2204_v14  ;;  %v2202_v20 = vmul.f32 0.2, %v1178_v17  ;;  %vm2138_vm8 = vcmp.ge.f32.partialorder %v1434_v18, 0.0  ;;  %v2266_v23 = vmul.f32 0.2, %v1434_v18 }
 0x141   : > { %v3628_v21 = vpack.c.bf16 %v2332_v19, %v2331_v12  ;;  %v2396_v22 = vsel %vm2140_vm5, %v4143_v11, %v2268_v16  ;;  %v2393_v29 = vsel %vm2137_vm6, %v1431_v8, %v2265_v13 }
 0x142   : > { %v3788_v25 = vpack.c.bf16 %v2396_v22, %v2395_v15  ;;  %v2330_v26 = vsel %vm2074_vm7, %v1178_v17, %v2202_v20  ;;  %v4082_v27 = vpop.f32.mrb[4].mxu0  ;;  %v4146_v28 = vpop.f32.mrb[4].mxu1  ;;  %v2394_v31 = vsel %vm2138_vm8, %v1434_v18, %v2266_v23 }
 0x143   : > { %3940 = vst [vmem:[%s4826_s17 + $0x8] sm:$0xff] %v3628_v21   ;;  %v3623_v30 = vpack.c.bf16 %v2330_v26, %v2329_v24  ;;  %v2207_v32 = vmul.f32 0.2, %v4082_v27  ;;  %v1191_v33 = vpop.f32.mrb[5].mxu0  ;;  %v1447_v34 = vpop.f32.mrb[5].mxu1  ;;  %v3783_v35 = vpack.c.bf16 %v2394_v31, %v2393_v29  ;;  %vm2079_vm9 = vcmp.ge.f32.partialorder %v4082_v27, 0.0 }
 0x144   : > { %3972 = vst [vmem:[%s4826_s17 + $0x108] sm:$0xff] %v3788_v25   ;;  %v2271_v36 = vmul.f32 0.2, %v4146_v28  ;;  %v4083_v37 = vpop.f32.mrb[6].mxu0  ;;  %v4147_v38 = vpop.f32.mrb[6].mxu1  ;;  %vm2143_vm10 = vcmp.ge.f32.partialorder %v4146_v28, 0.0 }
 0x145   : > { %3624 = vst [vmem:[%s4826_s17] sm:$0xff] %v3623_v30   ;;  %v2205_v39 = vmul.f32 0.2, %v1191_v33  ;;  %v2269_v40 = vmul.f32 0.2, %v1447_v34  ;;  %v1194_v41 = vpop.f32.mrb[7].mxu0  ;;  %3971 = vst [vmem:[%s4826_s17 + $0x100] sm:$0xff] %v3783_v35   ;;  %v2335_v44 = vsel %vm2079_vm9, %v4082_v27, %v2207_v32 }
 0x146   : > { %vm2077_vm11 = vcmp.ge.f32.partialorder %v1191_v33, 0.0  ;;  %vm2080_vm12 = vcmp.ge.f32.partialorder %v4083_v37, 0.0  ;;  %v2208_v42 = vmul.f32 0.2, %v4083_v37  ;;  %vm2144_vm13 = vcmp.ge.f32.partialorder %v4147_v38, 0.0  ;;  %v1450_v43 = vpop.f32.mrb[7].mxu1 }
 0x147   : > { %vm2141_vm14 = vcmp.ge.f32.partialorder %v1447_v34, 0.0  ;;  %v2272_v45 = vmul.f32 0.2, %v4147_v38  ;;  %vm2078_vm15 = vcmp.ge.f32.partialorder %v1194_v41, 0.0  ;;  %v2206_v47 = vmul.f32 0.2, %v1194_v41 }
 0x148   : > { %v2336_v46 = vsel %vm2080_vm12, %v4083_v37, %v2208_v42  ;;  %vm2142_vm0 = vcmp.ge.f32.partialorder %v1450_v43, 0.0  ;;  %v2270_v48 = vmul.f32 0.2, %v1450_v43  ;;  %v2399_v49 = vsel %vm2143_vm10, %v4146_v28, %v2271_v36 }
 0x149   : > { %v2333_v50 = vsel %vm2077_vm11, %v1191_v33, %v2205_v39  ;;  %v3638_v51 = vpack.c.bf16 %v2336_v46, %v2335_v44  ;;  %v2400_v52 = vsel %vm2144_vm13, %v4147_v38, %v2272_v45  ;;  %v2397_v53 = vsel %vm2141_vm14, %v1447_v34, %v2269_v40 }
 0x14a   : > { %v3798_v54 = vpack.c.bf16 %v2400_v52, %v2399_v49  ;;  %v2334_v55 = vsel %vm2078_vm15, %v1194_v41, %v2206_v47  ;;  %v2398_v56 = vsel %vm2142_vm0, %v1450_v43, %v2270_v48  ;;  %v4086_v57 = vpop.f32.mrb[8].mxu0  ;;  %v4150_v58 = vpop.f32.mrb[8].mxu1 }
 0x14b   : > { %3942 = vst [vmem:[%s4826_s17 + $0x18] sm:$0xff] %v3638_v51   ;;  %v3633_v59 = vpack.c.bf16 %v2334_v55, %v2333_v50  ;;  %v3793_v60 = vpack.c.bf16 %v2398_v56, %v2397_v53  ;;  %vm2083_vm1 = vcmp.ge.f32.partialorder %v4086_v57, 0.0  ;;  %v2211_v61 = vmul.f32 0.2, %v4086_v57  ;;  %v1207_v62 = vpop.f32.mrb[9].mxu0  ;;  %v1463_v63 = vpop.f32.mrb[9].mxu1 }
 0x14c   : > { %3974 = vst [vmem:[%s4826_s17 + $0x118] sm:$0xff] %v3798_v54   ;;  %vm2147_vm2 = vcmp.ge.f32.partialorder %v4150_v58, 0.0  ;;  %v2275_v0 = vmul.f32 0.2, %v4150_v58  ;;  %v2209_v1 = vmul.f32 0.2, %v1207_v62 }
 0x14d   : > { %3941 = vst [vmem:[%s4826_s17 + $0x10] sm:$0xff] %v3633_v59   ;;  %3973 = vst [vmem:[%s4826_s17 + $0x110] sm:$0xff] %v3793_v60   ;;  %v2273_v2 = vmul.f32 0.2, %v1463_v63  ;;  %v4087_v3 = vpop.f32.mrb[10].mxu0  ;;  %v4151_v4 = vpop.f32.mrb[10].mxu1  ;;  %v2339_v5 = vsel %vm2083_vm1, %v4086_v57, %v2211_v61 }
 0x14e   : > { %vm2081_vm3 = vcmp.ge.f32.partialorder %v1207_v62, 0.0  ;;  %vm2084_vm4 = vcmp.ge.f32.partialorder %v4087_v3, 0.0  ;;  %v2212_v6 = vmul.f32 0.2, %v4087_v3  ;;  %v1210_v7 = vpop.f32.mrb[11].mxu0  ;;  %v1466_v8 = vpop.f32.mrb[11].mxu1  ;;  %v2403_v13 = vsel %vm2147_vm2, %v4150_v58, %v2275_v0 }
 0x14f   : > { %vm2145_vm5 = vcmp.ge.f32.partialorder %v1463_v63, 0.0  ;;  %vm2148_vm6 = vcmp.ge.f32.partialorder %v4151_v4, 0.0  ;;  %v2276_v9 = vmul.f32 0.2, %v4151_v4  ;;  %vm2082_vm7 = vcmp.ge.f32.partialorder %v1210_v7, 0.0 }
 0x150   : > { %v2340_v10 = vsel %vm2084_vm4, %v4087_v3, %v2212_v6  ;;  %v2210_v11 = vmul.f32 0.2, %v1210_v7  ;;  %vm2146_vm8 = vcmp.ge.f32.partialorder %v1466_v8, 0.0  ;;  %v2274_v12 = vmul.f32 0.2, %v1466_v8 }
 0x151   : > { %v2337_v14 = vsel %vm2081_vm3, %v1207_v62, %v2209_v1  ;;  %v3648_v15 = vpack.c.bf16 %v2340_v10, %v2339_v5  ;;  %v2404_v16 = vsel %vm2148_vm6, %v4151_v4, %v2276_v9  ;;  %v2401_v17 = vsel %vm2145_vm5, %v1463_v63, %v2273_v2 }
 0x152   : > { %v3808_v18 = vpack.c.bf16 %v2404_v16, %v2403_v13  ;;  %v2338_v19 = vsel %vm2082_vm7, %v1210_v7, %v2210_v11  ;;  %v2402_v20 = vsel %vm2146_vm8, %v1466_v8, %v2274_v12  ;;  %v4090_v21 = vpop.f32.mrb[12].mxu0  ;;  %v4154_v22 = vpop.f32.mrb[12].mxu1 }
 0x153   : > { %3944 = vst [vmem:[%s4826_s17 + $0x28] sm:$0xff] %v3648_v15   ;;  %v3643_v23 = vpack.c.bf16 %v2338_v19, %v2337_v14  ;;  %v3803_v24 = vpack.c.bf16 %v2402_v20, %v2401_v17  ;;  %vm2087_vm9 = vcmp.ge.f32.partialorder %v4090_v21, 0.0  ;;  %v2215_v25 = vmul.f32 0.2, %v4090_v21  ;;  %v1223_v26 = vpop.f32.mrb[13].mxu0  ;;  %v1479_v27 = vpop.f32.mrb[13].mxu1 }
 0x154   : > { %3976 = vst [vmem:[%s4826_s17 + $0x128] sm:$0xff] %v3808_v18   ;;  %vm2151_vm10 = vcmp.ge.f32.partialorder %v4154_v22, 0.0  ;;  %v2279_v28 = vmul.f32 0.2, %v4154_v22  ;;  %v2213_v29 = vmul.f32 0.2, %v1223_v26 }
 0x155   : > { %3943 = vst [vmem:[%s4826_s17 + $0x20] sm:$0xff] %v3643_v23   ;;  %3975 = vst [vmem:[%s4826_s17 + $0x120] sm:$0xff] %v3803_v24   ;;  %v2277_v30 = vmul.f32 0.2, %v1479_v27  ;;  %v4091_v31 = vpop.f32.mrb[14].mxu0  ;;  %v4155_v32 = vpop.f32.mrb[14].mxu1  ;;  %v2343_v33 = vsel %vm2087_vm9, %v4090_v21, %v2215_v25 }
 0x156   : > { %vm2085_vm11 = vcmp.ge.f32.partialorder %v1223_v26, 0.0  ;;  %vm2088_vm12 = vcmp.ge.f32.partialorder %v4091_v31, 0.0  ;;  %v2216_v34 = vmul.f32 0.2, %v4091_v31  ;;  %v1226_v35 = vpop.f32.mrb[15].mxu0  ;;  %v1482_v36 = vpop.f32.mrb[15].mxu1  ;;  %v2407_v41 = vsel %vm2151_vm10, %v4154_v22, %v2279_v28 }
 0x157   : > { %vm2149_vm13 = vcmp.ge.f32.partialorder %v1479_v27, 0.0  ;;  %vm2152_vm14 = vcmp.ge.f32.partialorder %v4155_v32, 0.0  ;;  %v2280_v37 = vmul.f32 0.2, %v4155_v32  ;;  %vm2086_vm15 = vcmp.ge.f32.partialorder %v1226_v35, 0.0 }
 0x158   : > { %v2344_v38 = vsel %vm2088_vm12, %v4091_v31, %v2216_v34  ;;  %v2214_v39 = vmul.f32 0.2, %v1226_v35  ;;  %vm2150_vm0 = vcmp.ge.f32.partialorder %v1482_v36, 0.0  ;;  %v2278_v40 = vmul.f32 0.2, %v1482_v36 }
 0x159   : > { %v2341_v42 = vsel %vm2085_vm11, %v1223_v26, %v2213_v29  ;;  %v3658_v43 = vpack.c.bf16 %v2344_v38, %v2343_v33  ;;  %v2408_v44 = vsel %vm2152_vm14, %v4155_v32, %v2280_v37  ;;  %v2405_v45 = vsel %vm2149_vm13, %v1479_v27, %v2277_v30 }
 0x15a   : > { %v3818_v46 = vpack.c.bf16 %v2408_v44, %v2407_v41  ;;  %v2342_v47 = vsel %vm2086_vm15, %v1226_v35, %v2214_v39  ;;  %v2406_v48 = vsel %vm2150_vm0, %v1482_v36, %v2278_v40  ;;  %v4094_v49 = vpop.f32.mrb[16].mxu0  ;;  %v4158_v50 = vpop.f32.mrb[16].mxu1 }
 0x15b   : > { %3946 = vst [vmem:[%s4826_s17 + $0x38] sm:$0xff] %v3658_v43   ;;  %v3653_v51 = vpack.c.bf16 %v2342_v47, %v2341_v42  ;;  %v3813_v52 = vpack.c.bf16 %v2406_v48, %v2405_v45  ;;  %vm2091_vm1 = vcmp.ge.f32.partialorder %v4094_v49, 0.0  ;;  %v2219_v53 = vmul.f32 0.2, %v4094_v49  ;;  %v1239_v54 = vpop.f32.mrb[17].mxu0  ;;  %v1495_v55 = vpop.f32.mrb[17].mxu1 }
 0x15c   : > { %3978 = vst [vmem:[%s4826_s17 + $0x138] sm:$0xff] %v3818_v46   ;;  %vm2155_vm2 = vcmp.ge.f32.partialorder %v4158_v50, 0.0  ;;  %v2283_v56 = vmul.f32 0.2, %v4158_v50  ;;  %v2217_v57 = vmul.f32 0.2, %v1239_v54 }
 0x15d   : > { %3945 = vst [vmem:[%s4826_s17 + $0x30] sm:$0xff] %v3653_v51   ;;  %3977 = vst [vmem:[%s4826_s17 + $0x130] sm:$0xff] %v3813_v52   ;;  %v2281_v58 = vmul.f32 0.2, %v1495_v55  ;;  %v4095_v59 = vpop.f32.mrb[18].mxu0  ;;  %v4159_v60 = vpop.f32.mrb[18].mxu1  ;;  %v2347_v61 = vsel %vm2091_vm1, %v4094_v49, %v2219_v53 }
 0x15e   : > { %vm2089_vm3 = vcmp.ge.f32.partialorder %v1239_v54, 0.0  ;;  %vm2092_vm4 = vcmp.ge.f32.partialorder %v4095_v59, 0.0  ;;  %v2220_v62 = vmul.f32 0.2, %v4095_v59  ;;  %v1242_v63 = vpop.f32.mrb[19].mxu0  ;;  %v1498_v0 = vpop.f32.mrb[19].mxu1  ;;  %v2411_v5 = vsel %vm2155_vm2, %v4158_v50, %v2283_v56 }
 0x15f   : > { %vm2153_vm5 = vcmp.ge.f32.partialorder %v1495_v55, 0.0  ;;  %vm2156_vm6 = vcmp.ge.f32.partialorder %v4159_v60, 0.0  ;;  %v2284_v1 = vmul.f32 0.2, %v4159_v60  ;;  %vm2090_vm7 = vcmp.ge.f32.partialorder %v1242_v63, 0.0 }
 0x160   : > { %v2348_v2 = vsel %vm2092_vm4, %v4095_v59, %v2220_v62  ;;  %v2218_v3 = vmul.f32 0.2, %v1242_v63  ;;  %vm2154_vm8 = vcmp.ge.f32.partialorder %v1498_v0, 0.0  ;;  %v2282_v4 = vmul.f32 0.2, %v1498_v0 }
 0x161   : > { %v2345_v6 = vsel %vm2089_vm3, %v1239_v54, %v2217_v57  ;;  %v3668_v7 = vpack.c.bf16 %v2348_v2, %v2347_v61  ;;  %v2412_v8 = vsel %vm2156_vm6, %v4159_v60, %v2284_v1  ;;  %v2409_v9 = vsel %vm2153_vm5, %v1495_v55, %v2281_v58 }
 0x162   : > { %v3828_v10 = vpack.c.bf16 %v2412_v8, %v2411_v5  ;;  %v2346_v11 = vsel %vm2090_vm7, %v1242_v63, %v2218_v3  ;;  %v2410_v12 = vsel %vm2154_vm8, %v1498_v0, %v2282_v4  ;;  %v4098_v13 = vpop.f32.mrb[20].mxu0  ;;  %v4162_v14 = vpop.f32.mrb[20].mxu1 }
 0x163   : > { %3948 = vst [vmem:[%s4826_s17 + $0x48] sm:$0xff] %v3668_v7   ;;  %v3663_v15 = vpack.c.bf16 %v2346_v11, %v2345_v6  ;;  %v3823_v16 = vpack.c.bf16 %v2410_v12, %v2409_v9  ;;  %vm2095_vm9 = vcmp.ge.f32.partialorder %v4098_v13, 0.0  ;;  %v2223_v17 = vmul.f32 0.2, %v4098_v13  ;;  %v1255_v18 = vpop.f32.mrb[21].mxu0  ;;  %v1511_v19 = vpop.f32.mrb[21].mxu1 }
 0x164   : > { %3980 = vst [vmem:[%s4826_s17 + $0x148] sm:$0xff] %v3828_v10   ;;  %vm2159_vm10 = vcmp.ge.f32.partialorder %v4162_v14, 0.0  ;;  %v2287_v20 = vmul.f32 0.2, %v4162_v14  ;;  %v2221_v21 = vmul.f32 0.2, %v1255_v18 }
 0x165   : > { %3947 = vst [vmem:[%s4826_s17 + $0x40] sm:$0xff] %v3663_v15   ;;  %3979 = vst [vmem:[%s4826_s17 + $0x140] sm:$0xff] %v3823_v16   ;;  %v2285_v22 = vmul.f32 0.2, %v1511_v19  ;;  %v4099_v23 = vpop.f32.mrb[22].mxu0  ;;  %v4163_v24 = vpop.f32.mrb[22].mxu1  ;;  %v2351_v25 = vsel %vm2095_vm9, %v4098_v13, %v2223_v17 }
 0x166   : > { %vm2093_vm11 = vcmp.ge.f32.partialorder %v1255_v18, 0.0  ;;  %vm2096_vm12 = vcmp.ge.f32.partialorder %v4099_v23, 0.0  ;;  %v2224_v26 = vmul.f32 0.2, %v4099_v23  ;;  %v1258_v27 = vpop.f32.mrb[23].mxu0  ;;  %v1514_v28 = vpop.f32.mrb[23].mxu1  ;;  %v2415_v33 = vsel %vm2159_vm10, %v4162_v14, %v2287_v20 }
 0x167   : > { %vm2157_vm13 = vcmp.ge.f32.partialorder %v1511_v19, 0.0  ;;  %vm2160_vm14 = vcmp.ge.f32.partialorder %v4163_v24, 0.0  ;;  %v2288_v29 = vmul.f32 0.2, %v4163_v24  ;;  %vm2094_vm15 = vcmp.ge.f32.partialorder %v1258_v27, 0.0 }
 0x168   : > { %v2352_v30 = vsel %vm2096_vm12, %v4099_v23, %v2224_v26  ;;  %v2222_v31 = vmul.f32 0.2, %v1258_v27  ;;  %vm2158_vm0 = vcmp.ge.f32.partialorder %v1514_v28, 0.0  ;;  %v2286_v32 = vmul.f32 0.2, %v1514_v28 }
 0x169   : > { %v2349_v34 = vsel %vm2093_vm11, %v1255_v18, %v2221_v21  ;;  %v3678_v35 = vpack.c.bf16 %v2352_v30, %v2351_v25  ;;  %v2416_v36 = vsel %vm2160_vm14, %v4163_v24, %v2288_v29  ;;  %v2413_v37 = vsel %vm2157_vm13, %v1511_v19, %v2285_v22 }
 0x16a   : > { %v3838_v38 = vpack.c.bf16 %v2416_v36, %v2415_v33  ;;  %v2350_v39 = vsel %vm2094_vm15, %v1258_v27, %v2222_v31  ;;  %v2414_v40 = vsel %vm2158_vm0, %v1514_v28, %v2286_v32  ;;  %v4102_v41 = vpop.f32.mrb[24].mxu0  ;;  %v4166_v42 = vpop.f32.mrb[24].mxu1 }
 0x16b   : > { %3950 = vst [vmem:[%s4826_s17 + $0x58] sm:$0xff] %v3678_v35   ;;  %v3673_v43 = vpack.c.bf16 %v2350_v39, %v2349_v34  ;;  %v3833_v44 = vpack.c.bf16 %v2414_v40, %v2413_v37  ;;  %vm2099_vm1 = vcmp.ge.f32.partialorder %v4102_v41, 0.0  ;;  %v2227_v45 = vmul.f32 0.2, %v4102_v41  ;;  %v1271_v46 = vpop.f32.mrb[25].mxu0  ;;  %v1527_v47 = vpop.f32.mrb[25].mxu1 }
 0x16c   : > { %3982 = vst [vmem:[%s4826_s17 + $0x158] sm:$0xff] %v3838_v38   ;;  %vm2163_vm2 = vcmp.ge.f32.partialorder %v4166_v42, 0.0  ;;  %v2291_v48 = vmul.f32 0.2, %v4166_v42  ;;  %v2225_v49 = vmul.f32 0.2, %v1271_v46 }
 0x16d   : > { %3949 = vst [vmem:[%s4826_s17 + $0x50] sm:$0xff] %v3673_v43   ;;  %3981 = vst [vmem:[%s4826_s17 + $0x150] sm:$0xff] %v3833_v44   ;;  %v2289_v50 = vmul.f32 0.2, %v1527_v47  ;;  %v4103_v51 = vpop.f32.mrb[26].mxu0  ;;  %v4167_v52 = vpop.f32.mrb[26].mxu1  ;;  %v2355_v53 = vsel %vm2099_vm1, %v4102_v41, %v2227_v45 }
 0x16e   : > { %vm2097_vm3 = vcmp.ge.f32.partialorder %v1271_v46, 0.0  ;;  %vm2100_vm4 = vcmp.ge.f32.partialorder %v4103_v51, 0.0  ;;  %v2228_v54 = vmul.f32 0.2, %v4103_v51  ;;  %v1274_v55 = vpop.f32.mrb[27].mxu0  ;;  %v1530_v56 = vpop.f32.mrb[27].mxu1  ;;  %v2419_v61 = vsel %vm2163_vm2, %v4166_v42, %v2291_v48 }
 0x16f   : > { %vm2161_vm5 = vcmp.ge.f32.partialorder %v1527_v47, 0.0  ;;  %vm2164_vm6 = vcmp.ge.f32.partialorder %v4167_v52, 0.0  ;;  %v2292_v57 = vmul.f32 0.2, %v4167_v52  ;;  %vm2098_vm7 = vcmp.ge.f32.partialorder %v1274_v55, 0.0 }
 0x170   : > { %v2356_v58 = vsel %vm2100_vm4, %v4103_v51, %v2228_v54  ;;  %v2226_v59 = vmul.f32 0.2, %v1274_v55  ;;  %vm2162_vm8 = vcmp.ge.f32.partialorder %v1530_v56, 0.0  ;;  %v2290_v60 = vmul.f32 0.2, %v1530_v56 }
 0x171   : > { %v2353_v62 = vsel %vm2097_vm3, %v1271_v46, %v2225_v49  ;;  %v3688_v63 = vpack.c.bf16 %v2356_v58, %v2355_v53  ;;  %v2420_v0 = vsel %vm2164_vm6, %v4167_v52, %v2292_v57  ;;  %v2417_v1 = vsel %vm2161_vm5, %v1527_v47, %v2289_v50 }
 0x172   : > { %v3848_v2 = vpack.c.bf16 %v2420_v0, %v2419_v61  ;;  %v2354_v3 = vsel %vm2098_vm7, %v1274_v55, %v2226_v59  ;;  %v2418_v4 = vsel %vm2162_vm8, %v1530_v56, %v2290_v60  ;;  %v4106_v5 = vpop.f32.mrb[28].mxu0  ;;  %v4170_v6 = vpop.f32.mrb[28].mxu1 }
 0x173   : > { %3952 = vst [vmem:[%s4826_s17 + $0x68] sm:$0xff] %v3688_v63   ;;  %v3683_v7 = vpack.c.bf16 %v2354_v3, %v2353_v62  ;;  %v3843_v8 = vpack.c.bf16 %v2418_v4, %v2417_v1  ;;  %vm2103_vm9 = vcmp.ge.f32.partialorder %v4106_v5, 0.0  ;;  %v2231_v9 = vmul.f32 0.2, %v4106_v5  ;;  %v1287_v10 = vpop.f32.mrb[29].mxu0  ;;  %v1543_v11 = vpop.f32.mrb[29].mxu1 }
 0x174   : > { %3984 = vst [vmem:[%s4826_s17 + $0x168] sm:$0xff] %v3848_v2   ;;  %vm2167_vm10 = vcmp.ge.f32.partialorder %v4170_v6, 0.0  ;;  %v2295_v12 = vmul.f32 0.2, %v4170_v6  ;;  %v2229_v13 = vmul.f32 0.2, %v1287_v10 }
 0x175   : > { %3951 = vst [vmem:[%s4826_s17 + $0x60] sm:$0xff] %v3683_v7   ;;  %3983 = vst [vmem:[%s4826_s17 + $0x160] sm:$0xff] %v3843_v8   ;;  %v2293_v14 = vmul.f32 0.2, %v1543_v11  ;;  %v4107_v15 = vpop.f32.mrb[30].mxu0  ;;  %v4171_v16 = vpop.f32.mrb[30].mxu1  ;;  %v2359_v17 = vsel %vm2103_vm9, %v4106_v5, %v2231_v9 }
 0x176   : > { %vm2101_vm11 = vcmp.ge.f32.partialorder %v1287_v10, 0.0  ;;  %vm2104_vm12 = vcmp.ge.f32.partialorder %v4107_v15, 0.0  ;;  %v2232_v18 = vmul.f32 0.2, %v4107_v15  ;;  %v1290_v19 = vpop.f32.mrb[31].mxu0  ;;  %v1546_v20 = vpop.f32.mrb[31].mxu1  ;;  %v2423_v25 = vsel %vm2167_vm10, %v4170_v6, %v2295_v12 }
 0x177   : > { %vm2165_vm13 = vcmp.ge.f32.partialorder %v1543_v11, 0.0  ;;  %vm2168_vm14 = vcmp.ge.f32.partialorder %v4171_v16, 0.0  ;;  %v2296_v21 = vmul.f32 0.2, %v4171_v16  ;;  %vm2102_vm15 = vcmp.ge.f32.partialorder %v1290_v19, 0.0 }
 0x178   : > { %v2360_v22 = vsel %vm2104_vm12, %v4107_v15, %v2232_v18  ;;  %v2230_v23 = vmul.f32 0.2, %v1290_v19  ;;  %vm2166_vm0 = vcmp.ge.f32.partialorder %v1546_v20, 0.0  ;;  %v2294_v24 = vmul.f32 0.2, %v1546_v20 }
 0x179   : > { %v2357_v26 = vsel %vm2101_vm11, %v1287_v10, %v2229_v13  ;;  %v3698_v27 = vpack.c.bf16 %v2360_v22, %v2359_v17  ;;  %v2424_v28 = vsel %vm2168_vm14, %v4171_v16, %v2296_v21  ;;  %v2421_v29 = vsel %vm2165_vm13, %v1543_v11, %v2293_v14 }
 0x17a   : > { %v3858_v30 = vpack.c.bf16 %v2424_v28, %v2423_v25  ;;  %v2358_v31 = vsel %vm2102_vm15, %v1290_v19, %v2230_v23  ;;  %v2422_v32 = vsel %vm2166_vm0, %v1546_v20, %v2294_v24  ;;  %v4110_v33 = vpop.f32.mrb[32].mxu0  ;;  %v4174_v34 = vpop.f32.mrb[32].mxu1 }
 0x17b   : > { %3954 = vst [vmem:[%s4826_s17 + $0x78] sm:$0xff] %v3698_v27   ;;  %v3693_v35 = vpack.c.bf16 %v2358_v31, %v2357_v26  ;;  %v3853_v36 = vpack.c.bf16 %v2422_v32, %v2421_v29  ;;  %vm2107_vm1 = vcmp.ge.f32.partialorder %v4110_v33, 0.0  ;;  %v2235_v37 = vmul.f32 0.2, %v4110_v33  ;;  %v1303_v38 = vpop.f32.mrb[33].mxu0  ;;  %v1559_v39 = vpop.f32.mrb[33].mxu1 }
 0x17c   : > { %3986 = vst [vmem:[%s4826_s17 + $0x178] sm:$0xff] %v3858_v30   ;;  %vm2171_vm2 = vcmp.ge.f32.partialorder %v4174_v34, 0.0  ;;  %v2299_v40 = vmul.f32 0.2, %v4174_v34  ;;  %v2233_v41 = vmul.f32 0.2, %v1303_v38 }
 0x17d   : > { %3953 = vst [vmem:[%s4826_s17 + $0x70] sm:$0xff] %v3693_v35   ;;  %3985 = vst [vmem:[%s4826_s17 + $0x170] sm:$0xff] %v3853_v36   ;;  %v2297_v42 = vmul.f32 0.2, %v1559_v39  ;;  %v4111_v43 = vpop.f32.mrb[34].mxu0  ;;  %v4175_v44 = vpop.f32.mrb[34].mxu1  ;;  %v2363_v45 = vsel %vm2107_vm1, %v4110_v33, %v2235_v37 }
 0x17e   : > { %vm2105_vm3 = vcmp.ge.f32.partialorder %v1303_v38, 0.0  ;;  %vm2108_vm4 = vcmp.ge.f32.partialorder %v4111_v43, 0.0  ;;  %v2236_v46 = vmul.f32 0.2, %v4111_v43  ;;  %v1306_v47 = vpop.f32.mrb[35].mxu0  ;;  %v1562_v48 = vpop.f32.mrb[35].mxu1  ;;  %v2427_v53 = vsel %vm2171_vm2, %v4174_v34, %v2299_v40 }
 0x17f   : > { %vm2169_vm5 = vcmp.ge.f32.partialorder %v1559_v39, 0.0  ;;  %vm2172_vm6 = vcmp.ge.f32.partialorder %v4175_v44, 0.0  ;;  %v2300_v49 = vmul.f32 0.2, %v4175_v44  ;;  %vm2106_vm7 = vcmp.ge.f32.partialorder %v1306_v47, 0.0 }
 0x180   : > { %v2364_v50 = vsel %vm2108_vm4, %v4111_v43, %v2236_v46  ;;  %v2234_v51 = vmul.f32 0.2, %v1306_v47  ;;  %vm2170_vm8 = vcmp.ge.f32.partialorder %v1562_v48, 0.0  ;;  %v2298_v52 = vmul.f32 0.2, %v1562_v48 }
 0x181   : > { %v2361_v54 = vsel %vm2105_vm3, %v1303_v38, %v2233_v41  ;;  %v3708_v55 = vpack.c.bf16 %v2364_v50, %v2363_v45  ;;  %v2428_v56 = vsel %vm2172_vm6, %v4175_v44, %v2300_v49  ;;  %v2425_v57 = vsel %vm2169_vm5, %v1559_v39, %v2297_v42 }
 0x182   : > { %v3868_v58 = vpack.c.bf16 %v2428_v56, %v2427_v53  ;;  %v2362_v59 = vsel %vm2106_vm7, %v1306_v47, %v2234_v51  ;;  %v2426_v60 = vsel %vm2170_vm8, %v1562_v48, %v2298_v52  ;;  %v4114_v61 = vpop.f32.mrb[36].mxu0  ;;  %v4178_v62 = vpop.f32.mrb[36].mxu1 }
 0x183   : > { %3956 = vst [vmem:[%s4826_s17 + $0x88] sm:$0xff] %v3708_v55   ;;  %v3703_v63 = vpack.c.bf16 %v2362_v59, %v2361_v54  ;;  %v3863_v0 = vpack.c.bf16 %v2426_v60, %v2425_v57  ;;  %vm2111_vm9 = vcmp.ge.f32.partialorder %v4114_v61, 0.0  ;;  %v2239_v1 = vmul.f32 0.2, %v4114_v61  ;;  %v1319_v2 = vpop.f32.mrb[37].mxu0  ;;  %v1575_v3 = vpop.f32.mrb[37].mxu1 }
 0x184   : > { %3988 = vst [vmem:[%s4826_s17 + $0x188] sm:$0xff] %v3868_v58   ;;  %vm2175_vm10 = vcmp.ge.f32.partialorder %v4178_v62, 0.0  ;;  %v2303_v4 = vmul.f32 0.2, %v4178_v62  ;;  %v2237_v5 = vmul.f32 0.2, %v1319_v2 }
 0x185   : > { %3955 = vst [vmem:[%s4826_s17 + $0x80] sm:$0xff] %v3703_v63   ;;  %3987 = vst [vmem:[%s4826_s17 + $0x180] sm:$0xff] %v3863_v0   ;;  %v2301_v6 = vmul.f32 0.2, %v1575_v3  ;;  %v4115_v7 = vpop.f32.mrb[38].mxu0  ;;  %v4179_v8 = vpop.f32.mrb[38].mxu1  ;;  %v2367_v9 = vsel %vm2111_vm9, %v4114_v61, %v2239_v1 }
 0x186   : > { %vm2109_vm11 = vcmp.ge.f32.partialorder %v1319_v2, 0.0  ;;  %vm2112_vm12 = vcmp.ge.f32.partialorder %v4115_v7, 0.0  ;;  %v2240_v10 = vmul.f32 0.2, %v4115_v7  ;;  %v1322_v11 = vpop.f32.mrb[39].mxu0  ;;  %v1578_v12 = vpop.f32.mrb[39].mxu1  ;;  %v2431_v17 = vsel %vm2175_vm10, %v4178_v62, %v2303_v4 }
 0x187   : > { %vm2173_vm13 = vcmp.ge.f32.partialorder %v1575_v3, 0.0  ;;  %vm2176_vm14 = vcmp.ge.f32.partialorder %v4179_v8, 0.0  ;;  %v2304_v13 = vmul.f32 0.2, %v4179_v8  ;;  %vm2110_vm15 = vcmp.ge.f32.partialorder %v1322_v11, 0.0 }
 0x188   : > { %v2368_v14 = vsel %vm2112_vm12, %v4115_v7, %v2240_v10  ;;  %v2238_v15 = vmul.f32 0.2, %v1322_v11  ;;  %vm2174_vm0 = vcmp.ge.f32.partialorder %v1578_v12, 0.0  ;;  %v2302_v16 = vmul.f32 0.2, %v1578_v12 }
 0x189   : > { %v2365_v18 = vsel %vm2109_vm11, %v1319_v2, %v2237_v5  ;;  %v3718_v19 = vpack.c.bf16 %v2368_v14, %v2367_v9  ;;  %v2432_v20 = vsel %vm2176_vm14, %v4179_v8, %v2304_v13  ;;  %v2429_v21 = vsel %vm2173_vm13, %v1575_v3, %v2301_v6 }
 0x18a   : > { %v3878_v22 = vpack.c.bf16 %v2432_v20, %v2431_v17  ;;  %v2366_v23 = vsel %vm2110_vm15, %v1322_v11, %v2238_v15  ;;  %v2430_v24 = vsel %vm2174_vm0, %v1578_v12, %v2302_v16  ;;  %v4118_v25 = vpop.f32.mrb[40].mxu0  ;;  %v4182_v26 = vpop.f32.mrb[40].mxu1 }
 0x18b   : > { %3958 = vst [vmem:[%s4826_s17 + $0x98] sm:$0xff] %v3718_v19   ;;  %v3713_v27 = vpack.c.bf16 %v2366_v23, %v2365_v18  ;;  %v3873_v28 = vpack.c.bf16 %v2430_v24, %v2429_v21  ;;  %vm2115_vm1 = vcmp.ge.f32.partialorder %v4118_v25, 0.0  ;;  %v2243_v29 = vmul.f32 0.2, %v4118_v25  ;;  %v1335_v30 = vpop.f32.mrb[41].mxu0  ;;  %v1591_v31 = vpop.f32.mrb[41].mxu1 }
 0x18c   : > { %3990 = vst [vmem:[%s4826_s17 + $0x198] sm:$0xff] %v3878_v22   ;;  %vm2179_vm2 = vcmp.ge.f32.partialorder %v4182_v26, 0.0  ;;  %v2307_v32 = vmul.f32 0.2, %v4182_v26  ;;  %v2241_v33 = vmul.f32 0.2, %v1335_v30 }
 0x18d   : > { %3957 = vst [vmem:[%s4826_s17 + $0x90] sm:$0xff] %v3713_v27   ;;  %3989 = vst [vmem:[%s4826_s17 + $0x190] sm:$0xff] %v3873_v28   ;;  %v2305_v34 = vmul.f32 0.2, %v1591_v31  ;;  %v4119_v35 = vpop.f32.mrb[42].mxu0  ;;  %v4183_v36 = vpop.f32.mrb[42].mxu1  ;;  %v2371_v37 = vsel %vm2115_vm1, %v4118_v25, %v2243_v29 }
 0x18e   : > { %vm2113_vm3 = vcmp.ge.f32.partialorder %v1335_v30, 0.0  ;;  %vm2116_vm4 = vcmp.ge.f32.partialorder %v4119_v35, 0.0  ;;  %v2244_v38 = vmul.f32 0.2, %v4119_v35  ;;  %v1338_v39 = vpop.f32.mrb[43].mxu0  ;;  %v1594_v40 = vpop.f32.mrb[43].mxu1  ;;  %v2435_v45 = vsel %vm2179_vm2, %v4182_v26, %v2307_v32 }
 0x18f   : > { %vm2177_vm5 = vcmp.ge.f32.partialorder %v1591_v31, 0.0  ;;  %vm2180_vm6 = vcmp.ge.f32.partialorder %v4183_v36, 0.0  ;;  %v2308_v41 = vmul.f32 0.2, %v4183_v36  ;;  %vm2114_vm7 = vcmp.ge.f32.partialorder %v1338_v39, 0.0 }
 0x190   : > { %v2372_v42 = vsel %vm2116_vm4, %v4119_v35, %v2244_v38  ;;  %v2242_v43 = vmul.f32 0.2, %v1338_v39  ;;  %vm2178_vm8 = vcmp.ge.f32.partialorder %v1594_v40, 0.0  ;;  %v2306_v44 = vmul.f32 0.2, %v1594_v40 }
 0x191   : > { %v2369_v46 = vsel %vm2113_vm3, %v1335_v30, %v2241_v33  ;;  %v3728_v47 = vpack.c.bf16 %v2372_v42, %v2371_v37  ;;  %v2436_v48 = vsel %vm2180_vm6, %v4183_v36, %v2308_v41  ;;  %v2433_v49 = vsel %vm2177_vm5, %v1591_v31, %v2305_v34 }
 0x192   : > { %v3888_v50 = vpack.c.bf16 %v2436_v48, %v2435_v45  ;;  %v2370_v51 = vsel %vm2114_vm7, %v1338_v39, %v2242_v43  ;;  %v2434_v52 = vsel %vm2178_vm8, %v1594_v40, %v2306_v44  ;;  %v4122_v53 = vpop.f32.mrb[44].mxu0  ;;  %v4186_v54 = vpop.f32.mrb[44].mxu1 }
 0x193   : > { %3960 = vst [vmem:[%s4826_s17 + $0xa8] sm:$0xff] %v3728_v47   ;;  %v3723_v55 = vpack.c.bf16 %v2370_v51, %v2369_v46  ;;  %v3883_v56 = vpack.c.bf16 %v2434_v52, %v2433_v49  ;;  %vm2119_vm9 = vcmp.ge.f32.partialorder %v4122_v53, 0.0  ;;  %v2247_v57 = vmul.f32 0.2, %v4122_v53  ;;  %v1351_v58 = vpop.f32.mrb[45].mxu0  ;;  %v1607_v59 = vpop.f32.mrb[45].mxu1 }
 0x194   : > { %3992 = vst [vmem:[%s4826_s17 + $0x1a8] sm:$0xff] %v3888_v50   ;;  %vm2183_vm10 = vcmp.ge.f32.partialorder %v4186_v54, 0.0  ;;  %v2311_v60 = vmul.f32 0.2, %v4186_v54  ;;  %v2245_v61 = vmul.f32 0.2, %v1351_v58 }
 0x195   : > { %3959 = vst [vmem:[%s4826_s17 + $0xa0] sm:$0xff] %v3723_v55   ;;  %3991 = vst [vmem:[%s4826_s17 + $0x1a0] sm:$0xff] %v3883_v56   ;;  %v2309_v62 = vmul.f32 0.2, %v1607_v59  ;;  %v4123_v63 = vpop.f32.mrb[46].mxu0  ;;  %v4187_v0 = vpop.f32.mrb[46].mxu1  ;;  %v2375_v1 = vsel %vm2119_vm9, %v4122_v53, %v2247_v57 }
 0x196   : > { %vm2117_vm11 = vcmp.ge.f32.partialorder %v1351_v58, 0.0  ;;  %vm2120_vm12 = vcmp.ge.f32.partialorder %v4123_v63, 0.0  ;;  %v2248_v2 = vmul.f32 0.2, %v4123_v63  ;;  %v1354_v3 = vpop.f32.mrb[47].mxu0  ;;  %v1610_v4 = vpop.f32.mrb[47].mxu1  ;;  %v2439_v9 = vsel %vm2183_vm10, %v4186_v54, %v2311_v60 }
 0x197   : > { %vm2181_vm13 = vcmp.ge.f32.partialorder %v1607_v59, 0.0  ;;  %vm2184_vm14 = vcmp.ge.f32.partialorder %v4187_v0, 0.0  ;;  %v2312_v5 = vmul.f32 0.2, %v4187_v0  ;;  %vm2118_vm15 = vcmp.ge.f32.partialorder %v1354_v3, 0.0 }
 0x198   : > { %v2376_v6 = vsel %vm2120_vm12, %v4123_v63, %v2248_v2  ;;  %v2246_v7 = vmul.f32 0.2, %v1354_v3  ;;  %vm2182_vm0 = vcmp.ge.f32.partialorder %v1610_v4, 0.0  ;;  %v2310_v8 = vmul.f32 0.2, %v1610_v4 }
 0x199   : > { %v2373_v10 = vsel %vm2117_vm11, %v1351_v58, %v2245_v61  ;;  %v3738_v11 = vpack.c.bf16 %v2376_v6, %v2375_v1  ;;  %v2440_v12 = vsel %vm2184_vm14, %v4187_v0, %v2312_v5  ;;  %v2437_v13 = vsel %vm2181_vm13, %v1607_v59, %v2309_v62 }
 0x19a   : > { %v3898_v14 = vpack.c.bf16 %v2440_v12, %v2439_v9  ;;  %v2374_v15 = vsel %vm2118_vm15, %v1354_v3, %v2246_v7  ;;  %v2438_v16 = vsel %vm2182_vm0, %v1610_v4, %v2310_v8  ;;  %v4126_v17 = vpop.f32.mrb[48].mxu0  ;;  %v4190_v18 = vpop.f32.mrb[48].mxu1 }
 0x19b   : > { %3962 = vst [vmem:[%s4826_s17 + $0xb8] sm:$0xff] %v3738_v11   ;;  %v3733_v19 = vpack.c.bf16 %v2374_v15, %v2373_v10  ;;  %v3893_v20 = vpack.c.bf16 %v2438_v16, %v2437_v13  ;;  %vm2123_vm1 = vcmp.ge.f32.partialorder %v4126_v17, 0.0  ;;  %v2251_v21 = vmul.f32 0.2, %v4126_v17  ;;  %v1367_v22 = vpop.f32.mrb[49].mxu0  ;;  %v1623_v23 = vpop.f32.mrb[49].mxu1 }
 0x19c   : > { %3994 = vst [vmem:[%s4826_s17 + $0x1b8] sm:$0xff] %v3898_v14   ;;  %vm2187_vm2 = vcmp.ge.f32.partialorder %v4190_v18, 0.0  ;;  %v2315_v24 = vmul.f32 0.2, %v4190_v18  ;;  %v2249_v25 = vmul.f32 0.2, %v1367_v22 }
 0x19d   : > { %3961 = vst [vmem:[%s4826_s17 + $0xb0] sm:$0xff] %v3733_v19   ;;  %3993 = vst [vmem:[%s4826_s17 + $0x1b0] sm:$0xff] %v3893_v20   ;;  %v2313_v26 = vmul.f32 0.2, %v1623_v23  ;;  %v4127_v27 = vpop.f32.mrb[50].mxu0  ;;  %v4191_v28 = vpop.f32.mrb[50].mxu1  ;;  %v2379_v29 = vsel %vm2123_vm1, %v4126_v17, %v2251_v21 }
 0x19e   : > { %vm2121_vm3 = vcmp.ge.f32.partialorder %v1367_v22, 0.0  ;;  %vm2124_vm4 = vcmp.ge.f32.partialorder %v4127_v27, 0.0  ;;  %v2252_v30 = vmul.f32 0.2, %v4127_v27  ;;  %v1370_v31 = vpop.f32.mrb[51].mxu0  ;;  %v1626_v32 = vpop.f32.mrb[51].mxu1  ;;  %v2443_v37 = vsel %vm2187_vm2, %v4190_v18, %v2315_v24 }
 0x19f   : > { %vm2185_vm5 = vcmp.ge.f32.partialorder %v1623_v23, 0.0  ;;  %vm2188_vm6 = vcmp.ge.f32.partialorder %v4191_v28, 0.0  ;;  %v2316_v33 = vmul.f32 0.2, %v4191_v28  ;;  %vm2122_vm7 = vcmp.ge.f32.partialorder %v1370_v31, 0.0 }
 0x1a0   : > { %v2380_v34 = vsel %vm2124_vm4, %v4127_v27, %v2252_v30  ;;  %v2250_v35 = vmul.f32 0.2, %v1370_v31  ;;  %vm2186_vm8 = vcmp.ge.f32.partialorder %v1626_v32, 0.0  ;;  %v2314_v36 = vmul.f32 0.2, %v1626_v32 }
 0x1a1   : > { %v2377_v38 = vsel %vm2121_vm3, %v1367_v22, %v2249_v25  ;;  %v3748_v39 = vpack.c.bf16 %v2380_v34, %v2379_v29  ;;  %v2444_v40 = vsel %vm2188_vm6, %v4191_v28, %v2316_v33  ;;  %v2441_v41 = vsel %vm2185_vm5, %v1623_v23, %v2313_v26 }
 0x1a2   : > { %v3908_v42 = vpack.c.bf16 %v2444_v40, %v2443_v37  ;;  %v2378_v43 = vsel %vm2122_vm7, %v1370_v31, %v2250_v35  ;;  %v2442_v44 = vsel %vm2186_vm8, %v1626_v32, %v2314_v36  ;;  %v4130_v45 = vpop.f32.mrb[52].mxu0  ;;  %v4194_v46 = vpop.f32.mrb[52].mxu1 }
 0x1a3   : > { %3964 = vst [vmem:[%s4826_s17 + $0xc8] sm:$0xff] %v3748_v39   ;;  %v3743_v47 = vpack.c.bf16 %v2378_v43, %v2377_v38  ;;  %v3903_v48 = vpack.c.bf16 %v2442_v44, %v2441_v41  ;;  %vm2127_vm9 = vcmp.ge.f32.partialorder %v4130_v45, 0.0  ;;  %v2255_v49 = vmul.f32 0.2, %v4130_v45  ;;  %v1383_v50 = vpop.f32.mrb[53].mxu0  ;;  %v1639_v51 = vpop.f32.mrb[53].mxu1 }
 0x1a4   : > { %3996 = vst [vmem:[%s4826_s17 + $0x1c8] sm:$0xff] %v3908_v42   ;;  %vm2191_vm10 = vcmp.ge.f32.partialorder %v4194_v46, 0.0  ;;  %v2319_v52 = vmul.f32 0.2, %v4194_v46  ;;  %v2253_v53 = vmul.f32 0.2, %v1383_v50 }
 0x1a5   : > { %3963 = vst [vmem:[%s4826_s17 + $0xc0] sm:$0xff] %v3743_v47   ;;  %3995 = vst [vmem:[%s4826_s17 + $0x1c0] sm:$0xff] %v3903_v48   ;;  %v2317_v54 = vmul.f32 0.2, %v1639_v51  ;;  %v4131_v55 = vpop.f32.mrb[54].mxu0  ;;  %v4195_v56 = vpop.f32.mrb[54].mxu1  ;;  %v2383_v57 = vsel %vm2127_vm9, %v4130_v45, %v2255_v49 }
 0x1a6   : > { %vm2125_vm11 = vcmp.ge.f32.partialorder %v1383_v50, 0.0  ;;  %vm2128_vm12 = vcmp.ge.f32.partialorder %v4131_v55, 0.0  ;;  %v2256_v58 = vmul.f32 0.2, %v4131_v55  ;;  %v1386_v59 = vpop.f32.mrb[55].mxu0  ;;  %v1642_v60 = vpop.f32.mrb[55].mxu1  ;;  %v2447_v1 = vsel %vm2191_vm10, %v4194_v46, %v2319_v52 }
 0x1a7   : > { %vm2189_vm13 = vcmp.ge.f32.partialorder %v1639_v51, 0.0  ;;  %vm2192_vm14 = vcmp.ge.f32.partialorder %v4195_v56, 0.0  ;;  %v2320_v61 = vmul.f32 0.2, %v4195_v56  ;;  %vm2126_vm15 = vcmp.ge.f32.partialorder %v1386_v59, 0.0 }
 0x1a8   : > { %v2384_v62 = vsel %vm2128_vm12, %v4131_v55, %v2256_v58  ;;  %v2254_v63 = vmul.f32 0.2, %v1386_v59  ;;  %vm2190_vm0 = vcmp.ge.f32.partialorder %v1642_v60, 0.0  ;;  %v2318_v0 = vmul.f32 0.2, %v1642_v60 }
 0x1a9   : > { %v2381_v2 = vsel %vm2125_vm11, %v1383_v50, %v2253_v53  ;;  %v3758_v3 = vpack.c.bf16 %v2384_v62, %v2383_v57  ;;  %v2448_v4 = vsel %vm2192_vm14, %v4195_v56, %v2320_v61  ;;  %v2445_v5 = vsel %vm2189_vm13, %v1639_v51, %v2317_v54 }
 0x1aa   : > { %v3918_v6 = vpack.c.bf16 %v2448_v4, %v2447_v1  ;;  %v2382_v7 = vsel %vm2126_vm15, %v1386_v59, %v2254_v63  ;;  %v2446_v8 = vsel %vm2190_vm0, %v1642_v60, %v2318_v0  ;;  %v4134_v9 = vpop.f32.mrb[56].mxu0  ;;  %v4198_v10 = vpop.f32.mrb[56].mxu1 }
 0x1ab   : > { %3966 = vst [vmem:[%s4826_s17 + $0xd8] sm:$0xff] %v3758_v3   ;;  %v3753_v11 = vpack.c.bf16 %v2382_v7, %v2381_v2  ;;  %v3913_v12 = vpack.c.bf16 %v2446_v8, %v2445_v5  ;;  %vm2131_vm1 = vcmp.ge.f32.partialorder %v4134_v9, 0.0  ;;  %v2259_v13 = vmul.f32 0.2, %v4134_v9  ;;  %v1399_v14 = vpop.f32.mrb[57].mxu0  ;;  %v1655_v15 = vpop.f32.mrb[57].mxu1 }
 0x1ac   : > { %3998 = vst [vmem:[%s4826_s17 + $0x1d8] sm:$0xff] %v3918_v6   ;;  %vm2195_vm2 = vcmp.ge.f32.partialorder %v4198_v10, 0.0  ;;  %v2323_v16 = vmul.f32 0.2, %v4198_v10  ;;  %v2257_v17 = vmul.f32 0.2, %v1399_v14 }
 0x1ad   : > { %3965 = vst [vmem:[%s4826_s17 + $0xd0] sm:$0xff] %v3753_v11   ;;  %3997 = vst [vmem:[%s4826_s17 + $0x1d0] sm:$0xff] %v3913_v12   ;;  %v2321_v18 = vmul.f32 0.2, %v1655_v15  ;;  %v4135_v19 = vpop.f32.mrb[58].mxu0  ;;  %v4199_v20 = vpop.f32.mrb[58].mxu1  ;;  %v2387_v21 = vsel %vm2131_vm1, %v4134_v9, %v2259_v13 }
 0x1ae   : > { %vm2129_vm3 = vcmp.ge.f32.partialorder %v1399_v14, 0.0  ;;  %vm2132_vm4 = vcmp.ge.f32.partialorder %v4135_v19, 0.0  ;;  %v2260_v22 = vmul.f32 0.2, %v4135_v19  ;;  %v1402_v23 = vpop.f32.mrb[59].mxu0  ;;  %v1658_v24 = vpop.f32.mrb[59].mxu1  ;;  %v2451_v29 = vsel %vm2195_vm2, %v4198_v10, %v2323_v16 }
 0x1af   : > { %vm2193_vm5 = vcmp.ge.f32.partialorder %v1655_v15, 0.0  ;;  %vm2196_vm6 = vcmp.ge.f32.partialorder %v4199_v20, 0.0  ;;  %v2324_v25 = vmul.f32 0.2, %v4199_v20  ;;  %vm2130_vm7 = vcmp.ge.f32.partialorder %v1402_v23, 0.0 }
 0x1b0   : > { %v2388_v26 = vsel %vm2132_vm4, %v4135_v19, %v2260_v22  ;;  %v2258_v27 = vmul.f32 0.2, %v1402_v23  ;;  %vm2194_vm8 = vcmp.ge.f32.partialorder %v1658_v24, 0.0  ;;  %v2322_v28 = vmul.f32 0.2, %v1658_v24 }
 0x1b1   : > { %v2385_v30 = vsel %vm2129_vm3, %v1399_v14, %v2257_v17  ;;  %v3768_v31 = vpack.c.bf16 %v2388_v26, %v2387_v21  ;;  %v2452_v32 = vsel %vm2196_vm6, %v4199_v20, %v2324_v25  ;;  %v2449_v33 = vsel %vm2193_vm5, %v1655_v15, %v2321_v18 }
 0x1b2   : > { %v3928_v34 = vpack.c.bf16 %v2452_v32, %v2451_v29  ;;  %v2386_v35 = vsel %vm2130_vm7, %v1402_v23, %v2258_v27  ;;  %v2450_v36 = vsel %vm2194_vm8, %v1658_v24, %v2322_v28  ;;  %v4138_v37 = vpop.f32.mrb[60].mxu0  ;;  %v4202_v38 = vpop.f32.mrb[60].mxu1 }
 0x1b3   : > { %3968 = vst [vmem:[%s4826_s17 + $0xe8] sm:$0xff] %v3768_v31   ;;  %v3763_v39 = vpack.c.bf16 %v2386_v35, %v2385_v30  ;;  %v3923_v40 = vpack.c.bf16 %v2450_v36, %v2449_v33  ;;  %vm2135_vm9 = vcmp.ge.f32.partialorder %v4138_v37, 0.0  ;;  %v2263_v41 = vmul.f32 0.2, %v4138_v37  ;;  %v1415_v42 = vpop.f32.mrb[61].mxu0  ;;  %v1671_v43 = vpop.f32.mrb[61].mxu1 }
 0x1b4   : > { %4000 = vst [vmem:[%s4826_s17 + $0x1e8] sm:$0xff] %v3928_v34   ;;  %vm2199_vm10 = vcmp.ge.f32.partialorder %v4202_v38, 0.0  ;;  %v2327_v44 = vmul.f32 0.2, %v4202_v38  ;;  %v2261_v45 = vmul.f32 0.2, %v1415_v42 }
 0x1b5   : > { %3967 = vst [vmem:[%s4826_s17 + $0xe0] sm:$0xff] %v3763_v39   ;;  %3999 = vst [vmem:[%s4826_s17 + $0x1e0] sm:$0xff] %v3923_v40   ;;  %v2325_v46 = vmul.f32 0.2, %v1671_v43  ;;  %v4139_v47 = vpop.f32.mrb[62].mxu0  ;;  %v4203_v48 = vpop.f32.mrb[62].mxu1  ;;  %v2391_v49 = vsel %vm2135_vm9, %v4138_v37, %v2263_v41 }
 0x1b6   : > { %vm2133_vm11 = vcmp.ge.f32.partialorder %v1415_v42, 0.0  ;;  %vm2136_vm12 = vcmp.ge.f32.partialorder %v4139_v47, 0.0  ;;  %v2264_v50 = vmul.f32 0.2, %v4139_v47  ;;  %v1418_v51 = vpop.f32.mrb[63].mxu0  ;;  %v1674_v52 = vpop.f32.mrb[63].mxu1  ;;  %v2455_v57 = vsel %vm2199_vm10, %v4202_v38, %v2327_v44 }
 0x1b7   : > { %vm2197_vm13 = vcmp.ge.f32.partialorder %v1671_v43, 0.0  ;;  %vm2200_vm14 = vcmp.ge.f32.partialorder %v4203_v48, 0.0  ;;  %v2328_v53 = vmul.f32 0.2, %v4203_v48  ;;  %vm2134_vm15 = vcmp.ge.f32.partialorder %v1418_v51, 0.0 }
 0x1b8   : > { %v2392_v54 = vsel %vm2136_vm12, %v4139_v47, %v2264_v50  ;;  %v2262_v55 = vmul.f32 0.2, %v1418_v51  ;;  %vm2198_vm0 = vcmp.ge.f32.partialorder %v1674_v52, 0.0  ;;  %v2326_v56 = vmul.f32 0.2, %v1674_v52 }
 0x1b9   : > { %v2389_v58 = vsel %vm2133_vm11, %v1415_v42, %v2261_v45  ;;  %v3778_v59 = vpack.c.bf16 %v2392_v54, %v2391_v49  ;;  %v2456_v60 = vsel %vm2200_vm14, %v4203_v48, %v2328_v53  ;;  %v2453_v61 = vsel %vm2197_vm13, %v1671_v43, %v2325_v46 }
 0x1ba   : > { %v3938_v62 = vpack.c.bf16 %v2456_v60, %v2455_v57  ;;  %v2390_v63 = vsel %vm2134_vm15, %v1418_v51, %v2262_v55  ;;  %v2454_v0 = vsel %vm2198_vm0, %v1674_v52, %v2326_v56 }
 0x1bb   : > { %3970 = vst [vmem:[%s4826_s17 + $0xf8] sm:$0xff] %v3778_v59   ;;  %v3773_v1 = vpack.c.bf16 %v2390_v63, %v2389_v58  ;;  %v3933_v2 = vpack.c.bf16 %v2454_v0, %v2453_v61 }
 0x1bc   : > { %4002 = vst [vmem:[%s4826_s17 + $0x1f8] sm:$0xff] %v3938_v62  }
 0x1bd   : > { %3969 = vst [vmem:[%s4826_s17 + $0xf0] sm:$0xff] %v3773_v1   ;;  %4001 = vst [vmem:[%s4826_s17 + $0x1f0] sm:$0xff] %v3933_v2  }
 0x1be   : > { %4425 = shalt.err (!%p4422_p5)
}
 0x1bf   : > { %s4426_s23 = scalar_lea.hbm %s4910_s4, 8192  ;;  %s4430_s26 = scalar_lea.hbm %s4967_s2, 16384 }
 0x1c0   : > { %p4427_p9 = scmp.ne.s32.totalorder %s4910_s4, %s4426_s23  ;;  %p4431_p3 = scmp.lt.u32.totalorder %s4910_s4, %s4967_s2 }
 0x1c1   : > { %p4432_p7 = scmp.lt.u32.totalorder %s4430_s26, %s4426_s23  ;;  %p4434_p4 = scmp.lt.u32.totalorder %s4426_s23, %s4910_s4 }
 0x1c2   : > { %p4428_p1 = pnand %p4427_p9, %p4621_p10 }
 0x1c3   : > { %p4433_p13 = por %p4432_p7, %p4431_p3 }
 0x1c4   : > { %p4429_p2 = pneg %p4428_p1 }
 0x1c5   : > { %p4435_p6 = por %p4434_p4, %p4433_p13 }
 0x1c7   : > { %p4436_p8 = pnand %p4435_p6, %p4429_p2 }
 0x1c9   : > { %4439 = shalt.err (!%p4436_p8)
}
 0x1ca   : > { %s4505_s8 = smov 64   ;;  %s4506_s17 = smov 4  }
 0x1cb   : > { %4216 = dma.vmem_to_hbm [thread:$0]  (%p4621_p10), %s4912_s21, 8192, %s4910_s4, %s3098_s5, %s4505_s8, %s4505_s8, %s4506_s17  }
 0x1cc PF: > { %s3127_s19 = sand.u32 1, %s4478_s9   ;;  %p4985_p12 = scmp.ne.s32.totalorder %s4975_s20, 0 }
 0x1cd   : > { %p4986_p11 = scmp.ge.s32.totalorder %s4498_s14, 2  ;;  %s3128_s6 = scalar_lea.sflag [#allocation5], %s3127_s19 }
 0x1cf   : > { %p4227_p0 = pnand %p4986_p11, %p4985_p12 }
 0x1d1   : > { %4473 = dma.done.wait (!%p4227_p0), %s3128_s6, 8192  }
 0x1d2   : > { %4475 = vsyncadd (!%p4227_p0), %s3128_s6, 4294959104  ;;  %s19_s14 = sadd.s32 1, %s4498_s14   ;;  %s4987_s9 = smov %s4482_s10 }
 0x1d3   : > { %p16_p5 = scmp.ge.s32.totalorder %s19_s14, 4   ;;  %s4988_s10 = smov %s4486_s11 }
 0x1d4   : > { %s4989_s11 = smov %s4630_s28  ;;  %s4990_s12 = smov %s4494_s13 }
 0x1d5   : > { %s4991_s13 = smov %s4993_s25  ;;  %18 = sbr.rel (!%p16_p5) target bundleno = 7 (0x7), region = 86 }
 0x1dc   :  { %3133 = vsyncpa [#allocation4], 1 }
 0x1dd   :  { %3135 = vsyncpa [#allocation4 + $0x1], 1 }
 0x1de   :  { %3136 = vsyncpa [#allocation7], 1 }
 0x1df   :  { %3137 = vsyncpa [#allocation5], 1 }
 0x1e0   :  { %3139 = vsyncpa [#allocation5 + $0x1], 1 }

// kernel: discriminator_forward.6
= control target key start
LH: loop header
LB: loop body
LE: loop exit
PB: predicated region body
PF: predicated region fallthrough
CT: control target
= control target key end

     0   :  { %7 = vsyncpa [#allocation4], 0  ;;  %s5180_s0 = inlined_call_operand.hbm [shape: bf16[512,2048], index: 0, kind: input, shape index: {}]   ;;  %s5181_s1 = inlined_call_operand.hbm [shape: bf16[2048,128], index: 1, kind: input, shape index: {}]   ;;  %s5182_s2 = inlined_call_operand.hbm [shape: bf16[512,128], index: 2, kind: output, shape index: {}]  }
   0x1   :  { %9 = vsyncpa [#allocation4 + $0x1], 0 }
   0x2   :  { %10 = vsyncpa [#allocation7], 0 }
   0x3   :  { %12 = vsyncpa [#allocation7 + $0x1], 0 }
   0x4   :  { %13 = vsyncpa [#allocation5], 0  ;;  %s4087_s9 = smov 0   ;;  %s4089_s10 = smov 0  }
   0x5   :  { %s4091_s11 = smov 0   ;;  %s4093_s12 = smov 0  }
   0x6   :  { %s4095_s13 = smov 0   ;;  %s4097_s14 = smov 0  }
   0x7 LB: > { %s3113_s15 = sadd.s32 4294967295, %s4058_s14   ;;  %s31_s16 = sadd.s32 1, %s4054_s13  ;;  %s4058_s14 = sphi %s4097_s14, %s19_s14   ;;  %s4054_s13 = sphi %s4095_s13, %s5297_s13   ;;  %s4050_s12 = sphi %s4093_s12, %s5296_s12   ;;  %s4046_s11 = sphi %s4091_s11, %s5295_s11   ;;  %s4042_s10 = sphi %s4089_s10, %s5294_s10   ;;  %s4038_s9 = sphi %s4087_s9, %s5293_s9  }
   0x8   : > { %p32_p0 = scmp.ge.s32.totalorder %s31_s16, 4  ;;  %s47_s17 = sadd.s32 1, %s4046_s11 }
   0x9   : > { %p54_p1 = scmp.ne.s32.totalorder %s4046_s11, %s4042_s10  ;;  %p55_p2 = scmp.eq.s32.totalorder %s4058_s14, 0 }
   0xa   : > { %s5299_s16 = smov (%p32_p0, %s31_s16), 0  ;;  %p60_p4 = scmp.ne.s32.totalorder %s4042_s10, %s4038_s9 }
   0xb   : > { %p4123_p3 = por %p55_p2, %p54_p1  ;;  %s43_s19 = ssub.s32 %s4054_s13, %s5299_s16 }
   0xc   : > { %p61_p5 = scmp.eq.s32.totalorder %s3113_s15, 0  ;;  %p45_p6 = scmp.eq.s32.totalorder %s43_s19, 0 }
   0xd   : > { %p3627_p8 = scmp.lt.s32.totalorder %s4058_s14, 4  ;;  %s4141_s22 = sand.u32 1, %s4046_s11  }
   0xe   : > { %p4132_p7 = por %p61_p5, %p60_p4  ;;  %s3355_s23 = sshll.u32 %s4054_s13, 8 }
   0xf   : > { %s4138_s21 = scalar_select %p45_p6, %s4046_s11, %s47_s17  }
  0x10   : > { %s5219_s20 = scalar_select %p4132_p7, 1, 0 }
  0x11   : > { %s3116_s24 = sshll.u32 %s4141_s22, 10  ;;  %s4148_s27 = scalar_lea.hbm %s5180_s0, %s3355_s23 }
  0x12   : > { %s144_s28 = scalar_lea.vmem [#allocation3], %s3116_s24  ;;  %p4152_p9 = pnand %p3627_p8, %p4123_p3 }
  0x13   : > { %s154_s29 = sshll.u32 %s144_s28, 4  ;;  %s141_s3 = scalar_lea.sflag [#allocation4], %s4141_s22  ;;  %s4156_s29 = int_to_ptr.vmem [resolvable:$true] %s154_s29 }
  0x14   : > { %s3914_s4 = scalar_lea.hbm %s4148_s27, 16384  ;;  %p3916_p12 = pneg %p4152_p9 }
  0x15   : > { %p3915_p11 = scmp.ne.s32.totalorder %s4148_s27, %s3914_s4  ;;  %s3919_s7 = scalar_lea.hbm %s5180_s0, 65536 }
  0x16   : > { %p3920_p1 = scmp.lt.u32.totalorder %s4148_s27, %s5180_s0  ;;  %p3921_p2 = scmp.lt.u32.totalorder %s3919_s7, %s3914_s4 }
  0x17   : > { %p3917_p13 = pnand %p3916_p12, %p3915_p11  ;;  %p3923_p4 = scmp.lt.u32.totalorder %s3914_s4, %s4148_s27 }
  0x18   : > { %p3922_p3 = por %p3921_p2, %p3920_p1 }
  0x19   : > { %p3918_p0 = pneg %p3917_p13 }
  0x1a   : > { %p3924_p5 = por %p3923_p4, %p3922_p3 }
  0x1c   : > { %p3925_p6 = pnand %p3924_p5, %p3918_p0 }
  0x1e   : > { %3928 = shalt.err (!%p3925_p6)
}
  0x1f   : > { %s3929_s17 = scalar_lea.vmem %s4156_s29, 16384  ;;  %s4060_s18 = smov [#allocation3]  }
  0x20   : > { %p3930_p8 = scmp.ne.s32.totalorder %s4156_s29, %s3929_s17  ;;  %s3934_s19 = sshll.u32 %s4060_s18, 4  ;;  %s3935_s19 = int_to_ptr.vmem [resolvable:$false] %s3934_s19 }
  0x21   : > { %s3936_s23 = scalar_lea.vmem %s3935_s19, 32768  ;;  %p3937_p10 = scmp.lt.s32.totalorder %s4156_s29, %s3935_s19 }
  0x22   : > { %p3932_p11 = pnand %p3930_p8, %p3916_p12  ;;  %p3938_p1 = scmp.lt.s32.totalorder %s3936_s23, %s3929_s17 }
  0x24   : > { %p3933_p13 = pneg %p3932_p11  ;;  %p3939_p2 = por %p3938_p1, %p3937_p10 }
  0x26   : > { %p3940_p3 = pnand %p3939_p2, %p3933_p13 }
  0x28   : > { %3943 = shalt.err (!%p3940_p3)
}
  0x29   : > { %s4061_s24 = smov 1024   ;;  %s4062_s25 = smov 256  }
  0x2a   : > { %s4063_s26 = smov 16   ;;  %p184_p0 = scmp.lt.s32.totalorder %s4058_s14, 5 }
  0x2b   : > { %3623 = dma.hbm_to_vmem [thread:$0]  (!%p4152_p9), %s4148_s27, 16384, %s4156_s29, %s141_s3, %s4061_s24, %s4062_s25, %s4063_s26  }
  0x2c   : > { %s3119_s28 = sshll.u32 %s4141_s22, 8  ;;  %s3356_s4 = sshll.u32 %s4054_s13, 12 }
  0x2d   : > { %p5221_p10 = scmp.ge.s32.totalorder %s4058_s14, 1  ;;  %s4199_s8 = scalar_lea.hbm %s5181_s1, %s3356_s4 }
  0x2e   : > { %s168_s9 = scalar_lea.vmem [#allocation6], %s3119_s28  ;;  %s165_s27 = scalar_lea.sflag [#allocation7], %s4141_s22 }
  0x2f   : > { %p4192_p4 = pnand %p5221_p10, %p184_p0  ;;  %s176_s17 = sshll.u32 %s168_s9, 4  ;;  %s4201_s17 = int_to_ptr.vmem [resolvable:$true] %s176_s17 }
  0x30   : > { %s3944_s29 = scalar_lea.hbm %s4199_s8, 4096  ;;  %s3949_s19 = scalar_lea.hbm %s5181_s1, 16384 }
  0x31   : > { %p3945_p5 = scmp.ne.s32.totalorder %s4199_s8, %s3944_s29  ;;  %p3950_p11 = scmp.lt.u32.totalorder %s4199_s8, %s5181_s1 }
  0x32   : > { %p3951_p13 = scmp.lt.u32.totalorder %s3949_s19, %s3944_s29  ;;  %p3953_p2 = scmp.lt.u32.totalorder %s3944_s29, %s4199_s8 }
  0x33   : > { %p3947_p6 = pnand %p3945_p5, %p3916_p12 }
  0x34   : > { %p3952_p1 = por %p3951_p13, %p3950_p11 }
  0x35   : > { %p3948_p8 = pneg %p3947_p6 }
  0x36   : > { %p3954_p3 = por %p3953_p2, %p3952_p1 }
  0x38   : > { %p3955_p0 = pnand %p3954_p3, %p3948_p8 }
  0x3a   : > { %3958 = shalt.err (!%p3955_p0)
}
  0x3b   : > { %s3959_s25 = scalar_lea.vmem %s4201_s17, 4096  ;;  %s4064_s26 = smov [#allocation6]  }
  0x3c   : > { %p3960_p10 = scmp.ne.s32.totalorder %s4201_s17, %s3959_s25  ;;  %s3964_s28 = sshll.u32 %s4064_s26, 4  ;;  %s3965_s28 = int_to_ptr.vmem [resolvable:$false] %s3964_s28 }
  0x3d   : > { %s3966_s4 = scalar_lea.vmem %s3965_s28, 8192  ;;  %p3967_p7 = scmp.lt.s32.totalorder %s4201_s17, %s3965_s28 }
  0x3e   : > { %p3962_p5 = pnand %p3960_p10, %p3916_p12  ;;  %p3968_p11 = scmp.lt.s32.totalorder %s3966_s4, %s3959_s25 }
  0x40   : > { %p3963_p6 = pneg %p3962_p5  ;;  %p3969_p13 = por %p3968_p11, %p3967_p7 }
  0x42   : > { %p3970_p1 = pnand %p3969_p13, %p3963_p6 }
  0x44   : > { %3973 = shalt.err (!%p3970_p1)
}
  0x45   : > { %s4065_s6 = smov 64   ;;  %s4066_s7 = smov 4  }
  0x46   : > { %3626 = dma.hbm_to_vmem [thread:$0]  (!%p4152_p9), %s4199_s8, 4096, %s4201_s17, %s165_s27, %s4065_s6, %s4065_s6, %s4066_s7  }
  0x47   : > { %188 = sbr.rel (%p4192_p4) target bundleno = 1054 (0x41e), region = 28  ;;  %s190_s9 = sand.u32 (!%p4192_p4), 1, %s4042_s10  }
  0x48   : > { %s3123_s29 = sshll.u32 (!%p4192_p4), %s190_s9, 10  ;;  %s191_s3 = scalar_lea.sflag (!%p4192_p4), [#allocation4], %s190_s9 }
  0x49   : > { %s4232_s18 = scalar_lea.vmem (!%p4192_p4), [#allocation3], %s3123_s29  ;;  %p5223_p7 = scmp.ne.s32.totalorder (!%p4192_p4), %s5219_s20, 0 }
  0x4e   : > { %4025 = dma.done.wait (%p5223_p7), %s191_s3, 16384  }
  0x4f   : > { %4027 = vsyncadd (%p5223_p7), %s191_s3, 4294950912  ;;  %s3124_s19 = sshll.u32 %s190_s9, 8  ;;  %s200_s30 = scalar_lea.sflag [#allocation7], %s190_s9 }
  0x50   : > { %s4238_s22 = scalar_lea.vmem [#allocation6], %s3124_s19 }
  0x51   : > { %4029 = dma.done.wait (%p5223_p7), %s200_s30, 4096  }
  0x52   : > { %4031 = vsyncadd (%p5223_p7), %s200_s30, 4294963200  ;;  %p3125_p9 = scmp.ne.s32.totalorder %s4050_s12, 0 }
  0x53   : > { %v4067_v0 = vmov (!%p3125_p9), 0.0  }
  0x54   : > { %232 = sbr.rel (%p3125_p9) target bundleno = 116 (0x74), region = 40  ;;  %233 = vst [vmem:[#allocation2] sm:$0xff] (!%p3125_p9), %v4067_v0  ;;  %234 = vst [vmem:[#allocation2 + $0x8] sm:$0xff] (!%p3125_p9), %v4067_v0 }
  0x55   : > { %235 = vst [vmem:[#allocation2 + $0x10] sm:$0xff] (!%p3125_p9), %v4067_v0  ;;  %236 = vst [vmem:[#allocation2 + $0x18] sm:$0xff] (!%p3125_p9), %v4067_v0 }
  0x56   : > { %237 = vst [vmem:[#allocation2 + $0x20] sm:$0xff] (!%p3125_p9), %v4067_v0  ;;  %238 = vst [vmem:[#allocation2 + $0x28] sm:$0xff] (!%p3125_p9), %v4067_v0 }
  0x57   : > { %239 = vst [vmem:[#allocation2 + $0x30] sm:$0xff] (!%p3125_p9), %v4067_v0  ;;  %240 = vst [vmem:[#allocation2 + $0x38] sm:$0xff] (!%p3125_p9), %v4067_v0 }
  0x58   : > { %241 = vst [vmem:[#allocation2 + $0x40] sm:$0xff] (!%p3125_p9), %v4067_v0  ;;  %242 = vst [vmem:[#allocation2 + $0x48] sm:$0xff] (!%p3125_p9), %v4067_v0 }
  0x59   : > { %243 = vst [vmem:[#allocation2 + $0x50] sm:$0xff] (!%p3125_p9), %v4067_v0  ;;  %244 = vst [vmem:[#allocation2 + $0x58] sm:$0xff] (!%p3125_p9), %v4067_v0 }
  0x5a   : > { %245 = vst [vmem:[#allocation2 + $0x60] sm:$0xff] (!%p3125_p9), %v4067_v0  ;;  %246 = vst [vmem:[#allocation2 + $0x68] sm:$0xff] (!%p3125_p9), %v4067_v0 }
  0x5b   : > { %247 = vst [vmem:[#allocation2 + $0x70] sm:$0xff] %v4067_v0  ;;  %248 = vst [vmem:[#allocation2 + $0x78] sm:$0xff] %v4067_v0 }
  0x5c   : > { %249 = vst [vmem:[#allocation2 + $0x80] sm:$0xff] %v4067_v0  ;;  %250 = vst [vmem:[#allocation2 + $0x88] sm:$0xff] %v4067_v0 }
  0x5d   : > { %251 = vst [vmem:[#allocation2 + $0x90] sm:$0xff] %v4067_v0  ;;  %252 = vst [vmem:[#allocation2 + $0x98] sm:$0xff] %v4067_v0 }
  0x5e   : > { %253 = vst [vmem:[#allocation2 + $0xa0] sm:$0xff] %v4067_v0  ;;  %254 = vst [vmem:[#allocation2 + $0xa8] sm:$0xff] %v4067_v0 }
  0x5f   : > { %255 = vst [vmem:[#allocation2 + $0xb0] sm:$0xff] %v4067_v0  ;;  %256 = vst [vmem:[#allocation2 + $0xb8] sm:$0xff] %v4067_v0 }
  0x60   : > { %257 = vst [vmem:[#allocation2 + $0xc0] sm:$0xff] %v4067_v0  ;;  %258 = vst [vmem:[#allocation2 + $0xc8] sm:$0xff] %v4067_v0 }
  0x61   : > { %259 = vst [vmem:[#allocation2 + $0xd0] sm:$0xff] %v4067_v0  ;;  %260 = vst [vmem:[#allocation2 + $0xd8] sm:$0xff] %v4067_v0 }
  0x62   : > { %261 = vst [vmem:[#allocation2 + $0xe0] sm:$0xff] %v4067_v0  ;;  %262 = vst [vmem:[#allocation2 + $0xe8] sm:$0xff] %v4067_v0 }
  0x63   : > { %263 = vst [vmem:[#allocation2 + $0xf0] sm:$0xff] %v4067_v0  ;;  %264 = vst [vmem:[#allocation2 + $0xf8] sm:$0xff] %v4067_v0 }
  0x64   : > { %265 = vst [vmem:[#allocation2 + $0x100] sm:$0xff] %v4067_v0  ;;  %266 = vst [vmem:[#allocation2 + $0x108] sm:$0xff] %v4067_v0 }
  0x65   : > { %267 = vst [vmem:[#allocation2 + $0x110] sm:$0xff] %v4067_v0  ;;  %268 = vst [vmem:[#allocation2 + $0x118] sm:$0xff] %v4067_v0 }
  0x66   : > { %269 = vst [vmem:[#allocation2 + $0x120] sm:$0xff] %v4067_v0  ;;  %270 = vst [vmem:[#allocation2 + $0x128] sm:$0xff] %v4067_v0 }
  0x67   : > { %271 = vst [vmem:[#allocation2 + $0x130] sm:$0xff] %v4067_v0  ;;  %272 = vst [vmem:[#allocation2 + $0x138] sm:$0xff] %v4067_v0 }
  0x68   : > { %273 = vst [vmem:[#allocation2 + $0x140] sm:$0xff] %v4067_v0  ;;  %274 = vst [vmem:[#allocation2 + $0x148] sm:$0xff] %v4067_v0 }
  0x69   : > { %275 = vst [vmem:[#allocation2 + $0x150] sm:$0xff] %v4067_v0  ;;  %276 = vst [vmem:[#allocation2 + $0x158] sm:$0xff] %v4067_v0 }
  0x6a   : > { %277 = vst [vmem:[#allocation2 + $0x160] sm:$0xff] %v4067_v0  ;;  %278 = vst [vmem:[#allocation2 + $0x168] sm:$0xff] %v4067_v0 }
  0x6b   : > { %279 = vst [vmem:[#allocation2 + $0x170] sm:$0xff] %v4067_v0  ;;  %280 = vst [vmem:[#allocation2 + $0x178] sm:$0xff] %v4067_v0 }
  0x6c   : > { %281 = vst [vmem:[#allocation2 + $0x180] sm:$0xff] %v4067_v0  ;;  %282 = vst [vmem:[#allocation2 + $0x188] sm:$0xff] %v4067_v0 }
  0x6d   : > { %283 = vst [vmem:[#allocation2 + $0x190] sm:$0xff] %v4067_v0  ;;  %284 = vst [vmem:[#allocation2 + $0x198] sm:$0xff] %v4067_v0 }
  0x6e   : > { %285 = vst [vmem:[#allocation2 + $0x1a0] sm:$0xff] %v4067_v0  ;;  %286 = vst [vmem:[#allocation2 + $0x1a8] sm:$0xff] %v4067_v0 }
  0x6f   : > { %287 = vst [vmem:[#allocation2 + $0x1b0] sm:$0xff] %v4067_v0  ;;  %288 = vst [vmem:[#allocation2 + $0x1b8] sm:$0xff] %v4067_v0 }
  0x70   : > { %289 = vst [vmem:[#allocation2 + $0x1c0] sm:$0xff] %v4067_v0  ;;  %290 = vst [vmem:[#allocation2 + $0x1c8] sm:$0xff] %v4067_v0 }
  0x71   : > { %291 = vst [vmem:[#allocation2 + $0x1d0] sm:$0xff] %v4067_v0  ;;  %292 = vst [vmem:[#allocation2 + $0x1d8] sm:$0xff] %v4067_v0 }
  0x72   : > { %293 = vst [vmem:[#allocation2 + $0x1e0] sm:$0xff] %v4067_v0  ;;  %294 = vst [vmem:[#allocation2 + $0x1e8] sm:$0xff] %v4067_v0 }
  0x73   : > { %295 = vst [vmem:[#allocation2 + $0x1f0] sm:$0xff] %v4067_v0  ;;  %296 = vst [vmem:[#allocation2 + $0x1f8] sm:$0xff] %v4067_v0 }
  0x74 PF: > { %v3688_v1 = vld [vmem:[%s4238_s22] sm:$0xff]   ;;  %v4068_v2 = vmov 0   ;;  %v3690_v4 = vld [vmem:[%s4238_s22 + $0x8] sm:$0xff]   ;;  %v3692_v6 = vld [vmem:[%s4238_s22 + $0x10] sm:$0xff]   ;;  %p3286_p12 = scmp.ne.s32.totalorder %s4050_s12, 3 }
  0x75   : > { %1385 = vmatprep.subr.bf16.mxu0 %v4068_v2  ;;  %1674 = vmatprep.subr.bf16.mxu1 %v4068_v2  ;;  %v3689_v3 = vld [vmem:[%s4238_s22 + $0x80] sm:$0xff]   ;;  %v3691_v5 = vld [vmem:[%s4238_s22 + $0x88] sm:$0xff]   ;;  %v3693_v7 = vld [vmem:[%s4238_s22 + $0x90] sm:$0xff]  }
  0x76   : > { %1386 = vmatpush1.bf16.msra.mxu0 %v3688_v1  ;;  %1675 = vmatpush1.bf16.msra.mxu1 %v3689_v3  ;;  %v3694_v8 = vld [vmem:[%s4238_s22 + $0x18] sm:$0xff]   ;;  %v3696_v10 = vld [vmem:[%s4238_s22 + $0x20] sm:$0xff]   ;;  %v3698_v12 = vld [vmem:[%s4238_s22 + $0x28] sm:$0xff]  }
  0x77   : > { %1387 = vmatprep.subr.bf16.mxu0 %v4068_v2  ;;  %1676 = vmatprep.subr.bf16.mxu1 %v4068_v2  ;;  %v3695_v9 = vld [vmem:[%s4238_s22 + $0x98] sm:$0xff]   ;;  %v3697_v11 = vld [vmem:[%s4238_s22 + $0xa0] sm:$0xff]   ;;  %v3699_v13 = vld [vmem:[%s4238_s22 + $0xa8] sm:$0xff]  }
  0x78   : > { %v3700_v14 = vld [vmem:[%s4238_s22 + $0x30] sm:$0xff]   ;;  %v3702_v16 = vld [vmem:[%s4238_s22 + $0x38] sm:$0xff]   ;;  %v3704_v18 = vld [vmem:[%s4238_s22 + $0x40] sm:$0xff]  }
  0x79   : > { %v3701_v15 = vld [vmem:[%s4238_s22 + $0xb0] sm:$0xff]   ;;  %v3703_v17 = vld [vmem:[%s4238_s22 + $0xb8] sm:$0xff]   ;;  %v3705_v19 = vld [vmem:[%s4238_s22 + $0xc0] sm:$0xff]  }
  0x7a   : > { %1388 = vmatpush1.bf16.msra.mxu0 %v3690_v4  ;;  %1677 = vmatpush1.bf16.msra.mxu1 %v3691_v5  ;;  %v3722_v20 = vld [vmem:[%s4232_s18 + $0x4] ss:$16 sps:$4 sm:$0xff]   ;;  %v3706_v21 = vld [vmem:[%s4238_s22 + $0x48] sm:$0xff]   ;;  %v3710_v26 = vld [vmem:[%s4238_s22 + $0x58] sm:$0xff]  }
  0x7b   : > { %1389 = vmatprep.subr.bf16.mxu0 %v4068_v2  ;;  %1678 = vmatprep.subr.bf16.mxu1 %v4068_v2  ;;  %v3725_v22 = vld [vmem:[%s4232_s18 + $0xc] ss:$16 sps:$4 sm:$0xff]   ;;  %v3708_v24 = vld [vmem:[%s4238_s22 + $0x50] sm:$0xff]   ;;  %v3712_v28 = vld [vmem:[%s4238_s22 + $0x60] sm:$0xff]  }
  0x7c   : > { %v3707_v23 = vld [vmem:[%s4238_s22 + $0xc8] sm:$0xff]   ;;  %1417 = vmatprep.mubr.bf16.mxu0 %v3722_v20  ;;  %1706 = vmatprep.mubr.bf16.mxu1 %v3725_v22  ;;  %v3709_v25 = vld [vmem:[%s4238_s22 + $0xd0] sm:$0xff]   ;;  %v3711_v27 = vld [vmem:[%s4238_s22 + $0xd8] sm:$0xff]  }
  0x7d   : > { %v3713_v29 = vld [vmem:[%s4238_s22 + $0xe0] sm:$0xff]   ;;  %v3714_v30 = vld [vmem:[%s4238_s22 + $0x68] sm:$0xff]   ;;  %v3716_v32 = vld [vmem:[%s4238_s22 + $0x70] sm:$0xff]  }
  0x7e   : > { %1390 = vmatpush1.bf16.msra.mxu0 %v3692_v6  ;;  %1679 = vmatpush1.bf16.msra.mxu1 %v3693_v7  ;;  %v3715_v31 = vld [vmem:[%s4238_s22 + $0xe8] sm:$0xff]   ;;  %v3717_v33 = vld [vmem:[%s4238_s22 + $0xf0] sm:$0xff]   ;;  %v3718_v34 = vld [vmem:[%s4238_s22 + $0x78] sm:$0xff]  }
  0x7f   : > { %1391 = vmatprep.subr.bf16.mxu0 %v4068_v2  ;;  %1680 = vmatprep.subr.bf16.mxu1 %v4068_v2  ;;  %v3719_v35 = vld [vmem:[%s4238_s22 + $0xf8] sm:$0xff]   ;;  %v3720_v36 = vld [vmem:[%s4232_s18] ss:$16 sps:$4 sm:$0xff]   ;;  %v3726_v38 = vld [vmem:[%s4232_s18 + $0x24] ss:$16 sps:$4 sm:$0xff]  }
  0x80   : > { %v3723_v37 = vld [vmem:[%s4232_s18 + $0x8] ss:$16 sps:$4 sm:$0xff]   ;;  %v3728_v39 = vld [vmem:[%s4232_s18 + $0x2c] ss:$16 sps:$4 sm:$0xff]   ;;  %v3730_v40 = vld [vmem:[%s4232_s18 + $0x20] ss:$16 sps:$4 sm:$0xff]  }
  0x81   : > { %v3731_v41 = vld [vmem:[%s4232_s18 + $0x28] ss:$16 sps:$4 sm:$0xff]   ;;  %v3732_v42 = vld [vmem:[%s4232_s18 + $0x44] ss:$16 sps:$4 sm:$0xff]   ;;  %v3734_v43 = vld [vmem:[%s4232_s18 + $0x4c] ss:$16 sps:$4 sm:$0xff]  }
  0x82   : > { %1392 = vmatpush1.bf16.msra.mxu0 %v3694_v8  ;;  %1681 = vmatpush1.bf16.msra.mxu1 %v3695_v9  ;;  %v3736_v44 = vld [vmem:[%s4232_s18 + $0x40] ss:$16 sps:$4 sm:$0xff]   ;;  %v3737_v45 = vld [vmem:[%s4232_s18 + $0x48] ss:$16 sps:$4 sm:$0xff]   ;;  %v3738_v46 = vld [vmem:[%s4232_s18 + $0x64] ss:$16 sps:$4 sm:$0xff]  }
  0x83   : > { %1393 = vmatprep.subr.bf16.mxu0 %v4068_v2  ;;  %1682 = vmatprep.subr.bf16.mxu1 %v4068_v2  ;;  %v3740_v47 = vld [vmem:[%s4232_s18 + $0x6c] ss:$16 sps:$4 sm:$0xff]   ;;  %v3742_v48 = vld [vmem:[%s4232_s18 + $0x60] ss:$16 sps:$4 sm:$0xff]   ;;  %v3743_v49 = vld [vmem:[%s4232_s18 + $0x68] ss:$16 sps:$4 sm:$0xff]  }
  0x84   : > { %v3744_v50 = vld [vmem:[%s4232_s18 + $0x84] ss:$16 sps:$4 sm:$0xff]   ;;  %v3746_v51 = vld [vmem:[%s4232_s18 + $0x8c] ss:$16 sps:$4 sm:$0xff]   ;;  %v3748_v52 = vld [vmem:[%s4232_s18 + $0x80] ss:$16 sps:$4 sm:$0xff]  }
  0x85   : > { %v3749_v53 = vld [vmem:[%s4232_s18 + $0x88] ss:$16 sps:$4 sm:$0xff]   ;;  %v3750_v54 = vld [vmem:[%s4232_s18 + $0xa4] ss:$16 sps:$4 sm:$0xff]   ;;  %v3752_v55 = vld [vmem:[%s4232_s18 + $0xac] ss:$16 sps:$4 sm:$0xff]  }
  0x86   : > { %1394 = vmatpush1.bf16.msra.mxu0 %v3696_v10  ;;  %1683 = vmatpush1.bf16.msra.mxu1 %v3697_v11  ;;  %v3754_v56 = vld [vmem:[%s4232_s18 + $0xa0] ss:$16 sps:$4 sm:$0xff]   ;;  %v3755_v57 = vld [vmem:[%s4232_s18 + $0xa8] ss:$16 sps:$4 sm:$0xff]   ;;  %v3756_v58 = vld [vmem:[%s4232_s18 + $0xc4] ss:$16 sps:$4 sm:$0xff]  }
  0x87   : > { %1395 = vmatprep.subr.bf16.mxu0 %v4068_v2  ;;  %1684 = vmatprep.subr.bf16.mxu1 %v4068_v2  ;;  %v3758_v59 = vld [vmem:[%s4232_s18 + $0xcc] ss:$16 sps:$4 sm:$0xff]   ;;  %v3760_v60 = vld [vmem:[%s4232_s18 + $0xc0] ss:$16 sps:$4 sm:$0xff]   ;;  %v3761_v61 = vld [vmem:[%s4232_s18 + $0xc8] ss:$16 sps:$4 sm:$0xff]  }
  0x88   : > { %v3762_v62 = vld [vmem:[%s4232_s18 + $0xe4] ss:$16 sps:$4 sm:$0xff]   ;;  %v3764_v63 = vld [vmem:[%s4232_s18 + $0xec] ss:$16 sps:$4 sm:$0xff]   ;;  %v3766_v0 = vld [vmem:[%s4232_s18 + $0xe0] ss:$16 sps:$4 sm:$0xff]  }
  0x89   : > { %v3767_v1 = vld [vmem:[%s4232_s18 + $0xe8] ss:$16 sps:$4 sm:$0xff]   ;;  %v3770_v3 = vld [vmem:[%s4232_s18 + $0x10c] ss:$16 sps:$4 sm:$0xff]   ;;  %v3772_v4 = vld [vmem:[%s4232_s18 + $0x100] ss:$16 sps:$4 sm:$0xff]  }
  0x8a   : > { %1396 = vmatpush1.bf16.msra.mxu0 %v3698_v12  ;;  %1685 = vmatpush1.bf16.msra.mxu1 %v3699_v13  ;;  %v3773_v5 = vld [vmem:[%s4232_s18 + $0x108] ss:$16 sps:$4 sm:$0xff]   ;;  %v3774_v6 = vld [vmem:[%s4232_s18 + $0x124] ss:$16 sps:$4 sm:$0xff]   ;;  %v3776_v7 = vld [vmem:[%s4232_s18 + $0x12c] ss:$16 sps:$4 sm:$0xff]  }
  0x8b   : > { %1397 = vmatprep.subr.bf16.mxu0 %v4068_v2  ;;  %1686 = vmatprep.subr.bf16.mxu1 %v4068_v2  ;;  %v3778_v8 = vld [vmem:[%s4232_s18 + $0x120] ss:$16 sps:$4 sm:$0xff]   ;;  %v3779_v9 = vld [vmem:[%s4232_s18 + $0x128] ss:$16 sps:$4 sm:$0xff]   ;;  %v3780_v10 = vld [vmem:[%s4232_s18 + $0x144] ss:$16 sps:$4 sm:$0xff]  }
  0x8c   : > { %v3782_v11 = vld [vmem:[%s4232_s18 + $0x14c] ss:$16 sps:$4 sm:$0xff]   ;;  %v3784_v12 = vld [vmem:[%s4232_s18 + $0x140] ss:$16 sps:$4 sm:$0xff]   ;;  %v3785_v13 = vld [vmem:[%s4232_s18 + $0x148] ss:$16 sps:$4 sm:$0xff]  }
  0x8d   : > { %v3796_v20 = vld [vmem:[%s4232_s18 + $0x180] ss:$16 sps:$4 sm:$0xff]   ;;  %v3798_v22 = vld [vmem:[%s4232_s18 + $0x1a4] ss:$16 sps:$4 sm:$0xff]  }
  0x8e   : > { %1398 = vmatpush1.bf16.msra.mxu0 %v3700_v14  ;;  %1687 = vmatpush1.bf16.msra.mxu1 %v3701_v15  ;;  %v3786_v14 = vld [vmem:[%s4232_s18 + $0x164] ss:$16 sps:$4 sm:$0xff]   ;;  %v3788_v15 = vld [vmem:[%s4232_s18 + $0x16c] ss:$16 sps:$4 sm:$0xff]  }
  0x8f   : > { %1399 = vmatprep.subr.bf16.mxu0 %v4068_v2  ;;  %1688 = vmatprep.subr.bf16.mxu1 %v4068_v2 }
  0x92   : > { %1400 = vmatpush1.bf16.msra.mxu0 %v3702_v16  ;;  %1689 = vmatpush1.bf16.msra.mxu1 %v3703_v17  ;;  %v3790_v16 = vld [vmem:[%s4232_s18 + $0x160] ss:$16 sps:$4 sm:$0xff]   ;;  %v3791_v17 = vld [vmem:[%s4232_s18 + $0x168] ss:$16 sps:$4 sm:$0xff]  }
  0x93   : > { %1401 = vmatprep.subr.bf16.mxu0 %v4068_v2  ;;  %1690 = vmatprep.subr.bf16.mxu1 %v4068_v2 }
  0x96   : > { %1402 = vmatpush1.bf16.msra.mxu0 %v3704_v18  ;;  %1691 = vmatpush1.bf16.msra.mxu1 %v3705_v19  ;;  %v3792_v18 = vld [vmem:[%s4232_s18 + $0x184] ss:$16 sps:$4 sm:$0xff]   ;;  %v3794_v19 = vld [vmem:[%s4232_s18 + $0x18c] ss:$16 sps:$4 sm:$0xff]  }
  0x97   : > { %1403 = vmatprep.subr.bf16.mxu0 %v4068_v2  ;;  %1692 = vmatprep.subr.bf16.mxu1 %v4068_v2 }
  0x9a   : > { %1404 = vmatpush1.bf16.msra.mxu0 %v3706_v21  ;;  %1693 = vmatpush1.bf16.msra.mxu1 %v3707_v23  ;;  %v3797_v21 = vld [vmem:[%s4232_s18 + $0x188] ss:$16 sps:$4 sm:$0xff]   ;;  %v3800_v23 = vld [vmem:[%s4232_s18 + $0x1ac] ss:$16 sps:$4 sm:$0xff]  }
  0x9b   : > { %1405 = vmatprep.subr.bf16.mxu0 %v4068_v2  ;;  %1694 = vmatprep.subr.bf16.mxu1 %v4068_v2 }
  0x9e   : > { %1406 = vmatpush1.bf16.msra.mxu0 %v3708_v24  ;;  %1695 = vmatpush1.bf16.msra.mxu1 %v3709_v25  ;;  %v3802_v24 = vld [vmem:[%s4232_s18 + $0x1a0] ss:$16 sps:$4 sm:$0xff]   ;;  %v3803_v25 = vld [vmem:[%s4232_s18 + $0x1a8] ss:$16 sps:$4 sm:$0xff]  }
  0x9f   : > { %1407 = vmatprep.subr.bf16.mxu0 %v4068_v2  ;;  %1696 = vmatprep.subr.bf16.mxu1 %v4068_v2 }
  0xa2   : > { %1408 = vmatpush1.bf16.msra.mxu0 %v3710_v26  ;;  %1697 = vmatpush1.bf16.msra.mxu1 %v3711_v27  ;;  %v3804_v26 = vld [vmem:[%s4232_s18 + $0x1c4] ss:$16 sps:$4 sm:$0xff]   ;;  %v3806_v27 = vld [vmem:[%s4232_s18 + $0x1cc] ss:$16 sps:$4 sm:$0xff]  }
  0xa3   : > { %1409 = vmatprep.subr.bf16.mxu0 %v4068_v2  ;;  %1698 = vmatprep.subr.bf16.mxu1 %v4068_v2 }
  0xa6   : > { %1410 = vmatpush1.bf16.msra.mxu0 %v3712_v28  ;;  %1699 = vmatpush1.bf16.msra.mxu1 %v3713_v29  ;;  %v3808_v28 = vld [vmem:[%s4232_s18 + $0x1c0] ss:$16 sps:$4 sm:$0xff]   ;;  %v3809_v29 = vld [vmem:[%s4232_s18 + $0x1c8] ss:$16 sps:$4 sm:$0xff]  }
  0xa7   : > { %1411 = vmatprep.subr.bf16.mxu0 %v4068_v2  ;;  %1700 = vmatprep.subr.bf16.mxu1 %v4068_v2 }
  0xaa   : > { %1412 = vmatpush1.bf16.msra.mxu0 %v3714_v30  ;;  %1701 = vmatpush1.bf16.msra.mxu1 %v3715_v31  ;;  %v3810_v30 = vld [vmem:[%s4232_s18 + $0x1e4] ss:$16 sps:$4 sm:$0xff]   ;;  %v3812_v31 = vld [vmem:[%s4232_s18 + $0x1ec] ss:$16 sps:$4 sm:$0xff]  }
  0xab   : > { %1413 = vmatprep.subr.bf16.mxu0 %v4068_v2  ;;  %1702 = vmatprep.subr.bf16.mxu1 %v4068_v2 }
  0xae   : > { %1414 = vmatpush1.bf16.msra.mxu0 %v3716_v32  ;;  %1703 = vmatpush1.bf16.msra.mxu1 %v3717_v33  ;;  %v3814_v32 = vld [vmem:[%s4232_s18 + $0x1e0] ss:$16 sps:$4 sm:$0xff]   ;;  %v3815_v33 = vld [vmem:[%s4232_s18 + $0x1e8] ss:$16 sps:$4 sm:$0xff]  }
  0xaf   : > { %1415 = vmatprep.subr.bf16.mxu0 %v4068_v2  ;;  %1704 = vmatprep.subr.bf16.mxu1 %v4068_v2  ;;  %v3768_v2 = vld [vmem:[%s4232_s18 + $0x104] ss:$16 sps:$4 sm:$0xff]  }
  0xb2   : > { %1416 = vmatpush1.bf16.msra.mxu0 %v3718_v34  ;;  %1705 = vmatpush1.bf16.msra.mxu1 %v3719_v35  ;;  %v3816_v34 = vld [vmem:[%s4232_s18 + $0x204] ss:$16 sps:$4 sm:$0xff]   ;;  %v3818_v35 = vld [vmem:[%s4232_s18 + $0x20c] ss:$16 sps:$4 sm:$0xff]  }
  0xb5   : > { %1418 = vmatmul.mubr.bf16.vlgmr.msra.gmra.mrb[0].mxu0 %v3720_v36  ;;  %1707 = vmatmul.mubr.bf16.vlgmr.msra.gmra.mrb[0].mxu1 %v3723_v37  ;;  %v3820_v36 = vld [vmem:[%s4232_s18 + $0x200] ss:$16 sps:$4 sm:$0xff]   ;;  %v3821_v37 = vld [vmem:[%s4232_s18 + $0x208] ss:$16 sps:$4 sm:$0xff]  }
  0xb6   : > { %1425 = vmatprep.mubr.bf16.mxu0 %v3726_v38  ;;  %1714 = vmatprep.mubr.bf16.mxu1 %v3728_v39  ;;  %v3822_v38 = vld [vmem:[%s4232_s18 + $0x224] ss:$16 sps:$4 sm:$0xff]   ;;  %v3824_v39 = vld [vmem:[%s4232_s18 + $0x22c] ss:$16 sps:$4 sm:$0xff]  }
  0xbd   : > { %1426 = vmatmul.mubr.bf16.gmra.mrb[4].mxu0 %v3730_v40  ;;  %1715 = vmatmul.mubr.bf16.gmra.mrb[4].mxu1 %v3731_v41  ;;  %v3826_v40 = vld [vmem:[%s4232_s18 + $0x220] ss:$16 sps:$4 sm:$0xff]   ;;  %v3827_v41 = vld [vmem:[%s4232_s18 + $0x228] ss:$16 sps:$4 sm:$0xff]  }
  0xbe   : > { %1433 = vmatprep.mubr.bf16.mxu0 %v3732_v42  ;;  %1722 = vmatprep.mubr.bf16.mxu1 %v3734_v43  ;;  %v3828_v42 = vld [vmem:[%s4232_s18 + $0x244] ss:$16 sps:$4 sm:$0xff]   ;;  %v3830_v43 = vld [vmem:[%s4232_s18 + $0x24c] ss:$16 sps:$4 sm:$0xff]  }
  0xc5   : > { %1434 = vmatmul.mubr.bf16.gmra.mrb[8].mxu0 %v3736_v44  ;;  %1723 = vmatmul.mubr.bf16.gmra.mrb[8].mxu1 %v3737_v45  ;;  %v3832_v44 = vld [vmem:[%s4232_s18 + $0x240] ss:$16 sps:$4 sm:$0xff]   ;;  %v3833_v45 = vld [vmem:[%s4232_s18 + $0x248] ss:$16 sps:$4 sm:$0xff]  }
  0xc6   : > { %1441 = vmatprep.mubr.bf16.mxu0 %v3738_v46  ;;  %1730 = vmatprep.mubr.bf16.mxu1 %v3740_v47  ;;  %v3834_v46 = vld [vmem:[%s4232_s18 + $0x264] ss:$16 sps:$4 sm:$0xff]   ;;  %v3836_v47 = vld [vmem:[%s4232_s18 + $0x26c] ss:$16 sps:$4 sm:$0xff]  }
  0xcd   : > { %1442 = vmatmul.mubr.bf16.gmra.mrb[12].mxu0 %v3742_v48  ;;  %1731 = vmatmul.mubr.bf16.gmra.mrb[12].mxu1 %v3743_v49  ;;  %v3838_v48 = vld [vmem:[%s4232_s18 + $0x260] ss:$16 sps:$4 sm:$0xff]   ;;  %v3839_v49 = vld [vmem:[%s4232_s18 + $0x268] ss:$16 sps:$4 sm:$0xff]  }
  0xce   : > { %1449 = vmatprep.mubr.bf16.mxu0 %v3744_v50  ;;  %1738 = vmatprep.mubr.bf16.mxu1 %v3746_v51  ;;  %v3840_v50 = vld [vmem:[%s4232_s18 + $0x284] ss:$16 sps:$4 sm:$0xff]   ;;  %v3842_v51 = vld [vmem:[%s4232_s18 + $0x28c] ss:$16 sps:$4 sm:$0xff]  }
  0xd5   : > { %1450 = vmatmul.mubr.bf16.gmra.mrb[16].mxu0 %v3748_v52  ;;  %1739 = vmatmul.mubr.bf16.gmra.mrb[16].mxu1 %v3749_v53  ;;  %v3844_v52 = vld [vmem:[%s4232_s18 + $0x280] ss:$16 sps:$4 sm:$0xff]   ;;  %v3845_v53 = vld [vmem:[%s4232_s18 + $0x288] ss:$16 sps:$4 sm:$0xff]  }
  0xd6   : > { %1457 = vmatprep.mubr.bf16.mxu0 %v3750_v54  ;;  %1746 = vmatprep.mubr.bf16.mxu1 %v3752_v55  ;;  %v3846_v54 = vld [vmem:[%s4232_s18 + $0x2a4] ss:$16 sps:$4 sm:$0xff]   ;;  %v3848_v55 = vld [vmem:[%s4232_s18 + $0x2ac] ss:$16 sps:$4 sm:$0xff]  }
  0xdd   : > { %1458 = vmatmul.mubr.bf16.gmra.mrb[20].mxu0 %v3754_v56  ;;  %1747 = vmatmul.mubr.bf16.gmra.mrb[20].mxu1 %v3755_v57  ;;  %v3850_v56 = vld [vmem:[%s4232_s18 + $0x2a0] ss:$16 sps:$4 sm:$0xff]   ;;  %v3851_v57 = vld [vmem:[%s4232_s18 + $0x2a8] ss:$16 sps:$4 sm:$0xff]  }
  0xde   : > { %1465 = vmatprep.mubr.bf16.mxu0 %v3756_v58  ;;  %1754 = vmatprep.mubr.bf16.mxu1 %v3758_v59  ;;  %v3852_v58 = vld [vmem:[%s4232_s18 + $0x2c4] ss:$16 sps:$4 sm:$0xff]   ;;  %v3854_v59 = vld [vmem:[%s4232_s18 + $0x2cc] ss:$16 sps:$4 sm:$0xff]  }
  0xe5   : > { %1466 = vmatmul.mubr.bf16.gmra.mrb[24].mxu0 %v3760_v60  ;;  %1755 = vmatmul.mubr.bf16.gmra.mrb[24].mxu1 %v3761_v61  ;;  %v3856_v60 = vld [vmem:[%s4232_s18 + $0x2c0] ss:$16 sps:$4 sm:$0xff]   ;;  %v3857_v61 = vld [vmem:[%s4232_s18 + $0x2c8] ss:$16 sps:$4 sm:$0xff]  }
  0xe6   : > { %1473 = vmatprep.mubr.bf16.mxu0 %v3762_v62  ;;  %1762 = vmatprep.mubr.bf16.mxu1 %v3764_v63  ;;  %v3858_v62 = vld [vmem:[%s4232_s18 + $0x2e4] ss:$16 sps:$4 sm:$0xff]   ;;  %v3860_v63 = vld [vmem:[%s4232_s18 + $0x2ec] ss:$16 sps:$4 sm:$0xff]  }
  0xed   : > { %1474 = vmatmul.mubr.bf16.gmra.mrb[28].mxu0 %v3766_v0  ;;  %1763 = vmatmul.mubr.bf16.gmra.mrb[28].mxu1 %v3767_v1  ;;  %v3862_v0 = vld [vmem:[%s4232_s18 + $0x2e0] ss:$16 sps:$4 sm:$0xff]   ;;  %v3863_v1 = vld [vmem:[%s4232_s18 + $0x2e8] ss:$16 sps:$4 sm:$0xff]  }
  0xee   : > { %1481 = vmatprep.mubr.bf16.mxu0 %v3768_v2  ;;  %1770 = vmatprep.mubr.bf16.mxu1 %v3770_v3  ;;  %v3864_v2 = vld [vmem:[%s4232_s18 + $0x304] ss:$16 sps:$4 sm:$0xff]   ;;  %v3866_v3 = vld [vmem:[%s4232_s18 + $0x30c] ss:$16 sps:$4 sm:$0xff]  }
  0xf5   : > { %1482 = vmatmul.mubr.bf16.gmra.mrb[32].mxu0 %v3772_v4  ;;  %1771 = vmatmul.mubr.bf16.gmra.mrb[32].mxu1 %v3773_v5  ;;  %v3868_v4 = vld [vmem:[%s4232_s18 + $0x300] ss:$16 sps:$4 sm:$0xff]   ;;  %v3869_v5 = vld [vmem:[%s4232_s18 + $0x308] ss:$16 sps:$4 sm:$0xff]  }
  0xf6   : > { %1489 = vmatprep.mubr.bf16.mxu0 %v3774_v6  ;;  %1778 = vmatprep.mubr.bf16.mxu1 %v3776_v7  ;;  %v3870_v6 = vld [vmem:[%s4232_s18 + $0x324] ss:$16 sps:$4 sm:$0xff]   ;;  %v3872_v7 = vld [vmem:[%s4232_s18 + $0x32c] ss:$16 sps:$4 sm:$0xff]  }
  0xfd   : > { %1490 = vmatmul.mubr.bf16.gmra.mrb[36].mxu0 %v3778_v8  ;;  %1779 = vmatmul.mubr.bf16.gmra.mrb[36].mxu1 %v3779_v9  ;;  %v3874_v8 = vld [vmem:[%s4232_s18 + $0x320] ss:$16 sps:$4 sm:$0xff]   ;;  %v3875_v9 = vld [vmem:[%s4232_s18 + $0x328] ss:$16 sps:$4 sm:$0xff]  }
  0xfe   : > { %1497 = vmatprep.mubr.bf16.mxu0 %v3780_v10  ;;  %1786 = vmatprep.mubr.bf16.mxu1 %v3782_v11  ;;  %v3876_v10 = vld [vmem:[%s4232_s18 + $0x344] ss:$16 sps:$4 sm:$0xff]   ;;  %v3878_v11 = vld [vmem:[%s4232_s18 + $0x34c] ss:$16 sps:$4 sm:$0xff]  }
 0x105   : > { %1498 = vmatmul.mubr.bf16.gmra.mrb[40].mxu0 %v3784_v12  ;;  %1787 = vmatmul.mubr.bf16.gmra.mrb[40].mxu1 %v3785_v13  ;;  %v3880_v12 = vld [vmem:[%s4232_s18 + $0x340] ss:$16 sps:$4 sm:$0xff]   ;;  %v3881_v13 = vld [vmem:[%s4232_s18 + $0x348] ss:$16 sps:$4 sm:$0xff]  }
 0x106   : > { %1505 = vmatprep.mubr.bf16.mxu0 %v3786_v14  ;;  %1794 = vmatprep.mubr.bf16.mxu1 %v3788_v15  ;;  %v3882_v14 = vld [vmem:[%s4232_s18 + $0x364] ss:$16 sps:$4 sm:$0xff]   ;;  %v3884_v15 = vld [vmem:[%s4232_s18 + $0x36c] ss:$16 sps:$4 sm:$0xff]  }
 0x10d   : > { %1506 = vmatmul.mubr.bf16.gmra.mrb[44].mxu0 %v3790_v16  ;;  %1795 = vmatmul.mubr.bf16.gmra.mrb[44].mxu1 %v3791_v17  ;;  %v297_v17 = vld [vmem:[#allocation2] sm:$0xff] }
 0x10e   : > { %1513 = vmatprep.mubr.bf16.mxu0 %v3792_v18  ;;  %1802 = vmatprep.mubr.bf16.mxu1 %v3794_v19 }
 0x115   : > { %1514 = vmatmul.mubr.bf16.gmra.mrb[48].mxu0 %v3796_v20  ;;  %1803 = vmatmul.mubr.bf16.gmra.mrb[48].mxu1 %v3797_v21  ;;  %v3886_v20 = vld [vmem:[%s4232_s18 + $0x360] ss:$16 sps:$4 sm:$0xff]  }
 0x116   : > { %1521 = vmatprep.mubr.bf16.mxu0 %v3798_v22  ;;  %1810 = vmatprep.mubr.bf16.mxu1 %v3800_v23 }
 0x11d   : > { %1522 = vmatmul.mubr.bf16.gmra.mrb[52].mxu0 %v3802_v24  ;;  %1811 = vmatmul.mubr.bf16.gmra.mrb[52].mxu1 %v3803_v25  ;;  %v3887_v24 = vld [vmem:[%s4232_s18 + $0x368] ss:$16 sps:$4 sm:$0xff]   ;;  %v3888_v25 = vld [vmem:[%s4232_s18 + $0x384] ss:$16 sps:$4 sm:$0xff]  }
 0x11e   : > { %1529 = vmatprep.mubr.bf16.mxu0 %v3804_v26  ;;  %1818 = vmatprep.mubr.bf16.mxu1 %v3806_v27  ;;  %v298_v26 = vld [vmem:[#allocation2 + $0x8] sm:$0xff] }
 0x125   : > { %1530 = vmatmul.mubr.bf16.gmra.mrb[56].mxu0 %v3808_v28  ;;  %1819 = vmatmul.mubr.bf16.gmra.mrb[56].mxu1 %v3809_v29  ;;  %v3890_v29 = vld [vmem:[%s4232_s18 + $0x38c] ss:$16 sps:$4 sm:$0xff]  }
 0x126   : > { %1537 = vmatprep.mubr.bf16.mxu0 %v3810_v30  ;;  %1826 = vmatprep.mubr.bf16.mxu1 %v3812_v31 }
 0x12d   : > { %1538 = vmatmul.mubr.bf16.gmra.mrb[60].mxu0 %v3814_v32  ;;  %1827 = vmatmul.mubr.bf16.gmra.mrb[60].mxu1 %v3815_v33 }
 0x12e   : > { %1545 = vmatprep.mubr.bf16.mxu0 %v3816_v34  ;;  %1834 = vmatprep.mubr.bf16.mxu1 %v3818_v35  ;;  %v299_v35 = vld [vmem:[#allocation2 + $0x10] sm:$0xff] }
 0x135   : > { %1546 = vmatmul.mubr.bf16.gmra.mrb[64].mxu0 %v3820_v36  ;;  %1835 = vmatmul.mubr.bf16.gmra.mrb[64].mxu1 %v3821_v37 }
 0x136   : > { %1553 = vmatprep.mubr.bf16.mxu0 %v3822_v38  ;;  %1842 = vmatprep.mubr.bf16.mxu1 %v3824_v39  ;;  %v3892_v38 = vld [vmem:[%s4232_s18 + $0x380] ss:$16 sps:$4 sm:$0xff]  }
 0x13d   : > { %1554 = vmatmul.mubr.bf16.gmra.mrb[68].mxu0 %v3826_v40  ;;  %1843 = vmatmul.mubr.bf16.gmra.mrb[68].mxu1 %v3827_v41 }
 0x13e   : > { %1561 = vmatprep.mubr.bf16.mxu0 %v3828_v42  ;;  %1850 = vmatprep.mubr.bf16.mxu1 %v3830_v43  ;;  %v3893_v42 = vld [vmem:[%s4232_s18 + $0x388] ss:$16 sps:$4 sm:$0xff]   ;;  %v3894_v43 = vld [vmem:[%s4232_s18 + $0x3a4] ss:$16 sps:$4 sm:$0xff]  }
 0x145   : > { %1562 = vmatmul.mubr.bf16.gmra.mrb[72].mxu0 %v3832_v44  ;;  %1851 = vmatmul.mubr.bf16.gmra.mrb[72].mxu1 %v3833_v45  ;;  %v300_v44 = vld [vmem:[#allocation2 + $0x18] sm:$0xff] }
 0x146   : > { %1569 = vmatprep.mubr.bf16.mxu0 %v3834_v46  ;;  %1858 = vmatprep.mubr.bf16.mxu1 %v3836_v47  ;;  %v3896_v47 = vld [vmem:[%s4232_s18 + $0x3ac] ss:$16 sps:$4 sm:$0xff]  }
 0x14d   : > { %1570 = vmatmul.mubr.bf16.gmra.mrb[76].mxu0 %v3838_v48  ;;  %1859 = vmatmul.mubr.bf16.gmra.mrb[76].mxu1 %v3839_v49 }
 0x14e   : > { %1577 = vmatprep.mubr.bf16.mxu0 %v3840_v50  ;;  %1866 = vmatprep.mubr.bf16.mxu1 %v3842_v51 }
 0x155   : > { %1578 = vmatmul.mubr.bf16.gmra.mrb[80].mxu0 %v3844_v52  ;;  %1867 = vmatmul.mubr.bf16.gmra.mrb[80].mxu1 %v3845_v53  ;;  %v301_v53 = vld [vmem:[#allocation2 + $0x20] sm:$0xff] }
 0x156   : > { %1585 = vmatprep.mubr.bf16.mxu0 %v3846_v54  ;;  %1874 = vmatprep.mubr.bf16.mxu1 %v3848_v55 }
 0x15d   : > { %1586 = vmatmul.mubr.bf16.gmra.mrb[84].mxu0 %v3850_v56  ;;  %1875 = vmatmul.mubr.bf16.gmra.mrb[84].mxu1 %v3851_v57  ;;  %v3898_v56 = vld [vmem:[%s4232_s18 + $0x3a0] ss:$16 sps:$4 sm:$0xff]  }
 0x15e   : > { %1593 = vmatprep.mubr.bf16.mxu0 %v3852_v58  ;;  %1882 = vmatprep.mubr.bf16.mxu1 %v3854_v59 }
 0x165   : > { %1594 = vmatmul.mubr.bf16.gmra.mrb[88].mxu0 %v3856_v60  ;;  %1883 = vmatmul.mubr.bf16.gmra.mrb[88].mxu1 %v3857_v61  ;;  %v3899_v60 = vld [vmem:[%s4232_s18 + $0x3a8] ss:$16 sps:$4 sm:$0xff]   ;;  %v3900_v61 = vld [vmem:[%s4232_s18 + $0x3c4] ss:$16 sps:$4 sm:$0xff]  }
 0x166   : > { %1601 = vmatprep.mubr.bf16.mxu0 %v3858_v62  ;;  %1890 = vmatprep.mubr.bf16.mxu1 %v3860_v63  ;;  %v302_v62 = vld [vmem:[#allocation2 + $0x28] sm:$0xff] }
 0x16d   : > { %1602 = vmatmul.mubr.bf16.gmra.mrb[92].mxu0 %v3862_v0  ;;  %1891 = vmatmul.mubr.bf16.gmra.mrb[92].mxu1 %v3863_v1  ;;  %v3902_v1 = vld [vmem:[%s4232_s18 + $0x3cc] ss:$16 sps:$4 sm:$0xff]  }
 0x16e   : > { %1609 = vmatprep.mubr.bf16.mxu0 %v3864_v2  ;;  %1898 = vmatprep.mubr.bf16.mxu1 %v3866_v3 }
 0x175   : > { %1610 = vmatmul.mubr.bf16.gmra.mrb[96].mxu0 %v3868_v4  ;;  %1899 = vmatmul.mubr.bf16.gmra.mrb[96].mxu1 %v3869_v5 }
 0x176   : > { %1617 = vmatprep.mubr.bf16.mxu0 %v3870_v6  ;;  %1906 = vmatprep.mubr.bf16.mxu1 %v3872_v7  ;;  %v303_v7 = vld [vmem:[#allocation2 + $0x30] sm:$0xff] }
 0x17d   : > { %1618 = vmatmul.mubr.bf16.gmra.mrb[100].mxu0 %v3874_v8  ;;  %1907 = vmatmul.mubr.bf16.gmra.mrb[100].mxu1 %v3875_v9 }
 0x17e   : > { %1625 = vmatprep.mubr.bf16.mxu0 %v3876_v10  ;;  %1914 = vmatprep.mubr.bf16.mxu1 %v3878_v11  ;;  %v3904_v10 = vld [vmem:[%s4232_s18 + $0x3c0] ss:$16 sps:$4 sm:$0xff]  }
 0x185   : > { %1626 = vmatmul.mubr.bf16.gmra.mrb[104].mxu0 %v3880_v12  ;;  %1915 = vmatmul.mubr.bf16.gmra.mrb[104].mxu1 %v3881_v13 }
 0x186   : > { %1633 = vmatprep.mubr.bf16.mxu0 %v3882_v14  ;;  %1922 = vmatprep.mubr.bf16.mxu1 %v3884_v15  ;;  %v3905_v14 = vld [vmem:[%s4232_s18 + $0x3c8] ss:$16 sps:$4 sm:$0xff]   ;;  %v3906_v15 = vld [vmem:[%s4232_s18 + $0x3e4] ss:$16 sps:$4 sm:$0xff]  }
 0x188   : > { %v1419_v16 = vpop.f32.mrb[0].mxu0  ;;  %v1708_v18 = vpop.f32.mrb[0].mxu1 }
 0x189   : > { %v1421_v19 = vpop.f32.mrb[1].mxu0  ;;  %v1709_v21 = vadd.f32 %v1708_v18, %v1419_v16  ;;  %v1710_v22 = vpop.f32.mrb[1].mxu1  ;;  %v304_v16 = vld [vmem:[#allocation2 + $0x38] sm:$0xff] }
 0x18a   : > { %v1422_v23 = vpop.f32.mrb[2].mxu0  ;;  %v1711_v27 = vpop.f32.mrb[2].mxu1  ;;  %v3908_v19 = vld [vmem:[%s4232_s18 + $0x3ec] ss:$16 sps:$4 sm:$0xff]  }
 0x18b   : > { %v1424_v28 = vpop.f32.mrb[3].mxu0  ;;  %v1963_v30 = vadd.f32 %v1709_v21, %v297_v17  ;;  %v1712_v31 = vadd.f32 %v1711_v27, %v1422_v23  ;;  %v1713_v32 = vpop.f32.mrb[3].mxu1 }
 0x18c   : > { %v3910_v28 = vld [vmem:[%s4232_s18 + $0x3e0] ss:$16 sps:$4 sm:$0xff]   ;;  %v3911_v32 = vld [vmem:[%s4232_s18 + $0x3e8] ss:$16 sps:$4 sm:$0xff]  }
 0x18d   : > { %1634 = vmatmul.mubr.bf16.gmra.mrb[108].mxu0 %v3886_v20  ;;  %2027 = vst [vmem:[#allocation2] sm:$0xff] %v1963_v30  ;;  %v1964_v33 = vadd.f32 %v1712_v31, %v298_v26  ;;  %1923 = vmatmul.mubr.bf16.gmra.mrb[108].mxu1 %v3887_v24 }
 0x18e   : > { %1641 = vmatprep.mubr.bf16.mxu0 %v3888_v25  ;;  %1930 = vmatprep.mubr.bf16.mxu1 %v3890_v29  ;;  %v305_v25 = vld [vmem:[#allocation2 + $0x40] sm:$0xff] }
 0x18f   : > { %2028 = vst [vmem:[#allocation2 + $0x8] sm:$0xff] %v1964_v33  ;;  %v306_v33 = vld [vmem:[#allocation2 + $0x48] sm:$0xff] }
 0x190   : > { %v1427_v34 = vpop.f32.mrb[4].mxu0  ;;  %v1716_v36 = vpop.f32.mrb[4].mxu1 }
 0x191   : > { %v1429_v37 = vpop.f32.mrb[5].mxu0  ;;  %v1717_v39 = vadd.f32 %v1716_v36, %v1427_v34  ;;  %v1718_v40 = vpop.f32.mrb[5].mxu1 }
 0x192   : > { %v1430_v41 = vpop.f32.mrb[6].mxu0  ;;  %v1719_v45 = vpop.f32.mrb[6].mxu1 }
 0x193   : > { %v1432_v46 = vpop.f32.mrb[7].mxu0  ;;  %v1965_v48 = vadd.f32 %v1717_v39, %v299_v35  ;;  %v1720_v49 = vadd.f32 %v1719_v45, %v1430_v41  ;;  %v1721_v50 = vpop.f32.mrb[7].mxu1  ;;  %v307_v41 = vld [vmem:[#allocation2 + $0x50] sm:$0xff] }
 0x195   : > { %1642 = vmatmul.mubr.bf16.gmra.mrb[112].mxu0 %v3892_v38  ;;  %2029 = vst [vmem:[#allocation2 + $0x10] sm:$0xff] %v1965_v48  ;;  %v1966_v51 = vadd.f32 %v1720_v49, %v300_v44  ;;  %1931 = vmatmul.mubr.bf16.gmra.mrb[112].mxu1 %v3893_v42 }
 0x196   : > { %1649 = vmatprep.mubr.bf16.mxu0 %v3894_v43  ;;  %1938 = vmatprep.mubr.bf16.mxu1 %v3896_v47  ;;  %v308_v47 = vld [vmem:[#allocation2 + $0x58] sm:$0xff] }
 0x197   : > { %2030 = vst [vmem:[#allocation2 + $0x18] sm:$0xff] %v1966_v51 }
 0x198   : > { %v1435_v52 = vpop.f32.mrb[8].mxu0  ;;  %v1724_v54 = vpop.f32.mrb[8].mxu1 }
 0x199   : > { %v1437_v55 = vpop.f32.mrb[9].mxu0  ;;  %v1725_v57 = vadd.f32 %v1724_v54, %v1435_v52  ;;  %v1726_v58 = vpop.f32.mrb[9].mxu1 }
 0x19a   : > { %v1438_v59 = vpop.f32.mrb[10].mxu0  ;;  %v1727_v63 = vpop.f32.mrb[10].mxu1  ;;  %v309_v55 = vld [vmem:[#allocation2 + $0x60] sm:$0xff] }
 0x19b   : > { %v1440_v0 = vpop.f32.mrb[11].mxu0  ;;  %v1967_v2 = vadd.f32 %v1725_v57, %v301_v53  ;;  %v1728_v3 = vadd.f32 %v1727_v63, %v1438_v59  ;;  %v1729_v4 = vpop.f32.mrb[11].mxu1 }
 0x19d   : > { %1650 = vmatmul.mubr.bf16.gmra.mrb[116].mxu0 %v3898_v56  ;;  %2031 = vst [vmem:[#allocation2 + $0x20] sm:$0xff] %v1967_v2  ;;  %v1968_v5 = vadd.f32 %v1728_v3, %v302_v62  ;;  %1939 = vmatmul.mubr.bf16.gmra.mrb[116].mxu1 %v3899_v60 }
 0x19e   : > { %1657 = vmatprep.mubr.bf16.mxu0 %v3900_v61  ;;  %1946 = vmatprep.mubr.bf16.mxu1 %v3902_v1  ;;  %v310_v61 = vld [vmem:[#allocation2 + $0x68] sm:$0xff] }
 0x19f   : > { %2032 = vst [vmem:[#allocation2 + $0x28] sm:$0xff] %v1968_v5  ;;  %v311_v5 = vld [vmem:[#allocation2 + $0x70] sm:$0xff] }
 0x1a0   : > { %v1443_v6 = vpop.f32.mrb[12].mxu0  ;;  %v1732_v8 = vpop.f32.mrb[12].mxu1 }
 0x1a1   : > { %v1445_v9 = vpop.f32.mrb[13].mxu0  ;;  %v1733_v11 = vadd.f32 %v1732_v8, %v1443_v6  ;;  %v1734_v12 = vpop.f32.mrb[13].mxu1 }
 0x1a2   : > { %v1446_v13 = vpop.f32.mrb[14].mxu0  ;;  %v1735_v17 = vpop.f32.mrb[14].mxu1 }
 0x1a3   : > { %v1448_v18 = vpop.f32.mrb[15].mxu0  ;;  %v1969_v20 = vadd.f32 %v1733_v11, %v303_v7  ;;  %v1736_v21 = vadd.f32 %v1735_v17, %v1446_v13  ;;  %v1737_v22 = vpop.f32.mrb[15].mxu1  ;;  %v312_v11 = vld [vmem:[#allocation2 + $0x78] sm:$0xff] }
 0x1a5   : > { %1658 = vmatmul.mubr.bf16.gmra.mrb[120].mxu0 %v3904_v10  ;;  %2033 = vst [vmem:[#allocation2 + $0x30] sm:$0xff] %v1969_v20  ;;  %v1970_v23 = vadd.f32 %v1736_v21, %v304_v16  ;;  %1947 = vmatmul.mubr.bf16.gmra.mrb[120].mxu1 %v3905_v14 }
 0x1a6   : > { %1665 = vmatprep.mubr.bf16.mxu0 %v3906_v15  ;;  %1954 = vmatprep.mubr.bf16.mxu1 %v3908_v19  ;;  %v313_v19 = vld [vmem:[#allocation2 + $0x80] sm:$0xff] }
 0x1a7   : > { %2034 = vst [vmem:[#allocation2 + $0x38] sm:$0xff] %v1970_v23 }
 0x1a8   : > { %v1451_v24 = vpop.f32.mrb[16].mxu0  ;;  %v1740_v26 = vpop.f32.mrb[16].mxu1 }
 0x1a9   : > { %v1453_v27 = vpop.f32.mrb[17].mxu0  ;;  %v1741_v29 = vadd.f32 %v1740_v26, %v1451_v24  ;;  %v1742_v30 = vpop.f32.mrb[17].mxu1 }
 0x1aa   : > { %v1454_v31 = vpop.f32.mrb[18].mxu0  ;;  %v1743_v34 = vpop.f32.mrb[18].mxu1 }
 0x1ab   : > { %v1456_v35 = vpop.f32.mrb[19].mxu0  ;;  %v1971_v36 = vadd.f32 %v1741_v29, %v305_v25  ;;  %v1744_v37 = vadd.f32 %v1743_v34, %v1454_v31  ;;  %v1745_v38 = vpop.f32.mrb[19].mxu1  ;;  %v314_v25 = vld [vmem:[#allocation2 + $0x88] sm:$0xff] }
 0x1ad   : > { %1666 = vmatmul.mubr.bf16.gmra.mrb[124].mxu0 %v3910_v28  ;;  %2035 = vst [vmem:[#allocation2 + $0x40] sm:$0xff] %v1971_v36  ;;  %v1972_v39 = vadd.f32 %v1744_v37, %v306_v33  ;;  %1955 = vmatmul.mubr.bf16.gmra.mrb[124].mxu1 %v3911_v32  ;;  %v315_v33 = vld [vmem:[#allocation2 + $0x90] sm:$0xff] }
 0x1af   : > { %2036 = vst [vmem:[#allocation2 + $0x48] sm:$0xff] %v1972_v39  ;;  %v316_v39 = vld [vmem:[#allocation2 + $0x98] sm:$0xff] }
 0x1b0   : > { %v1459_v40 = vpop.f32.mrb[20].mxu0  ;;  %v1748_v42 = vpop.f32.mrb[20].mxu1 }
 0x1b1   : > { %v1461_v43 = vpop.f32.mrb[21].mxu0  ;;  %v1749_v44 = vadd.f32 %v1748_v42, %v1459_v40  ;;  %v1750_v45 = vpop.f32.mrb[21].mxu1 }
 0x1b2   : > { %v1462_v46 = vpop.f32.mrb[22].mxu0  ;;  %v1751_v48 = vpop.f32.mrb[22].mxu1 }
 0x1b3   : > { %v1464_v49 = vpop.f32.mrb[23].mxu0  ;;  %v1973_v50 = vadd.f32 %v1749_v44, %v307_v41  ;;  %v1752_v51 = vadd.f32 %v1751_v48, %v1462_v46  ;;  %v1753_v52 = vpop.f32.mrb[23].mxu1 }
 0x1b5   : > { %2037 = vst [vmem:[#allocation2 + $0x50] sm:$0xff] %v1973_v50  ;;  %v1974_v53 = vadd.f32 %v1752_v51, %v308_v47  ;;  %v317_v47 = vld [vmem:[#allocation2 + $0xa0] sm:$0xff] }
 0x1b7   : > { %2038 = vst [vmem:[#allocation2 + $0x58] sm:$0xff] %v1974_v53  ;;  %v318_v53 = vld [vmem:[#allocation2 + $0xa8] sm:$0xff] }
 0x1b8   : > { %v1467_v54 = vpop.f32.mrb[24].mxu0  ;;  %v1756_v56 = vpop.f32.mrb[24].mxu1 }
 0x1b9   : > { %v1469_v57 = vpop.f32.mrb[25].mxu0  ;;  %v1757_v58 = vadd.f32 %v1756_v56, %v1467_v54  ;;  %v1758_v59 = vpop.f32.mrb[25].mxu1 }
 0x1ba   : > { %v1470_v60 = vpop.f32.mrb[26].mxu0  ;;  %v1759_v62 = vpop.f32.mrb[26].mxu1 }
 0x1bb   : > { %v1472_v63 = vpop.f32.mrb[27].mxu0  ;;  %v1975_v0 = vadd.f32 %v1757_v58, %v309_v55  ;;  %v1760_v1 = vadd.f32 %v1759_v62, %v1470_v60  ;;  %v1761_v2 = vpop.f32.mrb[27].mxu1 }
 0x1bd   : > { %2039 = vst [vmem:[#allocation2 + $0x60] sm:$0xff] %v1975_v0  ;;  %v1976_v3 = vadd.f32 %v1760_v1, %v310_v61  ;;  %v319_v61 = vld [vmem:[#allocation2 + $0xb0] sm:$0xff] }
 0x1bf   : > { %2040 = vst [vmem:[#allocation2 + $0x68] sm:$0xff] %v1976_v3  ;;  %v320_v3 = vld [vmem:[#allocation2 + $0xb8] sm:$0xff] }
 0x1c0   : > { %v1475_v4 = vpop.f32.mrb[28].mxu0  ;;  %v1764_v6 = vpop.f32.mrb[28].mxu1 }
 0x1c1   : > { %v1477_v7 = vpop.f32.mrb[29].mxu0  ;;  %v1765_v8 = vadd.f32 %v1764_v6, %v1475_v4  ;;  %v1766_v9 = vpop.f32.mrb[29].mxu1 }
 0x1c2   : > { %v1478_v10 = vpop.f32.mrb[30].mxu0  ;;  %v1767_v12 = vpop.f32.mrb[30].mxu1 }
 0x1c3   : > { %v1480_v13 = vpop.f32.mrb[31].mxu0  ;;  %v1977_v14 = vadd.f32 %v1765_v8, %v311_v5  ;;  %v1768_v15 = vadd.f32 %v1767_v12, %v1478_v10  ;;  %v1769_v16 = vpop.f32.mrb[31].mxu1 }
 0x1c5   : > { %2041 = vst [vmem:[#allocation2 + $0x70] sm:$0xff] %v1977_v14  ;;  %v1978_v17 = vadd.f32 %v1768_v15, %v312_v11  ;;  %v321_v11 = vld [vmem:[#allocation2 + $0xc0] sm:$0xff] }
 0x1c7   : > { %2042 = vst [vmem:[#allocation2 + $0x78] sm:$0xff] %v1978_v17  ;;  %v322_v17 = vld [vmem:[#allocation2 + $0xc8] sm:$0xff] }
 0x1c8   : > { %v1483_v18 = vpop.f32.mrb[32].mxu0  ;;  %v1772_v20 = vpop.f32.mrb[32].mxu1 }
 0x1c9   : > { %v1485_v21 = vpop.f32.mrb[33].mxu0  ;;  %v1773_v22 = vadd.f32 %v1772_v20, %v1483_v18  ;;  %v1774_v23 = vpop.f32.mrb[33].mxu1 }
 0x1ca   : > { %v1486_v24 = vpop.f32.mrb[34].mxu0  ;;  %v1775_v26 = vpop.f32.mrb[34].mxu1 }
 0x1cb   : > { %v1488_v27 = vpop.f32.mrb[35].mxu0  ;;  %v1979_v28 = vadd.f32 %v1773_v22, %v313_v19  ;;  %v1776_v29 = vadd.f32 %v1775_v26, %v1486_v24  ;;  %v1777_v30 = vpop.f32.mrb[35].mxu1 }
 0x1cd   : > { %2043 = vst [vmem:[#allocation2 + $0x80] sm:$0xff] %v1979_v28  ;;  %v1980_v31 = vadd.f32 %v1776_v29, %v314_v25  ;;  %v323_v25 = vld [vmem:[#allocation2 + $0xd0] sm:$0xff] }
 0x1cf   : > { %2044 = vst [vmem:[#allocation2 + $0x88] sm:$0xff] %v1980_v31  ;;  %v324_v31 = vld [vmem:[#allocation2 + $0xd8] sm:$0xff] }
 0x1d0   : > { %v1491_v32 = vpop.f32.mrb[36].mxu0  ;;  %v1780_v34 = vpop.f32.mrb[36].mxu1 }
 0x1d1   : > { %v1493_v35 = vpop.f32.mrb[37].mxu0  ;;  %v1781_v36 = vadd.f32 %v1780_v34, %v1491_v32  ;;  %v1782_v37 = vpop.f32.mrb[37].mxu1 }
 0x1d2   : > { %v1494_v38 = vpop.f32.mrb[38].mxu0  ;;  %v1783_v40 = vpop.f32.mrb[38].mxu1 }
 0x1d3   : > { %v1496_v41 = vpop.f32.mrb[39].mxu0  ;;  %v1981_v42 = vadd.f32 %v1781_v36, %v315_v33  ;;  %v1784_v43 = vadd.f32 %v1783_v40, %v1494_v38  ;;  %v1785_v44 = vpop.f32.mrb[39].mxu1 }
 0x1d5   : > { %2045 = vst [vmem:[#allocation2 + $0x90] sm:$0xff] %v1981_v42  ;;  %v1982_v45 = vadd.f32 %v1784_v43, %v316_v39  ;;  %v325_v39 = vld [vmem:[#allocation2 + $0xe0] sm:$0xff] }
 0x1d7   : > { %2046 = vst [vmem:[#allocation2 + $0x98] sm:$0xff] %v1982_v45  ;;  %v326_v45 = vld [vmem:[#allocation2 + $0xe8] sm:$0xff] }
 0x1d8   : > { %v1499_v46 = vpop.f32.mrb[40].mxu0  ;;  %v1788_v48 = vpop.f32.mrb[40].mxu1 }
 0x1d9   : > { %v1501_v49 = vpop.f32.mrb[41].mxu0  ;;  %v1789_v50 = vadd.f32 %v1788_v48, %v1499_v46  ;;  %v1790_v51 = vpop.f32.mrb[41].mxu1 }
 0x1da   : > { %v1502_v52 = vpop.f32.mrb[42].mxu0  ;;  %v1791_v54 = vpop.f32.mrb[42].mxu1 }
 0x1db   : > { %v1504_v55 = vpop.f32.mrb[43].mxu0  ;;  %v1983_v56 = vadd.f32 %v1789_v50, %v317_v47  ;;  %v1792_v57 = vadd.f32 %v1791_v54, %v1502_v52  ;;  %v1793_v58 = vpop.f32.mrb[43].mxu1 }
 0x1dd   : > { %2047 = vst [vmem:[#allocation2 + $0xa0] sm:$0xff] %v1983_v56  ;;  %v1984_v59 = vadd.f32 %v1792_v57, %v318_v53  ;;  %v327_v53 = vld [vmem:[#allocation2 + $0xf0] sm:$0xff] }
 0x1df   : > { %2048 = vst [vmem:[#allocation2 + $0xa8] sm:$0xff] %v1984_v59  ;;  %v328_v59 = vld [vmem:[#allocation2 + $0xf8] sm:$0xff] }
 0x1e0   : > { %v1507_v60 = vpop.f32.mrb[44].mxu0  ;;  %v1796_v62 = vpop.f32.mrb[44].mxu1 }
 0x1e1   : > { %v1509_v63 = vpop.f32.mrb[45].mxu0  ;;  %v1797_v0 = vadd.f32 %v1796_v62, %v1507_v60  ;;  %v1798_v1 = vpop.f32.mrb[45].mxu1 }
 0x1e2   : > { %v1510_v2 = vpop.f32.mrb[46].mxu0  ;;  %v1799_v4 = vpop.f32.mrb[46].mxu1 }
 0x1e3   : > { %v1512_v5 = vpop.f32.mrb[47].mxu0  ;;  %v1985_v6 = vadd.f32 %v1797_v0, %v319_v61  ;;  %v1800_v7 = vadd.f32 %v1799_v4, %v1510_v2  ;;  %v1801_v8 = vpop.f32.mrb[47].mxu1 }
 0x1e5   : > { %2049 = vst [vmem:[#allocation2 + $0xb0] sm:$0xff] %v1985_v6  ;;  %v1986_v9 = vadd.f32 %v1800_v7, %v320_v3  ;;  %v329_v3 = vld [vmem:[#allocation2 + $0x100] sm:$0xff] }
 0x1e7   : > { %2050 = vst [vmem:[#allocation2 + $0xb8] sm:$0xff] %v1986_v9  ;;  %v330_v9 = vld [vmem:[#allocation2 + $0x108] sm:$0xff] }
 0x1e8   : > { %v1515_v10 = vpop.f32.mrb[48].mxu0  ;;  %v1804_v12 = vpop.f32.mrb[48].mxu1 }
 0x1e9   : > { %v1517_v13 = vpop.f32.mrb[49].mxu0  ;;  %v1805_v14 = vadd.f32 %v1804_v12, %v1515_v10  ;;  %v1806_v15 = vpop.f32.mrb[49].mxu1 }
 0x1ea   : > { %v1518_v16 = vpop.f32.mrb[50].mxu0  ;;  %v1807_v18 = vpop.f32.mrb[50].mxu1 }
 0x1eb   : > { %v1520_v19 = vpop.f32.mrb[51].mxu0  ;;  %v1987_v20 = vadd.f32 %v1805_v14, %v321_v11  ;;  %v1808_v21 = vadd.f32 %v1807_v18, %v1518_v16  ;;  %v1809_v22 = vpop.f32.mrb[51].mxu1 }
 0x1ed   : > { %2051 = vst [vmem:[#allocation2 + $0xc0] sm:$0xff] %v1987_v20  ;;  %v1988_v23 = vadd.f32 %v1808_v21, %v322_v17  ;;  %v331_v17 = vld [vmem:[#allocation2 + $0x110] sm:$0xff] }
 0x1ef   : > { %2052 = vst [vmem:[#allocation2 + $0xc8] sm:$0xff] %v1988_v23  ;;  %v332_v23 = vld [vmem:[#allocation2 + $0x118] sm:$0xff] }
 0x1f0   : > { %v1523_v24 = vpop.f32.mrb[52].mxu0  ;;  %v1812_v26 = vpop.f32.mrb[52].mxu1 }
 0x1f1   : > { %v1525_v27 = vpop.f32.mrb[53].mxu0  ;;  %v1813_v28 = vadd.f32 %v1812_v26, %v1523_v24  ;;  %v1814_v29 = vpop.f32.mrb[53].mxu1 }
 0x1f2   : > { %v1526_v30 = vpop.f32.mrb[54].mxu0  ;;  %v1815_v32 = vpop.f32.mrb[54].mxu1 }
 0x1f3   : > { %v1528_v33 = vpop.f32.mrb[55].mxu0  ;;  %v1989_v34 = vadd.f32 %v1813_v28, %v323_v25  ;;  %v1816_v35 = vadd.f32 %v1815_v32, %v1526_v30  ;;  %v1817_v36 = vpop.f32.mrb[55].mxu1 }
 0x1f5   : > { %2053 = vst [vmem:[#allocation2 + $0xd0] sm:$0xff] %v1989_v34  ;;  %v1990_v37 = vadd.f32 %v1816_v35, %v324_v31  ;;  %v333_v31 = vld [vmem:[#allocation2 + $0x120] sm:$0xff] }
 0x1f7   : > { %2054 = vst [vmem:[#allocation2 + $0xd8] sm:$0xff] %v1990_v37  ;;  %v334_v37 = vld [vmem:[#allocation2 + $0x128] sm:$0xff] }
 0x1f8   : > { %v1531_v38 = vpop.f32.mrb[56].mxu0  ;;  %v1820_v40 = vpop.f32.mrb[56].mxu1 }
 0x1f9   : > { %v1533_v41 = vpop.f32.mrb[57].mxu0  ;;  %v1821_v42 = vadd.f32 %v1820_v40, %v1531_v38  ;;  %v1822_v43 = vpop.f32.mrb[57].mxu1 }
 0x1fa   : > { %v1534_v44 = vpop.f32.mrb[58].mxu0  ;;  %v1823_v46 = vpop.f32.mrb[58].mxu1 }
 0x1fb   : > { %v1536_v47 = vpop.f32.mrb[59].mxu0  ;;  %v1991_v48 = vadd.f32 %v1821_v42, %v325_v39  ;;  %v1824_v49 = vadd.f32 %v1823_v46, %v1534_v44  ;;  %v1825_v50 = vpop.f32.mrb[59].mxu1 }
 0x1fd   : > { %2055 = vst [vmem:[#allocation2 + $0xe0] sm:$0xff] %v1991_v48  ;;  %v1992_v51 = vadd.f32 %v1824_v49, %v326_v45  ;;  %v335_v45 = vld [vmem:[#allocation2 + $0x130] sm:$0xff] }
 0x1ff   : > { %2056 = vst [vmem:[#allocation2 + $0xe8] sm:$0xff] %v1992_v51  ;;  %v336_v51 = vld [vmem:[#allocation2 + $0x138] sm:$0xff] }
 0x200   : > { %v1539_v52 = vpop.f32.mrb[60].mxu0  ;;  %v1828_v54 = vpop.f32.mrb[60].mxu1 }
 0x201   : > { %v1541_v55 = vpop.f32.mrb[61].mxu0  ;;  %v1829_v56 = vadd.f32 %v1828_v54, %v1539_v52  ;;  %v1830_v57 = vpop.f32.mrb[61].mxu1 }
 0x202   : > { %v1542_v58 = vpop.f32.mrb[62].mxu0  ;;  %v1831_v60 = vpop.f32.mrb[62].mxu1 }
 0x203   : > { %v1544_v61 = vpop.f32.mrb[63].mxu0  ;;  %v1993_v62 = vadd.f32 %v1829_v56, %v327_v53  ;;  %v1832_v63 = vadd.f32 %v1831_v60, %v1542_v58  ;;  %v1833_v0 = vpop.f32.mrb[63].mxu1 }
 0x205   : > { %2057 = vst [vmem:[#allocation2 + $0xf0] sm:$0xff] %v1993_v62  ;;  %v1994_v1 = vadd.f32 %v1832_v63, %v328_v59  ;;  %v337_v59 = vld [vmem:[#allocation2 + $0x140] sm:$0xff] }
 0x207   : > { %2058 = vst [vmem:[#allocation2 + $0xf8] sm:$0xff] %v1994_v1  ;;  %v338_v1 = vld [vmem:[#allocation2 + $0x148] sm:$0xff] }
 0x208   : > { %v1547_v2 = vpop.f32.mrb[64].mxu0  ;;  %v1836_v4 = vpop.f32.mrb[64].mxu1 }
 0x209   : > { %v1549_v5 = vpop.f32.mrb[65].mxu0  ;;  %v1837_v6 = vadd.f32 %v1836_v4, %v1547_v2  ;;  %v1838_v7 = vpop.f32.mrb[65].mxu1 }
 0x20a   : > { %v1550_v8 = vpop.f32.mrb[66].mxu0  ;;  %v1839_v10 = vpop.f32.mrb[66].mxu1 }
 0x20b   : > { %v1552_v11 = vpop.f32.mrb[67].mxu0  ;;  %v1995_v12 = vadd.f32 %v1837_v6, %v329_v3  ;;  %v1840_v13 = vadd.f32 %v1839_v10, %v1550_v8  ;;  %v1841_v14 = vpop.f32.mrb[67].mxu1 }
 0x20d   : > { %2059 = vst [vmem:[#allocation2 + $0x100] sm:$0xff] %v1995_v12  ;;  %v1996_v15 = vadd.f32 %v1840_v13, %v330_v9  ;;  %v339_v9 = vld [vmem:[#allocation2 + $0x150] sm:$0xff] }
 0x20f   : > { %2060 = vst [vmem:[#allocation2 + $0x108] sm:$0xff] %v1996_v15  ;;  %v340_v15 = vld [vmem:[#allocation2 + $0x158] sm:$0xff] }
 0x210   : > { %v1555_v16 = vpop.f32.mrb[68].mxu0  ;;  %v1844_v18 = vpop.f32.mrb[68].mxu1 }
 0x211   : > { %v1557_v19 = vpop.f32.mrb[69].mxu0  ;;  %v1845_v20 = vadd.f32 %v1844_v18, %v1555_v16  ;;  %v1846_v21 = vpop.f32.mrb[69].mxu1 }
 0x212   : > { %v1558_v22 = vpop.f32.mrb[70].mxu0  ;;  %v1847_v24 = vpop.f32.mrb[70].mxu1 }
 0x213   : > { %v1560_v25 = vpop.f32.mrb[71].mxu0  ;;  %v1997_v26 = vadd.f32 %v1845_v20, %v331_v17  ;;  %v1848_v27 = vadd.f32 %v1847_v24, %v1558_v22  ;;  %v1849_v28 = vpop.f32.mrb[71].mxu1 }
 0x215   : > { %2061 = vst [vmem:[#allocation2 + $0x110] sm:$0xff] %v1997_v26  ;;  %v1998_v29 = vadd.f32 %v1848_v27, %v332_v23  ;;  %v341_v23 = vld [vmem:[#allocation2 + $0x160] sm:$0xff] }
 0x217   : > { %2062 = vst [vmem:[#allocation2 + $0x118] sm:$0xff] %v1998_v29  ;;  %v342_v29 = vld [vmem:[#allocation2 + $0x168] sm:$0xff] }
 0x218   : > { %v1563_v30 = vpop.f32.mrb[72].mxu0  ;;  %v1852_v32 = vpop.f32.mrb[72].mxu1 }
 0x219   : > { %v1565_v33 = vpop.f32.mrb[73].mxu0  ;;  %v1853_v34 = vadd.f32 %v1852_v32, %v1563_v30  ;;  %v1854_v35 = vpop.f32.mrb[73].mxu1 }
 0x21a   : > { %v1566_v36 = vpop.f32.mrb[74].mxu0  ;;  %v1855_v38 = vpop.f32.mrb[74].mxu1 }
 0x21b   : > { %v1568_v39 = vpop.f32.mrb[75].mxu0  ;;  %v1999_v40 = vadd.f32 %v1853_v34, %v333_v31  ;;  %v1856_v41 = vadd.f32 %v1855_v38, %v1566_v36  ;;  %v1857_v42 = vpop.f32.mrb[75].mxu1 }
 0x21d   : > { %2063 = vst [vmem:[#allocation2 + $0x120] sm:$0xff] %v1999_v40  ;;  %v2000_v43 = vadd.f32 %v1856_v41, %v334_v37  ;;  %v343_v37 = vld [vmem:[#allocation2 + $0x170] sm:$0xff] }
 0x21f   : > { %2064 = vst [vmem:[#allocation2 + $0x128] sm:$0xff] %v2000_v43  ;;  %v344_v43 = vld [vmem:[#allocation2 + $0x178] sm:$0xff] }
 0x220   : > { %v1571_v44 = vpop.f32.mrb[76].mxu0  ;;  %v1860_v46 = vpop.f32.mrb[76].mxu1 }
 0x221   : > { %v1573_v47 = vpop.f32.mrb[77].mxu0  ;;  %v1861_v48 = vadd.f32 %v1860_v46, %v1571_v44  ;;  %v1862_v49 = vpop.f32.mrb[77].mxu1 }
 0x222   : > { %v1574_v50 = vpop.f32.mrb[78].mxu0  ;;  %v1863_v52 = vpop.f32.mrb[78].mxu1 }
 0x223   : > { %v1576_v53 = vpop.f32.mrb[79].mxu0  ;;  %v2001_v54 = vadd.f32 %v1861_v48, %v335_v45  ;;  %v1864_v55 = vadd.f32 %v1863_v52, %v1574_v50  ;;  %v1865_v56 = vpop.f32.mrb[79].mxu1 }
 0x225   : > { %2065 = vst [vmem:[#allocation2 + $0x130] sm:$0xff] %v2001_v54  ;;  %v2002_v57 = vadd.f32 %v1864_v55, %v336_v51  ;;  %v345_v51 = vld [vmem:[#allocation2 + $0x180] sm:$0xff] }
 0x227   : > { %2066 = vst [vmem:[#allocation2 + $0x138] sm:$0xff] %v2002_v57  ;;  %v346_v57 = vld [vmem:[#allocation2 + $0x188] sm:$0xff] }
 0x228   : > { %v1579_v58 = vpop.f32.mrb[80].mxu0  ;;  %v1868_v60 = vpop.f32.mrb[80].mxu1 }
 0x229   : > { %v1581_v61 = vpop.f32.mrb[81].mxu0  ;;  %v1869_v62 = vadd.f32 %v1868_v60, %v1579_v58  ;;  %v1870_v63 = vpop.f32.mrb[81].mxu1 }
 0x22a   : > { %v1582_v0 = vpop.f32.mrb[82].mxu0  ;;  %v1871_v2 = vpop.f32.mrb[82].mxu1 }
 0x22b   : > { %v1584_v3 = vpop.f32.mrb[83].mxu0  ;;  %v2003_v4 = vadd.f32 %v1869_v62, %v337_v59  ;;  %v1872_v5 = vadd.f32 %v1871_v2, %v1582_v0  ;;  %v1873_v6 = vpop.f32.mrb[83].mxu1 }
 0x22d   : > { %2067 = vst [vmem:[#allocation2 + $0x140] sm:$0xff] %v2003_v4  ;;  %v2004_v7 = vadd.f32 %v1872_v5, %v338_v1  ;;  %v347_v1 = vld [vmem:[#allocation2 + $0x190] sm:$0xff] }
 0x22f   : > { %2068 = vst [vmem:[#allocation2 + $0x148] sm:$0xff] %v2004_v7  ;;  %v348_v7 = vld [vmem:[#allocation2 + $0x198] sm:$0xff] }
 0x230   : > { %v1587_v8 = vpop.f32.mrb[84].mxu0  ;;  %v1876_v10 = vpop.f32.mrb[84].mxu1 }
 0x231   : > { %v1589_v11 = vpop.f32.mrb[85].mxu0  ;;  %v1877_v12 = vadd.f32 %v1876_v10, %v1587_v8  ;;  %v1878_v13 = vpop.f32.mrb[85].mxu1 }
 0x232   : > { %v1590_v14 = vpop.f32.mrb[86].mxu0  ;;  %v1879_v16 = vpop.f32.mrb[86].mxu1 }
 0x233   : > { %v1592_v17 = vpop.f32.mrb[87].mxu0  ;;  %v2005_v18 = vadd.f32 %v1877_v12, %v339_v9  ;;  %v1880_v19 = vadd.f32 %v1879_v16, %v1590_v14  ;;  %v1881_v20 = vpop.f32.mrb[87].mxu1 }
 0x235   : > { %2069 = vst [vmem:[#allocation2 + $0x150] sm:$0xff] %v2005_v18  ;;  %v2006_v21 = vadd.f32 %v1880_v19, %v340_v15  ;;  %v349_v15 = vld [vmem:[#allocation2 + $0x1a0] sm:$0xff] }
 0x237   : > { %2070 = vst [vmem:[#allocation2 + $0x158] sm:$0xff] %v2006_v21  ;;  %v350_v21 = vld [vmem:[#allocation2 + $0x1a8] sm:$0xff] }
 0x238   : > { %v1595_v22 = vpop.f32.mrb[88].mxu0  ;;  %v1884_v24 = vpop.f32.mrb[88].mxu1 }
 0x239   : > { %v1597_v25 = vpop.f32.mrb[89].mxu0  ;;  %v1885_v26 = vadd.f32 %v1884_v24, %v1595_v22  ;;  %v1886_v27 = vpop.f32.mrb[89].mxu1 }
 0x23a   : > { %v1598_v28 = vpop.f32.mrb[90].mxu0  ;;  %v1887_v30 = vpop.f32.mrb[90].mxu1 }
 0x23b   : > { %v1600_v31 = vpop.f32.mrb[91].mxu0  ;;  %v2007_v32 = vadd.f32 %v1885_v26, %v341_v23  ;;  %v1888_v33 = vadd.f32 %v1887_v30, %v1598_v28  ;;  %v1889_v34 = vpop.f32.mrb[91].mxu1 }
 0x23d   : > { %2071 = vst [vmem:[#allocation2 + $0x160] sm:$0xff] %v2007_v32  ;;  %v2008_v35 = vadd.f32 %v1888_v33, %v342_v29  ;;  %v351_v29 = vld [vmem:[#allocation2 + $0x1b0] sm:$0xff] }
 0x23f   : > { %2072 = vst [vmem:[#allocation2 + $0x168] sm:$0xff] %v2008_v35  ;;  %v352_v35 = vld [vmem:[#allocation2 + $0x1b8] sm:$0xff] }
 0x240   : > { %v1603_v36 = vpop.f32.mrb[92].mxu0  ;;  %v1892_v38 = vpop.f32.mrb[92].mxu1 }
 0x241   : > { %v1605_v39 = vpop.f32.mrb[93].mxu0  ;;  %v1893_v40 = vadd.f32 %v1892_v38, %v1603_v36  ;;  %v1894_v41 = vpop.f32.mrb[93].mxu1 }
 0x242   : > { %v1606_v42 = vpop.f32.mrb[94].mxu0  ;;  %v1895_v44 = vpop.f32.mrb[94].mxu1 }
 0x243   : > { %v1608_v45 = vpop.f32.mrb[95].mxu0  ;;  %v2009_v46 = vadd.f32 %v1893_v40, %v343_v37  ;;  %v1896_v47 = vadd.f32 %v1895_v44, %v1606_v42  ;;  %v1897_v48 = vpop.f32.mrb[95].mxu1 }
 0x245   : > { %2073 = vst [vmem:[#allocation2 + $0x170] sm:$0xff] %v2009_v46  ;;  %v2010_v49 = vadd.f32 %v1896_v47, %v344_v43  ;;  %v353_v43 = vld [vmem:[#allocation2 + $0x1c0] sm:$0xff] }
 0x247   : > { %2074 = vst [vmem:[#allocation2 + $0x178] sm:$0xff] %v2010_v49  ;;  %v354_v49 = vld [vmem:[#allocation2 + $0x1c8] sm:$0xff] }
 0x248   : > { %v1611_v50 = vpop.f32.mrb[96].mxu0  ;;  %v1900_v52 = vpop.f32.mrb[96].mxu1 }
 0x249   : > { %v1613_v53 = vpop.f32.mrb[97].mxu0  ;;  %v1901_v54 = vadd.f32 %v1900_v52, %v1611_v50  ;;  %v1902_v55 = vpop.f32.mrb[97].mxu1 }
 0x24a   : > { %v1614_v56 = vpop.f32.mrb[98].mxu0  ;;  %v1903_v58 = vpop.f32.mrb[98].mxu1 }
 0x24b   : > { %v1616_v59 = vpop.f32.mrb[99].mxu0  ;;  %v2011_v60 = vadd.f32 %v1901_v54, %v345_v51  ;;  %v1904_v61 = vadd.f32 %v1903_v58, %v1614_v56  ;;  %v1905_v62 = vpop.f32.mrb[99].mxu1 }
 0x24d   : > { %2075 = vst [vmem:[#allocation2 + $0x180] sm:$0xff] %v2011_v60  ;;  %v2012_v63 = vadd.f32 %v1904_v61, %v346_v57  ;;  %v355_v57 = vld [vmem:[#allocation2 + $0x1d0] sm:$0xff] }
 0x24f   : > { %2076 = vst [vmem:[#allocation2 + $0x188] sm:$0xff] %v2012_v63  ;;  %v356_v63 = vld [vmem:[#allocation2 + $0x1d8] sm:$0xff] }
 0x250   : > { %v1619_v0 = vpop.f32.mrb[100].mxu0  ;;  %v1908_v2 = vpop.f32.mrb[100].mxu1 }
 0x251   : > { %v1621_v3 = vpop.f32.mrb[101].mxu0  ;;  %v1909_v4 = vadd.f32 %v1908_v2, %v1619_v0  ;;  %v1910_v5 = vpop.f32.mrb[101].mxu1 }
 0x252   : > { %v1622_v6 = vpop.f32.mrb[102].mxu0  ;;  %v1911_v8 = vpop.f32.mrb[102].mxu1 }
 0x253   : > { %v1624_v9 = vpop.f32.mrb[103].mxu0  ;;  %v2013_v10 = vadd.f32 %v1909_v4, %v347_v1  ;;  %v1912_v11 = vadd.f32 %v1911_v8, %v1622_v6  ;;  %v1913_v12 = vpop.f32.mrb[103].mxu1 }
 0x255   : > { %2077 = vst [vmem:[#allocation2 + $0x190] sm:$0xff] %v2013_v10  ;;  %v2014_v13 = vadd.f32 %v1912_v11, %v348_v7  ;;  %v357_v7 = vld [vmem:[#allocation2 + $0x1e0] sm:$0xff] }
 0x257   : > { %2078 = vst [vmem:[#allocation2 + $0x198] sm:$0xff] %v2014_v13  ;;  %v358_v13 = vld [vmem:[#allocation2 + $0x1e8] sm:$0xff] }
 0x258   : > { %v1627_v14 = vpop.f32.mrb[104].mxu0  ;;  %v1916_v16 = vpop.f32.mrb[104].mxu1 }
 0x259   : > { %v1629_v17 = vpop.f32.mrb[105].mxu0  ;;  %v1917_v18 = vadd.f32 %v1916_v16, %v1627_v14  ;;  %v1918_v19 = vpop.f32.mrb[105].mxu1 }
 0x25a   : > { %v1630_v20 = vpop.f32.mrb[106].mxu0  ;;  %v1919_v22 = vpop.f32.mrb[106].mxu1 }
 0x25b   : > { %v1632_v23 = vpop.f32.mrb[107].mxu0  ;;  %v2015_v24 = vadd.f32 %v1917_v18, %v349_v15  ;;  %v1920_v25 = vadd.f32 %v1919_v22, %v1630_v20  ;;  %v1921_v26 = vpop.f32.mrb[107].mxu1 }
 0x25d   : > { %2079 = vst [vmem:[#allocation2 + $0x1a0] sm:$0xff] %v2015_v24  ;;  %v2016_v27 = vadd.f32 %v1920_v25, %v350_v21  ;;  %v359_v21 = vld [vmem:[#allocation2 + $0x1f0] sm:$0xff] }
 0x25f   : > { %2080 = vst [vmem:[#allocation2 + $0x1a8] sm:$0xff] %v2016_v27  ;;  %v360_v27 = vld [vmem:[#allocation2 + $0x1f8] sm:$0xff] }
 0x260   : > { %v1635_v28 = vpop.f32.mrb[108].mxu0  ;;  %v1924_v30 = vpop.f32.mrb[108].mxu1 }
 0x261   : > { %v1637_v31 = vpop.f32.mrb[109].mxu0  ;;  %v1925_v32 = vadd.f32 %v1924_v30, %v1635_v28  ;;  %v1926_v33 = vpop.f32.mrb[109].mxu1 }
 0x262   : > { %v1638_v34 = vpop.f32.mrb[110].mxu0  ;;  %v1927_v36 = vpop.f32.mrb[110].mxu1 }
 0x263   : > { %v1640_v37 = vpop.f32.mrb[111].mxu0  ;;  %v2017_v38 = vadd.f32 %v1925_v32, %v351_v29  ;;  %v1928_v39 = vadd.f32 %v1927_v36, %v1638_v34  ;;  %v1929_v40 = vpop.f32.mrb[111].mxu1 }
 0x265   : > { %2081 = vst [vmem:[#allocation2 + $0x1b0] sm:$0xff] %v2017_v38  ;;  %v2018_v41 = vadd.f32 %v1928_v39, %v352_v35 }
 0x267   : > { %2082 = vst [vmem:[#allocation2 + $0x1b8] sm:$0xff] %v2018_v41 }
 0x268   : > { %v1643_v42 = vpop.f32.mrb[112].mxu0  ;;  %v1932_v44 = vpop.f32.mrb[112].mxu1 }
 0x269   : > { %v1645_v45 = vpop.f32.mrb[113].mxu0  ;;  %v1933_v46 = vadd.f32 %v1932_v44, %v1643_v42  ;;  %v1934_v47 = vpop.f32.mrb[113].mxu1 }
 0x26a   : > { %v1646_v48 = vpop.f32.mrb[114].mxu0  ;;  %v1935_v50 = vpop.f32.mrb[114].mxu1 }
 0x26b   : > { %v1648_v51 = vpop.f32.mrb[115].mxu0  ;;  %v2019_v52 = vadd.f32 %v1933_v46, %v353_v43  ;;  %v1936_v53 = vadd.f32 %v1935_v50, %v1646_v48  ;;  %v1937_v54 = vpop.f32.mrb[115].mxu1 }
 0x26d   : > { %2083 = vst [vmem:[#allocation2 + $0x1c0] sm:$0xff] %v2019_v52  ;;  %v2020_v55 = vadd.f32 %v1936_v53, %v354_v49 }
 0x26f   : > { %2084 = vst [vmem:[#allocation2 + $0x1c8] sm:$0xff] %v2020_v55 }
 0x270   : > { %v1651_v56 = vpop.f32.mrb[116].mxu0  ;;  %v1940_v58 = vpop.f32.mrb[116].mxu1 }
 0x271   : > { %v1653_v59 = vpop.f32.mrb[117].mxu0  ;;  %v1941_v60 = vadd.f32 %v1940_v58, %v1651_v56  ;;  %v1942_v61 = vpop.f32.mrb[117].mxu1 }
 0x272   : > { %v1654_v62 = vpop.f32.mrb[118].mxu0  ;;  %v1943_v0 = vpop.f32.mrb[118].mxu1 }
 0x273   : > { %v1656_v1 = vpop.f32.mrb[119].mxu0  ;;  %v2021_v2 = vadd.f32 %v1941_v60, %v355_v57  ;;  %v1944_v3 = vadd.f32 %v1943_v0, %v1654_v62  ;;  %v1945_v4 = vpop.f32.mrb[119].mxu1 }
 0x275   : > { %2085 = vst [vmem:[#allocation2 + $0x1d0] sm:$0xff] %v2021_v2  ;;  %v2022_v5 = vadd.f32 %v1944_v3, %v356_v63 }
 0x277   : > { %2086 = vst [vmem:[#allocation2 + $0x1d8] sm:$0xff] %v2022_v5 }
 0x278   : > { %v1659_v6 = vpop.f32.mrb[120].mxu0  ;;  %v1948_v8 = vpop.f32.mrb[120].mxu1 }
 0x279   : > { %v1661_v9 = vpop.f32.mrb[121].mxu0  ;;  %v1949_v10 = vadd.f32 %v1948_v8, %v1659_v6  ;;  %v1950_v11 = vpop.f32.mrb[121].mxu1 }
 0x27a   : > { %v1662_v12 = vpop.f32.mrb[122].mxu0  ;;  %v1951_v14 = vpop.f32.mrb[122].mxu1 }
 0x27b   : > { %v1664_v15 = vpop.f32.mrb[123].mxu0  ;;  %v2023_v16 = vadd.f32 %v1949_v10, %v357_v7  ;;  %v1952_v17 = vadd.f32 %v1951_v14, %v1662_v12  ;;  %v1953_v18 = vpop.f32.mrb[123].mxu1 }
 0x27d   : > { %2087 = vst [vmem:[#allocation2 + $0x1e0] sm:$0xff] %v2023_v16  ;;  %v2024_v19 = vadd.f32 %v1952_v17, %v358_v13 }
 0x27f   : > { %2088 = vst [vmem:[#allocation2 + $0x1e8] sm:$0xff] %v2024_v19 }
 0x280   : > { %v1667_v20 = vpop.f32.mrb[124].mxu0  ;;  %v1956_v22 = vpop.f32.mrb[124].mxu1 }
 0x281   : > { %v1669_v23 = vpop.f32.mrb[125].mxu0  ;;  %v1957_v24 = vadd.f32 %v1956_v22, %v1667_v20  ;;  %v1958_v25 = vpop.f32.mrb[125].mxu1  ;;  %2094 = sbr.rel (%p3286_p12) target bundleno = 1028 (0x404), region = 44 }
 0x282   : > { %v1670_v26 = vpop.f32.mrb[126].mxu0  ;;  %v1959_v28 = vpop.f32.mrb[126].mxu1 }
 0x283   : > { %v1672_v29 = vpop.f32.mrb[127].mxu0  ;;  %v2025_v30 = vadd.f32 %v1957_v24, %v359_v21  ;;  %v1960_v31 = vadd.f32 %v1959_v28, %v1670_v26  ;;  %v1961_v32 = vpop.f32.mrb[127].mxu1 }
 0x285   : > { %2089 = vst [vmem:[#allocation2 + $0x1f0] sm:$0xff] %v2025_v30  ;;  %v2026_v33 = vadd.f32 %v1960_v31, %v360_v27 }
 0x287   : > { %2090 = vst [vmem:[#allocation2 + $0x1f8] sm:$0xff] %v2026_v33 }
 0x288   : > { %v4502_v34 = vld [vmem:[#allocation2] sm:$0xff]  ;;  %v4504_v35 = vld [vmem:[#allocation2 + $0x8] sm:$0xff]  ;;  %v4506_v36 = vld [vmem:[#allocation2 + $0x10] sm:$0xff] }
 0x289   : > { %v2159_v37 = vadd.f32 %v4504_v35, %v4502_v34  ;;  %v4510_v38 = vld [vmem:[#allocation2 + $0x18] sm:$0xff]  ;;  %v4513_v40 = vld [vmem:[#allocation2 + $0x20] sm:$0xff]  ;;  %v4516_v42 = vld [vmem:[#allocation2 + $0x28] sm:$0xff] }
 0x28a   : > { %v4519_v44 = vld [vmem:[#allocation2 + $0x30] sm:$0xff]  ;;  %v4522_v46 = vld [vmem:[#allocation2 + $0x38] sm:$0xff]  ;;  %v4525_v48 = vld [vmem:[#allocation2 + $0x40] sm:$0xff] }
 0x28b   : > { %v2160_v39 = vadd.f32 %v2159_v37, %v4506_v36  ;;  %v4528_v50 = vld [vmem:[#allocation2 + $0x48] sm:$0xff]  ;;  %v4531_v52 = vld [vmem:[#allocation2 + $0x50] sm:$0xff]  ;;  %v4534_v54 = vld [vmem:[#allocation2 + $0x58] sm:$0xff] }
 0x28c   : > { %v4537_v56 = vld [vmem:[#allocation2 + $0x60] sm:$0xff]  ;;  %v4540_v58 = vld [vmem:[#allocation2 + $0x68] sm:$0xff]  ;;  %v4543_v60 = vld [vmem:[#allocation2 + $0x70] sm:$0xff] }
 0x28d   : > { %v2161_v41 = vadd.f32 %v2160_v39, %v4510_v38  ;;  %v4546_v62 = vld [vmem:[#allocation2 + $0x78] sm:$0xff]  ;;  %v4549_v0 = vld [vmem:[#allocation2 + $0x80] sm:$0xff]  ;;  %v4552_v2 = vld [vmem:[#allocation2 + $0x88] sm:$0xff] }
 0x28e   : > { %v4555_v4 = vld [vmem:[#allocation2 + $0x90] sm:$0xff]  ;;  %v4558_v6 = vld [vmem:[#allocation2 + $0x98] sm:$0xff]  ;;  %v4561_v8 = vld [vmem:[#allocation2 + $0xa0] sm:$0xff] }
 0x28f   : > { %v2162_v43 = vadd.f32 %v2161_v41, %v4513_v40  ;;  %v4564_v10 = vld [vmem:[#allocation2 + $0xa8] sm:$0xff]  ;;  %v4567_v12 = vld [vmem:[#allocation2 + $0xb0] sm:$0xff]  ;;  %v4570_v14 = vld [vmem:[#allocation2 + $0xb8] sm:$0xff] }
 0x290   : > { %v4573_v16 = vld [vmem:[#allocation2 + $0xc0] sm:$0xff]  ;;  %v4576_v18 = vld [vmem:[#allocation2 + $0xc8] sm:$0xff]  ;;  %v4579_v20 = vld [vmem:[#allocation2 + $0xd0] sm:$0xff] }
 0x291   : > { %v2163_v45 = vadd.f32 %v2162_v43, %v4516_v42  ;;  %v4582_v22 = vld [vmem:[#allocation2 + $0xd8] sm:$0xff]  ;;  %v4585_v24 = vld [vmem:[#allocation2 + $0xe0] sm:$0xff]  ;;  %v4588_v26 = vld [vmem:[#allocation2 + $0xe8] sm:$0xff] }
 0x292   : > { %v4591_v28 = vld [vmem:[#allocation2 + $0xf0] sm:$0xff]  ;;  %v4594_v30 = vld [vmem:[#allocation2 + $0xf8] sm:$0xff]  ;;  %v4597_v32 = vld [vmem:[#allocation2 + $0x100] sm:$0xff] }
 0x293   : > { %v2164_v47 = vadd.f32 %v2163_v45, %v4519_v44  ;;  %5224 = vst [vmem:[#allocation12_spill] sm:$0xff] %v4591_v28  ;;  %5225 = vst [vmem:[#allocation13_spill] sm:$0xff] %v4594_v30  ;;  %v4600_v37 = vld [vmem:[#allocation2 + $0x108] sm:$0xff]  ;;  %v4603_v41 = vld [vmem:[#allocation2 + $0x110] sm:$0xff] }
 0x294   : > { %5226 = vst [vmem:[#allocation14_spill] sm:$0xff] %v4597_v32  ;;  %5227 = vst [vmem:[#allocation15_spill] sm:$0xff] %v4600_v37  ;;  %v4606_v45 = vld [vmem:[#allocation2 + $0x118] sm:$0xff] }
 0x295   : > { %v2165_v49 = vadd.f32 %v2164_v47, %v4522_v46  ;;  %5228 = vst [vmem:[#allocation16_spill] sm:$0xff] %v4603_v41  ;;  %5229 = vst [vmem:[#allocation17_spill] sm:$0xff] %v4606_v45 }
 0x297   : > { %v2166_v51 = vadd.f32 %v2165_v49, %v4525_v48  ;;  %v4609_v49 = vld [vmem:[#allocation2 + $0x120] sm:$0xff] }
 0x298   : > { %5230 = vst [vmem:[#allocation18_spill] sm:$0xff] %v4609_v49 }
 0x299   : > { %v2167_v53 = vadd.f32 %v2166_v51, %v4528_v50 }
 0x29b   : > { %v2168_v55 = vadd.f32 %v2167_v53, %v4531_v52  ;;  %v4612_v53 = vld [vmem:[#allocation2 + $0x128] sm:$0xff] }
 0x29c   : > { %5231 = vst [vmem:[#allocation19_spill] sm:$0xff] %v4612_v53 }
 0x29d   : > { %v2169_v57 = vadd.f32 %v2168_v55, %v4534_v54 }
 0x29f   : > { %v2170_v59 = vadd.f32 %v2169_v57, %v4537_v56  ;;  %v4615_v57 = vld [vmem:[#allocation2 + $0x130] sm:$0xff] }
 0x2a0   : > { %5232 = vst [vmem:[#allocation20_spill] sm:$0xff] %v4615_v57 }
 0x2a1   : > { %v2171_v61 = vadd.f32 %v2170_v59, %v4540_v58 }
 0x2a3   : > { %v2172_v63 = vadd.f32 %v2171_v61, %v4543_v60  ;;  %v4618_v61 = vld [vmem:[#allocation2 + $0x138] sm:$0xff] }
 0x2a4   : > { %5233 = vst [vmem:[#allocation21_spill] sm:$0xff] %v4618_v61 }
 0x2a5   : > { %v2173_v1 = vadd.f32 %v2172_v63, %v4546_v62 }
 0x2a7   : > { %v2174_v3 = vadd.f32 %v2173_v1, %v4549_v0  ;;  %v4621_v1 = vld [vmem:[#allocation2 + $0x140] sm:$0xff] }
 0x2a8   : > { %5234 = vst [vmem:[#allocation22_spill] sm:$0xff] %v4621_v1 }
 0x2a9   : > { %v2175_v5 = vadd.f32 %v2174_v3, %v4552_v2 }
 0x2ab   : > { %v2176_v7 = vadd.f32 %v2175_v5, %v4555_v4  ;;  %v4624_v5 = vld [vmem:[#allocation2 + $0x148] sm:$0xff] }
 0x2ac   : > { %5235 = vst [vmem:[#allocation23_spill] sm:$0xff] %v4624_v5 }
 0x2ad   : > { %v2177_v9 = vadd.f32 %v2176_v7, %v4558_v6 }
 0x2af   : > { %v2178_v11 = vadd.f32 %v2177_v9, %v4561_v8  ;;  %v4627_v9 = vld [vmem:[#allocation2 + $0x150] sm:$0xff] }
 0x2b0   : > { %5236 = vst [vmem:[#allocation24_spill] sm:$0xff] %v4627_v9 }
 0x2b1   : > { %v2179_v13 = vadd.f32 %v2178_v11, %v4564_v10 }
 0x2b3   : > { %v2180_v15 = vadd.f32 %v2179_v13, %v4567_v12  ;;  %v4630_v13 = vld [vmem:[#allocation2 + $0x158] sm:$0xff] }
 0x2b4   : > { %5237 = vst [vmem:[#allocation25_spill] sm:$0xff] %v4630_v13 }
 0x2b5   : > { %v2181_v17 = vadd.f32 %v2180_v15, %v4570_v14 }
 0x2b7   : > { %v2182_v19 = vadd.f32 %v2181_v17, %v4573_v16  ;;  %v4633_v17 = vld [vmem:[#allocation2 + $0x160] sm:$0xff] }
 0x2b8   : > { %5238 = vst [vmem:[#allocation26_spill] sm:$0xff] %v4633_v17 }
 0x2b9   : > { %v2183_v21 = vadd.f32 %v2182_v19, %v4576_v18 }
 0x2bb   : > { %v2184_v23 = vadd.f32 %v2183_v21, %v4579_v20  ;;  %v2140_v21 = vld [vmem:[#allocation2 + $0x168] sm:$0xff] }
 0x2bd   : > { %v2185_v25 = vadd.f32 %v2184_v23, %v4582_v22 }
 0x2bf   : > { %v2186_v27 = vadd.f32 %v2185_v25, %v4585_v24  ;;  %v2141_v25 = vld [vmem:[#allocation2 + $0x170] sm:$0xff] }
 0x2c1   : > { %v2187_v29 = vadd.f32 %v2186_v27, %v4588_v26 }
 0x2c3   : > { %v2188_v31 = vadd.f32 %v2187_v29, %v4591_v28  ;;  %v2142_v29 = vld [vmem:[#allocation2 + $0x178] sm:$0xff] }
 0x2c5   : > { %v2189_v33 = vadd.f32 %v2188_v31, %v4594_v30 }
 0x2c7   : > { %v2190_v39 = vadd.f32 %v2189_v33, %v4597_v32  ;;  %v2143_v33 = vld [vmem:[#allocation2 + $0x180] sm:$0xff] }
 0x2c9   : > { %v2191_v43 = vadd.f32 %v2190_v39, %v4600_v37 }
 0x2cb   : > { %v2192_v47 = vadd.f32 %v2191_v43, %v4603_v41  ;;  %v2144_v43 = vld [vmem:[#allocation2 + $0x188] sm:$0xff]  ;;  %v2158_v41 = vld [vmem:[#allocation2 + $0x1f8] sm:$0xff] }
 0x2cd   : > { %v2193_v51 = vadd.f32 %v2192_v47, %v4606_v45  ;;  %v2157_v45 = vld [vmem:[#allocation2 + $0x1f0] sm:$0xff] }
 0x2cf   : > { %v2194_v55 = vadd.f32 %v2193_v51, %v4609_v49  ;;  %v2145_v51 = vld [vmem:[#allocation2 + $0x190] sm:$0xff]  ;;  %v2156_v49 = vld [vmem:[#allocation2 + $0x1e8] sm:$0xff] }
 0x2d1   : > { %v2195_v59 = vadd.f32 %v2194_v55, %v4612_v53  ;;  %v2155_v53 = vld [vmem:[#allocation2 + $0x1e0] sm:$0xff] }
 0x2d3   : > { %v2196_v63 = vadd.f32 %v2195_v59, %v4615_v57  ;;  %v2146_v59 = vld [vmem:[#allocation2 + $0x198] sm:$0xff] }
 0x2d4   : > { %v2154_v57 = vld [vmem:[#allocation2 + $0x1d8] sm:$0xff] }
 0x2d5   : > { %v2197_v3 = vadd.f32 %v2196_v63, %v4618_v61  ;;  %v2153_v61 = vld [vmem:[#allocation2 + $0x1d0] sm:$0xff] }
 0x2d7   : > { %v2198_v7 = vadd.f32 %v2197_v3, %v4621_v1  ;;  %v2147_v3 = vld [vmem:[#allocation2 + $0x1a0] sm:$0xff]  ;;  %v2152_v1 = vld [vmem:[#allocation2 + $0x1c8] sm:$0xff] }
 0x2d9   : > { %v2199_v11 = vadd.f32 %v2198_v7, %v4624_v5  ;;  %v2150_v5 = vld [vmem:[#allocation2 + $0x1b8] sm:$0xff] }
 0x2db   : > { %v2200_v15 = vadd.f32 %v2199_v11, %v4627_v9  ;;  %v2148_v11 = vld [vmem:[#allocation2 + $0x1a8] sm:$0xff] }
 0x2dd   : > { %v2201_v19 = vadd.f32 %v2200_v15, %v4630_v13  ;;  %v2149_v15 = vld [vmem:[#allocation2 + $0x1b0] sm:$0xff] }
 0x2df   : > { %v2202_v23 = vadd.f32 %v2201_v19, %v4633_v17  ;;  %v2151_v17 = vld [vmem:[#allocation2 + $0x1c0] sm:$0xff] }
 0x2e1   : > { %v2203_v27 = vadd.f32 %v2202_v23, %v2140_v21 }
 0x2e3   : > { %v2204_v31 = vadd.f32 %v2203_v27, %v2141_v25 }
 0x2e5   : > { %v2205_v39 = vadd.f32 %v2204_v31, %v2142_v29 }
 0x2e7   : > { %v2206_v47 = vadd.f32 %v2205_v39, %v2143_v33 }
 0x2e9   : > { %v2207_v55 = vadd.f32 %v2206_v47, %v2144_v43 }
 0x2eb   : > { %v2208_v63 = vadd.f32 %v2207_v55, %v2145_v51 }
 0x2ed   : > { %v2209_v7 = vadd.f32 %v2208_v63, %v2146_v59 }
 0x2ef   : > { %v2210_v9 = vadd.f32 %v2209_v7, %v2147_v3 }
 0x2f1   : > { %v2211_v13 = vadd.f32 %v2210_v9, %v2148_v11 }
 0x2f3   : > { %v2212_v19 = vadd.f32 %v2211_v13, %v2149_v15 }
 0x2f5   : > { %v2213_v23 = vadd.f32 %v2212_v19, %v2150_v5 }
 0x2f7   : > { %v2214_v27 = vadd.f32 %v2213_v23, %v2151_v17 }
 0x2f9   : > { %v2215_v31 = vadd.f32 %v2214_v27, %v2152_v1 }
 0x2fb   : > { %v2216_v39 = vadd.f32 %v2215_v31, %v2153_v61 }
 0x2fd   : > { %v2217_v47 = vadd.f32 %v2216_v39, %v2154_v57 }
 0x2ff   : > { %v2218_v55 = vadd.f32 %v2217_v47, %v2155_v53 }
 0x301   : > { %v2219_v63 = vadd.f32 %v2218_v55, %v2156_v49 }
 0x303   : > { %v2220_v7 = vadd.f32 %v2219_v63, %v2157_v45 }
 0x305   : > { %v2221_v37 = vadd.f32 %v2220_v7, %v2158_v41 }
 0x307   : > { %v2222_v9 = vrot.slane %v2221_v37, 4 }
 0x309   : > { %v2223_v32 = vadd.f32 %v2222_v9, %v2221_v37 }
 0x30b   : > { %v2224_v13 = vrot.slane %v2223_v32, 2 }
 0x30d   : > { %v2225_v30 = vadd.f32 %v2224_v13, %v2223_v32 }
 0x30f   : > { %v2226_v19 = vrot.slane %v2225_v30, 1 }
 0x311   : > { %v2227_v28 = vadd.f32 %v2226_v19, %v2225_v30 }
 0x313   : > { %v4637_v23 = vmul.f32 0.001953125, %v2227_v28 }
 0x315   : > { %v4640_v27 = vsub.f32 %v2140_v21, %v4637_v23  ;;  %v4643_v31 = vsub.f32 %v2141_v25, %v4637_v23  ;;  %v4646_v39 = vsub.f32 %v2142_v29, %v4637_v23  ;;  %v4649_v47 = vsub.f32 %v2143_v33, %v4637_v23 }
 0x316   : > { %v4652_v37 = vsub.f32 %v2144_v43, %v4637_v23  ;;  %v4655_v32 = vsub.f32 %v2145_v51, %v4637_v23  ;;  %v4658_v28 = vsub.f32 %v2146_v59, %v4637_v23  ;;  %v4661_v30 = vsub.f32 %v2147_v3, %v4637_v23 }
 0x317   : > { %v4664_v21 = vsub.f32 %v2148_v11, %v4637_v23  ;;  %v4667_v25 = vsub.f32 %v2149_v15, %v4637_v23  ;;  %v4670_v29 = vsub.f32 %v2150_v5, %v4637_v23  ;;  %v4673_v33 = vsub.f32 %v2151_v17, %v4637_v23 }
 0x318   : > { %v4676_v43 = vsub.f32 %v2152_v1, %v4637_v23  ;;  %v4679_v51 = vsub.f32 %v2153_v61, %v4637_v23  ;;  %v4682_v59 = vsub.f32 %v2154_v57, %v4637_v23  ;;  %v4685_v3 = vsub.f32 %v2155_v53, %v4637_v23 }
 0x319   : > { %5239 = vst [vmem:[#allocation27_spill] sm:$0xff] %v4673_v33  ;;  %v4688_v11 = vsub.f32 %v2156_v49, %v4637_v23  ;;  %v4691_v5 = vsub.f32 %v2157_v45, %v4637_v23  ;;  %v4694_v17 = vsub.f32 %v2158_v41, %v4637_v23  ;;  %v4698_v1 = vsub.f32 %v4502_v34, %v4637_v23 }
 0x31a   : > { %5240 = vst [vmem:[#allocation28_spill] sm:$0xff] %v4676_v43  ;;  %5241 = vst [vmem:[#allocation29_spill] sm:$0xff] %v4679_v51  ;;  %v4702_v57 = vsub.f32 %v4504_v35, %v4637_v23  ;;  %v4706_v53 = vsub.f32 %v4506_v36, %v4637_v23  ;;  %v4710_v49 = vsub.f32 %v4510_v38, %v4637_v23 }
 0x31b   : > { %5242 = vst [vmem:[#allocation30_spill] sm:$0xff] %v4682_v59  ;;  %5243 = vst [vmem:[#allocation31_spill] sm:$0xff] %v4685_v3  ;;  %v2294_v41 = vmul.f32 %v4698_v1, %v4698_v1  ;;  %v4718_v34 = vsub.f32 %v4513_v40, %v4637_v23  ;;  %v4724_v36 = vsub.f32 %v4516_v42, %v4637_v23 }
 0x31c   : > { %v2295_v45 = vmul.f32 %v4702_v57, %v4702_v57  ;;  %v2296_v35 = vmul.f32 %v4706_v53, %v4706_v53  ;;  %v2297_v38 = vmul.f32 %v4710_v49, %v4710_v49  ;;  %v4730_v15 = vsub.f32 %v4519_v44, %v4637_v23 }
 0x31d   : > { %v2298_v55 = vmul.f32 %v4718_v34, %v4718_v34  ;;  %v4736_v63 = vsub.f32 %v4522_v46, %v4637_v23  ;;  %v2299_v42 = vmul.f32 %v4724_v36, %v4724_v36  ;;  %v4742_v9 = vsub.f32 %v4525_v48, %v4637_v23 }
 0x31e   : > { %v2358_v61 = vadd.f32 %v2295_v45, %v2294_v41  ;;  %v2300_v44 = vmul.f32 %v4730_v15, %v4730_v15  ;;  %v4748_v19 = vsub.f32 %v4528_v50, %v4637_v23  ;;  %v4754_v45 = vsub.f32 %v4531_v52, %v4637_v23 }
 0x31f   : > { %v2301_v46 = vmul.f32 %v4736_v63, %v4736_v63  ;;  %v2302_v48 = vmul.f32 %v4742_v9, %v4742_v9 }
 0x320   : > { %v2359_v40 = vadd.f32 %v2358_v61, %v2296_v35  ;;  %v2303_v50 = vmul.f32 %v4748_v19, %v4748_v19  ;;  %v2304_v52 = vmul.f32 %v4754_v45, %v4754_v45 }
 0x322   : > { %v2360_v7 = vadd.f32 %v2359_v40, %v2297_v38  ;;  %v4760_v38 = vsub.f32 %v4534_v54, %v4637_v23 }
 0x324   : > { %v2361_v13 = vadd.f32 %v2360_v7, %v2298_v55  ;;  %v4766_v55 = vsub.f32 %v4537_v56, %v4637_v23  ;;  %v2305_v54 = vmul.f32 %v4760_v38, %v4760_v38 }
 0x326   : > { %v2362_v41 = vadd.f32 %v2361_v13, %v2299_v42  ;;  %v4772_v42 = vsub.f32 %v4540_v58, %v4637_v23  ;;  %v2306_v56 = vmul.f32 %v4766_v55, %v4766_v55 }
 0x328   : > { %v2363_v35 = vadd.f32 %v2362_v41, %v2300_v44  ;;  %v4778_v44 = vsub.f32 %v4543_v60, %v4637_v23  ;;  %v2307_v58 = vmul.f32 %v4772_v42, %v4772_v42 }
 0x32a   : > { %v2364_v61 = vadd.f32 %v2363_v35, %v2301_v46  ;;  %v4784_v46 = vsub.f32 %v4546_v62, %v4637_v23  ;;  %v2308_v60 = vmul.f32 %v4778_v44, %v4778_v44 }
 0x32c   : > { %v2365_v40 = vadd.f32 %v2364_v61, %v2302_v48  ;;  %v4790_v48 = vsub.f32 %v4549_v0, %v4637_v23  ;;  %v2309_v62 = vmul.f32 %v4784_v46, %v4784_v46 }
 0x32e   : > { %v2366_v7 = vadd.f32 %v2365_v40, %v2303_v50  ;;  %v4796_v50 = vsub.f32 %v4552_v2, %v4637_v23  ;;  %v2310_v0 = vmul.f32 %v4790_v48, %v4790_v48 }
 0x330   : > { %v2367_v13 = vadd.f32 %v2366_v7, %v2304_v52  ;;  %v4802_v52 = vsub.f32 %v4555_v4, %v4637_v23  ;;  %v2311_v2 = vmul.f32 %v4796_v50, %v4796_v50 }
 0x332   : > { %v2368_v41 = vadd.f32 %v2367_v13, %v2305_v54  ;;  %v4808_v54 = vsub.f32 %v4558_v6, %v4637_v23  ;;  %v2312_v4 = vmul.f32 %v4802_v52, %v4802_v52 }
 0x334   : > { %v2369_v35 = vadd.f32 %v2368_v41, %v2306_v56  ;;  %v4814_v56 = vsub.f32 %v4561_v8, %v4637_v23  ;;  %v2313_v6 = vmul.f32 %v4808_v54, %v4808_v54 }
 0x336   : > { %v2370_v61 = vadd.f32 %v2369_v35, %v2307_v58  ;;  %v4820_v58 = vsub.f32 %v4564_v10, %v4637_v23  ;;  %v2314_v8 = vmul.f32 %v4814_v56, %v4814_v56 }
 0x338   : > { %v2371_v40 = vadd.f32 %v2370_v61, %v2308_v60  ;;  %v4826_v60 = vsub.f32 %v4567_v12, %v4637_v23  ;;  %v2315_v10 = vmul.f32 %v4820_v58, %v4820_v58 }
 0x33a   : > { %v2372_v7 = vadd.f32 %v2371_v40, %v2309_v62  ;;  %v4832_v62 = vsub.f32 %v4570_v14, %v4637_v23  ;;  %v2316_v12 = vmul.f32 %v4826_v60, %v4826_v60 }
 0x33c   : > { %v2373_v13 = vadd.f32 %v2372_v7, %v2310_v0  ;;  %v4838_v0 = vsub.f32 %v4573_v16, %v4637_v23  ;;  %v2317_v14 = vmul.f32 %v4832_v62, %v4832_v62 }
 0x33e   : > { %v2374_v41 = vadd.f32 %v2373_v13, %v2311_v2  ;;  %v4844_v2 = vsub.f32 %v4576_v18, %v4637_v23  ;;  %v2318_v16 = vmul.f32 %v4838_v0, %v4838_v0 }
 0x340   : > { %v2375_v35 = vadd.f32 %v2374_v41, %v2312_v4  ;;  %v4850_v4 = vsub.f32 %v4579_v20, %v4637_v23  ;;  %v2319_v18 = vmul.f32 %v4844_v2, %v4844_v2 }
 0x342   : > { %v2376_v61 = vadd.f32 %v2375_v35, %v2313_v6  ;;  %v4856_v6 = vsub.f32 %v4582_v22, %v4637_v23  ;;  %v2320_v20 = vmul.f32 %v4850_v4, %v4850_v4 }
 0x344   : > { %v2377_v40 = vadd.f32 %v2376_v61, %v2314_v8  ;;  %5244 = vst [vmem:[#allocation32_spill] sm:$0xff] %v4856_v6  ;;  %v4862_v8 = vsub.f32 %v4585_v24, %v4637_v23  ;;  %v2321_v22 = vmul.f32 %v4856_v6, %v4856_v6 }
 0x346   : > { %v2378_v7 = vadd.f32 %v2377_v40, %v2315_v10  ;;  %5245 = vst [vmem:[#allocation33_spill] sm:$0xff] %v4862_v8  ;;  %v4868_v10 = vsub.f32 %v4588_v26, %v4637_v23  ;;  %v2322_v24 = vmul.f32 %v4862_v8, %v4862_v8 }
 0x348   : > { %v2379_v13 = vadd.f32 %v2378_v7, %v2316_v12  ;;  %5246 = vst [vmem:[#allocation34_spill] sm:$0xff] %v4868_v10  ;;  %v5247_v12 = vld [vmem:[#allocation12_spill] sm:$0xff]  ;;  %v5249_v7 = vld [vmem:[#allocation13_spill] sm:$0xff]  ;;  %v2323_v26 = vmul.f32 %v4868_v10, %v4868_v10 }
 0x349   : > { %v4874_v40 = vsub.f32 %v5247_v12, %v4637_v23  ;;  %v5253_v12 = vld [vmem:[#allocation15_spill] sm:$0xff] }
 0x34a   : > { %v2380_v41 = vadd.f32 %v2379_v13, %v2317_v14  ;;  %v4880_v13 = vsub.f32 %v5249_v7, %v4637_v23  ;;  %v4892_v8 = vsub.f32 %v5253_v12, %v4637_v23  ;;  %v5255_v7 = vld [vmem:[#allocation16_spill] sm:$0xff]  ;;  %v5259_v12 = vld [vmem:[#allocation18_spill] sm:$0xff] }
 0x34b   : > { %5248 = vst [vmem:[#allocation12_spill] sm:$0xff] %v4874_v40  ;;  %v4898_v10 = vsub.f32 %v5255_v7, %v4637_v23  ;;  %v5261_v7 = vld [vmem:[#allocation19_spill] sm:$0xff] }
 0x34c   : > { %v2381_v35 = vadd.f32 %v2380_v41, %v2318_v16  ;;  %5250 = vst [vmem:[#allocation13_spill] sm:$0xff] %v4880_v13  ;;  %v5251_v41 = vld [vmem:[#allocation14_spill] sm:$0xff]  ;;  %5254 = vst [vmem:[#allocation15_spill] sm:$0xff] %v4892_v8 }
 0x34d   : > { %v4886_v6 = vsub.f32 %v5251_v41, %v4637_v23  ;;  %5256 = vst [vmem:[#allocation16_spill] sm:$0xff] %v4898_v10  ;;  %v5257_v41 = vld [vmem:[#allocation17_spill] sm:$0xff] }
 0x34e   : > { %v2382_v61 = vadd.f32 %v2381_v35, %v2319_v18  ;;  %v2324_v18 = vmul.f32 %v4874_v40, %v4874_v40  ;;  %v4904_v40 = vsub.f32 %v5257_v41, %v4637_v23  ;;  %v5263_v41 = vld [vmem:[#allocation20_spill] sm:$0xff] }
 0x34f   : > { %5252 = vst [vmem:[#allocation14_spill] sm:$0xff] %v4886_v6 }
 0x350   : > { %v2383_v14 = vadd.f32 %v2382_v61, %v2320_v20  ;;  %v2325_v20 = vmul.f32 %v4880_v13, %v4880_v13  ;;  %5258 = vst [vmem:[#allocation17_spill] sm:$0xff] %v4904_v40  ;;  %v4910_v13 = vsub.f32 %v5259_v12, %v4637_v23  ;;  %v5265_v12 = vld [vmem:[#allocation21_spill] sm:$0xff] }
 0x352   : > { %v2384_v16 = vadd.f32 %v2383_v14, %v2321_v22  ;;  %v2326_v22 = vmul.f32 %v4886_v6, %v4886_v6  ;;  %5260 = vst [vmem:[#allocation18_spill] sm:$0xff] %v4910_v13  ;;  %v4916_v6 = vsub.f32 %v5261_v7, %v4637_v23  ;;  %v5267_v7 = vld [vmem:[#allocation22_spill] sm:$0xff] }
 0x354   : > { %v2385_v35 = vadd.f32 %v2384_v16, %v2322_v24  ;;  %v2327_v24 = vmul.f32 %v4892_v8, %v4892_v8  ;;  %5262 = vst [vmem:[#allocation19_spill] sm:$0xff] %v4916_v6  ;;  %v4922_v8 = vsub.f32 %v5263_v41, %v4637_v23  ;;  %v5268_v41 = vld [vmem:[#allocation23_spill] sm:$0xff] }
 0x356   : > { %v2386_v61 = vadd.f32 %v2385_v35, %v2323_v26  ;;  %v2328_v26 = vmul.f32 %v4898_v10, %v4898_v10  ;;  %5264 = vst [vmem:[#allocation20_spill] sm:$0xff] %v4922_v8  ;;  %v4928_v10 = vsub.f32 %v5265_v12, %v4637_v23  ;;  %v5270_v12 = vld [vmem:[#allocation24_spill] sm:$0xff] }
 0x358   : > { %v2387_v14 = vadd.f32 %v2386_v61, %v2324_v18  ;;  %v2329_v18 = vmul.f32 %v4904_v40, %v4904_v40  ;;  %5266 = vst [vmem:[#allocation21_spill] sm:$0xff] %v4928_v10  ;;  %v4934_v40 = vsub.f32 %v5267_v7, %v4637_v23  ;;  %v5271_v7 = vld [vmem:[#allocation25_spill] sm:$0xff] }
 0x35a   : > { %v2388_v16 = vadd.f32 %v2387_v14, %v2325_v20  ;;  %v2330_v20 = vmul.f32 %v4910_v13, %v4910_v13  ;;  %v4940_v13 = vsub.f32 %v5268_v41, %v4637_v23  ;;  %v5272_v41 = vld [vmem:[#allocation26_spill] sm:$0xff] }
 0x35c   : > { %v2389_v35 = vadd.f32 %v2388_v16, %v2326_v22  ;;  %v2331_v22 = vmul.f32 %v4916_v6, %v4916_v6  ;;  %5269 = vst [vmem:[#allocation22_spill] sm:$0xff] %v4940_v13  ;;  %v4946_v6 = vsub.f32 %v5270_v12, %v4637_v23 }
 0x35e   : > { %v2390_v61 = vadd.f32 %v2389_v35, %v2327_v24  ;;  %v2332_v24 = vmul.f32 %v4922_v8, %v4922_v8  ;;  %v4952_v8 = vsub.f32 %v5271_v7, %v4637_v23 }
 0x360   : > { %v2391_v14 = vadd.f32 %v2390_v61, %v2328_v26  ;;  %v2333_v26 = vmul.f32 %v4928_v10, %v4928_v10  ;;  %v4958_v10 = vsub.f32 %v5272_v41, %v4637_v23  ;;  %v2337_v12 = vmul.f32 %v4952_v8, %v4952_v8 }
 0x361   : > { %v2340_v23 = vmul.f32 %v4643_v31, %v4643_v31  ;;  %v2341_v41 = vmul.f32 %v4646_v39, %v4646_v39 }
 0x362   : > { %v2392_v16 = vadd.f32 %v2391_v14, %v2329_v18  ;;  %v2334_v18 = vmul.f32 %v4934_v40, %v4934_v40 }
 0x364   : > { %v2393_v35 = vadd.f32 %v2392_v16, %v2330_v20  ;;  %v2335_v20 = vmul.f32 %v4940_v13, %v4940_v13  ;;  %v2339_v13 = vmul.f32 %v4640_v27, %v4640_v27 }
 0x366   : > { %v2394_v61 = vadd.f32 %v2393_v35, %v2331_v22  ;;  %v2336_v22 = vmul.f32 %v4946_v6, %v4946_v6 }
 0x368   : > { %v2395_v14 = vadd.f32 %v2394_v61, %v2332_v24  ;;  %v2338_v61 = vmul.f32 %v4958_v10, %v4958_v10 }
 0x36a   : > { %v2396_v16 = vadd.f32 %v2395_v14, %v2333_v26 }
 0x36c   : > { %v2397_v35 = vadd.f32 %v2396_v16, %v2334_v18  ;;  %v2342_v16 = vmul.f32 %v4649_v47, %v4649_v47 }
 0x36e   : > { %v2398_v24 = vadd.f32 %v2397_v35, %v2335_v20  ;;  %v2343_v35 = vmul.f32 %v4652_v37, %v4652_v37 }
 0x370   : > { %v2399_v7 = vadd.f32 %v2398_v24, %v2336_v22  ;;  %v2344_v24 = vmul.f32 %v4655_v32, %v4655_v32 }
 0x372   : > { %v2400_v26 = vadd.f32 %v2399_v7, %v2337_v12  ;;  %v2345_v7 = vmul.f32 %v4658_v28, %v4658_v28 }
 0x374   : > { %v2401_v14 = vadd.f32 %v2400_v26, %v2338_v61  ;;  %v2346_v26 = vmul.f32 %v4661_v30, %v4661_v30 }
 0x376   : > { %v2402_v18 = vadd.f32 %v2401_v14, %v2339_v13  ;;  %v2347_v14 = vmul.f32 %v4664_v21, %v4664_v21 }
 0x378   : > { %v2403_v20 = vadd.f32 %v2402_v18, %v2340_v23  ;;  %v2348_v18 = vmul.f32 %v4667_v25, %v4667_v25 }
 0x37a   : > { %v2404_v22 = vadd.f32 %v2403_v20, %v2341_v41  ;;  %v2349_v20 = vmul.f32 %v4670_v29, %v4670_v29 }
 0x37c   : > { %v2405_v12 = vadd.f32 %v2404_v22, %v2342_v16  ;;  %v2350_v22 = vmul.f32 %v4673_v33, %v4673_v33 }
 0x37e   : > { %v2406_v61 = vadd.f32 %v2405_v12, %v2343_v35  ;;  %v2351_v12 = vmul.f32 %v4676_v43, %v4676_v43 }
 0x380   : > { %v2407_v13 = vadd.f32 %v2406_v61, %v2344_v24  ;;  %v2352_v61 = vmul.f32 %v4679_v51, %v4679_v51 }
 0x382   : > { %v2408_v23 = vadd.f32 %v2407_v13, %v2345_v7  ;;  %v2353_v13 = vmul.f32 %v4682_v59, %v4682_v59 }
 0x384   : > { %v2409_v41 = vadd.f32 %v2408_v23, %v2346_v26  ;;  %v2354_v23 = vmul.f32 %v4685_v3, %v4685_v3 }
 0x386   : > { %v2410_v16 = vadd.f32 %v2409_v41, %v2347_v14  ;;  %v2355_v41 = vmul.f32 %v4688_v11, %v4688_v11 }
 0x388   : > { %v2411_v35 = vadd.f32 %v2410_v16, %v2348_v18  ;;  %v2356_v16 = vmul.f32 %v4691_v5, %v4691_v5 }
 0x38a   : > { %v2412_v24 = vadd.f32 %v2411_v35, %v2349_v20  ;;  %v2357_v35 = vmul.f32 %v4694_v17, %v4694_v17 }
 0x38c   : > { %v2413_v7 = vadd.f32 %v2412_v24, %v2350_v22 }
 0x38e   : > { %v2414_v26 = vadd.f32 %v2413_v7, %v2351_v12 }
 0x390   : > { %v2415_v14 = vadd.f32 %v2414_v26, %v2352_v61 }
 0x392   : > { %v2416_v18 = vadd.f32 %v2415_v14, %v2353_v13 }
 0x394   : > { %v2417_v20 = vadd.f32 %v2416_v18, %v2354_v23 }
 0x396   : > { %v2418_v22 = vadd.f32 %v2417_v20, %v2355_v41 }
 0x398   : > { %v2419_v24 = vadd.f32 %v2418_v22, %v2356_v16 }
 0x39a   : > { %v2420_v51 = vadd.f32 %v2419_v24, %v2357_v35 }
 0x39c   : > { %v2421_v59 = vrot.slane %v2420_v51, 4 }
 0x39e   : > { %v2422_v12 = vadd.f32 %v2421_v59, %v2420_v51 }
 0x3a0   : > { %v2423_v7 = vrot.slane %v2422_v12, 2 }
 0x3a2   : > { %v2424_v43 = vadd.f32 %v2423_v7, %v2422_v12 }
 0x3a4   : > { %v2425_v3 = vrot.slane %v2424_v43, 1 }
 0x3a6   : > { %v2426_v61 = vadd.f32 %v2425_v3, %v2424_v43 }
 0x3a8   : > { %v2427_v26 = vmul.f32 0.001953125, %v2426_v61 }
 0x3aa   : > { %v2428_v33 = vadd.f32 1e-05, %v2427_v26 }
 0x3ac   : > { %3912 = vrsqrt.f32 %v2428_v33 }
 0x3b6   : > { %v5004_v13 = vpop.eup %3912 }
 0x3b7   : > { %v2430_v23 = vmul.f32 %v5004_v13, %v4698_v1  ;;  %v2431_v14 = vmul.f32 %v5004_v13, %v4702_v57  ;;  %v2432_v41 = vmul.f32 %v5004_v13, %v4706_v53  ;;  %v2433_v51 = vmul.f32 %v5004_v13, %v4710_v49 }
 0x3b8   : > { %v2434_v43 = vmul.f32 %v5004_v13, %v4718_v34  ;;  %v2435_v33 = vmul.f32 %v5004_v13, %v4724_v36  ;;  %v2436_v59 = vmul.f32 %v5004_v13, %v4730_v15  ;;  %v2437_v3 = vmul.f32 %v5004_v13, %v4736_v63 }
 0x3b9   : > { %vm2494_vm0 = vcmp.ge.f32.partialorder %v2430_v23, 0.0  ;;  %vm2495_vm1 = vcmp.ge.f32.partialorder %v2431_v14, 0.0  ;;  %v2558_v1 = vmul.f32 0.2, %v2430_v23  ;;  %v2559_v57 = vmul.f32 0.2, %v2431_v14 }
 0x3ba   : > { %vm2496_vm2 = vcmp.ge.f32.partialorder %v2432_v41, 0.0  ;;  %vm2497_vm3 = vcmp.ge.f32.partialorder %v2433_v51, 0.0  ;;  %v2560_v53 = vmul.f32 0.2, %v2432_v41  ;;  %v2561_v49 = vmul.f32 0.2, %v2433_v51 }
 0x3bb   : > { %v2622_v18 = vsel %vm2494_vm0, %v2430_v23, %v2558_v1  ;;  %v2623_v16 = vsel %vm2495_vm1, %v2431_v14, %v2559_v57  ;;  %vm2498_vm4 = vcmp.ge.f32.partialorder %v2434_v43, 0.0  ;;  %vm2499_vm5 = vcmp.ge.f32.partialorder %v2435_v33, 0.0 }
 0x3bc   : > { %v3424_v34 = vpack.c.bf16 %v2623_v16, %v2622_v18  ;;  %v2624_v36 = vsel %vm2496_vm2, %v2432_v41, %v2560_v53  ;;  %v2625_v20 = vsel %vm2497_vm3, %v2433_v51, %v2561_v49  ;;  %v2562_v35 = vmul.f32 0.2, %v2434_v43 }
 0x3bd   : > { %v3429_v15 = vpack.c.bf16 %v2625_v20, %v2624_v36  ;;  %v2563_v22 = vmul.f32 0.2, %v2435_v33  ;;  %vm2500_vm6 = vcmp.ge.f32.partialorder %v2436_v59, 0.0  ;;  %vm2501_vm7 = vcmp.ge.f32.partialorder %v2437_v3, 0.0 }
 0x3be   : > { %3425 = vst [vmem:[#allocation8] sm:$0xff] %v3424_v34   ;;  %v2626_v63 = vsel %vm2498_vm4, %v2434_v43, %v2562_v35  ;;  %v2564_v24 = vmul.f32 0.2, %v2436_v59  ;;  %v2565_v12 = vmul.f32 0.2, %v2437_v3  ;;  %v2438_v7 = vmul.f32 %v5004_v13, %v4742_v9 }
 0x3bf   : > { %3581 = vst [vmem:[#allocation8 + $0x8] sm:$0xff] %v3429_v15   ;;  %v2627_v61 = vsel %vm2499_vm5, %v2435_v33, %v2563_v22  ;;  %v2439_v26 = vmul.f32 %v5004_v13, %v4748_v19  ;;  %v2440_v23 = vmul.f32 %v5004_v13, %v4754_v45  ;;  %v2441_v14 = vmul.f32 %v5004_v13, %v4760_v38 }
 0x3c0   : > { %v3434_v41 = vpack.c.bf16 %v2627_v61, %v2626_v63  ;;  %v2628_v51 = vsel %vm2500_vm6, %v2436_v59, %v2564_v24  ;;  %v2629_v1 = vsel %vm2501_vm7, %v2437_v3, %v2565_v12  ;;  %vm2502_vm8 = vcmp.ge.f32.partialorder %v2438_v7, 0.0 }
 0x3c1   : > { %v3439_v43 = vpack.c.bf16 %v2629_v1, %v2628_v51  ;;  %vm2503_vm9 = vcmp.ge.f32.partialorder %v2439_v26, 0.0  ;;  %v2566_v57 = vmul.f32 0.2, %v2438_v7  ;;  %v2567_v53 = vmul.f32 0.2, %v2439_v26 }
 0x3c2   : > { %3582 = vst [vmem:[#allocation8 + $0x10] sm:$0xff] %v3434_v41   ;;  %vm2504_vm10 = vcmp.ge.f32.partialorder %v2440_v23, 0.0  ;;  %vm2505_vm11 = vcmp.ge.f32.partialorder %v2441_v14, 0.0  ;;  %v2568_v9 = vmul.f32 0.2, %v2440_v23  ;;  %v2442_v45 = vmul.f32 %v5004_v13, %v4766_v55 }
 0x3c3   : > { %v2569_v33 = vmul.f32 0.2, %v2441_v14  ;;  %3583 = vst [vmem:[#allocation8 + $0x18] sm:$0xff] %v3439_v43   ;;  %v2630_v19 = vsel %vm2502_vm8, %v2438_v7, %v2566_v57  ;;  %v2631_v49 = vsel %vm2503_vm9, %v2439_v26, %v2567_v53  ;;  %v2443_v38 = vmul.f32 %v5004_v13, %v4772_v42 }
 0x3c4   : > { %v3444_v59 = vpack.c.bf16 %v2631_v49, %v2630_v19  ;;  %v2632_v3 = vsel %vm2504_vm10, %v2440_v23, %v2568_v9  ;;  %v2444_v16 = vmul.f32 %v5004_v13, %v4778_v44  ;;  %vm2506_vm12 = vcmp.ge.f32.partialorder %v2442_v45, 0.0 }
 0x3c5   : > { %v2633_v18 = vsel %vm2505_vm11, %v2441_v14, %v2569_v33  ;;  %vm2507_vm13 = vcmp.ge.f32.partialorder %v2443_v38, 0.0  ;;  %v2570_v36 = vmul.f32 0.2, %v2442_v45  ;;  %v2571_v20 = vmul.f32 0.2, %v2443_v38 }
 0x3c6   : > { %v3449_v34 = vpack.c.bf16 %v2633_v18, %v2632_v3  ;;  %3584 = vst [vmem:[#allocation8 + $0x20] sm:$0xff] %v3444_v59   ;;  %v2445_v35 = vmul.f32 %v5004_v13, %v4784_v46  ;;  %vm2508_vm14 = vcmp.ge.f32.partialorder %v2444_v16, 0.0  ;;  %v2572_v55 = vmul.f32 0.2, %v2444_v16 }
 0x3c7   : > { %v2634_v15 = vsel %vm2506_vm12, %v2442_v45, %v2570_v36  ;;  %v2446_v42 = vmul.f32 %v5004_v13, %v4790_v48  ;;  %v2447_v22 = vmul.f32 %v5004_v13, %v4796_v50  ;;  %v2448_v44 = vmul.f32 %v5004_v13, %v4802_v52  ;;  %v5273_v36 = vld [vmem:[#allocation32_spill] sm:$0xff] }
 0x3c8   : > { %3585 = vst [vmem:[#allocation8 + $0x28] sm:$0xff] %v3449_v34   ;;  %v2635_v63 = vsel %vm2507_vm13, %v2443_v38, %v2571_v20  ;;  %vm2509_vm15 = vcmp.ge.f32.partialorder %v2445_v35, 0.0  ;;  %v2573_v24 = vmul.f32 0.2, %v2445_v35  ;;  %v2636_v12 = vsel %vm2508_vm14, %v2444_v16, %v2572_v55 }
 0x3c9   : > { %v3454_v7 = vpack.c.bf16 %v2635_v63, %v2634_v15  ;;  %vm2510_vm0 = vcmp.ge.f32.partialorder %v2446_v42, 0.0  ;;  %vm2511_vm1 = vcmp.ge.f32.partialorder %v2447_v22, 0.0  ;;  %v2574_v46 = vmul.f32 0.2, %v2446_v42 }
 0x3ca   : > { %v2637_v61 = vsel %vm2509_vm15, %v2445_v35, %v2573_v24  ;;  %v2575_v26 = vmul.f32 0.2, %v2447_v22  ;;  %v2449_v23 = vmul.f32 %v5004_v13, %v4808_v54  ;;  %vm2512_vm2 = vcmp.ge.f32.partialorder %v2448_v44, 0.0  ;;  %v5274_v35 = vld [vmem:[#allocation33_spill] sm:$0xff] }
 0x3cb   : > { %3586 = vst [vmem:[#allocation8 + $0x30] sm:$0xff] %v3454_v7   ;;  %v3459_v48 = vpack.c.bf16 %v2637_v61, %v2636_v12  ;;  %v2638_v50 = vsel %vm2510_vm0, %v2446_v42, %v2574_v46  ;;  %v2576_v14 = vmul.f32 0.2, %v2448_v44  ;;  %v2450_v52 = vmul.f32 %v5004_v13, %v4814_v56  ;;  %v5276_v61 = vld [vmem:[#allocation12_spill] sm:$0xff] }
 0x3cc   : > { %v2639_v41 = vsel %vm2511_vm1, %v2447_v22, %v2575_v26  ;;  %vm2513_vm3 = vcmp.ge.f32.partialorder %v2449_v23, 0.0  ;;  %v2577_v51 = vmul.f32 0.2, %v2449_v23  ;;  %v2451_v1 = vmul.f32 %v5004_v13, %v4820_v58  ;;  %v5275_v22 = vld [vmem:[#allocation34_spill] sm:$0xff] }
 0x3cd   : > { %3587 = vst [vmem:[#allocation8 + $0x38] sm:$0xff] %v3459_v48   ;;  %v3464_v43 = vpack.c.bf16 %v2639_v41, %v2638_v50  ;;  %v2640_v57 = vsel %vm2512_vm2, %v2448_v44, %v2576_v14  ;;  %vm2514_vm4 = vcmp.ge.f32.partialorder %v2450_v52, 0.0  ;;  %v2578_v53 = vmul.f32 0.2, %v2450_v52 }
 0x3ce   : > { %v2641_v54 = vsel %vm2513_vm3, %v2449_v23, %v2577_v51  ;;  %vm2515_vm5 = vcmp.ge.f32.partialorder %v2451_v1, 0.0  ;;  %v2579_v9 = vmul.f32 0.2, %v2451_v1  ;;  %v2452_v33 = vmul.f32 %v5004_v13, %v4826_v60  ;;  %v5277_v23 = vld [vmem:[#allocation13_spill] sm:$0xff]  ;;  %v5279_v51 = vld [vmem:[#allocation15_spill] sm:$0xff] }
 0x3cf   : > { %3588 = vst [vmem:[#allocation8 + $0x40] sm:$0xff] %v3464_v43   ;;  %v3469_v19 = vpack.c.bf16 %v2641_v54, %v2640_v57  ;;  %v2642_v56 = vsel %vm2514_vm4, %v2450_v52, %v2578_v53  ;;  %v2453_v49 = vmul.f32 %v5004_v13, %v4832_v62  ;;  %v2454_v58 = vmul.f32 %v5004_v13, %v4838_v0  ;;  %v5278_v52 = vld [vmem:[#allocation14_spill] sm:$0xff] }
 0x3d0   : > { %v2643_v45 = vsel %vm2515_vm5, %v2451_v1, %v2579_v9  ;;  %vm2516_vm6 = vcmp.ge.f32.partialorder %v2452_v33, 0.0  ;;  %v2580_v38 = vmul.f32 0.2, %v2452_v33  ;;  %v2455_v59 = vmul.f32 %v5004_v13, %v4844_v2 }
 0x3d1   : > { %3589 = vst [vmem:[#allocation8 + $0x48] sm:$0xff] %v3469_v19   ;;  %v3474_v3 = vpack.c.bf16 %v2643_v45, %v2642_v56  ;;  %vm2517_vm7 = vcmp.ge.f32.partialorder %v2453_v49, 0.0  ;;  %v2581_v18 = vmul.f32 0.2, %v2453_v49  ;;  %vm2518_vm8 = vcmp.ge.f32.partialorder %v2454_v58, 0.0  ;;  %v5280_v56 = vld [vmem:[#allocation16_spill] sm:$0xff] }
 0x3d2   : > { %v2644_v60 = vsel %vm2516_vm6, %v2452_v33, %v2580_v38  ;;  %vm2519_vm9 = vcmp.ge.f32.partialorder %v2455_v59, 0.0  ;;  %v2582_v16 = vmul.f32 0.2, %v2454_v58  ;;  %v2583_v34 = vmul.f32 0.2, %v2455_v59  ;;  %v5281_v38 = vld [vmem:[#allocation17_spill] sm:$0xff] }
 0x3d3   : > { %3590 = vst [vmem:[#allocation8 + $0x50] sm:$0xff] %v3474_v3   ;;  %v2645_v62 = vsel %vm2517_vm7, %v2453_v49, %v2581_v18  ;;  %v2456_v0 = vmul.f32 %v5004_v13, %v4850_v4  ;;  %v2457_v20 = vmul.f32 %v5004_v13, %v5273_v36  ;;  %v2458_v2 = vmul.f32 %v5004_v13, %v5274_v35  ;;  %v5282_v3 = vld [vmem:[#allocation18_spill] sm:$0xff] }
 0x3d4   : > { %v3479_v55 = vpack.c.bf16 %v2645_v62, %v2644_v60  ;;  %v2646_v15 = vsel %vm2518_vm8, %v2454_v58, %v2582_v16  ;;  %v2647_v42 = vsel %vm2519_vm9, %v2455_v59, %v2583_v34  ;;  %v2459_v44 = vmul.f32 %v5004_v13, %v5275_v22 }
 0x3d5   : > { %v3484_v63 = vpack.c.bf16 %v2647_v42, %v2646_v15  ;;  %vm2520_vm10 = vcmp.ge.f32.partialorder %v2456_v0, 0.0  ;;  %vm2521_vm11 = vcmp.ge.f32.partialorder %v2457_v20, 0.0  ;;  %v2584_v24 = vmul.f32 0.2, %v2456_v0 }
 0x3d6   : > { %3591 = vst [vmem:[#allocation8 + $0x58] sm:$0xff] %v3479_v55   ;;  %v2585_v12 = vmul.f32 0.2, %v2457_v20  ;;  %vm2522_vm12 = vcmp.ge.f32.partialorder %v2458_v2, 0.0  ;;  %vm2523_vm13 = vcmp.ge.f32.partialorder %v2459_v44, 0.0  ;;  %v2460_v26 = vmul.f32 %v5004_v13, %v5276_v61  ;;  %v5284_v55 = vld [vmem:[#allocation20_spill] sm:$0xff] }
 0x3d7   : > { %v2586_v4 = vmul.f32 0.2, %v2458_v2  ;;  %3592 = vst [vmem:[#allocation8 + $0x60] sm:$0xff] %v3484_v63   ;;  %v2648_v7 = vsel %vm2520_vm10, %v2456_v0, %v2584_v24  ;;  %v2587_v46 = vmul.f32 0.2, %v2459_v44  ;;  %v2461_v48 = vmul.f32 %v5004_v13, %v5277_v23  ;;  %v5286_v23 = vld [vmem:[#allocation22_spill] sm:$0xff] }
 0x3d8   : > { %v2649_v50 = vsel %vm2521_vm11, %v2457_v20, %v2585_v12  ;;  %v2462_v41 = vmul.f32 %v5004_v13, %v5278_v52  ;;  %v2463_v1 = vmul.f32 %v5004_v13, %v5279_v51  ;;  %vm2524_vm14 = vcmp.ge.f32.partialorder %v2460_v26, 0.0  ;;  %v5283_v20 = vld [vmem:[#allocation19_spill] sm:$0xff] }
 0x3d9   : > { %v2650_v14 = vsel %vm2522_vm12, %v2458_v2, %v2586_v4  ;;  %v3489_v43 = vpack.c.bf16 %v2649_v50, %v2648_v7  ;;  %v2651_v57 = vsel %vm2523_vm13, %v2459_v44, %v2587_v46  ;;  %vm2525_vm15 = vcmp.ge.f32.partialorder %v2461_v48, 0.0  ;;  %v5285_v44 = vld [vmem:[#allocation21_spill] sm:$0xff] }
 0x3da   : > { %v3494_v53 = vpack.c.bf16 %v2651_v57, %v2650_v14  ;;  %v2588_v54 = vmul.f32 0.2, %v2460_v26  ;;  %v2589_v9 = vmul.f32 0.2, %v2461_v48  ;;  %vm2526_vm0 = vcmp.ge.f32.partialorder %v2462_v41, 0.0 }
 0x3db   : > { %3593 = vst [vmem:[#allocation8 + $0x68] sm:$0xff] %v3489_v43   ;;  %vm2527_vm1 = vcmp.ge.f32.partialorder %v2463_v1, 0.0  ;;  %v2590_v33 = vmul.f32 0.2, %v2462_v41  ;;  %v2591_v19 = vmul.f32 0.2, %v2463_v1  ;;  %v2464_v49 = vmul.f32 %v5004_v13, %v5280_v56 }
 0x3dc   : > { %3594 = vst [vmem:[#allocation8 + $0x70] sm:$0xff] %v3494_v53   ;;  %v2652_v58 = vsel %vm2524_vm14, %v2460_v26, %v2588_v54  ;;  %v2653_v45 = vsel %vm2525_vm15, %v2461_v48, %v2589_v9  ;;  %v2465_v59 = vmul.f32 %v5004_v13, %v5281_v38  ;;  %v2466_v18 = vmul.f32 %v5004_v13, %v5282_v3 }
 0x3dd   : > { %v3499_v60 = vpack.c.bf16 %v2653_v45, %v2652_v58  ;;  %v2654_v16 = vsel %vm2526_vm0, %v2462_v41, %v2590_v33  ;;  %v2655_v34 = vsel %vm2527_vm1, %v2463_v1, %v2591_v19  ;;  %vm2528_vm2 = vcmp.ge.f32.partialorder %v2464_v49, 0.0 }
 0x3de   : > { %v3504_v62 = vpack.c.bf16 %v2655_v34, %v2654_v16  ;;  %vm2529_vm3 = vcmp.ge.f32.partialorder %v2465_v59, 0.0  ;;  %v2592_v0 = vmul.f32 0.2, %v2464_v49  ;;  %v2593_v36 = vmul.f32 0.2, %v2465_v59 }
 0x3df   : > { %3595 = vst [vmem:[#allocation8 + $0x78] sm:$0xff] %v3499_v60   ;;  %v2467_v35 = vmul.f32 %v5004_v13, %v5283_v20  ;;  %vm2530_vm4 = vcmp.ge.f32.partialorder %v2466_v18, 0.0  ;;  %v2594_v2 = vmul.f32 0.2, %v2466_v18  ;;  %v2468_v15 = vmul.f32 %v5004_v13, %v5284_v55 }
 0x3e0   : > { %3596 = vst [vmem:[#allocation8 + $0x80] sm:$0xff] %v3504_v62   ;;  %v2656_v42 = vsel %vm2528_vm2, %v2464_v49, %v2592_v0  ;;  %v2657_v22 = vsel %vm2529_vm3, %v2465_v59, %v2593_v36  ;;  %v2469_v63 = vmul.f32 %v5004_v13, %v5285_v44  ;;  %v2470_v24 = vmul.f32 %v5004_v13, %v4934_v40 }
 0x3e1   : > { %v3509_v12 = vpack.c.bf16 %v2657_v22, %v2656_v42  ;;  %vm2531_vm5 = vcmp.ge.f32.partialorder %v2467_v35, 0.0  ;;  %v2595_v4 = vmul.f32 0.2, %v2467_v35  ;;  %v2658_v7 = vsel %vm2530_vm4, %v2466_v18, %v2594_v2 }
 0x3e2   : > { %vm2532_vm6 = vcmp.ge.f32.partialorder %v2468_v15, 0.0  ;;  %vm2533_vm7 = vcmp.ge.f32.partialorder %v2469_v63, 0.0  ;;  %v2596_v46 = vmul.f32 0.2, %v2468_v15  ;;  %v2597_v61 = vmul.f32 0.2, %v2469_v63 }
 0x3e3   : > { %3597 = vst [vmem:[#allocation8 + $0x88] sm:$0xff] %v3509_v12   ;;  %v2659_v26 = vsel %vm2531_vm5, %v2467_v35, %v2595_v4  ;;  %v2471_v48 = vmul.f32 %v5004_v13, %v5286_v23  ;;  %vm2534_vm8 = vcmp.ge.f32.partialorder %v2470_v24, 0.0  ;;  %v2598_v50 = vmul.f32 0.2, %v2470_v24 }
 0x3e4   : > { %v3514_v14 = vpack.c.bf16 %v2659_v26, %v2658_v7  ;;  %v2660_v52 = vsel %vm2532_vm6, %v2468_v15, %v2596_v46  ;;  %v2661_v41 = vsel %vm2533_vm7, %v2469_v63, %v2597_v61  ;;  %v2472_v40 = vmul.f32 %v5004_v13, %v4946_v6  ;;  %v5287_v46 = vld [vmem:[#allocation27_spill] sm:$0xff]  ;;  %v5288_v26 = vld [vmem:[#allocation28_spill] sm:$0xff] }
 0x3e5   : > { %v3519_v51 = vpack.c.bf16 %v2661_v41, %v2660_v52  ;;  %vm2535_vm9 = vcmp.ge.f32.partialorder %v2471_v48, 0.0  ;;  %v2599_v1 = vmul.f32 0.2, %v2471_v48  ;;  %v2662_v43 = vsel %vm2534_vm8, %v2470_v24, %v2598_v50  ;;  %v5289_v50 = vld [vmem:[#allocation29_spill] sm:$0xff] }
 0x3e6   : > { %3598 = vst [vmem:[#allocation8 + $0x90] sm:$0xff] %v3514_v14   ;;  %v2473_v57 = vmul.f32 %v5004_v13, %v4952_v8  ;;  %vm2536_vm10 = vcmp.ge.f32.partialorder %v2472_v40, 0.0  ;;  %v2600_v53 = vmul.f32 0.2, %v2472_v40  ;;  %v2474_v54 = vmul.f32 %v5004_v13, %v4958_v10 }
 0x3e7   : > { %3599 = vst [vmem:[#allocation8 + $0x98] sm:$0xff] %v3519_v51   ;;  %v2663_v9 = vsel %vm2535_vm9, %v2471_v48, %v2599_v1  ;;  %v2475_v33 = vmul.f32 %v5004_v13, %v4640_v27  ;;  %v2476_v6 = vmul.f32 %v5004_v13, %v4643_v31  ;;  %v2477_v19 = vmul.f32 %v5004_v13, %v4646_v39  ;;  %v5290_v51 = vld [vmem:[#allocation30_spill] sm:$0xff] }
 0x3e8   : > { %v3524_v56 = vpack.c.bf16 %v2663_v9, %v2662_v43  ;;  %vm2537_vm11 = vcmp.ge.f32.partialorder %v2473_v57, 0.0  ;;  %v2601_v49 = vmul.f32 0.2, %v2473_v57  ;;  %v2664_v8 = vsel %vm2536_vm10, %v2472_v40, %v2600_v53 }
 0x3e9   : > { %vm2538_vm12 = vcmp.ge.f32.partialorder %v2474_v54, 0.0  ;;  %vm2539_vm13 = vcmp.ge.f32.partialorder %v2475_v33, 0.0  ;;  %v2602_v58 = vmul.f32 0.2, %v2474_v54  ;;  %v2603_v45 = vmul.f32 0.2, %v2475_v33 }
 0x3ea   : > { %3600 = vst [vmem:[#allocation8 + $0xa0] sm:$0xff] %v3524_v56   ;;  %v2665_v10 = vsel %vm2537_vm11, %v2473_v57, %v2601_v49  ;;  %vm2540_vm14 = vcmp.ge.f32.partialorder %v2476_v6, 0.0  ;;  %vm2541_vm15 = vcmp.ge.f32.partialorder %v2477_v19, 0.0  ;;  %v2604_v38 = vmul.f32 0.2, %v2476_v6 }
 0x3eb   : > { %v3529_v27 = vpack.c.bf16 %v2665_v10, %v2664_v8  ;;  %v2666_v59 = vsel %vm2538_vm12, %v2474_v54, %v2602_v58  ;;  %v2667_v3 = vsel %vm2539_vm13, %v2475_v33, %v2603_v45  ;;  %v2605_v31 = vmul.f32 0.2, %v2477_v19  ;;  %v5291_v54 = vld [vmem:[#allocation31_spill] sm:$0xff] }
 0x3ec   : > { %v3534_v18 = vpack.c.bf16 %v2667_v3, %v2666_v59  ;;  %v2668_v60 = vsel %vm2540_vm14, %v2476_v6, %v2604_v38  ;;  %v2478_v39 = vmul.f32 %v5004_v13, %v4649_v47  ;;  %v2479_v16 = vmul.f32 %v5004_v13, %v4652_v37 }
 0x3ed   : > { %3601 = vst [vmem:[#allocation8 + $0xa8] sm:$0xff] %v3529_v27   ;;  %v2669_v34 = vsel %vm2541_vm15, %v2477_v19, %v2605_v31  ;;  %v2480_v62 = vmul.f32 %v5004_v13, %v4655_v32  ;;  %v2481_v0 = vmul.f32 %v5004_v13, %v4658_v28  ;;  %v2482_v36 = vmul.f32 %v5004_v13, %v4661_v30 }
 0x3ee   : > { %3602 = vst [vmem:[#allocation8 + $0xb0] sm:$0xff] %v3534_v18   ;;  %v3539_v20 = vpack.c.bf16 %v2669_v34, %v2668_v60  ;;  %vm2542_vm0 = vcmp.ge.f32.partialorder %v2478_v39, 0.0  ;;  %vm2543_vm1 = vcmp.ge.f32.partialorder %v2479_v16, 0.0  ;;  %v2606_v35 = vmul.f32 0.2, %v2478_v39 }
 0x3ef   : > { %v2607_v47 = vmul.f32 0.2, %v2479_v16  ;;  %vm2544_vm2 = vcmp.ge.f32.partialorder %v2480_v62, 0.0  ;;  %vm2545_vm3 = vcmp.ge.f32.partialorder %v2481_v0, 0.0  ;;  %v2608_v37 = vmul.f32 0.2, %v2480_v62 }
 0x3f0   : > { %3603 = vst [vmem:[#allocation8 + $0xb8] sm:$0xff] %v3539_v20   ;;  %v2670_v2 = vsel %vm2542_vm0, %v2478_v39, %v2606_v35  ;;  %v2609_v55 = vmul.f32 0.2, %v2481_v0  ;;  %v2483_v32 = vmul.f32 %v5004_v13, %v4664_v21  ;;  %vm2546_vm4 = vcmp.ge.f32.partialorder %v2482_v36, 0.0 }
 0x3f1   : > { %v2671_v28 = vsel %vm2543_vm1, %v2479_v16, %v2607_v47  ;;  %v2672_v15 = vsel %vm2544_vm2, %v2480_v62, %v2608_v37  ;;  %v2610_v42 = vmul.f32 0.2, %v2482_v36  ;;  %v2484_v30 = vmul.f32 %v5004_v13, %v4667_v25 }
 0x3f2   : > { %v3544_v22 = vpack.c.bf16 %v2671_v28, %v2670_v2  ;;  %v2673_v44 = vsel %vm2545_vm3, %v2481_v0, %v2609_v55  ;;  %vm2547_vm5 = vcmp.ge.f32.partialorder %v2483_v32, 0.0  ;;  %v2611_v63 = vmul.f32 0.2, %v2483_v32 }
 0x3f3   : > { %v3549_v24 = vpack.c.bf16 %v2673_v44, %v2672_v15  ;;  %v2674_v12 = vsel %vm2546_vm4, %v2482_v36, %v2610_v42  ;;  %v2485_v4 = vmul.f32 %v5004_v13, %v4670_v29  ;;  %vm2548_vm6 = vcmp.ge.f32.partialorder %v2484_v30, 0.0 }
 0x3f4   : > { %3604 = vst [vmem:[#allocation8 + $0xc0] sm:$0xff] %v3544_v22   ;;  %v2675_v7 = vsel %vm2547_vm5, %v2483_v32, %v2611_v63  ;;  %v2612_v21 = vmul.f32 0.2, %v2484_v30  ;;  %v2486_v61 = vmul.f32 %v5004_v13, %v5287_v46  ;;  %v2487_v23 = vmul.f32 %v5004_v13, %v5288_v26 }
 0x3f5   : > { %3605 = vst [vmem:[#allocation8 + $0xc8] sm:$0xff] %v3549_v24   ;;  %v3554_v25 = vpack.c.bf16 %v2675_v7, %v2674_v12  ;;  %vm2549_vm7 = vcmp.ge.f32.partialorder %v2485_v4, 0.0  ;;  %v2613_v48 = vmul.f32 0.2, %v2485_v4  ;;  %v2488_v14 = vmul.f32 %v5004_v13, %v5289_v50 }
 0x3f6   : > { %v2676_v52 = vsel %vm2548_vm6, %v2484_v30, %v2612_v21  ;;  %vm2550_vm8 = vcmp.ge.f32.partialorder %v2486_v61, 0.0  ;;  %vm2551_vm9 = vcmp.ge.f32.partialorder %v2487_v23, 0.0  ;;  %v2614_v29 = vmul.f32 0.2, %v2486_v61 }
 0x3f7   : > { %3606 = vst [vmem:[#allocation8 + $0xd0] sm:$0xff] %v3554_v25   ;;  %v2677_v41 = vsel %vm2549_vm7, %v2485_v4, %v2613_v48  ;;  %v2615_v40 = vmul.f32 0.2, %v2487_v23  ;;  %v2489_v1 = vmul.f32 %v5004_v13, %v5290_v51  ;;  %vm2552_vm10 = vcmp.ge.f32.partialorder %v2488_v14, 0.0 }
 0x3f8   : > { %v3559_v43 = vpack.c.bf16 %v2677_v41, %v2676_v52  ;;  %v2678_v57 = vsel %vm2550_vm8, %v2486_v61, %v2614_v29  ;;  %v2616_v53 = vmul.f32 0.2, %v2488_v14  ;;  %v2490_v9 = vmul.f32 %v5004_v13, %v5291_v54 }
 0x3f9   : > { %v2679_v33 = vsel %vm2551_vm9, %v2487_v23, %v2615_v40  ;;  %vm2553_vm11 = vcmp.ge.f32.partialorder %v2489_v1, 0.0  ;;  %v2617_v6 = vmul.f32 0.2, %v2489_v1  ;;  %v2491_v19 = vmul.f32 %v5004_v13, %v4688_v11 }
 0x3fa   : > { %3607 = vst [vmem:[#allocation8 + $0xd8] sm:$0xff] %v3559_v43   ;;  %v3564_v56 = vpack.c.bf16 %v2679_v33, %v2678_v57  ;;  %v2680_v49 = vsel %vm2552_vm10, %v2488_v14, %v2616_v53  ;;  %vm2554_vm12 = vcmp.ge.f32.partialorder %v2490_v9, 0.0  ;;  %v2618_v8 = vmul.f32 0.2, %v2490_v9 }
 0x3fb   : > { %v2681_v58 = vsel %vm2553_vm11, %v2489_v1, %v2617_v6  ;;  %vm2555_vm13 = vcmp.ge.f32.partialorder %v2491_v19, 0.0  ;;  %v2619_v45 = vmul.f32 0.2, %v2491_v19  ;;  %v2492_v10 = vmul.f32 %v5004_v13, %v4691_v5 }
 0x3fc   : > { %3608 = vst [vmem:[#allocation8 + $0xe0] sm:$0xff] %v3564_v56   ;;  %v3569_v38 = vpack.c.bf16 %v2681_v58, %v2680_v49  ;;  %v2682_v27 = vsel %vm2554_vm12, %v2490_v9, %v2618_v8  ;;  %v2493_v59 = vmul.f32 %v5004_v13, %v4694_v17 }
 0x3fd   : > { %v2683_v3 = vsel %vm2555_vm13, %v2491_v19, %v2619_v45  ;;  %vm2556_vm14 = vcmp.ge.f32.partialorder %v2492_v10, 0.0  ;;  %v2620_v11 = vmul.f32 0.2, %v2492_v10 }
 0x3fe   : > { %3609 = vst [vmem:[#allocation8 + $0xe8] sm:$0xff] %v3569_v38   ;;  %v3574_v31 = vpack.c.bf16 %v2683_v3, %v2682_v27  ;;  %vm2557_vm15 = vcmp.ge.f32.partialorder %v2493_v59, 0.0  ;;  %v2621_v18 = vmul.f32 0.2, %v2493_v59 }
 0x3ff   : > { %v2684_v60 = vsel %vm2556_vm14, %v2492_v10, %v2620_v11 }
 0x400   : > { %3610 = vst [vmem:[#allocation8 + $0xf0] sm:$0xff] %v3574_v31   ;;  %v2685_v39 = vsel %vm2557_vm15, %v2493_v59, %v2621_v18 }
 0x401   : > { %v3579_v16 = vpack.c.bf16 %v2685_v39, %v2684_v60 }
 0x403   : > { %3611 = vst [vmem:[#allocation8 + $0xf8] sm:$0xff] %v3579_v16  }
 0x404 PF: > { %p5136_p4 = scmp.eq.s32.totalorder %s3113_s15, 3  ;;  %s4069_s20 = smov [#allocation8]  }
 0x405   : > { %s3016_s5 = sshll.u32 %s4069_s20, 4  ;;  %s3017_s5 = int_to_ptr.vmem [resolvable:$true] %s3016_s5 }
 0x406   : > { %s3974_s8 = scalar_lea.vmem %s3017_s5, 4096  ;;  %p3981_p0 = scmp.lt.s32.totalorder %s3017_s5, %s3017_s5 }
 0x407   : > { %p3975_p8 = scmp.ne.s32.totalorder %s3017_s5, %s3974_s8  ;;  %p3982_p10 = scmp.lt.s32.totalorder %s3974_s8, %s3974_s8 }
 0x409   : > { %p3976_p2 = pnand %p3975_p8, %p5136_p4  ;;  %p3983_p5 = por %p3982_p10, %p3981_p0 }
 0x40b   : > { %p3977_p3 = pneg %p3976_p2 }
 0x40d   : > { %p3984_p6 = pnand %p3983_p5, %p3977_p3 }
 0x40f   : > { %3987 = shalt.err (!%p3984_p6)
}
 0x410   : > { %s3988_s15 = scalar_lea.hbm %s5182_s2, 4096 }
 0x411   : > { %p3989_p11 = scmp.ne.s32.totalorder %s5182_s2, %s3988_s15  ;;  %p3994_p7 = scmp.lt.u32.totalorder %s3988_s15, %s5182_s2 }
 0x413   : > { %p3990_p13 = pnand %p3989_p11, %p5136_p4 }
 0x415   : > { %p3991_p1 = pneg %p3990_p13 }
 0x417   : > { %p3996_p9 = pnand %p3994_p7, %p3991_p1 }
 0x419   : > { %3999 = shalt.err (!%p3996_p9)
}
 0x41a   : > { %s4070_s28 = smov 64   ;;  %s4071_s4 = smov 4  }
 0x41b   : > { %3617 = dma.vmem_to_hbm [thread:$0]  (%p5136_p4), %s3017_s5, 4096, %s5182_s2, [#allocation5], %s4070_s28, %s4070_s28, %s4071_s4  }
 0x41c   : > { %4033 = dma.done.wait (%p5136_p4), [#allocation5], 4096  }
 0x41d   : > { %4035 = vsyncadd (%p5136_p4), [#allocation5], 4294963200 }
 0x41e PF: > { %s19_s14 = sadd.s32 1, %s4058_s14   ;;  %s5293_s9 = smov %s4042_s10 }
 0x41f   : > { %p16_p12 = scmp.ge.s32.totalorder %s19_s14, 6   ;;  %s5294_s10 = smov %s4046_s11 }
 0x420   : > { %s5295_s11 = smov %s4138_s21  ;;  %s5296_s12 = smov %s4054_s13 }
 0x421   : > { %s5297_s13 = smov %s5299_s16  ;;  %18 = sbr.rel (!%p16_p12) target bundleno = 7 (0x7), region = 87 }
 0x428   :  { %3032 = vsyncpa [#allocation4], 1 }
 0x429   :  { %3034 = vsyncpa [#allocation4 + $0x1], 1 }
 0x42a   :  { %3035 = vsyncpa [#allocation7], 1 }
 0x42b   :  { %3037 = vsyncpa [#allocation7 + $0x1], 1 }
 0x42c   :  { %3038 = vsyncpa [#allocation5], 1 }
 0x42d   :  { %3040 = vsyncpa [#allocation5 + $0x1], 1 }

// kernel: discriminator_forward.7
= control target key start
LH: loop header
LB: loop body
LE: loop exit
PB: predicated region body
PF: predicated region fallthrough
CT: control target
= control target key end

     0   :  { %s2577_s0 = inlined_call_operand.hbm [shape: bf16[128,2048], index: 0, kind: input, shape index: {}]   ;;  %s2578_s1 = inlined_call_operand.hbm [shape: bf16[2048,256], index: 1, kind: input, shape index: {}]   ;;  %s2579_s2 = inlined_call_operand.hbm [shape: bf16[128,256], index: 2, kind: output, shape index: {}]  }
   0x1   :  { %2590 = sst [smem:[#allocation16_spill]] %s2577_s0 }
   0x2   :  { %2591 = sst [smem:[#allocation17_spill]] %s2579_s2 }
   0x3   :  { %7 = vsyncpa [#allocation4], 0 }
   0x4   :  { %9 = vsyncpa [#allocation4 + $0x1], 0 }
   0x5   :  { %10 = vsyncpa [#allocation7], 0 }
   0x6   :  { %12 = vsyncpa [#allocation7 + $0x1], 0 }
   0x7   :  { %13 = vsyncpa [#allocation5], 0 }
   0x8   :  { %15 = vsyncpa [#allocation5 + $0x1], 0  ;;  %s2080_s9 = smov 0   ;;  %s2082_s10 = smov 0  }
   0x9   :  { %s2084_s11 = smov 0   ;;  %s2086_s12 = smov 0  }
   0xa   :  { %s2088_s13 = smov 0   ;;  %s2090_s14 = smov 0  }
   0xb   :  { %s2092_s15 = smov 0   ;;  %s2094_s16 = smov 0  }
   0xc   :  { %s2096_s17 = smov 0   ;;  %s2098_s18 = smov 0  }
   0xd   :  { %s2100_s19 = smov 0   ;;  %s2102_s20 = smov 0  }
   0xe   :  { %s2104_s21 = smov 0   ;;  %s2106_s22 = smov 0  }
   0xf LB: > { %2592 = sst [smem:[#allocation12_spill]] %s2030_s17  ;;  %s1323_s23 = sadd.s32 4294967295, %s2050_s22   ;;  %s2050_s22 = sphi %s2106_s22, %s21_s22   ;;  %s2046_s21 = sphi %s2104_s21, %s2636_s21   ;;  %s2042_s20 = sphi %s2102_s20, %s2635_s20   ;;  %s2038_s19 = sphi %s2100_s19, %s2634_s19   ;;  %s2034_s18 = sphi %s2098_s18, %s2633_s18   ;;  %s2030_s17 = sphi %s2096_s17, %s2632_s17   ;;  %s2026_s16 = sphi %s2094_s16, %s2631_s16   ;;  %s2022_s15 = sphi %s2092_s15, %s2630_s15   ;;  %s2018_s14 = sphi %s2090_s14, %s2629_s14   ;;  %s2014_s13 = sphi %s2088_s13, %s2628_s13   ;;  %s2010_s12 = sphi %s2086_s12, %s2627_s12   ;;  %s2006_s11 = sphi %s2084_s11, %s2626_s11   ;;  %s2002_s10 = sphi %s2082_s10, %s2625_s10   ;;  %s1998_s9 = sphi %s2080_s9, %s2624_s9  }
  0x10   : > { %s33_s24 = sadd.s32 1, %s2042_s20  ;;  %s49_s26 = sadd.s32 1, %s2030_s17 }
  0x11   : > { %p2150_p0 = scmp.ge.s32.totalorder %s33_s24, 4  ;;  %p56_p1 = scmp.ne.s32.totalorder %s2030_s17, %s2026_s16 }
  0x12   : > { %p2583_p2 = scmp.eq.s32.totalorder %s2050_s22, 0  ;;  %p62_p4 = scmp.ne.s32.totalorder %s2026_s16, %s2022_s15 }
  0x13   : > { %s2638_s24 = smov (%p2150_p0, %s33_s24), 0  ;;  %p2173_p5 = scmp.eq.s32.totalorder %s1323_s23, 0 }
  0x14   : > { %2594 = sst [smem:[#allocation13_spill]] %s2638_s24  ;;  %p2164_p3 = por %p2583_p2, %p56_p1 }
  0x15   : > { %s2171_s28 = ssub.s32 %s2042_s20, %s2638_s24  ;;  %p2178_p7 = scmp.eq.s32.totalorder %s1323_s23, 7 }
  0x16   : > { %s2596_s29 = scalar_select %p2173_p5, 1, 0 }
  0x17   : > { %p47_p6 = scmp.eq.s32.totalorder %s2171_s28, 0  ;;  %p2184_p8 = por %p2173_p5, %p62_p4 }
  0x18   : > { %s2597_s30 = scalar_select %p2178_p7, 1, 0 }
  0x19   : > { %s2598_s3 = scalar_select %p2184_p8, 1, 0 }
  0x1a   : > { %s2189_s4 = scalar_select %p47_p6, %s2030_s17, %s49_s26  }
  0x1b   : > { %p2582_p9 = scmp.lt.s32.totalorder %s2050_s22, 8  ;;  %s142_s5 = sand.u32 1, %s2030_s17  }
  0x1c   : > { %2599 = sst [smem:[#allocation14_spill]] %s2189_s4  ;;  %s1327_s6 = sshll.u32 %s142_s5, 8 }
  0x1d   : > { %s1424_s7 = sshll.u32 %s2042_s20, 8  ;;  %s2600_s0 = sld [smem:[#allocation16_spill]] }
  0x1e   : > { %s146_s23 = scalar_lea.vmem [#allocation3], %s1327_s6  ;;  %p2205_p10 = pnand %p2582_p9, %p2164_p3 }
  0x1f   : > { %s156_s2 = sshll.u32 %s146_s23, 4  ;;  %s2209_s4 = scalar_lea.sflag [#allocation4], %s142_s5  ;;  %s2199_s2 = int_to_ptr.vmem [resolvable:$true] %s156_s2 }
  0x20   : > { %p1842_p12 = pneg %p2205_p10 }
  0x23   : > { %s2197_s24 = scalar_lea.hbm %s2600_s0, %s1424_s7  ;;  %s1845_s27 = scalar_lea.hbm %s2600_s0, 16384 }
  0x24   : > { %s1840_s7 = scalar_lea.hbm %s2197_s24, 4096  ;;  %p1846_p3 = scmp.lt.u32.totalorder %s2197_s24, %s2600_s0 }
  0x25   : > { %p1841_p11 = scmp.ne.s32.totalorder %s2197_s24, %s1840_s7  ;;  %p1847_p4 = scmp.lt.u32.totalorder %s1845_s27, %s1840_s7 }
  0x26   : > { %p1849_p9 = scmp.lt.u32.totalorder %s1840_s7, %s2197_s24 }
  0x27   : > { %p1843_p13 = pnand %p1842_p12, %p1841_p11  ;;  %p1848_p6 = por %p1847_p4, %p1846_p3 }
  0x29   : > { %p1844_p1 = pneg %p1843_p13  ;;  %p1850_p2 = por %p1849_p9, %p1848_p6 }
  0x2b   : > { %p1851_p8 = pnand %p1850_p2, %p1844_p1 }
  0x2d   : > { %1854 = shalt.err (!%p1851_p8)
}
  0x2e   : > { %s1855_s5 = scalar_lea.vmem %s2199_s2, 4096  ;;  %s2052_s6 = smov [#allocation3]  }
  0x2f   : > { %p1856_p11 = scmp.ne.s32.totalorder %s2199_s2, %s1855_s5  ;;  %s1860_s8 = sshll.u32 %s2052_s6, 4  ;;  %s1861_s8 = int_to_ptr.vmem [resolvable:$false] %s1860_s8 }
  0x30   : > { %s1862_s15 = scalar_lea.vmem %s1861_s8, 8192  ;;  %p1863_p5 = scmp.lt.s32.totalorder %s2199_s2, %s1861_s8 }
  0x31   : > { %p1858_p13 = pnand %p1856_p11, %p1842_p12  ;;  %p1864_p3 = scmp.lt.s32.totalorder %s1862_s15, %s1855_s5 }
  0x33   : > { %p1859_p7 = pneg %p1858_p13  ;;  %p1865_p4 = por %p1864_p3, %p1863_p5 }
  0x35   : > { %p1866_p9 = pnand %p1865_p4, %p1859_p7 }
  0x37   : > { %1869 = shalt.err (!%p1866_p9)
}
  0x38   : > { %s2053_s7 = smov 1024   ;;  %s2054_s27 = smov 256  }
  0x39   : > { %s2055_s23 = smov 16   ;;  %p1334_p2 = scmp.ge.s32.totalorder %s2050_s22, 1 }
  0x3a   : > { %1626 = dma.hbm_to_vmem [thread:$0]  (!%p2205_p10), %s2197_s24, 4096, %s2199_s2, %s2209_s4, %s2053_s7, %s2054_s27, %s2055_s23  }
  0x3b   : > { %p187_p5 = scmp.lt.s32.totalorder %s2050_s22, 9  ;;  %s1324_s6 = sadd.s32 4294967294, %s2050_s22  }
  0x3c   : > { %s36_s8 = sadd.s32 1, %s2046_s21  ;;  %s77_s15 = sadd.s32 1, %s2018_s14 }
  0x3d   : > { %p2239_p7 = pnand %p1334_p2, %p187_p5  ;;  %s2640_s8 = smov (!%p2150_p0, %s36_s8), %s2046_s21 }
  0x3e   : > { %p84_p8 = scmp.ne.s32.totalorder %s2018_s14, %s2014_s13  ;;  %p90_p10 = scmp.ne.s32.totalorder %s2014_s13, %s2010_s12 }
  0x3f   : > { %p38_p12 = scmp.ge.s32.totalorder %s2640_s8, 2  ;;  %s105_s2 = sadd.s32 1, %s2006_s11 }
  0x40   : > { %p2603_p1 = scmp.eq.s32.totalorder %s2050_s22, 0  ;;  %p2605_p11 = scmp.ne.s32.totalorder %s2596_s29, 0 }
  0x41   : > { %s2642_s8 = smov (%p38_p12, %s2640_s8), 0  ;;  %p115_p0 = scmp.ne.s32.totalorder %s2006_s11, %s2002_s10 }
  0x42   : > { %p2256_p6 = por %p84_p8, %p2603_p1  ;;  %p2262_p13 = por %p90_p10, %p2605_p11 }
  0x43   : > { %2607 = sst [smem:[#allocation15_spill]] %s2642_s8  ;;  %p121_p3 = scmp.ne.s32.totalorder %s2002_s10, %s1998_s9 }
  0x44   : > { %s2606_s4 = scalar_select %p2262_p13, 1, 0 }
  0x45   : > { %s73_s12 = ssub.s32 %s2046_s21, %s2642_s8  ;;  %p122_p4 = scmp.eq.s32.totalorder %s1324_s6, 7 }
  0x46   : > { %s74_s25 = sor.u32 %s73_s12, %s2171_s28  ;;  %p103_p9 = scmp.eq.s32.totalorder %s73_s12, 0 }
  0x47   : > { %p75_p2 = scmp.eq.s32.totalorder %s74_s25, 0  ;;  %p2608_p5 = scmp.ne.s32.totalorder %s2597_s30, 0 }
  0x48   : > { %s2282_s26 = scalar_select %p103_p9, %s2006_s11, %s105_s2  }
  0x49   : > { %p2277_p8 = por %p2608_p5, %p115_p0  ;;  %p2287_p10 = por %p122_p4, %p121_p3 }
  0x4a   : > { %s2285_s7 = scalar_select %p75_p2, %s2018_s14, %s77_s15  }
  0x4b   : > { %s2609_s29 = scalar_select %p2277_p8, 1, 0 }
  0x4c   : > { %s2610_s27 = scalar_select %p2287_p10, 1, 0 }
  0x4d   : > { %s166_s23 = sand.u32 1, %s2018_s14   ;;  %s1425_s28 = sshll.u32 %s2042_s20, 7 }
  0x4e   : > { %s1330_s6 = sshll.u32 %s166_s23, 8  ;;  %s176_s0 = sadd.s32 %s2046_s21, %s1425_s28 }
  0x4f   : > { %s170_s8 = scalar_lea.vmem [#allocation6], %s1330_s6  ;;  %s1333_s25 = sshll.u32 %s176_s0, 6 }
  0x50   : > { %s179_s12 = sshll.u32 %s170_s8, 4  ;;  %s2299_s2 = scalar_lea.hbm %s2578_s1, %s1333_s25  ;;  %s2294_s12 = int_to_ptr.vmem [resolvable:$true] %s179_s12 }
  0x51   : > { %p2611_p12 = scmp.lt.s32.totalorder %s2050_s22, 8  ;;  %s2309_s0 = scalar_lea.sflag [#allocation7], %s166_s23 }
  0x52   : > { %s1870_s8 = scalar_lea.hbm %s2299_s2, 4096  ;;  %s1875_s6 = scalar_lea.hbm %s2578_s1, 32768 }
  0x53   : > { %p2305_p1 = pnand %p2611_p12, %p2256_p6  ;;  %p1871_p11 = scmp.ne.s32.totalorder %s2299_s2, %s1870_s8 }
  0x54   : > { %p1876_p6 = scmp.lt.u32.totalorder %s2299_s2, %s2578_s1  ;;  %p1877_p9 = scmp.lt.u32.totalorder %s1875_s6, %s1870_s8 }
  0x55   : > { %p1872_p0 = pneg %p2305_p1  ;;  %p1879_p5 = scmp.lt.u32.totalorder %s1870_s8, %s2299_s2 }
  0x56   : > { %p1878_p2 = por %p1877_p9, %p1876_p6 }
  0x57   : > { %p1873_p3 = pnand %p1872_p0, %p1871_p11 }
  0x58   : > { %p1880_p12 = por %p1879_p5, %p1878_p2 }
  0x59   : > { %p1874_p4 = pneg %p1873_p3 }
  0x5b   : > { %p1881_p10 = pnand %p1880_p12, %p1874_p4 }
  0x5d   : > { %1884 = shalt.err (!%p1881_p10)
}
  0x5e   : > { %s1885_s23 = scalar_lea.vmem %s2294_s12, 4096  ;;  %s2056_s30 = smov [#allocation6]  }
  0x5f   : > { %p1886_p11 = scmp.ne.s32.totalorder %s2294_s12, %s1885_s23  ;;  %s1890_s17 = sshll.u32 %s2056_s30, 4  ;;  %s1891_s17 = int_to_ptr.vmem [resolvable:$false] %s1890_s17 }
  0x60   : > { %s1892_s24 = scalar_lea.vmem %s1891_s17, 8192  ;;  %p1893_p13 = scmp.lt.s32.totalorder %s2294_s12, %s1891_s17 }
  0x61   : > { %p1888_p3 = pnand %p1886_p11, %p1872_p0  ;;  %p1894_p6 = scmp.lt.s32.totalorder %s1892_s24, %s1885_s23 }
  0x63   : > { %p1889_p8 = pneg %p1888_p3  ;;  %p1895_p9 = por %p1894_p6, %p1893_p13 }
  0x65   : > { %p1896_p2 = pnand %p1895_p9, %p1889_p8 }
  0x67   : > { %1899 = shalt.err (!%p1896_p2)
}
  0x68   : > { %s2057_s8 = smov 128   ;;  %s2058_s6 = smov 64  }
  0x69   : > { %s2059_s28 = smov 4   ;;  %191 = sbr.rel (%p2239_p7) target bundleno = 575 (0x23f), region = 28 }
  0x6a   : > { %1629 = dma.hbm_to_vmem [thread:$0]  (!%p2305_p1), %s2299_s2, 4096, %s2294_s12, %s2309_s0, %s2057_s8, %s2058_s6, %s2059_s28  }
  0x6b   : > { %s193_s25 = sand.u32 (!%p2239_p7), 1, %s2026_s16   ;;  %p2613_p13 = scmp.ne.s32.totalorder (!%p2239_p7), %s2598_s3, 0 }
  0x6c   : > { %s1335_s30 = sshll.u32 (!%p2239_p7), %s193_s25, 8  ;;  %s194_s23 = scalar_lea.sflag (!%p2239_p7), [#allocation4], %s193_s25 }
  0x6d   : > { %s2340_s17 = scalar_lea.vmem (!%p2239_p7), [#allocation3], %s1335_s30 }
  0x70   : > { %1985 = dma.done.wait (%p2613_p13), %s194_s23, 4096  }
  0x71   : > { %1987 = vsyncadd (%p2613_p13), %s194_s23, 4294963200  ;;  %s202_s24 = sand.u32 1, %s2014_s13   ;;  %p2614_p7 = scmp.ne.s32.totalorder %s2606_s4, 0 }
  0x72   : > { %s1336_s15 = sshll.u32 %s202_s24, 8  ;;  %s203_s12 = scalar_lea.sflag [#allocation7], %s202_s24 }
  0x73   : > { %s2347_s2 = scalar_lea.vmem [#allocation6], %s1336_s15 }
  0x74   : > { %1989 = dma.done.wait (%p2614_p7), %s203_s12, 4096  }
  0x75   : > { %1991 = vsyncadd (%p2614_p7), %s203_s12, 4294963200  ;;  %s229_s5 = sand.u32 1, %s2002_s10   ;;  %p1338_p8 = scmp.ne.s32.totalorder %s2034_s18, 0 }
  0x76   : > { %s1337_s0 = sshll.u32 %s229_s5, 6  ;;  %v2060_v0 = vmov (!%p1338_p8), 0.0  }
  0x77   : > { %s2356_s8 = scalar_lea.vmem [#allocation8], %s1337_s0  ;;  %240 = sbr.rel (%p1338_p8) target bundleno = 127 (0x7f), region = 40  ;;  %241 = vst [vmem:[#allocation2] sm:$0xff] (!%p1338_p8), %v2060_v0  ;;  %242 = vst [vmem:[#allocation2 + $0x8] sm:$0xff] (!%p1338_p8), %v2060_v0 }
  0x78   : > { %243 = vst [vmem:[#allocation2 + $0x10] sm:$0xff] (!%p1338_p8), %v2060_v0  ;;  %244 = vst [vmem:[#allocation2 + $0x18] sm:$0xff] (!%p1338_p8), %v2060_v0 }
  0x79   : > { %245 = vst [vmem:[#allocation2 + $0x20] sm:$0xff] (!%p1338_p8), %v2060_v0  ;;  %246 = vst [vmem:[#allocation2 + $0x28] sm:$0xff] (!%p1338_p8), %v2060_v0 }
  0x7a   : > { %247 = vst [vmem:[#allocation2 + $0x30] sm:$0xff] (!%p1338_p8), %v2060_v0  ;;  %248 = vst [vmem:[#allocation2 + $0x38] sm:$0xff] (!%p1338_p8), %v2060_v0 }
  0x7b   : > { %249 = vst [vmem:[#allocation2 + $0x40] sm:$0xff] (!%p1338_p8), %v2060_v0  ;;  %250 = vst [vmem:[#allocation2 + $0x48] sm:$0xff] (!%p1338_p8), %v2060_v0 }
  0x7c   : > { %251 = vst [vmem:[#allocation2 + $0x50] sm:$0xff] (!%p1338_p8), %v2060_v0  ;;  %252 = vst [vmem:[#allocation2 + $0x58] sm:$0xff] (!%p1338_p8), %v2060_v0 }
  0x7d   : > { %253 = vst [vmem:[#allocation2 + $0x60] sm:$0xff] (!%p1338_p8), %v2060_v0  ;;  %254 = vst [vmem:[#allocation2 + $0x68] sm:$0xff] (!%p1338_p8), %v2060_v0 }
  0x7e   : > { %255 = vst [vmem:[#allocation2 + $0x70] sm:$0xff] %v2060_v0  ;;  %256 = vst [vmem:[#allocation2 + $0x78] sm:$0xff] %v2060_v0 }
  0x7f PF: > { %v1758_v1 = vld [vmem:[%s2347_s2 + $0x40] sm:$0xff]   ;;  %v1762_v5 = vld [vmem:[%s2347_s2 + $0x48] sm:$0xff]   ;;  %v1766_v9 = vld [vmem:[%s2347_s2 + $0x50] sm:$0xff]   ;;  %p1403_p10 = scmp.ne.s32.totalorder %s2034_s18, 3 }
  0x80   : > { %v1759_v2 = vld [vmem:[%s2347_s2 + $0xc0] sm:$0xff]   ;;  %1489 = vmatprep.subr.bf16.mxu0 %v1758_v1  ;;  %v1763_v6 = vld [vmem:[%s2347_s2 + $0xc8] sm:$0xff]   ;;  %v1767_v10 = vld [vmem:[%s2347_s2 + $0xd0] sm:$0xff]  }
  0x81   : > { %v1760_v3 = vld [vmem:[%s2347_s2] sm:$0xff]   ;;  %1553 = vmatprep.subr.bf16.mxu1 %v1759_v2  ;;  %v1764_v7 = vld [vmem:[%s2347_s2 + $0x8] sm:$0xff]   ;;  %v1768_v11 = vld [vmem:[%s2347_s2 + $0x10] sm:$0xff]  }
  0x82   : > { %v1761_v4 = vld [vmem:[%s2347_s2 + $0x80] sm:$0xff]   ;;  %1490 = vmatpush3.bf16.msra.mxu0 %v1760_v3  ;;  %v1765_v8 = vld [vmem:[%s2347_s2 + $0x88] sm:$0xff]   ;;  %v1769_v12 = vld [vmem:[%s2347_s2 + $0x90] sm:$0xff]  }
  0x83   : > { %1554 = vmatpush3.bf16.msra.mxu1 %v1761_v4  ;;  %1491 = vmatprep.subr.bf16.mxu0 %v1762_v5  ;;  %v1770_v13 = vld [vmem:[%s2347_s2 + $0x58] sm:$0xff]   ;;  %v1774_v17 = vld [vmem:[%s2347_s2 + $0x60] sm:$0xff]   ;;  %v1778_v21 = vld [vmem:[%s2347_s2 + $0x68] sm:$0xff]  }
  0x84   : > { %1555 = vmatprep.subr.bf16.mxu1 %v1763_v6  ;;  %v1771_v14 = vld [vmem:[%s2347_s2 + $0xd8] sm:$0xff]   ;;  %v1775_v18 = vld [vmem:[%s2347_s2 + $0xe0] sm:$0xff]   ;;  %v1779_v22 = vld [vmem:[%s2347_s2 + $0xe8] sm:$0xff]  }
  0x85   : > { %v1772_v15 = vld [vmem:[%s2347_s2 + $0x18] sm:$0xff]   ;;  %v1776_v19 = vld [vmem:[%s2347_s2 + $0x20] sm:$0xff]   ;;  %v1780_v23 = vld [vmem:[%s2347_s2 + $0x28] sm:$0xff]  }
  0x86   : > { %1492 = vmatpush3.bf16.msra.mxu0 %v1764_v7  ;;  %v1773_v16 = vld [vmem:[%s2347_s2 + $0x98] sm:$0xff]   ;;  %v1777_v20 = vld [vmem:[%s2347_s2 + $0xa0] sm:$0xff]   ;;  %v1781_v24 = vld [vmem:[%s2347_s2 + $0xa8] sm:$0xff]  }
  0x87   : > { %1556 = vmatpush3.bf16.msra.mxu1 %v1765_v8  ;;  %1493 = vmatprep.subr.bf16.mxu0 %v1766_v9  ;;  %v1782_v25 = vld [vmem:[%s2347_s2 + $0x70] sm:$0xff]   ;;  %v1786_v29 = vld [vmem:[%s2347_s2 + $0x78] sm:$0xff]  }
  0x88   : > { %1557 = vmatprep.subr.bf16.mxu1 %v1767_v10  ;;  %v1783_v26 = vld [vmem:[%s2347_s2 + $0xf0] sm:$0xff]   ;;  %v1787_v30 = vld [vmem:[%s2347_s2 + $0xf8] sm:$0xff]   ;;  %v257_v10 = vld [vmem:[#allocation2] sm:$0xff] }
  0x89   : > { %v1784_v27 = vld [vmem:[%s2347_s2 + $0x30] sm:$0xff]   ;;  %v1788_v31 = vld [vmem:[%s2347_s2 + $0x38] sm:$0xff]  }
  0x8a   : > { %1494 = vmatpush3.bf16.msra.mxu0 %v1768_v11  ;;  %v1785_v28 = vld [vmem:[%s2347_s2 + $0xb0] sm:$0xff]   ;;  %v1789_v32 = vld [vmem:[%s2347_s2 + $0xb8] sm:$0xff]  }
  0x8b   : > { %1558 = vmatpush3.bf16.msra.mxu1 %v1769_v12  ;;  %1495 = vmatprep.subr.bf16.mxu0 %v1770_v13  ;;  %v1790_v33 = vld [vmem:[%s2340_s17] ss:$16 sps:$4 sm:$0xff]   ;;  %v1792_v34 = vld [vmem:[%s2340_s17 + $0x4] ss:$16 sps:$4 sm:$0xff]   ;;  %v1793_v35 = vld [vmem:[%s2340_s17 + $0x8] ss:$16 sps:$4 sm:$0xff]  }
  0x8c   : > { %1559 = vmatprep.subr.bf16.mxu1 %v1771_v14  ;;  %v1795_v36 = vld [vmem:[%s2340_s17 + $0xc] ss:$16 sps:$4 sm:$0xff]   ;;  %753 = vmatprep.mubr.bf16.mxu0 %v1792_v34  ;;  %v1796_v37 = vld [vmem:[%s2340_s17 + $0x24] ss:$16 sps:$4 sm:$0xff]   ;;  %v1800_v39 = vld [vmem:[%s2340_s17 + $0x20] ss:$16 sps:$4 sm:$0xff]  }
  0x8d   : > { %850 = vmatprep.mubr.bf16.mxu1 %v1795_v36  ;;  %v1798_v38 = vld [vmem:[%s2340_s17 + $0x2c] ss:$16 sps:$4 sm:$0xff]   ;;  %v1801_v40 = vld [vmem:[%s2340_s17 + $0x28] ss:$16 sps:$4 sm:$0xff]   ;;  %v1802_v41 = vld [vmem:[%s2340_s17 + $0x44] ss:$16 sps:$4 sm:$0xff]  }
  0x8e   : > { %1496 = vmatpush3.bf16.msra.mxu0 %v1772_v15  ;;  %v1804_v42 = vld [vmem:[%s2340_s17 + $0x4c] ss:$16 sps:$4 sm:$0xff]   ;;  %v1806_v43 = vld [vmem:[%s2340_s17 + $0x40] ss:$16 sps:$4 sm:$0xff]   ;;  %v1807_v44 = vld [vmem:[%s2340_s17 + $0x48] ss:$16 sps:$4 sm:$0xff]  }
  0x8f   : > { %1560 = vmatpush3.bf16.msra.mxu1 %v1773_v16  ;;  %1497 = vmatprep.subr.bf16.mxu0 %v1774_v17  ;;  %v1808_v45 = vld [vmem:[%s2340_s17 + $0x64] ss:$16 sps:$4 sm:$0xff]   ;;  %v1810_v46 = vld [vmem:[%s2340_s17 + $0x6c] ss:$16 sps:$4 sm:$0xff]   ;;  %v1812_v47 = vld [vmem:[%s2340_s17 + $0x60] ss:$16 sps:$4 sm:$0xff]  }
  0x90   : > { %1561 = vmatprep.subr.bf16.mxu1 %v1775_v18  ;;  %v1813_v48 = vld [vmem:[%s2340_s17 + $0x68] ss:$16 sps:$4 sm:$0xff]   ;;  %v1814_v49 = vld [vmem:[%s2340_s17 + $0x84] ss:$16 sps:$4 sm:$0xff]   ;;  %v1816_v50 = vld [vmem:[%s2340_s17 + $0x8c] ss:$16 sps:$4 sm:$0xff]  }
  0x91   : > { %v1818_v51 = vld [vmem:[%s2340_s17 + $0x80] ss:$16 sps:$4 sm:$0xff]   ;;  %v1819_v52 = vld [vmem:[%s2340_s17 + $0x88] ss:$16 sps:$4 sm:$0xff]   ;;  %v1820_v53 = vld [vmem:[%s2340_s17 + $0xa4] ss:$16 sps:$4 sm:$0xff]  }
  0x92   : > { %1498 = vmatpush3.bf16.msra.mxu0 %v1776_v19  ;;  %v1822_v54 = vld [vmem:[%s2340_s17 + $0xac] ss:$16 sps:$4 sm:$0xff]   ;;  %v1824_v55 = vld [vmem:[%s2340_s17 + $0xa0] ss:$16 sps:$4 sm:$0xff]   ;;  %v1825_v56 = vld [vmem:[%s2340_s17 + $0xa8] ss:$16 sps:$4 sm:$0xff]  }
  0x93   : > { %1562 = vmatpush3.bf16.msra.mxu1 %v1777_v20  ;;  %1499 = vmatprep.subr.bf16.mxu0 %v1778_v21  ;;  %v1826_v57 = vld [vmem:[%s2340_s17 + $0xc4] ss:$16 sps:$4 sm:$0xff]   ;;  %v1828_v58 = vld [vmem:[%s2340_s17 + $0xcc] ss:$16 sps:$4 sm:$0xff]   ;;  %v1830_v59 = vld [vmem:[%s2340_s17 + $0xc0] ss:$16 sps:$4 sm:$0xff]  }
  0x94   : > { %1563 = vmatprep.subr.bf16.mxu1 %v1779_v22  ;;  %v1831_v60 = vld [vmem:[%s2340_s17 + $0xc8] ss:$16 sps:$4 sm:$0xff]   ;;  %v1832_v61 = vld [vmem:[%s2340_s17 + $0xe4] ss:$16 sps:$4 sm:$0xff]   ;;  %v1834_v62 = vld [vmem:[%s2340_s17 + $0xec] ss:$16 sps:$4 sm:$0xff]  }
  0x95   : > { %v1836_v63 = vld [vmem:[%s2340_s17 + $0xe0] ss:$16 sps:$4 sm:$0xff]   ;;  %v1837_v0 = vld [vmem:[%s2340_s17 + $0xe8] ss:$16 sps:$4 sm:$0xff]  }
  0x96   : > { %1500 = vmatpush3.bf16.msra.mxu0 %v1780_v23  ;;  %v258_v15 = vld [vmem:[#allocation2 + $0x8] sm:$0xff] }
  0x97   : > { %1564 = vmatpush3.bf16.msra.mxu1 %v1781_v24  ;;  %1501 = vmatprep.subr.bf16.mxu0 %v1782_v25 }
  0x98   : > { %1565 = vmatprep.subr.bf16.mxu1 %v1783_v26 }
  0x9a   : > { %1502 = vmatpush3.bf16.msra.mxu0 %v1784_v27 }
  0x9b   : > { %1566 = vmatpush3.bf16.msra.mxu1 %v1785_v28  ;;  %1503 = vmatprep.subr.bf16.mxu0 %v1786_v29  ;;  %v259_v28 = vld [vmem:[#allocation2 + $0x10] sm:$0xff] }
  0x9c   : > { %1567 = vmatprep.subr.bf16.mxu1 %v1787_v30 }
  0x9e   : > { %1504 = vmatpush3.bf16.msra.mxu0 %v1788_v31 }
  0x9f   : > { %1568 = vmatpush3.bf16.msra.mxu1 %v1789_v32 }
  0xa1   : > { %754 = vmatmul.mubr.bf16.vlgmr.msra.gmra.mrb[0].mxu0 %v1790_v33  ;;  %v260_v33 = vld [vmem:[#allocation2 + $0x18] sm:$0xff] }
  0xa2   : > { %851 = vmatmul.mubr.bf16.vlgmr.msra.gmra.mrb[0].mxu1 %v1793_v35  ;;  %761 = vmatprep.mubr.bf16.mxu0 %v1796_v37 }
  0xa3   : > { %858 = vmatprep.mubr.bf16.mxu1 %v1798_v38 }
  0xa9   : > { %762 = vmatmul.mubr.bf16.gmra.mrb[4].mxu0 %v1800_v39 }
  0xaa   : > { %859 = vmatmul.mubr.bf16.gmra.mrb[4].mxu1 %v1801_v40  ;;  %769 = vmatprep.mubr.bf16.mxu0 %v1802_v41 }
  0xab   : > { %866 = vmatprep.mubr.bf16.mxu1 %v1804_v42 }
  0xb1   : > { %770 = vmatmul.mubr.bf16.gmra.mrb[8].mxu0 %v1806_v43 }
  0xb2   : > { %867 = vmatmul.mubr.bf16.gmra.mrb[8].mxu1 %v1807_v44  ;;  %777 = vmatprep.mubr.bf16.mxu0 %v1808_v45 }
  0xb3   : > { %874 = vmatprep.mubr.bf16.mxu1 %v1810_v46  ;;  %v261_v46 = vld [vmem:[#allocation2 + $0x20] sm:$0xff] }
  0xb9   : > { %778 = vmatmul.mubr.bf16.gmra.mrb[12].mxu0 %v1812_v47 }
  0xba   : > { %875 = vmatmul.mubr.bf16.gmra.mrb[12].mxu1 %v1813_v48  ;;  %785 = vmatprep.mubr.bf16.mxu0 %v1814_v49 }
  0xbb   : > { %882 = vmatprep.mubr.bf16.mxu1 %v1816_v50 }
  0xc1   : > { %786 = vmatmul.mubr.bf16.gmra.mrb[16].mxu0 %v1818_v51  ;;  %v262_v51 = vld [vmem:[#allocation2 + $0x28] sm:$0xff] }
  0xc2   : > { %883 = vmatmul.mubr.bf16.gmra.mrb[16].mxu1 %v1819_v52  ;;  %793 = vmatprep.mubr.bf16.mxu0 %v1820_v53 }
  0xc3   : > { %890 = vmatprep.mubr.bf16.mxu1 %v1822_v54 }
  0xc9   : > { %794 = vmatmul.mubr.bf16.gmra.mrb[20].mxu0 %v1824_v55 }
  0xca   : > { %891 = vmatmul.mubr.bf16.gmra.mrb[20].mxu1 %v1825_v56  ;;  %801 = vmatprep.mubr.bf16.mxu0 %v1826_v57 }
  0xcb   : > { %898 = vmatprep.mubr.bf16.mxu1 %v1828_v58 }
  0xd1   : > { %802 = vmatmul.mubr.bf16.gmra.mrb[24].mxu0 %v1830_v59 }
  0xd2   : > { %899 = vmatmul.mubr.bf16.gmra.mrb[24].mxu1 %v1831_v60  ;;  %809 = vmatprep.mubr.bf16.mxu0 %v1832_v61 }
  0xd3   : > { %906 = vmatprep.mubr.bf16.mxu1 %v1834_v62 }
  0xd9   : > { %810 = vmatmul.mubr.bf16.gmra.mrb[28].mxu0 %v1836_v63 }
  0xda   : > { %907 = vmatmul.mubr.bf16.gmra.mrb[28].mxu1 %v1837_v0  ;;  %v263_v0 = vld [vmem:[#allocation2 + $0x30] sm:$0xff] }
 0x174   : > { %v1505_v1 = vpop.f32.mrb[0].mxu0 }
 0x175   : > { %v1569_v2 = vpop.f32.mrb[0].mxu1  ;;  %v1506_v3 = vpop.f32.mrb[1].mxu0 }
 0x176   : > { %v1507_v4 = vadd.f32 %v1506_v3, %v1505_v1  ;;  %v1570_v5 = vpop.f32.mrb[1].mxu1  ;;  %v1508_v6 = vpop.f32.mrb[2].mxu0 }
 0x177   : > { %v1571_v7 = vadd.f32 %v1570_v5, %v1569_v2  ;;  %v1572_v8 = vpop.f32.mrb[2].mxu1  ;;  %v1509_v9 = vpop.f32.mrb[3].mxu0  ;;  %v264_v5 = vld [vmem:[#allocation2 + $0x38] sm:$0xff] }
 0x178   : > { %v1510_v11 = vadd.f32 %v1509_v9, %v1508_v6  ;;  %v1573_v12 = vpop.f32.mrb[3].mxu1 }
 0x179   : > { %v853_v13 = vadd.f32 %v1571_v7, %v1507_v4  ;;  %v1574_v14 = vadd.f32 %v1573_v12, %v1572_v8 }
 0x17b   : > { %v915_v16 = vadd.f32 %v853_v13, %v257_v10  ;;  %v856_v17 = vadd.f32 %v1574_v14, %v1510_v11 }
 0x17c   : > { %v1511_v18 = vpop.f32.mrb[4].mxu0 }
 0x17d   : > { %931 = vst [vmem:[#allocation2] sm:$0xff] %v915_v16  ;;  %v916_v19 = vadd.f32 %v856_v17, %v258_v15  ;;  %v1575_v20 = vpop.f32.mrb[4].mxu1  ;;  %v1512_v21 = vpop.f32.mrb[5].mxu0 }
 0x17e   : > { %v1513_v22 = vadd.f32 %v1512_v21, %v1511_v18  ;;  %v1576_v23 = vpop.f32.mrb[5].mxu1  ;;  %v1514_v24 = vpop.f32.mrb[6].mxu0  ;;  %v265_v18 = vld [vmem:[#allocation2 + $0x40] sm:$0xff] }
 0x17f   : > { %932 = vst [vmem:[#allocation2 + $0x8] sm:$0xff] %v916_v19  ;;  %v1577_v25 = vadd.f32 %v1576_v23, %v1575_v20  ;;  %v1578_v26 = vpop.f32.mrb[6].mxu1  ;;  %v1515_v27 = vpop.f32.mrb[7].mxu0  ;;  %v266_v23 = vld [vmem:[#allocation2 + $0x48] sm:$0xff] }
 0x180   : > { %v1516_v29 = vadd.f32 %v1515_v27, %v1514_v24  ;;  %v1579_v30 = vpop.f32.mrb[7].mxu1 }
 0x181   : > { %v861_v31 = vadd.f32 %v1577_v25, %v1513_v22  ;;  %v1580_v32 = vadd.f32 %v1579_v30, %v1578_v26 }
 0x183   : > { %v917_v34 = vadd.f32 %v861_v31, %v259_v28  ;;  %v864_v35 = vadd.f32 %v1580_v32, %v1516_v29 }
 0x184   : > { %v1517_v36 = vpop.f32.mrb[8].mxu0 }
 0x185   : > { %933 = vst [vmem:[#allocation2 + $0x10] sm:$0xff] %v917_v34  ;;  %v918_v37 = vadd.f32 %v864_v35, %v260_v33  ;;  %v1581_v38 = vpop.f32.mrb[8].mxu1  ;;  %v1518_v39 = vpop.f32.mrb[9].mxu0 }
 0x186   : > { %v1519_v40 = vadd.f32 %v1518_v39, %v1517_v36  ;;  %v1582_v41 = vpop.f32.mrb[9].mxu1  ;;  %v1520_v42 = vpop.f32.mrb[10].mxu0  ;;  %v267_v36 = vld [vmem:[#allocation2 + $0x50] sm:$0xff] }
 0x187   : > { %934 = vst [vmem:[#allocation2 + $0x18] sm:$0xff] %v918_v37  ;;  %v1583_v43 = vadd.f32 %v1582_v41, %v1581_v38  ;;  %v1584_v44 = vpop.f32.mrb[10].mxu1  ;;  %v1521_v45 = vpop.f32.mrb[11].mxu0  ;;  %v268_v41 = vld [vmem:[#allocation2 + $0x58] sm:$0xff] }
 0x188   : > { %v1522_v47 = vadd.f32 %v1521_v45, %v1520_v42  ;;  %v1585_v48 = vpop.f32.mrb[11].mxu1 }
 0x189   : > { %v869_v49 = vadd.f32 %v1583_v43, %v1519_v40  ;;  %v1586_v50 = vadd.f32 %v1585_v48, %v1584_v44 }
 0x18b   : > { %v919_v52 = vadd.f32 %v869_v49, %v261_v46  ;;  %v872_v53 = vadd.f32 %v1586_v50, %v1522_v47 }
 0x18c   : > { %v1523_v54 = vpop.f32.mrb[12].mxu0 }
 0x18d   : > { %935 = vst [vmem:[#allocation2 + $0x20] sm:$0xff] %v919_v52  ;;  %v920_v55 = vadd.f32 %v872_v53, %v262_v51  ;;  %v1587_v56 = vpop.f32.mrb[12].mxu1  ;;  %v1524_v57 = vpop.f32.mrb[13].mxu0 }
 0x18e   : > { %v1525_v58 = vadd.f32 %v1524_v57, %v1523_v54  ;;  %v1588_v59 = vpop.f32.mrb[13].mxu1  ;;  %v1526_v60 = vpop.f32.mrb[14].mxu0  ;;  %v269_v54 = vld [vmem:[#allocation2 + $0x60] sm:$0xff] }
 0x18f   : > { %936 = vst [vmem:[#allocation2 + $0x28] sm:$0xff] %v920_v55  ;;  %v1589_v61 = vadd.f32 %v1588_v59, %v1587_v56  ;;  %v1590_v62 = vpop.f32.mrb[14].mxu1  ;;  %v1527_v63 = vpop.f32.mrb[15].mxu0  ;;  %v270_v59 = vld [vmem:[#allocation2 + $0x68] sm:$0xff] }
 0x190   : > { %v1528_v1 = vadd.f32 %v1527_v63, %v1526_v60  ;;  %v1591_v2 = vpop.f32.mrb[15].mxu1 }
 0x191   : > { %v877_v3 = vadd.f32 %v1589_v61, %v1525_v58  ;;  %v1592_v4 = vadd.f32 %v1591_v2, %v1590_v62 }
 0x193   : > { %v921_v6 = vadd.f32 %v877_v3, %v263_v0  ;;  %v880_v7 = vadd.f32 %v1592_v4, %v1528_v1 }
 0x194   : > { %v1529_v8 = vpop.f32.mrb[16].mxu0 }
 0x195   : > { %937 = vst [vmem:[#allocation2 + $0x30] sm:$0xff] %v921_v6  ;;  %v922_v9 = vadd.f32 %v880_v7, %v264_v5  ;;  %v1593_v10 = vpop.f32.mrb[16].mxu1  ;;  %v1530_v11 = vpop.f32.mrb[17].mxu0 }
 0x196   : > { %v1531_v12 = vadd.f32 %v1530_v11, %v1529_v8  ;;  %v1594_v13 = vpop.f32.mrb[17].mxu1  ;;  %v1532_v14 = vpop.f32.mrb[18].mxu0  ;;  %v271_v8 = vld [vmem:[#allocation2 + $0x70] sm:$0xff] }
 0x197   : > { %938 = vst [vmem:[#allocation2 + $0x38] sm:$0xff] %v922_v9  ;;  %v1595_v15 = vadd.f32 %v1594_v13, %v1593_v10  ;;  %v1596_v16 = vpop.f32.mrb[18].mxu1  ;;  %v1533_v17 = vpop.f32.mrb[19].mxu0  ;;  %v272_v13 = vld [vmem:[#allocation2 + $0x78] sm:$0xff] }
 0x198   : > { %v1534_v19 = vadd.f32 %v1533_v17, %v1532_v14  ;;  %v1597_v20 = vpop.f32.mrb[19].mxu1  ;;  %v951_v17 = vld [vmem:[#allocation2] sm:$0xff] (!%p1403_p10) }
 0x199   : > { %v885_v21 = vadd.f32 %v1595_v15, %v1531_v12  ;;  %v1598_v22 = vadd.f32 %v1597_v20, %v1596_v16 }
 0x19b   : > { %v923_v24 = vadd.f32 %v885_v21, %v265_v18  ;;  %v888_v25 = vadd.f32 %v1598_v22, %v1534_v19  ;;  %v952_v18 = vld [vmem:[#allocation2 + $0x8] sm:$0xff] (!%p1403_p10)  ;;  %v953_v19 = vld [vmem:[#allocation2 + $0x10] sm:$0xff] (!%p1403_p10)  ;;  %v954_v21 = vld [vmem:[#allocation2 + $0x18] sm:$0xff] (!%p1403_p10) }
 0x19c   : > { %v1535_v26 = vpop.f32.mrb[20].mxu0  ;;  %v967_v20 = vadd.f32 (!%p1403_p10), %v952_v18, %v951_v17 }
 0x19d   : > { %939 = vst [vmem:[#allocation2 + $0x40] sm:$0xff] %v923_v24  ;;  %v924_v27 = vadd.f32 %v888_v25, %v266_v23  ;;  %v1599_v28 = vpop.f32.mrb[20].mxu1  ;;  %v1536_v29 = vpop.f32.mrb[21].mxu0  ;;  %v955_v23 = vld [vmem:[#allocation2 + $0x20] sm:$0xff] (!%p1403_p10)  ;;  %v956_v25 = vld [vmem:[#allocation2 + $0x28] sm:$0xff] (!%p1403_p10) }
 0x19e   : > { %v1537_v30 = vadd.f32 %v1536_v29, %v1535_v26  ;;  %v1600_v31 = vpop.f32.mrb[21].mxu1  ;;  %v1538_v32 = vpop.f32.mrb[22].mxu0  ;;  %v968_v22 = vadd.f32 (!%p1403_p10), %v967_v20, %v953_v19  ;;  %v958_v29 = vld [vmem:[#allocation2 + $0x38] sm:$0xff] (!%p1403_p10) }
 0x19f   : > { %940 = vst [vmem:[#allocation2 + $0x48] sm:$0xff] %v924_v27  ;;  %v1601_v33 = vadd.f32 %v1600_v31, %v1599_v28  ;;  %v1602_v34 = vpop.f32.mrb[22].mxu1  ;;  %v1539_v35 = vpop.f32.mrb[23].mxu0  ;;  %v957_v27 = vld [vmem:[#allocation2 + $0x30] sm:$0xff] (!%p1403_p10) }
 0x1a0   : > { %v1540_v37 = vadd.f32 %v1539_v35, %v1538_v32  ;;  %v1603_v38 = vpop.f32.mrb[23].mxu1  ;;  %v969_v24 = vadd.f32 (!%p1403_p10), %v968_v22, %v954_v21 }
 0x1a1   : > { %v893_v39 = vadd.f32 %v1601_v33, %v1537_v30  ;;  %v1604_v40 = vadd.f32 %v1603_v38, %v1602_v34 }
 0x1a2   : > { %v970_v26 = vadd.f32 (!%p1403_p10), %v969_v24, %v955_v23 }
 0x1a3   : > { %v925_v42 = vadd.f32 %v893_v39, %v267_v36  ;;  %v896_v43 = vadd.f32 %v1604_v40, %v1540_v37 }
 0x1a4   : > { %v1541_v44 = vpop.f32.mrb[24].mxu0  ;;  %v971_v28 = vadd.f32 (!%p1403_p10), %v970_v26, %v956_v25  ;;  %v959_v31 = vld [vmem:[#allocation2 + $0x40] sm:$0xff] (!%p1403_p10) }
 0x1a5   : > { %941 = vst [vmem:[#allocation2 + $0x50] sm:$0xff] %v925_v42  ;;  %v926_v45 = vadd.f32 %v896_v43, %v268_v41  ;;  %v1605_v46 = vpop.f32.mrb[24].mxu1  ;;  %v1542_v47 = vpop.f32.mrb[25].mxu0 }
 0x1a6   : > { %v1543_v48 = vadd.f32 %v1542_v47, %v1541_v44  ;;  %v1606_v49 = vpop.f32.mrb[25].mxu1  ;;  %v1544_v50 = vpop.f32.mrb[26].mxu0  ;;  %v972_v30 = vadd.f32 (!%p1403_p10), %v971_v28, %v957_v27  ;;  %v960_v33 = vld [vmem:[#allocation2 + $0x48] sm:$0xff] (!%p1403_p10) }
 0x1a7   : > { %942 = vst [vmem:[#allocation2 + $0x58] sm:$0xff] %v926_v45  ;;  %v1607_v51 = vadd.f32 %v1606_v49, %v1605_v46  ;;  %v1608_v52 = vpop.f32.mrb[26].mxu1  ;;  %v1545_v53 = vpop.f32.mrb[27].mxu0 }
 0x1a8   : > { %v1546_v55 = vadd.f32 %v1545_v53, %v1544_v50  ;;  %v1609_v56 = vpop.f32.mrb[27].mxu1  ;;  %v973_v32 = vadd.f32 (!%p1403_p10), %v972_v30, %v958_v29 }
 0x1a9   : > { %v901_v57 = vadd.f32 %v1607_v51, %v1543_v48  ;;  %v1610_v58 = vadd.f32 %v1609_v56, %v1608_v52 }
 0x1aa   : > { %v974_v34 = vadd.f32 (!%p1403_p10), %v973_v32, %v959_v31 }
 0x1ab   : > { %v927_v60 = vadd.f32 %v901_v57, %v269_v54  ;;  %v904_v61 = vadd.f32 %v1610_v58, %v1546_v55 }
 0x1ac   : > { %v1547_v62 = vpop.f32.mrb[28].mxu0  ;;  %v961_v35 = vld [vmem:[#allocation2 + $0x50] sm:$0xff] (!%p1403_p10)  ;;  %v975_v36 = vadd.f32 (!%p1403_p10), %v974_v34, %v960_v33 }
 0x1ad   : > { %943 = vst [vmem:[#allocation2 + $0x60] sm:$0xff] %v927_v60  ;;  %v928_v63 = vadd.f32 %v904_v61, %v270_v59  ;;  %v1611_v0 = vpop.f32.mrb[28].mxu1  ;;  %v1548_v1 = vpop.f32.mrb[29].mxu0 }
 0x1ae   : > { %v1549_v2 = vadd.f32 %v1548_v1, %v1547_v62  ;;  %v1612_v3 = vpop.f32.mrb[29].mxu1  ;;  %v1550_v4 = vpop.f32.mrb[30].mxu0  ;;  %v962_v37 = vld [vmem:[#allocation2 + $0x58] sm:$0xff] (!%p1403_p10)  ;;  %v976_v38 = vadd.f32 (!%p1403_p10), %v975_v36, %v961_v35 }
 0x1af   : > { %944 = vst [vmem:[#allocation2 + $0x68] sm:$0xff] %v928_v63  ;;  %v1613_v5 = vadd.f32 %v1612_v3, %v1611_v0  ;;  %v1614_v6 = vpop.f32.mrb[30].mxu1  ;;  %v1551_v7 = vpop.f32.mrb[31].mxu0 }
 0x1b0   : > { %v1552_v9 = vadd.f32 %v1551_v7, %v1550_v4  ;;  %v1615_v10 = vpop.f32.mrb[31].mxu1  ;;  %v977_v40 = vadd.f32 (!%p1403_p10), %v976_v38, %v962_v37 }
 0x1b1   : > { %v909_v11 = vadd.f32 %v1613_v5, %v1549_v2  ;;  %v1616_v12 = vadd.f32 %v1615_v10, %v1614_v6  ;;  %950 = sbr.rel (%p1403_p10) target bundleno = 547 (0x223), region = 44 }
 0x1b3   : > { %v929_v14 = vadd.f32 %v909_v11, %v271_v8  ;;  %v912_v15 = vadd.f32 %v1616_v12, %v1552_v9 }
 0x1b4   : > { %v963_v39 = vld [vmem:[#allocation2 + $0x60] sm:$0xff] (!%p1403_p10) }
 0x1b5   : > { %945 = vst [vmem:[#allocation2 + $0x70] sm:$0xff] %v929_v14  ;;  %v930_v16 = vadd.f32 %v912_v15, %v272_v13  ;;  %v978_v42 = vadd.f32 (!%p1403_p10), %v977_v40, %v963_v39 }
 0x1b6   : > { %v964_v41 = vld [vmem:[#allocation2 + $0x68] sm:$0xff] (!%p1403_p10) }
 0x1b7   : > { %946 = vst [vmem:[#allocation2 + $0x78] sm:$0xff] %v930_v16  ;;  %v979_v44 = vadd.f32 (!%p1403_p10), %v978_v42, %v964_v41 }
 0x1bc   : > { %v965_v43 = vld [vmem:[#allocation2 + $0x70] sm:$0xff] }
 0x1bd   : > { %v980_v46 = vadd.f32 %v979_v44, %v965_v43 }
 0x1be   : > { %v966_v45 = vld [vmem:[#allocation2 + $0x78] sm:$0xff] }
 0x1bf   : > { %v981_v47 = vadd.f32 %v980_v46, %v966_v45 }
 0x1c1   : > { %v982_v48 = vrot.slane %v981_v47, 4 }
 0x1c3   : > { %v983_v49 = vadd.f32 %v982_v48, %v981_v47 }
 0x1c5   : > { %v984_v50 = vrot.slane %v983_v49, 2 }
 0x1c7   : > { %v985_v51 = vadd.f32 %v984_v50, %v983_v49 }
 0x1c9   : > { %v986_v52 = vrot.slane %v985_v51, 1 }
 0x1cb   : > { %v987_v53 = vadd.f32 %v986_v52, %v985_v51 }
 0x1cd   : > { %v989_v54 = vmul.f32 0.0078125, %v987_v53 }
 0x1cf   : > { %v990_v55 = vsub.f32 %v951_v17, %v989_v54  ;;  %v991_v56 = vsub.f32 %v952_v18, %v989_v54  ;;  %v992_v57 = vsub.f32 %v953_v19, %v989_v54  ;;  %v993_v58 = vsub.f32 %v954_v21, %v989_v54 }
 0x1d0   : > { %v994_v61 = vsub.f32 %v955_v23, %v989_v54  ;;  %v995_v63 = vsub.f32 %v956_v25, %v989_v54  ;;  %v996_v2 = vsub.f32 %v957_v27, %v989_v54  ;;  %v997_v5 = vsub.f32 %v958_v29, %v989_v54 }
 0x1d1   : > { %v1006_v59 = vmul.f32 %v990_v55, %v990_v55  ;;  %v1007_v60 = vmul.f32 %v991_v56, %v991_v56  ;;  %v1008_v62 = vmul.f32 %v992_v57, %v992_v57  ;;  %v1009_v0 = vmul.f32 %v993_v58, %v993_v58 }
 0x1d2   : > { %v1010_v3 = vmul.f32 %v994_v61, %v994_v61  ;;  %v1011_v6 = vmul.f32 %v995_v63, %v995_v63  ;;  %v2424_v8 = vsub.f32 %v959_v31, %v989_v54  ;;  %v1012_v9 = vmul.f32 %v996_v2, %v996_v2 }
 0x1d3   : > { %v1022_v1 = vadd.f32 %v1007_v60, %v1006_v59  ;;  %v2426_v11 = vsub.f32 %v960_v33, %v989_v54  ;;  %v1013_v12 = vmul.f32 %v997_v5, %v997_v5  ;;  %v2428_v14 = vsub.f32 %v961_v35, %v989_v54 }
 0x1d4   : > { %v1014_v15 = vmul.f32 %v2424_v8, %v2424_v8  ;;  %v2432_v17 = vsub.f32 %v962_v37, %v989_v54  ;;  %v2436_v20 = vsub.f32 %v963_v39, %v989_v54  ;;  %v2440_v23 = vsub.f32 %v964_v41, %v989_v54 }
 0x1d5   : > { %v1023_v4 = vadd.f32 %v1022_v1, %v1008_v62  ;;  %v1015_v18 = vmul.f32 %v2426_v11, %v2426_v11  ;;  %v1016_v21 = vmul.f32 %v2428_v14, %v2428_v14  ;;  %v2444_v26 = vsub.f32 %v965_v43, %v989_v54 }
 0x1d6   : > { %v1017_v24 = vmul.f32 %v2432_v17, %v2432_v17  ;;  %v1018_v27 = vmul.f32 %v2436_v20, %v2436_v20  ;;  %v2448_v29 = vsub.f32 %v966_v45, %v989_v54  ;;  %v1019_v30 = vmul.f32 %v2440_v23, %v2440_v23 }
 0x1d7   : > { %v1024_v7 = vadd.f32 %v1023_v4, %v1009_v0  ;;  %v1020_v32 = vmul.f32 %v2444_v26, %v2444_v26 }
 0x1d8   : > { %v1021_v34 = vmul.f32 %v2448_v29, %v2448_v29 }
 0x1d9   : > { %v1025_v10 = vadd.f32 %v1024_v7, %v1010_v3 }
 0x1db   : > { %v1026_v13 = vadd.f32 %v1025_v10, %v1011_v6 }
 0x1dd   : > { %v1027_v16 = vadd.f32 %v1026_v13, %v1012_v9 }
 0x1df   : > { %v1028_v19 = vadd.f32 %v1027_v16, %v1013_v12 }
 0x1e1   : > { %v1029_v22 = vadd.f32 %v1028_v19, %v1014_v15 }
 0x1e3   : > { %v1030_v25 = vadd.f32 %v1029_v22, %v1015_v18 }
 0x1e5   : > { %v1031_v28 = vadd.f32 %v1030_v25, %v1016_v21 }
 0x1e7   : > { %v1032_v31 = vadd.f32 %v1031_v28, %v1017_v24 }
 0x1e9   : > { %v1033_v33 = vadd.f32 %v1032_v31, %v1018_v27 }
 0x1eb   : > { %v1034_v35 = vadd.f32 %v1033_v33, %v1019_v30 }
 0x1ed   : > { %v1035_v36 = vadd.f32 %v1034_v35, %v1020_v32 }
 0x1ef   : > { %v1036_v37 = vadd.f32 %v1035_v36, %v1021_v34 }
 0x1f1   : > { %v1037_v38 = vrot.slane %v1036_v37, 4 }
 0x1f3   : > { %v1038_v39 = vadd.f32 %v1037_v38, %v1036_v37 }
 0x1f5   : > { %v1039_v40 = vrot.slane %v1038_v39, 2 }
 0x1f7   : > { %v1040_v41 = vadd.f32 %v1039_v40, %v1038_v39 }
 0x1f9   : > { %v1041_v42 = vrot.slane %v1040_v41, 1 }
 0x1fb   : > { %v1042_v43 = vadd.f32 %v1041_v42, %v1040_v41 }
 0x1fd   : > { %v1043_v44 = vmul.f32 0.0078125, %v1042_v43 }
 0x1ff   : > { %v1044_v45 = vadd.f32 1e-05, %v1043_v44 }
 0x201   : > { %1838 = vrsqrt.f32 %v1044_v45 }
 0x20b   : > { %v2456_v46 = vpop.eup %1838 }
 0x20c   : > { %v1046_v47 = vmul.f32 %v2456_v46, %v990_v55  ;;  %v1047_v48 = vmul.f32 %v2456_v46, %v991_v56  ;;  %v1048_v49 = vmul.f32 %v2456_v46, %v992_v57  ;;  %v1049_v50 = vmul.f32 %v2456_v46, %v993_v58 }
 0x20d   : > { %v1050_v51 = vmul.f32 %v2456_v46, %v994_v61  ;;  %v1051_v52 = vmul.f32 %v2456_v46, %v995_v63  ;;  %v1052_v53 = vmul.f32 %v2456_v46, %v996_v2  ;;  %v1053_v54 = vmul.f32 %v2456_v46, %v997_v5 }
 0x20e   : > { %vm1062_vm0 = vcmp.ge.f32.partialorder %v1046_v47, 0.0  ;;  %vm1063_vm1 = vcmp.ge.f32.partialorder %v1047_v48, 0.0  ;;  %v1078_v59 = vmul.f32 0.2, %v1046_v47  ;;  %v1079_v60 = vmul.f32 0.2, %v1047_v48 }
 0x20f   : > { %vm1064_vm2 = vcmp.ge.f32.partialorder %v1048_v49, 0.0  ;;  %vm1065_vm3 = vcmp.ge.f32.partialorder %v1049_v50, 0.0  ;;  %v1080_v55 = vmul.f32 0.2, %v1048_v49  ;;  %v1081_v56 = vmul.f32 0.2, %v1049_v50 }
 0x210   : > { %v1094_v57 = vsel %vm1062_vm0, %v1046_v47, %v1078_v59  ;;  %v1095_v62 = vsel %vm1063_vm1, %v1047_v48, %v1079_v60  ;;  %vm1066_vm4 = vcmp.ge.f32.partialorder %v1050_v51, 0.0  ;;  %vm1067_vm5 = vcmp.ge.f32.partialorder %v1051_v52, 0.0 }
 0x211   : > { %v1445_v58 = vpack.c.bf16 %v1095_v62, %v1094_v57  ;;  %v1096_v61 = vsel %vm1064_vm2, %v1048_v49, %v1080_v55  ;;  %v1097_v63 = vsel %vm1065_vm3, %v1049_v50, %v1081_v56  ;;  %v1082_v0 = vmul.f32 0.2, %v1050_v51 }
 0x212   : > { %v1450_v1 = vpack.c.bf16 %v1097_v63, %v1096_v61  ;;  %v1083_v2 = vmul.f32 0.2, %v1051_v52  ;;  %vm1068_vm6 = vcmp.ge.f32.partialorder %v1052_v53, 0.0  ;;  %vm1069_vm7 = vcmp.ge.f32.partialorder %v1053_v54, 0.0 }
 0x213   : > { %1446 = vst [vmem:[%s2356_s8] sm:$0xff] %v1445_v58   ;;  %v1098_v3 = vsel %vm1066_vm4, %v1050_v51, %v1082_v0  ;;  %v1084_v4 = vmul.f32 0.2, %v1052_v53  ;;  %v1085_v5 = vmul.f32 0.2, %v1053_v54  ;;  %v1054_v6 = vmul.f32 %v2456_v46, %v2424_v8 }
 0x214   : > { %1482 = vst [vmem:[%s2356_s8 + $0x8] sm:$0xff] %v1450_v1   ;;  %v1099_v7 = vsel %vm1067_vm5, %v1051_v52, %v1083_v2  ;;  %v1055_v9 = vmul.f32 %v2456_v46, %v2426_v11  ;;  %v1056_v10 = vmul.f32 %v2456_v46, %v2428_v14  ;;  %v1057_v12 = vmul.f32 %v2456_v46, %v2432_v17 }
 0x215   : > { %v1455_v13 = vpack.c.bf16 %v1099_v7, %v1098_v3  ;;  %v1100_v15 = vsel %vm1068_vm6, %v1052_v53, %v1084_v4  ;;  %v1101_v16 = vsel %vm1069_vm7, %v1053_v54, %v1085_v5  ;;  %vm1070_vm8 = vcmp.ge.f32.partialorder %v1054_v6, 0.0 }
 0x216   : > { %v1460_v18 = vpack.c.bf16 %v1101_v16, %v1100_v15  ;;  %vm1071_vm9 = vcmp.ge.f32.partialorder %v1055_v9, 0.0  ;;  %v1086_v19 = vmul.f32 0.2, %v1054_v6  ;;  %v1087_v8 = vmul.f32 0.2, %v1055_v9 }
 0x217   : > { %1483 = vst [vmem:[%s2356_s8 + $0x10] sm:$0xff] %v1455_v13   ;;  %vm1072_vm10 = vcmp.ge.f32.partialorder %v1056_v10, 0.0  ;;  %vm1073_vm11 = vcmp.ge.f32.partialorder %v1057_v12, 0.0  ;;  %v1088_v11 = vmul.f32 0.2, %v1056_v10  ;;  %v1058_v17 = vmul.f32 %v2456_v46, %v2436_v20 }
 0x218   : > { %v1089_v21 = vmul.f32 0.2, %v1057_v12  ;;  %1484 = vst [vmem:[%s2356_s8 + $0x18] sm:$0xff] %v1460_v18   ;;  %v1102_v22 = vsel %vm1070_vm8, %v1054_v6, %v1086_v19  ;;  %v1103_v14 = vsel %vm1071_vm9, %v1055_v9, %v1087_v8  ;;  %v1059_v24 = vmul.f32 %v2456_v46, %v2440_v23 }
 0x219   : > { %v1465_v25 = vpack.c.bf16 %v1103_v14, %v1102_v22  ;;  %v1104_v27 = vsel %vm1072_vm10, %v1056_v10, %v1088_v11  ;;  %v1060_v30 = vmul.f32 %v2456_v46, %v2444_v26  ;;  %vm1074_vm12 = vcmp.ge.f32.partialorder %v1058_v17, 0.0 }
 0x21a   : > { %v1105_v28 = vsel %vm1073_vm11, %v1057_v12, %v1089_v21  ;;  %vm1075_vm13 = vcmp.ge.f32.partialorder %v1059_v24, 0.0  ;;  %v1090_v32 = vmul.f32 0.2, %v1058_v17  ;;  %v1091_v33 = vmul.f32 0.2, %v1059_v24 }
 0x21b   : > { %v1470_v31 = vpack.c.bf16 %v1105_v28, %v1104_v27  ;;  %1485 = vst [vmem:[%s2356_s8 + $0x20] sm:$0xff] %v1465_v25   ;;  %v1061_v20 = vmul.f32 %v2456_v46, %v2448_v29  ;;  %vm1076_vm14 = vcmp.ge.f32.partialorder %v1060_v30, 0.0  ;;  %v1092_v34 = vmul.f32 0.2, %v1060_v30 }
 0x21c   : > { %v1106_v23 = vsel %vm1074_vm12, %v1058_v17, %v1090_v32  ;;  %v1107_v35 = vsel %vm1075_vm13, %v1059_v24, %v1091_v33 }
 0x21d   : > { %1486 = vst [vmem:[%s2356_s8 + $0x28] sm:$0xff] %v1470_v31   ;;  %vm1077_vm15 = vcmp.ge.f32.partialorder %v1061_v20, 0.0  ;;  %v1093_v36 = vmul.f32 0.2, %v1061_v20  ;;  %v1108_v37 = vsel %vm1076_vm14, %v1060_v30, %v1092_v34  ;;  %v1475_v26 = vpack.c.bf16 %v1107_v35, %v1106_v23 }
 0x21f   : > { %v1109_v38 = vsel %vm1077_vm15, %v1061_v20, %v1093_v36  ;;  %1487 = vst [vmem:[%s2356_s8 + $0x30] sm:$0xff] %v1475_v26  }
 0x220   : > { %v1480_v39 = vpack.c.bf16 %v1109_v38, %v1108_v37 }
 0x222   : > { %1488 = vst [vmem:[%s2356_s8 + $0x38] sm:$0xff] %v1480_v39  }
 0x223 PF: > { %s1421_s18 = sshll.u32 %s2038_s19, 6  ;;  %s2615_s6 = sld [smem:[#allocation17_spill]] }
 0x224   : > { %s1206_s25 = sshll.u32 %s2356_s8, 4  ;;  %s2501_s30 = scalar_lea.sflag [#allocation5], %s229_s5  ;;  %s2497_s25 = int_to_ptr.vmem [resolvable:$true] %s1206_s25 }
 0x225   : > { %s1900_s23 = scalar_lea.vmem %s2497_s25, 1024  ;;  %p2616_p0 = scmp.ne.s32.totalorder %s2609_s29, 0 }
 0x226   : > { %p1901_p1 = scmp.ne.s32.totalorder %s2497_s25, %s1900_s23  ;;  %s2061_s19 = smov [#allocation8]  }
 0x227   : > { %s1904_s17 = sshll.u32 %s2061_s19, 4  ;;  %s1905_s17 = int_to_ptr.vmem [resolvable:$false] %s1904_s17 }
 0x228   : > { %p1902_p4 = pnand %p1901_p1, %p2616_p0  ;;  %s1906_s24 = scalar_lea.vmem %s1905_s17, 2048 }
 0x229   : > { %s2494_s28 = scalar_lea.hbm %s2615_s6, %s1421_s18  ;;  %p1907_p12 = scmp.lt.s32.totalorder %s2497_s25, %s1905_s17 }
 0x22a   : > { %p1903_p5 = pneg %p1902_p4  ;;  %p1908_p11 = scmp.lt.s32.totalorder %s1906_s24, %s1900_s23 }
 0x22c   : > { %p1909_p3 = por %p1908_p11, %p1907_p12 }
 0x22e   : > { %p1910_p6 = pnand %p1909_p3, %p1903_p5 }
 0x230   : > { %1913 = shalt.err (!%p1910_p6)
}
 0x231   : > { %s1914_s15 = scalar_lea.hbm %s2494_s28, 1024  ;;  %s1918_s5 = scalar_lea.hbm %s2615_s6, 2048 }
 0x232   : > { %p1915_p9 = scmp.ne.s32.totalorder %s2494_s28, %s1914_s15  ;;  %p1919_p7 = scmp.lt.u32.totalorder %s2494_s28, %s2615_s6 }
 0x233   : > { %p1920_p8 = scmp.lt.u32.totalorder %s1918_s5, %s1914_s15  ;;  %p1922_p1 = scmp.lt.u32.totalorder %s1914_s15, %s2494_s28 }
 0x234   : > { %p1916_p2 = pnand %p1915_p9, %p2616_p0 }
 0x235   : > { %p1921_p10 = por %p1920_p8, %p1919_p7 }
 0x236   : > { %p1917_p13 = pneg %p1916_p2 }
 0x237   : > { %p1923_p4 = por %p1922_p1, %p1921_p10 }
 0x239   : > { %p1924_p5 = pnand %p1923_p4, %p1917_p13 }
 0x23b   : > { %1927 = shalt.err (!%p1924_p5)
}
 0x23c   : > { %s2062_s18 = smov 64   ;;  %s2063_s3 = smov 128  }
 0x23d   : > { %s2064_s4 = smov 4  }
 0x23e   : > { %1621 = dma.vmem_to_hbm [thread:$0]  (%p2616_p0), %s2497_s25, 1024, %s2494_s28, %s2501_s30, %s2062_s18, %s2063_s3, %s2064_s4  }
 0x23f PF: > { %p1635_p12 = scmp.ge.s32.totalorder %s2050_s22, 2  ;;  %s1221_s23 = sand.u32 1, %s1998_s9  }
 0x240   : > { %p2617_p11 = scmp.ne.s32.totalorder %s2610_s27, 0  ;;  %s1222_s19 = scalar_lea.sflag [#allocation5], %s1221_s23 }
 0x242   : > { %p1631_p3 = pnand %p1635_p12, %p2617_p11 }
 0x244   : > { %1993 = dma.done.wait (!%p1631_p3), %s1222_s19, 1024  }
 0x245   : > { %1995 = vsyncadd (!%p1631_p3), %s1222_s19, 4294966272  ;;  %s21_s22 = sadd.s32 1, %s2050_s22   ;;  %s2619_s29 = sld [smem:[#allocation12_spill]] }
 0x246   : > { %p2530_p6 = scmp.ge.s32.totalorder %s21_s22, 10   ;;  %s2620_s28 = sld [smem:[#allocation14_spill]] }
 0x247   : > { %s2621_s27 = sld [smem:[#allocation13_spill]]  ;;  %s2622_s25 = sld [smem:[#allocation15_spill]] }
 0x248   : > { %s2624_s9 = smov %s2002_s10  ;;  %s2625_s10 = smov %s2006_s11 }
 0x249   : > { %s2626_s11 = smov %s2282_s26  ;;  %s2627_s12 = smov %s2014_s13 }
 0x24a   : > { %s2628_s13 = smov %s2018_s14  ;;  %s2629_s14 = smov %s2285_s7 }
 0x24b   : > { %s2630_s15 = smov %s2026_s16  ;;  %s2631_s16 = smov %s2619_s29 }
 0x24c   : > { %s2632_s17 = smov %s2620_s28  ;;  %s2633_s18 = smov %s2042_s20 }
 0x24d   : > { %s2634_s19 = smov %s2046_s21  ;;  %s2635_s20 = smov %s2621_s27 }
 0x24e   : > { %s2636_s21 = smov %s2622_s25  ;;  %20 = sbr.rel (!%p2530_p6) target bundleno = 15 (0xf), region = 94 }
 0x255   :  { %1227 = vsyncpa [#allocation4], 1 }
 0x256   :  { %1229 = vsyncpa [#allocation4 + $0x1], 1 }
 0x257   :  { %1230 = vsyncpa [#allocation7], 1 }
 0x258   :  { %1232 = vsyncpa [#allocation7 + $0x1], 1 }
 0x259   :  { %1233 = vsyncpa [#allocation5], 1 }
 0x25a   :  { %1235 = vsyncpa [#allocation5 + $0x1], 1 }

// kernel: discriminator_forward.8
= control target key start
LH: loop header
LB: loop body
LE: loop exit
PB: predicated region body
PF: predicated region fallthrough
CT: control target
= control target key end

     0   :  { %s1844_s0 = inlined_call_operand.hbm [shape: bf16[32,4096], index: 0, kind: input, shape index: {}]   ;;  %s1845_s1 = inlined_call_operand.hbm [shape: bf16[4096,512], index: 1, kind: input, shape index: {}]   ;;  %s1846_s2 = inlined_call_operand.hbm [shape: bf16[32,512], index: 2, kind: output, shape index: {}]  }
   0x1   :  { %1860 = sst [smem:[#allocation17_spill]] %s1844_s0 }
   0x2   :  { %1861 = sst [smem:[#allocation18_spill]] %s1846_s2 }
   0x3   :  { %7 = vsyncpa [#allocation4], 0 }
   0x4   :  { %9 = vsyncpa [#allocation4 + $0x1], 0 }
   0x5   :  { %10 = vsyncpa [#allocation7], 0 }
   0x6   :  { %12 = vsyncpa [#allocation7 + $0x1], 0 }
   0x7   :  { %13 = vsyncpa [#allocation5], 0 }
   0x8   :  { %15 = vsyncpa [#allocation5 + $0x1], 0  ;;  %s1430_s9 = smov 0   ;;  %s1432_s10 = smov 0  }
   0x9   :  { %s1434_s11 = smov 0   ;;  %s1436_s12 = smov 0  }
   0xa   :  { %s1438_s13 = smov 0   ;;  %s1440_s14 = smov 0  }
   0xb   :  { %s1442_s15 = smov 0   ;;  %s1444_s16 = smov 0  }
   0xc   :  { %s1446_s17 = smov 0   ;;  %s1448_s18 = smov 0  }
   0xd   :  { %s1450_s19 = smov 0   ;;  %s1452_s20 = smov 0  }
   0xe   :  { %s1454_s21 = smov 0   ;;  %s1456_s22 = smov 0  }
   0xf LB: > { %1862 = sst [smem:[#allocation12_spill]] %s1349_s9  ;;  %s867_s23 = sadd.s32 4294967295, %s1401_s22   ;;  %s1401_s22 = sphi %s1456_s22, %s21_s22   ;;  %s1397_s21 = sphi %s1454_s21, %s1910_s21   ;;  %s1393_s20 = sphi %s1452_s20, %s1909_s20   ;;  %s1389_s19 = sphi %s1450_s19, %s1908_s19   ;;  %s1385_s18 = sphi %s1448_s18, %s1907_s18   ;;  %s1381_s17 = sphi %s1446_s17, %s1895_s17   ;;  %s1377_s16 = sphi %s1444_s16, %s1906_s16   ;;  %s1373_s15 = sphi %s1442_s15, %s1905_s15   ;;  %s1369_s14 = sphi %s1440_s14, %s1904_s14   ;;  %s1365_s13 = sphi %s1438_s13, %s1903_s13   ;;  %s1361_s12 = sphi %s1436_s12, %s1902_s12   ;;  %s1357_s11 = sphi %s1434_s11, %s1901_s11   ;;  %s1353_s10 = sphi %s1432_s10, %s1900_s10   ;;  %s1349_s9 = sphi %s1430_s9, %s1899_s9  }
  0x10   : > { %1863 = sst [smem:[#allocation13_spill]] %s1381_s17  ;;  %s33_s24 = sadd.s32 1, %s1393_s20 }
  0x11   : > { %p1500_p0 = scmp.ge.s32.totalorder %s33_s24, 8  ;;  %s49_s26 = sadd.s32 1, %s1381_s17 }
  0x12   : > { %p56_p1 = scmp.ne.s32.totalorder %s1381_s17, %s1377_s16  ;;  %p1851_p2 = scmp.eq.s32.totalorder %s1401_s22, 0 }
  0x13   : > { %s1912_s24 = smov (%p1500_p0, %s33_s24), 0  ;;  %p62_p4 = scmp.ne.s32.totalorder %s1377_s16, %s1373_s15 }
  0x14   : > { %1865 = sst [smem:[#allocation14_spill]] %s1912_s24  ;;  %p1514_p3 = por %p1851_p2, %p56_p1 }
  0x15   : > { %s1521_s28 = ssub.s32 %s1393_s20, %s1912_s24  ;;  %p1523_p5 = scmp.eq.s32.totalorder %s867_s23, 0 }
  0x16   : > { %p47_p6 = scmp.eq.s32.totalorder %s1521_s28, 0  ;;  %p1528_p7 = scmp.eq.s32.totalorder %s867_s23, 31 }
  0x17   : > { %s1867_s29 = scalar_select %p1523_p5, 1, 0 }
  0x18   : > { %s1868_s30 = scalar_select %p1528_p7, 1, 0 }
  0x19   : > { %p1534_p8 = por %p1523_p5, %p62_p4  ;;  %p1850_p9 = scmp.lt.s32.totalorder %s1401_s22, 32 }
  0x1a   : > { %s1539_s4 = scalar_select %p47_p6, %s1381_s17, %s49_s26  }
  0x1b   : > { %s1869_s3 = scalar_select %p1534_p8, 1, 0 }
  0x1c   : > { %1870 = sst [smem:[#allocation15_spill]] %s1539_s4  ;;  %s142_s5 = sand.u32 1, %s1381_s17  }
  0x1d   : > { %s871_s6 = sshll.u32 %s142_s5, 6  ;;  %s1849_s7 = sshll.u32 %s1393_s20, 8 }
  0x1e   : > { %s1871_s0 = sld [smem:[#allocation17_spill]]  ;;  %s146_s23 = scalar_lea.vmem [#allocation3], %s871_s6 }
  0x1f   : > { %s156_s2 = sshll.u32 %s146_s23, 4  ;;  %p1557_p10 = pnand %p1850_p9, %p1514_p3  ;;  %s1551_s2 = int_to_ptr.vmem [resolvable:$true] %s156_s2 }
  0x20   : > { %s1561_s4 = scalar_lea.sflag [#allocation4], %s142_s5 }
  0x21   : > { %p1193_p12 = pneg %p1557_p10 }
  0x24   : > { %s1549_s24 = scalar_lea.hbm %s1871_s0, %s1849_s7  ;;  %s1196_s27 = scalar_lea.hbm %s1871_s0, 8192 }
  0x25   : > { %s1191_s8 = scalar_lea.hbm %s1549_s24, 1024  ;;  %p1197_p3 = scmp.lt.u32.totalorder %s1549_s24, %s1871_s0 }
  0x26   : > { %p1192_p11 = scmp.ne.s32.totalorder %s1549_s24, %s1191_s8  ;;  %p1198_p4 = scmp.lt.u32.totalorder %s1196_s27, %s1191_s8 }
  0x27   : > { %p1200_p9 = scmp.lt.u32.totalorder %s1191_s8, %s1549_s24 }
  0x28   : > { %p1194_p13 = pnand %p1193_p12, %p1192_p11  ;;  %p1199_p6 = por %p1198_p4, %p1197_p3 }
  0x2a   : > { %p1195_p1 = pneg %p1194_p13  ;;  %p1201_p2 = por %p1200_p9, %p1199_p6 }
  0x2c   : > { %p1202_p8 = pnand %p1201_p2, %p1195_p1 }
  0x2e   : > { %1205 = shalt.err (!%p1202_p8)
}
  0x2f   : > { %s1206_s5 = scalar_lea.vmem %s1551_s2, 1024  ;;  %s1403_s6 = smov [#allocation3]  }
  0x30   : > { %p1207_p11 = scmp.ne.s32.totalorder %s1551_s2, %s1206_s5  ;;  %s1211_s15 = sshll.u32 %s1403_s6, 4  ;;  %s1212_s15 = int_to_ptr.vmem [resolvable:$false] %s1211_s15 }
  0x31   : > { %s1213_s7 = scalar_lea.vmem %s1212_s15, 2048  ;;  %p1214_p5 = scmp.lt.s32.totalorder %s1551_s2, %s1212_s15 }
  0x32   : > { %p1209_p13 = pnand %p1207_p11, %p1193_p12  ;;  %p1215_p3 = scmp.lt.s32.totalorder %s1213_s7, %s1206_s5 }
  0x34   : > { %p1210_p7 = pneg %p1209_p13  ;;  %p1216_p4 = por %p1215_p3, %p1214_p5 }
  0x36   : > { %p1217_p9 = pnand %p1216_p4, %p1210_p7 }
  0x38   : > { %1220 = shalt.err (!%p1217_p9)
}
  0x39   : > { %s1404_s8 = smov 2048   ;;  %s1854_s27 = smov 256  }
  0x3a   : > { %s1406_s23 = smov 16   ;;  %p878_p2 = scmp.ge.s32.totalorder %s1401_s22, 1 }
  0x3b   : > { %1014 = dma.hbm_to_vmem [thread:$0]  (!%p1557_p10), %s1549_s24, 1024, %s1551_s2, %s1561_s4, %s1404_s8, %s1854_s27, %s1406_s23  }
  0x3c   : > { %p187_p5 = scmp.lt.s32.totalorder %s1401_s22, 33  ;;  %s868_s6 = sadd.s32 4294967294, %s1401_s22  }
  0x3d   : > { %s36_s15 = sadd.s32 1, %s1397_s21  ;;  %s77_s7 = sadd.s32 1, %s1369_s14 }
  0x3e   : > { %p1592_p7 = pnand %p878_p2, %p187_p5  ;;  %s1914_s15 = smov (!%p1500_p0, %s36_s15), %s1397_s21 }
  0x3f   : > { %p84_p8 = scmp.ne.s32.totalorder %s1369_s14, %s1365_s13  ;;  %p90_p10 = scmp.ne.s32.totalorder %s1365_s13, %s1361_s12 }
  0x40   : > { %p38_p12 = scmp.ge.s32.totalorder %s1914_s15, 4  ;;  %s105_s2 = sadd.s32 1, %s1357_s11 }
  0x41   : > { %p1874_p1 = scmp.eq.s32.totalorder %s1401_s22, 0  ;;  %p1876_p11 = scmp.ne.s32.totalorder %s1867_s29, 0 }
  0x42   : > { %s1916_s15 = smov (%p38_p12, %s1914_s15), 0  ;;  %p115_p0 = scmp.ne.s32.totalorder %s1357_s11, %s1353_s10 }
  0x43   : > { %p1609_p6 = por %p84_p8, %p1874_p1  ;;  %p1615_p13 = por %p90_p10, %p1876_p11 }
  0x44   : > { %1878 = sst [smem:[#allocation16_spill]] %s1916_s15  ;;  %p121_p3 = scmp.ne.s32.totalorder %s1353_s10, %s1349_s9 }
  0x45   : > { %s1877_s4 = scalar_select %p1615_p13, 1, 0 }
  0x46   : > { %s73_s12 = ssub.s32 %s1397_s21, %s1916_s15  ;;  %p122_p4 = scmp.eq.s32.totalorder %s868_s6, 31 }
  0x47   : > { %s74_s25 = sor.u32 %s73_s12, %s1521_s28  ;;  %p103_p9 = scmp.eq.s32.totalorder %s73_s12, 0 }
  0x48   : > { %p75_p2 = scmp.eq.s32.totalorder %s74_s25, 0  ;;  %p1879_p5 = scmp.ne.s32.totalorder %s1868_s30, 0 }
  0x49   : > { %s1635_s26 = scalar_select %p103_p9, %s1357_s11, %s105_s2  }
  0x4a   : > { %p1630_p8 = por %p1879_p5, %p115_p0  ;;  %p1640_p10 = por %p122_p4, %p121_p3 }
  0x4b   : > { %s1638_s8 = scalar_select %p75_p2, %s1369_s14, %s77_s7  }
  0x4c   : > { %s1880_s29 = scalar_select %p1630_p8, 1, 0 }
  0x4d   : > { %s1881_s23 = scalar_select %p1640_p10, 1, 0 }
  0x4e   : > { %s166_s27 = sand.u32 1, %s1369_s14   ;;  %s1882_s0 = sshll.u32 %s1393_s20, 8 }
  0x4f   : > { %s874_s6 = sshll.u32 %s166_s27, 8  ;;  %s176_s15 = sadd.s32 %s1397_s21, %s1882_s0 }
  0x50   : > { %s877_s28 = sshll.u32 %s176_s15, 6  ;;  %s170_s12 = scalar_lea.vmem [#allocation6], %s874_s6 }
  0x51   : > { %s179_s25 = sshll.u32 %s170_s12, 4  ;;  %s1651_s9 = scalar_lea.hbm %s1845_s1, %s877_s28  ;;  %s1653_s25 = int_to_ptr.vmem [resolvable:$true] %s179_s25 }
  0x52   : > { %p1883_p12 = scmp.lt.s32.totalorder %s1401_s22, 32  ;;  %s1663_s0 = scalar_lea.sflag [#allocation7], %s166_s27 }
  0x53   : > { %s1221_s15 = scalar_lea.hbm %s1651_s9, 4096  ;;  %s1226_s24 = scalar_lea.hbm %s1845_s1, 131072 }
  0x54   : > { %p1659_p1 = pnand %p1883_p12, %p1609_p6  ;;  %p1222_p11 = scmp.ne.s32.totalorder %s1651_s9, %s1221_s15 }
  0x55   : > { %p1227_p6 = scmp.lt.u32.totalorder %s1651_s9, %s1845_s1  ;;  %p1228_p9 = scmp.lt.u32.totalorder %s1226_s24, %s1221_s15 }
  0x56   : > { %p1223_p0 = pneg %p1659_p1  ;;  %p1230_p5 = scmp.lt.u32.totalorder %s1221_s15, %s1651_s9 }
  0x57   : > { %p1229_p2 = por %p1228_p9, %p1227_p6 }
  0x58   : > { %p1224_p3 = pnand %p1223_p0, %p1222_p11 }
  0x59   : > { %p1231_p12 = por %p1230_p5, %p1229_p2 }
  0x5a   : > { %p1225_p4 = pneg %p1224_p3 }
  0x5c   : > { %p1232_p10 = pnand %p1231_p12, %p1225_p4 }
  0x5e   : > { %1235 = shalt.err (!%p1232_p10)
}
  0x5f   : > { %s1236_s27 = scalar_lea.vmem %s1653_s25, 4096  ;;  %s1407_s12 = smov [#allocation6]  }
  0x60   : > { %p1237_p11 = scmp.ne.s32.totalorder %s1653_s25, %s1236_s27  ;;  %s1241_s30 = sshll.u32 %s1407_s12, 4  ;;  %s1242_s30 = int_to_ptr.vmem [resolvable:$false] %s1241_s30 }
  0x61   : > { %s1243_s17 = scalar_lea.vmem %s1242_s30, 8192  ;;  %p1244_p13 = scmp.lt.s32.totalorder %s1653_s25, %s1242_s30 }
  0x62   : > { %p1239_p3 = pnand %p1237_p11, %p1223_p0  ;;  %p1245_p6 = scmp.lt.s32.totalorder %s1243_s17, %s1236_s27 }
  0x64   : > { %p1240_p8 = pneg %p1239_p3  ;;  %p1246_p9 = por %p1245_p6, %p1244_p13 }
  0x66   : > { %p1247_p2 = pnand %p1246_p9, %p1240_p8 }
  0x68   : > { %1250 = shalt.err (!%p1247_p2)
}
  0x69   : > { %s1408_s15 = smov 64   ;;  %s1409_s2 = smov 4  }
  0x6a   : > { %s1885_s24 = smov 256   ;;  %191 = sbr.rel (%p1592_p7) target bundleno = 490 (0x1ea), region = 28 }
  0x6b   : > { %1017 = dma.hbm_to_vmem [thread:$0]  (!%p1659_p1), %s1651_s9, 4096, %s1653_s25, %s1663_s0, %s1885_s24, %s1408_s15, %s1409_s2  }
  0x6c   : > { %s193_s6 = sand.u32 (!%p1592_p7), 1, %s1377_s16   ;;  %p1886_p13 = scmp.ne.s32.totalorder (!%p1592_p7), %s1869_s3, 0 }
  0x6d   : > { %s879_s28 = sshll.u32 (!%p1592_p7), %s193_s6, 6  ;;  %s194_s27 = scalar_lea.sflag (!%p1592_p7), [#allocation4], %s193_s6 }
  0x6e   : > { %s1695_s12 = scalar_lea.vmem (!%p1592_p7), [#allocation3], %s879_s28 }
  0x71   : > { %1336 = dma.done.wait (%p1886_p13), %s194_s27, 1024  }
  0x72   : > { %1338 = vsyncadd (%p1886_p13), %s194_s27, 4294966272  ;;  %s202_s7 = sand.u32 1, %s1365_s13   ;;  %p1887_p7 = scmp.ne.s32.totalorder %s1877_s4, 0 }
  0x73   : > { %s880_s30 = sshll.u32 %s202_s7, 8  ;;  %s203_s9 = scalar_lea.sflag [#allocation7], %s202_s7 }
  0x74   : > { %s1702_s25 = scalar_lea.vmem [#allocation6], %s880_s30 }
  0x75   : > { %1340 = dma.done.wait (%p1887_p7), %s203_s9, 4096  }
  0x76   : > { %1342 = vsyncadd (%p1887_p7), %s203_s9, 4294963200  ;;  %s229_s5 = sand.u32 1, %s1353_s10   ;;  %p882_p8 = scmp.ne.s32.totalorder %s1385_s18, 0 }
  0x77   : > { %s881_s0 = sshll.u32 %s229_s5, 4  ;;  %v1410_v0 = vmov (!%p882_p8), 0.0  }
  0x78   : > { %s1711_s17 = scalar_lea.vmem [#allocation8], %s881_s0  ;;  %240 = sbr.rel (%p882_p8) target bundleno = 127 (0x7f), region = 40  ;;  %241 = vst [vmem:[#allocation2] sm:$0xff] (!%p882_p8), %v1410_v0  ;;  %242 = vst [vmem:[#allocation2 + $0x8] sm:$0xff] (!%p882_p8), %v1410_v0 }
  0x79   : > { %243 = vst [vmem:[#allocation2 + $0x10] sm:$0xff] (!%p882_p8), %v1410_v0  ;;  %244 = vst [vmem:[#allocation2 + $0x18] sm:$0xff] (!%p882_p8), %v1410_v0 }
  0x7f PF: > { %v1145_v1 = vld [vmem:[%s1702_s25 + $0x40] sm:$0xff]   ;;  %v1149_v5 = vld [vmem:[%s1702_s25 + $0x48] sm:$0xff]   ;;  %v1153_v9 = vld [vmem:[%s1702_s25 + $0x50] sm:$0xff]   ;;  %p923_p10 = scmp.ne.s32.totalorder %s1385_s18, 7 }
  0x80   : > { %v1146_v2 = vld [vmem:[%s1702_s25 + $0xc0] sm:$0xff]   ;;  %949 = vmatprep.subr.bf16.mxu0 %v1145_v1  ;;  %v1150_v6 = vld [vmem:[%s1702_s25 + $0xc8] sm:$0xff]   ;;  %v1154_v10 = vld [vmem:[%s1702_s25 + $0xd0] sm:$0xff]  }
  0x81   : > { %v1147_v3 = vld [vmem:[%s1702_s25] sm:$0xff]   ;;  %977 = vmatprep.subr.bf16.mxu1 %v1146_v2  ;;  %v1151_v7 = vld [vmem:[%s1702_s25 + $0x8] sm:$0xff]   ;;  %v1155_v11 = vld [vmem:[%s1702_s25 + $0x10] sm:$0xff]  }
  0x82   : > { %v1148_v4 = vld [vmem:[%s1702_s25 + $0x80] sm:$0xff]   ;;  %950 = vmatpush3.bf16.msra.mxu0 %v1147_v3  ;;  %v1152_v8 = vld [vmem:[%s1702_s25 + $0x88] sm:$0xff]   ;;  %v1156_v12 = vld [vmem:[%s1702_s25 + $0x90] sm:$0xff]  }
  0x83   : > { %978 = vmatpush3.bf16.msra.mxu1 %v1148_v4  ;;  %951 = vmatprep.subr.bf16.mxu0 %v1149_v5  ;;  %v1157_v13 = vld [vmem:[%s1702_s25 + $0x58] sm:$0xff]   ;;  %v1161_v17 = vld [vmem:[%s1702_s25 + $0x60] sm:$0xff]   ;;  %v1165_v21 = vld [vmem:[%s1702_s25 + $0x68] sm:$0xff]  }
  0x84   : > { %979 = vmatprep.subr.bf16.mxu1 %v1150_v6  ;;  %v1158_v14 = vld [vmem:[%s1702_s25 + $0xd8] sm:$0xff]   ;;  %v1162_v18 = vld [vmem:[%s1702_s25 + $0xe0] sm:$0xff]   ;;  %v1166_v22 = vld [vmem:[%s1702_s25 + $0xe8] sm:$0xff]  }
  0x85   : > { %v1159_v15 = vld [vmem:[%s1702_s25 + $0x18] sm:$0xff]   ;;  %v1163_v19 = vld [vmem:[%s1702_s25 + $0x20] sm:$0xff]   ;;  %v1167_v23 = vld [vmem:[%s1702_s25 + $0x28] sm:$0xff]  }
  0x86   : > { %952 = vmatpush3.bf16.msra.mxu0 %v1151_v7  ;;  %v1160_v16 = vld [vmem:[%s1702_s25 + $0x98] sm:$0xff]   ;;  %v1164_v20 = vld [vmem:[%s1702_s25 + $0xa0] sm:$0xff]   ;;  %v1168_v24 = vld [vmem:[%s1702_s25 + $0xa8] sm:$0xff]  }
  0x87   : > { %980 = vmatpush3.bf16.msra.mxu1 %v1152_v8  ;;  %953 = vmatprep.subr.bf16.mxu0 %v1153_v9  ;;  %v1169_v25 = vld [vmem:[%s1702_s25 + $0x70] sm:$0xff]   ;;  %v1173_v29 = vld [vmem:[%s1702_s25 + $0x78] sm:$0xff]   ;;  %v245_v50 = vld [vmem:[#allocation2] sm:$0xff] }
  0x88   : > { %981 = vmatprep.subr.bf16.mxu1 %v1154_v10  ;;  %v1170_v26 = vld [vmem:[%s1702_s25 + $0xf0] sm:$0xff]   ;;  %v1174_v30 = vld [vmem:[%s1702_s25 + $0xf8] sm:$0xff]   ;;  %v246_v55 = vld [vmem:[#allocation2 + $0x8] sm:$0xff] }
  0x89   : > { %v1171_v27 = vld [vmem:[%s1702_s25 + $0x30] sm:$0xff]   ;;  %v1175_v31 = vld [vmem:[%s1702_s25 + $0x38] sm:$0xff]  }
  0x8a   : > { %954 = vmatpush3.bf16.msra.mxu0 %v1155_v11  ;;  %v1172_v28 = vld [vmem:[%s1702_s25 + $0xb0] sm:$0xff]   ;;  %v1176_v32 = vld [vmem:[%s1702_s25 + $0xb8] sm:$0xff]  }
  0x8b   : > { %982 = vmatpush3.bf16.msra.mxu1 %v1156_v12  ;;  %955 = vmatprep.subr.bf16.mxu0 %v1157_v13  ;;  %v1177_v33 = vld [vmem:[%s1695_s12] ss:$16 sps:$4 sm:$0xff]   ;;  %v1179_v34 = vld [vmem:[%s1695_s12 + $0x4] ss:$16 sps:$4 sm:$0xff]   ;;  %v1180_v35 = vld [vmem:[%s1695_s12 + $0x8] ss:$16 sps:$4 sm:$0xff]  }
  0x8c   : > { %983 = vmatprep.subr.bf16.mxu1 %v1158_v14  ;;  %v1182_v36 = vld [vmem:[%s1695_s12 + $0xc] ss:$16 sps:$4 sm:$0xff]   ;;  %585 = vmatprep.mubr.bf16.mxu0 %v1179_v34  ;;  %v1183_v37 = vld [vmem:[%s1695_s12 + $0x24] ss:$16 sps:$4 sm:$0xff]   ;;  %v1187_v39 = vld [vmem:[%s1695_s12 + $0x20] ss:$16 sps:$4 sm:$0xff]  }
  0x8d   : > { %634 = vmatprep.mubr.bf16.mxu1 %v1182_v36  ;;  %v1185_v38 = vld [vmem:[%s1695_s12 + $0x2c] ss:$16 sps:$4 sm:$0xff]   ;;  %v1188_v40 = vld [vmem:[%s1695_s12 + $0x28] ss:$16 sps:$4 sm:$0xff]   ;;  %v247_v4 = vld [vmem:[#allocation2 + $0x10] sm:$0xff] }
  0x8e   : > { %956 = vmatpush3.bf16.msra.mxu0 %v1159_v15  ;;  %v248_v9 = vld [vmem:[#allocation2 + $0x18] sm:$0xff] }
  0x8f   : > { %984 = vmatpush3.bf16.msra.mxu1 %v1160_v16  ;;  %957 = vmatprep.subr.bf16.mxu0 %v1161_v17 }
  0x90   : > { %985 = vmatprep.subr.bf16.mxu1 %v1162_v18 }
  0x92   : > { %958 = vmatpush3.bf16.msra.mxu0 %v1163_v19 }
  0x93   : > { %986 = vmatpush3.bf16.msra.mxu1 %v1164_v20  ;;  %959 = vmatprep.subr.bf16.mxu0 %v1165_v21 }
  0x94   : > { %987 = vmatprep.subr.bf16.mxu1 %v1166_v22 }
  0x96   : > { %960 = vmatpush3.bf16.msra.mxu0 %v1167_v23 }
  0x97   : > { %988 = vmatpush3.bf16.msra.mxu1 %v1168_v24  ;;  %961 = vmatprep.subr.bf16.mxu0 %v1169_v25 }
  0x98   : > { %989 = vmatprep.subr.bf16.mxu1 %v1170_v26 }
  0x9a   : > { %962 = vmatpush3.bf16.msra.mxu0 %v1171_v27 }
  0x9b   : > { %990 = vmatpush3.bf16.msra.mxu1 %v1172_v28  ;;  %963 = vmatprep.subr.bf16.mxu0 %v1173_v29 }
  0x9c   : > { %991 = vmatprep.subr.bf16.mxu1 %v1174_v30 }
  0x9e   : > { %964 = vmatpush3.bf16.msra.mxu0 %v1175_v31 }
  0x9f   : > { %992 = vmatpush3.bf16.msra.mxu1 %v1176_v32 }
  0xa1   : > { %586 = vmatmul.mubr.bf16.vlgmr.msra.gmra.mrb[0].mxu0 %v1177_v33 }
  0xa2   : > { %635 = vmatmul.mubr.bf16.vlgmr.msra.gmra.mrb[0].mxu1 %v1180_v35  ;;  %593 = vmatprep.mubr.bf16.mxu0 %v1183_v37 }
  0xa3   : > { %642 = vmatprep.mubr.bf16.mxu1 %v1185_v38 }
  0xa9   : > { %594 = vmatmul.mubr.bf16.gmra.mrb[4].mxu0 %v1187_v39 }
  0xaa   : > { %643 = vmatmul.mubr.bf16.gmra.mrb[4].mxu1 %v1188_v40 }
 0x174   : > { %v965_v41 = vpop.f32.mrb[0].mxu0 }
 0x175   : > { %v993_v42 = vpop.f32.mrb[0].mxu1  ;;  %v966_v43 = vpop.f32.mrb[1].mxu0 }
 0x176   : > { %v967_v44 = vadd.f32 %v966_v43, %v965_v41  ;;  %v994_v45 = vpop.f32.mrb[1].mxu1  ;;  %v968_v46 = vpop.f32.mrb[2].mxu0 }
 0x177   : > { %v995_v47 = vadd.f32 %v994_v45, %v993_v42  ;;  %v996_v48 = vpop.f32.mrb[2].mxu1  ;;  %v969_v49 = vpop.f32.mrb[3].mxu0 }
 0x178   : > { %v970_v51 = vadd.f32 %v969_v49, %v968_v46  ;;  %v997_v52 = vpop.f32.mrb[3].mxu1 }
 0x179   : > { %v637_v53 = vadd.f32 %v995_v47, %v967_v44  ;;  %v998_v54 = vadd.f32 %v997_v52, %v996_v48 }
 0x17b   : > { %v651_v56 = vadd.f32 %v637_v53, %v245_v50  ;;  %v640_v57 = vadd.f32 %v998_v54, %v970_v51 }
 0x17c   : > { %v971_v58 = vpop.f32.mrb[4].mxu0 }
 0x17d   : > { %655 = vst [vmem:[#allocation2] sm:$0xff] %v651_v56  ;;  %v652_v59 = vadd.f32 %v640_v57, %v246_v55  ;;  %v999_v60 = vpop.f32.mrb[4].mxu1  ;;  %v972_v61 = vpop.f32.mrb[5].mxu0 }
 0x17e   : > { %v973_v62 = vadd.f32 %v972_v61, %v971_v58  ;;  %v1000_v63 = vpop.f32.mrb[5].mxu1  ;;  %v974_v0 = vpop.f32.mrb[6].mxu0 }
 0x17f   : > { %656 = vst [vmem:[#allocation2 + $0x8] sm:$0xff] %v652_v59  ;;  %v1001_v1 = vadd.f32 %v1000_v63, %v999_v60  ;;  %v1002_v2 = vpop.f32.mrb[6].mxu1  ;;  %v975_v3 = vpop.f32.mrb[7].mxu0 }
 0x180   : > { %v976_v5 = vadd.f32 %v975_v3, %v974_v0  ;;  %v1003_v6 = vpop.f32.mrb[7].mxu1 }
 0x181   : > { %v645_v7 = vadd.f32 %v1001_v1, %v973_v62  ;;  %v1004_v8 = vadd.f32 %v1003_v6, %v1002_v2  ;;  %662 = sbr.rel (%p923_p10) target bundleno = 461 (0x1cd), region = 44 }
 0x183   : > { %v653_v10 = vadd.f32 %v645_v7, %v247_v4  ;;  %v648_v11 = vadd.f32 %v1004_v8, %v976_v5 }
 0x184   : > { %v663_v13 = vld [vmem:[#allocation2] sm:$0xff] (!%p923_p10) }
 0x185   : > { %657 = vst [vmem:[#allocation2 + $0x10] sm:$0xff] %v653_v10  ;;  %v654_v12 = vadd.f32 %v648_v11, %v248_v9 }
 0x186   : > { %v664_v14 = vld [vmem:[#allocation2 + $0x8] sm:$0xff] (!%p923_p10) }
 0x187   : > { %658 = vst [vmem:[#allocation2 + $0x18] sm:$0xff] %v654_v12  ;;  %v667_v16 = vadd.f32 (!%p923_p10), %v664_v14, %v663_v13 }
 0x18c   : > { %v665_v15 = vld [vmem:[#allocation2 + $0x10] sm:$0xff] }
 0x18d   : > { %v668_v18 = vadd.f32 %v667_v16, %v665_v15 }
 0x18e   : > { %v666_v17 = vld [vmem:[#allocation2 + $0x18] sm:$0xff] }
 0x18f   : > { %v669_v19 = vadd.f32 %v668_v18, %v666_v17 }
 0x191   : > { %v670_v20 = vrot.slane %v669_v19, 4 }
 0x193   : > { %v671_v21 = vadd.f32 %v670_v20, %v669_v19 }
 0x195   : > { %v672_v22 = vrot.slane %v671_v21, 2 }
 0x197   : > { %v673_v23 = vadd.f32 %v672_v22, %v671_v21 }
 0x199   : > { %v674_v24 = vrot.slane %v673_v23, 1 }
 0x19b   : > { %v675_v25 = vadd.f32 %v674_v24, %v673_v23 }
 0x19d   : > { %v677_v26 = vmul.f32 0.03125, %v675_v25 }
 0x19f   : > { %v678_v27 = vsub.f32 %v663_v13, %v677_v26  ;;  %v679_v28 = vsub.f32 %v664_v14, %v677_v26  ;;  %v680_v29 = vsub.f32 %v665_v15, %v677_v26  ;;  %v681_v30 = vsub.f32 %v666_v17, %v677_v26 }
 0x1a1   : > { %v682_v31 = vmul.f32 %v678_v27, %v678_v27  ;;  %v683_v32 = vmul.f32 %v679_v28, %v679_v28  ;;  %v684_v33 = vmul.f32 %v680_v29, %v680_v29  ;;  %v685_v34 = vmul.f32 %v681_v30, %v681_v30 }
 0x1a3   : > { %v686_v35 = vadd.f32 %v683_v32, %v682_v31 }
 0x1a5   : > { %v687_v36 = vadd.f32 %v686_v35, %v684_v33 }
 0x1a7   : > { %v688_v37 = vadd.f32 %v687_v36, %v685_v34 }
 0x1a9   : > { %v689_v38 = vrot.slane %v688_v37, 4 }
 0x1ab   : > { %v690_v39 = vadd.f32 %v689_v38, %v688_v37 }
 0x1ad   : > { %v691_v40 = vrot.slane %v690_v39, 2 }
 0x1af   : > { %v692_v41 = vadd.f32 %v691_v40, %v690_v39 }
 0x1b1   : > { %v693_v42 = vrot.slane %v692_v41, 1 }
 0x1b3   : > { %v694_v43 = vadd.f32 %v693_v42, %v692_v41 }
 0x1b5   : > { %v695_v44 = vmul.f32 0.03125, %v694_v43 }
 0x1b7   : > { %v696_v45 = vadd.f32 1e-05, %v695_v44 }
 0x1b9   : > { %1189 = vrsqrt.f32 %v696_v45 }
 0x1c3   : > { %v1190_v46 = vpop.eup %1189 }
 0x1c4   : > { %v698_v47 = vmul.f32 %v1190_v46, %v678_v27  ;;  %v699_v48 = vmul.f32 %v1190_v46, %v679_v28  ;;  %v700_v49 = vmul.f32 %v1190_v46, %v680_v29  ;;  %v701_v50 = vmul.f32 %v1190_v46, %v681_v30 }
 0x1c6   : > { %vm702_vm0 = vcmp.ge.f32.partialorder %v698_v47, 0.0  ;;  %vm703_vm1 = vcmp.ge.f32.partialorder %v699_v48, 0.0  ;;  %v706_v51 = vmul.f32 0.2, %v698_v47  ;;  %v707_v52 = vmul.f32 0.2, %v699_v48 }
 0x1c7   : > { %vm704_vm2 = vcmp.ge.f32.partialorder %v700_v49, 0.0  ;;  %vm705_vm3 = vcmp.ge.f32.partialorder %v701_v50, 0.0  ;;  %v708_v53 = vmul.f32 0.2, %v700_v49  ;;  %v709_v54 = vmul.f32 0.2, %v701_v50 }
 0x1c8   : > { %v710_v55 = vsel %vm702_vm0, %v698_v47, %v706_v51  ;;  %v711_v56 = vsel %vm703_vm1, %v699_v48, %v707_v52 }
 0x1c9   : > { %v941_v57 = vpack.c.bf16 %v711_v56, %v710_v55  ;;  %v712_v58 = vsel %vm704_vm2, %v700_v49, %v708_v53  ;;  %v713_v59 = vsel %vm705_vm3, %v701_v50, %v709_v54 }
 0x1ca   : > { %v946_v60 = vpack.c.bf16 %v713_v59, %v712_v58 }
 0x1cb   : > { %942 = vst [vmem:[%s1711_s17] sm:$0xff] %v941_v57  }
 0x1cc   : > { %948 = vst [vmem:[%s1711_s17 + $0x8] sm:$0xff] %v946_v60  }
 0x1cd PF: > { %s929_s18 = sshll.u32 %s1389_s19, 6  ;;  %s1888_s15 = sld [smem:[#allocation18_spill]] }
 0x1ce   : > { %s750_s6 = sshll.u32 %s1711_s17, 4  ;;  %s1768_s28 = scalar_lea.sflag [#allocation5], %s229_s5  ;;  %s1764_s6 = int_to_ptr.vmem [resolvable:$true] %s750_s6 }
 0x1cf   : > { %s1251_s27 = scalar_lea.vmem %s1764_s6, 256  ;;  %p1890_p0 = scmp.ne.s32.totalorder %s1880_s29, 0 }
 0x1d0   : > { %p1252_p1 = scmp.ne.s32.totalorder %s1764_s6, %s1251_s27  ;;  %s1411_s19 = smov [#allocation8]  }
 0x1d1   : > { %s1255_s12 = sshll.u32 %s1411_s19, 4  ;;  %s1256_s12 = int_to_ptr.vmem [resolvable:$false] %s1255_s12 }
 0x1d2   : > { %p1253_p4 = pnand %p1252_p1, %p1890_p0  ;;  %s1257_s7 = scalar_lea.vmem %s1256_s12, 512 }
 0x1d3   : > { %s1889_s2 = smov %s1888_s15  ;;  %s1761_s24 = scalar_lea.hbm %s1888_s15, %s929_s18 }
 0x1d4   : > { %p1254_p5 = pneg %p1253_p4  ;;  %p1258_p12 = scmp.lt.s32.totalorder %s1764_s6, %s1256_s12 }
 0x1d5   : > { %p1259_p11 = scmp.lt.s32.totalorder %s1257_s7, %s1251_s27 }
 0x1d7   : > { %p1260_p3 = por %p1259_p11, %p1258_p12 }
 0x1d9   : > { %p1261_p6 = pnand %p1260_p3, %p1254_p5 }
 0x1db   : > { %1264 = shalt.err (!%p1261_p6)
}
 0x1dc   : > { %s1265_s30 = scalar_lea.hbm %s1761_s24, 256  ;;  %s1269_s5 = scalar_lea.hbm %s1889_s2, 1024 }
 0x1dd   : > { %p1266_p9 = scmp.ne.s32.totalorder %s1761_s24, %s1265_s30  ;;  %p1270_p7 = scmp.lt.u32.totalorder %s1761_s24, %s1889_s2 }
 0x1de   : > { %p1271_p8 = scmp.lt.u32.totalorder %s1269_s5, %s1265_s30  ;;  %p1273_p1 = scmp.lt.u32.totalorder %s1265_s30, %s1761_s24 }
 0x1df   : > { %p1267_p2 = pnand %p1266_p9, %p1890_p0 }
 0x1e0   : > { %p1272_p10 = por %p1271_p8, %p1270_p7 }
 0x1e1   : > { %p1268_p13 = pneg %p1267_p2 }
 0x1e2   : > { %p1274_p4 = por %p1273_p1, %p1272_p10 }
 0x1e4   : > { %p1275_p5 = pnand %p1274_p4, %p1268_p13 }
 0x1e6   : > { %1278 = shalt.err (!%p1275_p5)
}
 0x1e7   : > { %s1412_s18 = smov 64   ;;  %s1413_s3 = smov 256  }
 0x1e8   : > { %s1414_s4 = smov 4  }
 0x1e9   : > { %1009 = dma.vmem_to_hbm [thread:$0]  (%p1890_p0), %s1764_s6, 256, %s1761_s24, %s1768_s28, %s1412_s18, %s1413_s3, %s1414_s4  }
 0x1ea PF: > { %s1891_s15 = sld [smem:[#allocation12_spill]]  ;;  %p1023_p12 = scmp.ge.s32.totalorder %s1401_s22, 2 }
 0x1eb   : > { %p1892_p11 = scmp.ne.s32.totalorder %s1881_s23, 0 }
 0x1ed   : > { %p1019_p3 = pnand %p1023_p12, %p1892_p11 }
 0x1f0   : > { %s765_s27 = sand.u32 1, %s1891_s15  }
 0x1f1   : > { %s766_s19 = scalar_lea.sflag [#allocation5], %s765_s27 }
 0x1f2   : > { %1344 = dma.done.wait (!%p1019_p3), %s766_s19, 256  }
 0x1f3   : > { %1346 = vsyncadd (!%p1019_p3), %s766_s19, 4294967040  ;;  %s21_s22 = sadd.s32 1, %s1401_s22   ;;  %s1894_s29 = sld [smem:[#allocation13_spill]] }
 0x1f4   : > { %p1797_p6 = scmp.ge.s32.totalorder %s21_s22, 34   ;;  %s1895_s17 = sld [smem:[#allocation15_spill]] }
 0x1f5   : > { %s1896_s23 = sld [smem:[#allocation14_spill]]  ;;  %s1897_s24 = sld [smem:[#allocation16_spill]] }
 0x1f6   : > { %s1899_s9 = smov %s1353_s10  ;;  %s1900_s10 = smov %s1357_s11 }
 0x1f7   : > { %s1901_s11 = smov %s1635_s26  ;;  %s1902_s12 = smov %s1365_s13 }
 0x1f8   : > { %s1903_s13 = smov %s1369_s14  ;;  %s1904_s14 = smov %s1638_s8 }
 0x1f9   : > { %s1905_s15 = smov %s1377_s16  ;;  %s1906_s16 = smov %s1894_s29 }
 0x1fa   : > { %s1907_s18 = smov %s1393_s20  ;;  %s1908_s19 = smov %s1397_s21 }
 0x1fb   : > { %s1909_s20 = smov %s1896_s23  ;;  %s1910_s21 = smov %s1897_s24 }
 0x1fc   :  { %20 = sbr.rel (!%p1797_p6) target bundleno = 15 (0xf), region = 94 }
 0x203   :  { %771 = vsyncpa [#allocation4], 1 }
 0x204   :  { %773 = vsyncpa [#allocation4 + $0x1], 1 }
 0x205   :  { %774 = vsyncpa [#allocation7], 1 }
 0x206   :  { %776 = vsyncpa [#allocation7 + $0x1], 1 }
 0x207   :  { %777 = vsyncpa [#allocation5], 1 }
 0x208   :  { %779 = vsyncpa [#allocation5 + $0x1], 1 }

// kernel: discriminator_forward.9
= control target key start
LH: loop header
LB: loop body
LE: loop exit
PB: predicated region body
PF: predicated region fallthrough
CT: control target
= control target key end

     0   :  { %7 = vsyncpa [#allocation3], 0  ;;  %s2553_s0 = inlined_call_operand.hbm [shape: bf16[2,8192], index: 0, kind: input, shape index: {}]   ;;  %s2554_s1 = inlined_call_operand.hbm [shape: bf16[1,8192], index: 1, kind: input, shape index: {}]   ;;  %s2555_s2 = inlined_call_operand.hbm [shape: f32[2,1], index: 2, kind: output, shape index: {}]  }
   0x1   :  { %8 = vsyncpa [#allocation6], 0 }
   0x2   :  { %9 = vsyncpa [#allocation4], 0  ;;  %s1626_s9 = smov [#allocation2]   ;;  %s1627_s11 = smov [#allocation5]  }
   0x3   :  { %s16_s10 = sshll.u32 %s1626_s9, 4  ;;  %s26_s12 = sshll.u32 %s1627_s11, 4  ;;  %s17_s10 = int_to_ptr.vmem [resolvable:$true] %s16_s10  ;;  %s27_s12 = int_to_ptr.vmem [resolvable:$true] %s26_s12 }
   0x4   :  { %s1554_s15 = scalar_lea.hbm %s2553_s0, 1024 }
   0x5   :  { %p1555_p0 = scmp.ne.s32.totalorder %s2553_s0, %s1554_s15  ;;  %p1558_p1 = scmp.lt.u32.totalorder %s1554_s15, %s2553_s0 }
   0x7   :  { %p1560_p2 = pnand %p1558_p1, %p1555_p0 }
   0x9   :  { %1563 = shalt.err (!%p1560_p2)
}
   0xa   :  { %s1564_s20 = scalar_lea.vmem %s17_s10, 1024  ;;  %p1569_p4 = scmp.lt.s32.totalorder %s17_s10, %s17_s10 }
   0xb   :  { %p1565_p3 = scmp.ne.s32.totalorder %s17_s10, %s1564_s20  ;;  %p1570_p5 = scmp.lt.s32.totalorder %s1564_s20, %s1564_s20 }
   0xd   :  { %p1571_p6 = por %p1570_p5, %p1569_p4 }
   0xf   :  { %p1572_p7 = pnand %p1571_p6, %p1565_p3 }
  0x11   :  { %1575 = shalt.err (!%p1572_p7)
}
  0x12   :  { %19 = dma.hbm_to_vmem [thread:$0]  %s2553_s0, 1024, %s17_s10, [#allocation3]  }
  0x13   :  { %s1576_s25 = scalar_lea.hbm %s2554_s1, 1024 }
  0x14   :  { %p1577_p8 = scmp.ne.s32.totalorder %s2554_s1, %s1576_s25  ;;  %p1580_p9 = scmp.lt.u32.totalorder %s1576_s25, %s2554_s1 }
  0x16   :  { %p1582_p10 = pnand %p1580_p9, %p1577_p8 }
  0x18   :  { %1585 = shalt.err (!%p1582_p10)
}
  0x19   :  { %s1586_s30 = scalar_lea.vmem %s27_s12, 1024  ;;  %p1591_p12 = scmp.lt.s32.totalorder %s27_s12, %s27_s12 }
  0x1a   :  { %p1587_p11 = scmp.ne.s32.totalorder %s27_s12, %s1586_s30  ;;  %p1592_p13 = scmp.lt.s32.totalorder %s1586_s30, %s1586_s30 }
  0x1c   :  { %p1593_p0 = por %p1592_p13, %p1591_p12 }
  0x1e   :  { %p1594_p1 = pnand %p1593_p0, %p1587_p11 }
  0x20   :  { %1597 = shalt.err (!%p1594_p1)
}
  0x21   :  { %29 = dma.hbm_to_vmem [thread:$0]  %s2554_s1, 1024, %s27_s12, [#allocation6]  }
  0x22   :  { %1620 = dma.done.wait [#allocation3], 1024  }
  0x23   :  { %1621 = vsyncadd [#allocation3], 4294966272 }
  0x24   :  { %1622 = dma.done.wait [#allocation6], 1024  }
  0x25   :  { %1623 = vsyncadd [#allocation6], 4294966272  ;;  %v100_v0 = vlaneseq  ;;  %v1628_v1 = vmov 1983009808   ;;  %v1669_v5 = vld [vmem:[#allocation2] sm:$0xff]  ;;  %v1671_v6 = vld [vmem:[#allocation2 + $0x8] sm:$0xff] }
  0x26   :  { %v743_v2 = vunpack.c.l.s4 %v1628_v1  ;;  %2577 = vst [vmem:[#allocation11_spill] sm:$0xff] %v1669_v5  ;;  %2578 = vst [vmem:[#allocation12_spill] sm:$0xff] %v1671_v6  ;;  %v1673_v7 = vld [vmem:[#allocation2 + $0x10] sm:$0xff]  ;;  %v1675_v8 = vld [vmem:[#allocation2 + $0x20] sm:$0xff]  ;;  %vm1396_vm0 = vcmask 1041408   ;;  %s1629_s1 = smov [#allocation7]  }
  0x27   :  { %v101_v3 = vshrl.u32 %v100_v0, 7  ;;  %2579 = vst [vmem:[#allocation13_spill] sm:$0xff] %v1673_v7  ;;  %2580 = vst [vmem:[#allocation14_spill] sm:$0xff] %v1675_v8  ;;  %v1677_v9 = vld [vmem:[#allocation2 + $0x28] sm:$0xff]  ;;  %v1683_v12 = vld [vmem:[#allocation2 + $0x30] sm:$0xff]  ;;  %s1538_s4 = sshll.u32 %s1629_s1, 4  ;;  %s1539_s4 = int_to_ptr.vmem [resolvable:$true] %s1538_s4 }
  0x28   :  { %v744_v4 = vunpack.c.0.s8 %v743_v2  ;;  %2581 = vst [vmem:[#allocation15_spill] sm:$0xff] %v1677_v9  ;;  %2583 = vst [vmem:[#allocation17_spill] sm:$0xff] %v1683_v12  ;;  %v1685_v13 = vld [vmem:[#allocation2 + $0x38] sm:$0xff]  ;;  %v60_v15 = vld [vmem:[#allocation5] sm:$0xff]  ;;  %vm1530_vm1 = vcmask 1024   ;;  %s1598_s5 = scalar_lea.vmem %s1539_s4, 32  ;;  %p1603_p3 = scmp.lt.s32.totalorder %s1539_s4, %s1539_s4 }
  0x29   :  { %v1679_v10 = vsub.s32 0, %v101_v3  ;;  %v1681_v11 = vsub.s32 2, %v101_v3  ;;  %2584 = vst [vmem:[#allocation18_spill] sm:$0xff] %v1685_v13  ;;  %v1688_v16 = vsub.s32 4, %v101_v3  ;;  %v1690_v17 = vsub.s32 6, %v101_v3  ;;  %v61_v23 = vld [vmem:[#allocation5 + $0x8] sm:$0xff]  ;;  %p1599_p2 = scmp.ne.s32.totalorder %s1539_s4, %s1598_s5  ;;  %p1604_p4 = scmp.lt.s32.totalorder %s1598_s5, %s1598_s5 }
  0x2a   :  { %v1692_v18 = vsub.s32 %v744_v4, %v101_v3  ;;  %v62_v24 = vld [vmem:[#allocation5 + $0x10] sm:$0xff]  ;;  %v64_v29 = vld [vmem:[#allocation5 + $0x20] sm:$0xff]  ;;  %v65_v30 = vld [vmem:[#allocation5 + $0x28] sm:$0xff]  ;;  %v1705_v36 = vunpack.c.l.bf16 %v60_v15  ;;  %v1707_v37 = vunpack.c.h.bf16 %v60_v15  ;;  %v1709_v38 = vunpack.c.l.bf16 %v61_v23 }
  0x2b   :  { %2582 = vst [vmem:[#allocation16_spill] sm:$0xff] %v1681_v11  ;;  %2585 = vst [vmem:[#allocation19_spill] sm:$0xff] %v1690_v17  ;;  %v66_v34 = vld [vmem:[#allocation5 + $0x30] sm:$0xff]  ;;  %v67_v35 = vld [vmem:[#allocation5 + $0x38] sm:$0xff]  ;;  %v1711_v39 = vunpack.c.h.bf16 %v61_v23  ;;  %v1713_v40 = vunpack.c.l.bf16 %v62_v24  ;;  %v1715_v41 = vunpack.c.h.bf16 %v62_v24  ;;  %v1717_v42 = vunpack.c.l.bf16 %v64_v29  ;;  %p1605_p5 = por %p1604_p4, %p1603_p3 }
  0x2c   :  { %2586 = vst [vmem:[#allocation20_spill] sm:$0xff] %v1692_v18  ;;  %v1719_v43 = vunpack.c.h.bf16 %v64_v29  ;;  %v1721_v44 = vunpack.c.l.bf16 %v65_v30  ;;  %v1723_v45 = vunpack.c.h.bf16 %v65_v30  ;;  %v1725_v46 = vunpack.c.l.bf16 %v66_v34 }
  0x2d   :  { %v1727_v47 = vunpack.c.h.bf16 %v66_v34  ;;  %v1729_v48 = vunpack.c.l.bf16 %v67_v35  ;;  %v1731_v49 = vunpack.c.h.bf16 %v67_v35  ;;  %v103_v50 = vrot.slane %v1705_v36, %v1679_v10  ;;  %p1606_p6 = pnand %p1605_p5, %p1599_p2 }
  0x2e   :  { %v107_v51 = vrot.slane %v1705_v36, %v1681_v11  ;;  %v111_v52 = vrot.slane %v1705_v36, %v1688_v16  ;;  %v235_v1 = vrot.slane %v1717_v42, %v1681_v11  ;;  %v239_v2 = vrot.slane %v1717_v42, %v1688_v16 }
  0x2f   :  { %v243_v3 = vrot.slane %v1717_v42, %v1690_v17  ;;  %v251_v4 = vrot.slane %v1719_v43, %v1681_v11  ;;  %v255_v15 = vrot.slane %v1719_v43, %v1688_v16  ;;  %v259_v23 = vrot.slane %v1719_v43, %v1690_v17 }
  0x30   :  { %v267_v24 = vrot.slane %v1721_v44, %v1681_v11  ;;  %v271_v29 = vrot.slane %v1721_v44, %v1688_v16  ;;  %v275_v30 = vrot.slane %v1721_v44, %v1690_v17  ;;  %v283_v34 = vrot.slane %v1723_v45, %v1681_v11 }
  0x31   :  { %v287_v35 = vrot.slane %v1723_v45, %v1688_v16  ;;  %v291_v22 = vrot.slane %v1723_v45, %v1690_v17  ;;  %v299_v33 = vrot.slane %v1725_v46, %v1681_v11  ;;  %v303_v32 = vrot.slane %v1725_v46, %v1688_v16 }
  0x32   :  { %v307_v31 = vrot.slane %v1725_v46, %v1690_v17  ;;  %v315_v28 = vrot.slane %v1727_v47, %v1681_v11  ;;  %v319_v21 = vrot.slane %v1727_v47, %v1688_v16  ;;  %v323_v20 = vrot.slane %v1727_v47, %v1690_v17 }
  0x33   :  { %v331_v27 = vrot.slane %v1729_v48, %v1681_v11  ;;  %v335_v19 = vrot.slane %v1729_v48, %v1688_v16  ;;  %v339_v14 = vrot.slane %v1729_v48, %v1690_v17  ;;  %v1806_v26 = vrot.slane %v235_v1, %v1679_v10 }
  0x34   :  { %v1809_v25 = vrot.slane %v239_v2, %v1679_v10  ;;  %v1812_v0 = vrot.slane %v243_v3, %v1679_v10  ;;  %v347_v63 = vrot.slane %v1731_v49, %v1681_v11  ;;  %v1817_v62 = vrot.slane %v251_v4, %v1679_v10 }
  0x35   :  { %v1820_v61 = vrot.slane %v255_v15, %v1679_v10  ;;  %v1823_v60 = vrot.slane %v259_v23, %v1679_v10  ;;  %v351_v1 = vrot.slane %v1731_v49, %v1688_v16  ;;  %v1828_v2 = vrot.slane %v267_v24, %v1679_v10 }
  0x36   :  { %v1831_v3 = vrot.slane %v271_v29, %v1679_v10  ;;  %v1834_v59 = vrot.slane %v275_v30, %v1679_v10  ;;  %v355_v4 = vrot.slane %v1731_v49, %v1690_v17  ;;  %v1839_v15 = vrot.slane %v283_v34, %v1679_v10 }
  0x37   :  { %v1842_v23 = vrot.slane %v287_v35, %v1679_v10  ;;  %v1845_v58 = vrot.slane %v291_v22, %v1679_v10  ;;  %v163_v24 = vrot.slane %v1711_v39, %v1690_v17  ;;  %v1850_v29 = vrot.slane %v299_v33, %v1679_v10 }
  0x38   :  { %v1853_v30 = vrot.slane %v303_v32, %v1679_v10  ;;  %v1856_v57 = vrot.slane %v307_v31, %v1679_v10  ;;  %v167_v34 = vrot.slane %v1713_v40, %v1679_v10  ;;  %v1861_v35 = vrot.slane %v315_v28, %v1679_v10 }
  0x39   :  { %v1864_v22 = vrot.slane %v319_v21, %v1679_v10  ;;  %v1867_v56 = vrot.slane %v323_v20, %v1679_v10  ;;  %v171_v33 = vrot.slane %v1713_v40, %v1681_v11  ;;  %v1872_v32 = vrot.slane %v331_v27, %v1679_v10 }
  0x3a   :  { %v1875_v31 = vrot.slane %v335_v19, %v1679_v10  ;;  %v1878_v55 = vrot.slane %v339_v14, %v1679_v10  ;;  %v175_v28 = vrot.slane %v1713_v40, %v1688_v16  ;;  %v1883_v21 = vrot.slane %v347_v63, %v1679_v10 }
  0x3b   :  { %v1886_v20 = vrot.slane %v351_v1, %v1679_v10  ;;  %v1889_v54 = vrot.slane %v355_v4, %v1679_v10  ;;  %v179_v27 = vrot.slane %v1713_v40, %v1690_v17  ;;  %v231_v19 = vrot.slane %v1717_v42, %v1679_v10 }
  0x3c   :  { %v247_v14 = vrot.slane %v1719_v43, %v1679_v10  ;;  %v263_v53 = vrot.slane %v1721_v44, %v1679_v10  ;;  %v279_v63 = vrot.slane %v1723_v45, %v1679_v10  ;;  %v295_v1 = vrot.slane %v1725_v46, %v1679_v10 }
  0x3d   :  { %v311_v4 = vrot.slane %v1727_v47, %v1679_v10  ;;  %v327_v40 = vrot.slane %v1729_v48, %v1679_v10  ;;  %v343_v42 = vrot.slane %v1731_v49, %v1679_v10  ;;  %v1913_v43 = vrot.slane %v103_v50, %v1679_v10 }
  0x3e   :  { %v1919_v44 = vrot.slane %v107_v51, %v1679_v10  ;;  %v1925_v45 = vrot.slane %v111_v52, %v1679_v10  ;;  %v2587_v46 = vrot.slane %v1705_v36, %v1690_v17  ;;  %v2588_v48 = vrot.slane %v1707_v37, %v1679_v10 }
  0x3f   :  { %v2589_v50 = vrot.slane %v1707_v37, %v1681_v11  ;;  %v2590_v52 = vrot.slane %v1707_v37, %v1688_v16  ;;  %v2591_v36 = vrot.slane %v1707_v37, %v1690_v17  ;;  %v2594_v37 = vrot.slane %v1709_v38, %v1688_v16 }
  0x40   :  { %v1931_v47 = vrot.slane %v2587_v46, %v1679_v10  ;;  %v1937_v49 = vrot.slane %v2588_v48, %v1679_v10  ;;  %v2592_v48 = vrot.slane %v1709_v38, %v1679_v10  ;;  %v2595_v9 = vrot.slane %v1709_v38, %v1690_v17 }
  0x41   :  { %v1943_v51 = vrot.slane %v2589_v50, %v1679_v10  ;;  %v1949_v7 = vrot.slane %v2590_v52, %v1679_v10  ;;  %v1955_v46 = vrot.slane %v2591_v36, %v1679_v10  ;;  %v2593_v50 = vrot.slane %v1709_v38, %v1681_v11 }
  0x42   :  { %v1961_v12 = vrot.slane %v2592_v48, %v1679_v10  ;;  %v551_v52 = vrot.slane %v231_v19, %v1679_v10  ;;  %v1974_v36 = vrot.slane %v2594_v37, %v1679_v10  ;;  %v1980_v48 = vrot.slane %v2595_v9, %v1679_v10 }
  0x43   :  { %v1967_v6 = vrot.slane %v2593_v50, %v1679_v10  ;;  %v2596_v5 = vrot.slane %v1711_v39, %v1679_v10  ;;  %v2597_v19 = vrot.slane %v1711_v39, %v1681_v11  ;;  %v2598_v37 = vrot.slane %v1711_v39, %v1688_v16 }
  0x44   :  { %v2001_v9 = vrot.slane %v163_v24, %v1679_v10  ;;  %v2004_v38 = vrot.slane %v167_v34, %v1679_v10  ;;  %v2008_v17 = vrot.slane %v171_v33, %v1679_v10  ;;  %v2014_v11 = vrot.slane %v179_v27, %v1679_v10 }
  0x45   :  { %v1986_v50 = vrot.slane %v2596_v5, %v1679_v10  ;;  %v1992_v8 = vrot.slane %v2597_v19, %v1679_v10  ;;  %v1998_v13 = vrot.slane %v2598_v37, %v1679_v10  ;;  %v567_v5 = vrot.slane %v247_v14, %v1679_v10 }
  0x46   :  { %2599 = vst [vmem:[#allocation21_spill] sm:$0xff] %v2004_v38  ;;  %v2011_v19 = vrot.slane %v175_v28, %v1679_v10  ;;  %v583_v39 = vrot.slane %v263_v53, %v1679_v10  ;;  %v599_v37 = vrot.slane %v279_v63, %v1679_v10  ;;  %v615_v24 = vrot.slane %v295_v1, %v1679_v10 }
  0x47   :  { %v631_v34 = vrot.slane %v311_v4, %v1679_v10  ;;  %v876_v38 = vcombine.low %v551_v52, %v1806_v26  ;;  %v647_v14 = vrot.slane %v327_v40, %v1679_v10  ;;  %v663_v33 = vrot.slane %v343_v42, %v1679_v10 }
  0x48   :  { %v740_v28 = vcombine.low %v1913_v43, %v1919_v44  ;;  %v877_v27 = vcombine.low %v1809_v25, %v1812_v0  ;;  %v741_v53 = vcombine.low %v1925_v45, %v1931_v47  ;;  %v893_v1 = vcombine.low %v567_v5, %v1817_v62 }
  0x49   :  { %v2030_v63 = vrot.slane %v876_v38, %v1692_v18  ;;  %v894_v26 = vcombine.low %v1820_v61, %v1823_v60  ;;  %v757_v4 = vcombine.low %v1937_v49, %v1943_v51  ;;  %v910_v42 = vcombine.low %v583_v39, %v1828_v2 }
  0x4a   :  { %v2038_v40 = vrot.slane %v877_v27, %v1692_v18  ;;  %v911_v25 = vcombine.low %v1831_v3, %v1834_v59  ;;  %v2044_v0 = vrot.slane %v893_v1, %v1692_v18  ;;  %v927_v62 = vcombine.low %v599_v37, %v1839_v15 }
  0x4b   :  { %v2047_v43 = vrot.slane %v894_v26, %v1692_v18  ;;  %v928_v60 = vcombine.low %v1842_v23, %v1845_v58  ;;  %v2055_v44 = vrot.slane %v910_v42, %v1692_v18  ;;  %v944_v59 = vcombine.low %v615_v24, %v1850_v29 }
  0x4c   :  { %v892_v61 = vcombine.low %v2030_v63, %v2038_v40  ;;  %v2058_v2 = vrot.slane %v911_v25, %v1692_v18  ;;  %v2064_v45 = vrot.slane %v927_v62, %v1692_v18  ;;  %v945_v58 = vcombine.low %v1853_v30, %v1856_v57  ;;  %v2607_v63 = vld [vmem:[#allocation11_spill] sm:$0xff] }
  0x4d   :  { %v909_v3 = vcombine.low %v2044_v0, %v2047_v43  ;;  %v2067_v15 = vrot.slane %v928_v60, %v1692_v18  ;;  %v2074_v47 = vrot.slane %v944_v59, %v1692_v18  ;;  %v961_v29 = vcombine.low %v631_v34, %v1861_v35  ;;  %v2602_v26 = vld [vmem:[#allocation21_spill] sm:$0xff] }
  0x4e   :  { %v926_v23 = vcombine.low %v2055_v44, %v2058_v2  ;;  %v962_v49 = vcombine.low %v1864_v22, %v1867_v56  ;;  %v2082_v52 = vrot.slane %v945_v58, %v1692_v18  ;;  %v978_v38 = vcombine.low %v647_v14, %v1872_v32  ;;  %v63_v22 = vld [vmem:[#allocation5 + $0x18] sm:$0xff]  ;;  %v2600_v14 = vld [vmem:[#allocation16_spill] sm:$0xff] }
  0x4f   :  { %v943_v51 = vcombine.low %v2064_v45, %v2067_v15  ;;  %v979_v57 = vcombine.low %v1875_v31, %v1878_v55  ;;  %v2088_v30 = vrot.slane %v961_v29, %v1692_v18  ;;  %v995_v35 = vcombine.low %v663_v33, %v1883_v21 }
  0x50   :  { %v2091_v5 = vrot.slane %v962_v49, %v1692_v18  ;;  %v996_v56 = vcombine.low %v1886_v20, %v1889_v54  ;;  %v758_v39 = vcombine.low %v1949_v7, %v1955_v46  ;;  %v960_v32 = vcombine.low %v2074_v47, %v2082_v52 }
  0x51   :  { %v2101_v55 = vrot.slane %v978_v38, %v1692_v18  ;;  %v2104_v31 = vrot.slane %v979_v57, %v1692_v18  ;;  %v774_v37 = vcombine.low %v1961_v12, %v1967_v6  ;;  %v2111_v54 = vrot.slane %v995_v35, %v1692_v18  ;;  %v2603_v57 = vld [vmem:[#allocation18_spill] sm:$0xff] }
  0x52   :  { %v977_v21 = vcombine.low %v2088_v30, %v2091_v5  ;;  %v2114_v7 = vrot.slane %v996_v56, %v1692_v18  ;;  %v775_v20 = vcombine.low %v1974_v36, %v1980_v48  ;;  %v791_v46 = vcombine.low %v1986_v50, %v1992_v8  ;;  %v2601_v8 = vld [vmem:[#allocation19_spill] sm:$0xff] }
  0x53   :  { %v792_v24 = vcombine.low %v1998_v13, %v2001_v9  ;;  %v994_v6 = vcombine.low %v2101_v55, %v2104_v31  ;;  %v74_v12 = vunpack.c.l.bf16 %v63_v22  ;;  %v183_v34 = vrot.slane %v1715_v41, %v1679_v10 }
  0x54   :  { %v187_v33 = vrot.slane %v1715_v41, %v2600_v14  ;;  %v1011_v27 = vcombine.low %v2111_v54, %v2114_v7  ;;  %v191_v36 = vrot.slane %v1715_v41, %v1688_v16  ;;  %v195_v48 = vrot.slane %v1715_v41, %v2601_v8 }
  0x55   :  { %v748_v13 = vrot.slane %v740_v28, %v1692_v18  ;;  %v755_v50 = vrot.slane %v741_v53, %v1692_v18  ;;  %v765_v9 = vrot.slane %v757_v4, %v1692_v18  ;;  %v772_v1 = vrot.slane %v758_v39, %v1692_v18 }
  0x56   :  { %v808_v42 = vcombine.low %v2602_v26, %v2008_v17  ;;  %v809_v25 = vcombine.low %v2011_v19, %v2014_v11  ;;  %v782_v62 = vrot.slane %v774_v37, %v1692_v18  ;;  %v789_v60 = vrot.slane %v775_v20, %v1692_v18  ;;  %v2604_v37 = vld [vmem:[#allocation14_spill] sm:$0xff] }
  0x57   :  { %v799_v41 = vrot.slane %v791_v46, %v1692_v18  ;;  %v806_v28 = vrot.slane %v792_v24, %v1692_v18  ;;  %v199_v53 = vrot.slane %v74_v12, %v1679_v10  ;;  %v203_v4 = vrot.slane %v74_v12, %v2600_v14 }
  0x58   :  { %v207_v59 = vrot.slane %v74_v12, %v1688_v16  ;;  %v211_v58 = vrot.slane %v74_v12, %v2601_v8  ;;  %v2151_v17 = vrot.slane %v183_v34, %v1679_v10  ;;  %v2154_v11 = vrot.slane %v187_v33, %v1679_v10 }
  0x59   :  { %v2157_v19 = vrot.slane %v191_v36, %v1679_v10  ;;  %v2160_v47 = vrot.slane %v195_v48, %v1679_v10  ;;  %v756_v29 = vcombine.low %v748_v13, %v755_v50  ;;  %v773_v49 = vcombine.low %v765_v9, %v772_v1  ;;  %v2610_v48 = vld [vmem:[#allocation15_spill] sm:$0xff]  ;;  %v2612_v9 = vld [vmem:[#allocation12_spill] sm:$0xff] }
  0x5a   :  { %v2163_v52 = vrot.slane %v808_v42, %v1692_v18  ;;  %v2166_v38 = vrot.slane %v809_v25, %v1692_v18  ;;  %v59_v30 = vunpack.c.h.bf16 %v2603_v57  ;;  %v2169_v5 = vunpack.c.h.bf16 %v63_v22 }
  0x5b   :  { %v790_v35 = vcombine.low %v782_v62, %v789_v60  ;;  %v807_v56 = vcombine.low %v799_v41, %v806_v28  ;;  %v2172_v39 = vrot.slane %v199_v53, %v1679_v10  ;;  %v2175_v55 = vrot.slane %v203_v4, %v1679_v10  ;;  %v2616_v62 = vld [vmem:[#allocation17_spill] sm:$0xff] }
  0x5c   :  { %v2178_v31 = vrot.slane %v207_v59, %v1679_v10  ;;  %v2605_v54 = vunpack.c.l.bf16 %v2604_v37  ;;  %v2186_v22 = vrot.slane %v211_v58, %v1679_v10  ;;  %v825_v20 = vcombine.low %v2151_v17, %v2154_v11 }
  0x5d   :  { %v826_v46 = vcombine.low %v2157_v19, %v2160_v47  ;;  %v2606_v24 = vunpack.c.h.bf16 %v2604_v37  ;;  %v824_v34 = vcombine.low %v2163_v52, %v2166_v38  ;;  %v2608_v40 = vunpack.c.l.bf16 %v2607_v63 }
  0x5e   :  { %v1036_v7 = vmul.f32 %v892_v61, %v2605_v54  ;;  %v2609_v33 = vunpack.c.h.bf16 %v2607_v63  ;;  %v2611_v13 = vunpack.c.l.bf16 %v2610_v48  ;;  %v2613_v1 = vunpack.c.l.bf16 %v2612_v9 }
  0x5f   :  { %v1037_v12 = vmul.f32 %v909_v3, %v2606_v24  ;;  %v1028_v61 = vmul.f32 %v756_v29, %v2608_v40  ;;  %v2614_v43 = vunpack.c.h.bf16 %v2612_v9  ;;  %v2615_v26 = vunpack.c.h.bf16 %v2610_v48 }
  0x60   :  { %v1029_v36 = vmul.f32 %v773_v49, %v2609_v33  ;;  %v1038_v50 = vmul.f32 %v926_v23, %v2611_v13  ;;  %v1030_v0 = vmul.f32 %v790_v35, %v2613_v1  ;;  %v1196_v25 = vcombine.high %v1036_v7, %v1036_v7 }
  0x61   :  { %v1031_v3 = vmul.f32 %v807_v56, %v2614_v43  ;;  %v1039_v42 = vmul.f32 %v943_v51, %v2615_v26  ;;  %v2617_v60 = vunpack.c.l.bf16 %v2616_v62  ;;  %v2618_v44 = vunpack.c.h.bf16 %v2616_v62 }
  0x62   :  { %v1060_v23 = vcombine.high %v1028_v61, %v1028_v61  ;;  %v2222_v28 = vrot.slane %v1036_v7, %v1692_v18  ;;  %v2620_v53 = vunpack.c.l.bf16 %v2603_v57  ;;  %v2227_v59 = vrot.slane %v1196_v25, %v1692_v18 }
  0x63   :  { %v1040_v41 = vmul.f32 %v960_v32, %v2617_v60  ;;  %v1041_v2 = vmul.f32 %v977_v21, %v2618_v44  ;;  %v1213_v58 = vcombine.high %v1037_v12, %v1037_v12  ;;  %v2230_v45 = vrot.slane %v1037_v12, %v1692_v18 }
  0x64   :  { %2619 = vst [vmem:[#allocation16_spill] sm:$0xff] %v2222_v28  ;;  %v1042_v4 = vmul.f32 %v994_v6, %v2620_v53  ;;  %v1043_v15 = vmul.f32 %v1011_v27, %v59_v30  ;;  %v1067_v51 = vrot.slane %v1028_v61, %v1692_v18  ;;  %v1230_v32 = vcombine.high %v1038_v50, %v1038_v50 }
  0x65   :  { %v2234_v21 = vrot.slane %v1038_v50, %v1692_v18  ;;  %v1077_v17 = vcombine.high %v1029_v36, %v1029_v36  ;;  %v1084_v11 = vrot.slane %v1029_v36, %v1692_v18  ;;  %v2238_v19 = vrot.slane %v1213_v58, %v1692_v18 }
  0x66   :  { %v1247_v6 = vcombine.high %v1039_v42, %v1039_v42  ;;  %v1074_v47 = vrot.slane %v1060_v23, %v1692_v18  ;;  %v2242_v29 = vrot.slane %v1230_v32, %v1692_v18  ;;  %v2245_v27 = vrot.slane %v1039_v42, %v1692_v18  ;;  %v2621_v42 = vld [vmem:[#allocation13_spill] sm:$0xff] }
  0x67   :  { %v1264_v49 = vcombine.high %v1040_v41, %v1040_v41  ;;  %v1094_v52 = vcombine.high %v1030_v0, %v1030_v0  ;;  %v2251_v57 = vrot.slane %v1040_v41, %v1692_v18  ;;  %v1281_v30 = vcombine.high %v1041_v2, %v1041_v2 }
  0x68   :  { %v2248_v38 = vrot.slane %v1247_v6, %v1692_v18  ;;  %v1075_v35 = vcombine.high %v1067_v51, %v1067_v51  ;;  %v1101_v56 = vrot.slane %v1030_v0, %v1692_v18  ;;  %v2258_v54 = vrot.slane %v1041_v2, %v1692_v18 }
  0x69   :  { %v2255_v37 = vrot.slane %v1264_v49, %v1692_v18  ;;  %v1111_v7 = vcombine.high %v1031_v3, %v1031_v3  ;;  %v2261_v24 = vrot.slane %v1031_v3, %v1692_v18  ;;  %v2264_v12 = vrot.slane %v1281_v30, %v1692_v18 }
  0x6a   :  { %v1298_v63 = vcombine.high %v1042_v4, %v1042_v4  ;;  %v1076_v40 = vcombine.high %v1074_v47, %v1074_v47  ;;  %v1091_v61 = vrot.slane %v1077_v17, %v1692_v18  ;;  %v2268_v33 = vrot.slane %v1042_v4, %v1692_v18 }
  0x6b   :  { %v1315_v36 = vcombine.high %v1043_v15, %v1043_v15  ;;  %v1108_v48 = vrot.slane %v1094_v52, %v1692_v18  ;;  %v2275_v50 = vrot.slane %v1043_v15, %v1692_v18  ;;  %v1397_v9 = vsel %vm1396_vm0, %v1067_v51, 0.0 }
  0x6c   :  { %v2272_v13 = vrot.slane %v1298_v63, %v1692_v18  ;;  %v2279_v1 = vrot.slane %v825_v20, %v1692_v18  ;;  %v1398_v43 = vsel %vm1396_vm0, %v1075_v35, 0.0  ;;  %v1400_v3 = vsel %vm1396_vm0, %v1074_v47, 0.0 }
  0x6d   :  { %v2282_v0 = vrot.slane %v1315_v36, %v1692_v18  ;;  %v2287_v26 = vrot.slane %v826_v46, %v1692_v18  ;;  %v2622_v25 = vunpack.c.l.bf16 %v2621_v42  ;;  %v1092_v60 = vcombine.high %v1084_v11, %v1084_v11 }
  0x6e   :  { %v1399_v41 = vadd.f32 %v1398_v43, %v1397_v9  ;;  %v1109_v44 = vcombine.high %v1101_v56, %v1101_v56  ;;  %v2294_v20 = vrot.slane %v1111_v7, %v1692_v18  ;;  %v1402_v23 = vsel %vm1396_vm0, %v1076_v40, 0.0 }
  0x6f   :  { %v2291_v62 = vmul.f32 %v824_v34, %v2622_v25  ;;  %v1093_v53 = vcombine.high %v1091_v61, %v1091_v61  ;;  %v1110_v4 = vcombine.high %v1108_v48, %v1108_v48  ;;  %v1211_v46 = vcombine.high %v2222_v28, %v2222_v28 }
  0x70   :  { %v1401_v58 = vadd.f32 %v1400_v3, %v1399_v41  ;;  %v1212_v34 = vcombine.high %v2227_v59, %v2227_v59  ;;  %v1228_v15 = vcombine.high %v2230_v45, %v2230_v45  ;;  %v1245_v51 = vcombine.high %v2234_v21, %v2234_v21 }
  0x71   :  { %v1404_v32 = vsel %vm1396_vm0, %v1084_v11, 0.0  ;;  %v1229_v17 = vcombine.high %v2238_v19, %v2238_v19  ;;  %v1246_v6 = vcombine.high %v2242_v29, %v2242_v29  ;;  %v1262_v47 = vcombine.high %v2245_v27, %v2245_v27 }
  0x72   :  { %v1403_v49 = vadd.f32 %v1402_v23, %v1401_v58  ;;  %v1263_v52 = vcombine.high %v2248_v38, %v2248_v38  ;;  %v1279_v30 = vcombine.high %v2251_v57, %v2251_v57  ;;  %v1280_v35 = vcombine.high %v2255_v37, %v2255_v37 }
  0x73   :  { %v1406_v11 = vsel %vm1396_vm0, %v1092_v60, 0.0  ;;  %v1296_v7 = vcombine.high %v2258_v54, %v2258_v54  ;;  %v1297_v63 = vcombine.high %v2264_v12, %v2264_v12  ;;  %v1313_v40 = vcombine.high %v2268_v33, %v2268_v33 }
  0x74   :  { %v1405_v36 = vadd.f32 %v1404_v32, %v1403_v49  ;;  %v1314_v9 = vcombine.high %v2272_v13, %v2272_v13  ;;  %v1330_v43 = vcombine.high %v2275_v50, %v2275_v50  ;;  %v1331_v3 = vcombine.high %v2282_v0, %v2282_v0 }
  0x75   :  { %v1408_v25 = vsel %vm1396_vm0, %v1091_v61, 0.0  ;;  %v1410_v41 = vsel %vm1396_vm0, %v1093_v53, 0.0  ;;  %v1412_v23 = vsel %vm1396_vm0, %v1101_v56, 0.0  ;;  %v1414_v58 = vsel %vm1396_vm0, %v1109_v44, 0.0 }
  0x76   :  { %v1407_v60 = vadd.f32 %v1406_v11, %v1405_v36  ;;  %v1416_v32 = vsel %vm1396_vm0, %v1108_v48, 0.0  ;;  %v1418_v49 = vsel %vm1396_vm0, %v1110_v4, 0.0  ;;  %v2340_v2 = vsel %vm1396_vm0, %v1211_v46, 0.0 }
  0x77   :  { %v2344_v28 = vsel %vm1396_vm0, %v2227_v59, 0.0  ;;  %v2347_v61 = vsel %vm1396_vm0, %v1212_v34, 0.0  ;;  %v2351_v56 = vsel %vm1396_vm0, %v2230_v45, 0.0  ;;  %v2354_v44 = vsel %vm1396_vm0, %v1228_v15, 0.0 }
  0x78   :  { %v1409_v18 = vadd.f32 %v1408_v25, %v1407_v60  ;;  %v2358_v48 = vsel %vm1396_vm0, %v2238_v19, 0.0  ;;  %v2361_v53 = vsel %vm1396_vm0, %v1229_v17, 0.0  ;;  %v2365_v59 = vsel %vm1396_vm0, %v2234_v21, 0.0 }
  0x79   :  { %v2368_v4 = vsel %vm1396_vm0, %v1245_v51, 0.0  ;;  %v2372_v45 = vsel %vm1396_vm0, %v2242_v29, 0.0  ;;  %v2375_v34 = vsel %vm1396_vm0, %v1246_v6, 0.0  ;;  %v2379_v19 = vsel %vm1396_vm0, %v2245_v27, 0.0 }
  0x7a   :  { %v1411_v46 = vadd.f32 %v1410_v41, %v1409_v18  ;;  %v2382_v15 = vsel %vm1396_vm0, %v1262_v47, 0.0  ;;  %v2386_v21 = vsel %vm1396_vm0, %v2248_v38, 0.0  ;;  %v2389_v18 = vsel %vm1396_vm0, %v1263_v52, 0.0 }
  0x7b   :  { %v2393_v29 = vsel %vm1396_vm0, %v2251_v57, 0.0  ;;  %v2396_v17 = vsel %vm1396_vm0, %v1279_v30, 0.0  ;;  %v2400_v27 = vsel %vm1396_vm0, %v2255_v37, 0.0  ;;  %v2403_v6 = vsel %vm1396_vm0, %v1280_v35, 0.0 }
  0x7c   :  { %v1413_v51 = vadd.f32 %v1412_v23, %v1411_v46  ;;  %v2407_v38 = vsel %vm1396_vm0, %v2258_v54, 0.0  ;;  %v2410_v47 = vsel %vm1396_vm0, %v1296_v7, 0.0  ;;  %v2414_v57 = vsel %vm1396_vm0, %v2264_v12, 0.0  ;;  %v39_v23 = vld [vmem:[#allocation2 + $0x18] sm:$0xff] }
  0x7d   :  { %v2417_v52 = vsel %vm1396_vm0, %v1297_v63, 0.0  ;;  %v2421_v37 = vsel %vm1396_vm0, %v2268_v33, 0.0  ;;  %v2424_v35 = vsel %vm1396_vm0, %v1313_v40, 0.0  ;;  %v2428_v54 = vsel %vm1396_vm0, %v2272_v13, 0.0 }
  0x7e   :  { %v1415_v30 = vadd.f32 %v1414_v58, %v1413_v51  ;;  %v2431_v11 = vsel %vm1396_vm0, %v1314_v9, 0.0  ;;  %v2435_v12 = vsel %vm1396_vm0, %v2275_v50, 0.0  ;;  %v2438_v7 = vsel %vm1396_vm0, %v1330_v43, 0.0 }
  0x7f   :  { %v2442_v33 = vsel %vm1396_vm0, %v2282_v0, 0.0  ;;  %v49_v63 = vunpack.c.h.bf16 %v2621_v42  ;;  %v215_v13 = vrot.slane %v2169_v5, %v1679_v10  ;;  %v2448_v36 = vsel %vm1396_vm0, %v1331_v3, 0.0 }
  0x80   :  { %v1417_v40 = vadd.f32 %v1416_v32, %v1415_v30  ;;  %v219_v50 = vrot.slane %v2169_v5, %v2600_v14  ;;  %v223_v9 = vrot.slane %v2169_v5, %v1688_v16  ;;  %v227_v43 = vrot.slane %v2169_v5, %v2601_v8  ;;  %v2623_v8 = vld [vmem:[#allocation20_spill] sm:$0xff] }
  0x81   :  { %v1420_v0 = vsel %vm1396_vm0, %v2261_v24, 0.0  ;;  %v841_v42 = vcombine.low %v2279_v1, %v2287_v26  ;;  %v842_v25 = vcombine.low %v2172_v39, %v2175_v55  ;;  %v843_v3 = vcombine.low %v2178_v31, %v2186_v22 }
  0x82   :  { %v1419_v60 = vadd.f32 %v1418_v49, %v1417_v40  ;;  %v1127_v14 = vcombine.high %v2294_v20, %v2294_v20  ;;  %v1128_v16 = vcombine.high %v2291_v62, %v2291_v62  ;;  %v1135_v5 = vrot.slane %v2291_v62, %v2623_v8 }
  0x83   :  { %v2624_v41 = vcombine.high %v2261_v24, %v2261_v24  ;;  %v535_v39 = vrot.slane %v215_v13, %v1679_v10  ;;  %v539_v55 = vrot.slane %v219_v50, %v1679_v10  ;;  %v543_v31 = vrot.slane %v223_v9, %v1679_v10 }
  0x84   :  { %v1421_v26 = vadd.f32 %v1420_v0, %v1419_v60  ;;  %v1424_v22 = vsel %vm1396_vm0, %v2294_v20, 0.0  ;;  %v547_v58 = vrot.slane %v227_v43, %v1679_v10  ;;  %v850_v62 = vrot.slane %v842_v25, %v2623_v8 }
  0x85   :  { %v1422_v1 = vsel %vm1396_vm0, %v2624_v41, 0.0  ;;  %v857_v32 = vrot.slane %v843_v3, %v2623_v8  ;;  %v1033_v49 = vmul.f32 %v841_v42, %v49_v63  ;;  %v1142_v46 = vrot.slane %v1128_v16, %v2623_v8 }
  0x86   :  { %v1423_v24 = vadd.f32 %v1422_v1, %v1421_v26  ;;  %v1143_v51 = vcombine.high %v1135_v5, %v1135_v5  ;;  %v1426_v30 = vsel %vm1396_vm0, %v1127_v14, 0.0  ;;  %v50_v40 = vunpack.c.l.bf16 %v39_v23 }
  0x87   :  { %v1428_v50 = vsel %vm1396_vm0, %v1135_v5, 0.0  ;;  %v858_v9 = vcombine.low %v850_v62, %v857_v32  ;;  %v859_v20 = vcombine.low %v535_v39, %v539_v55  ;;  %v860_v0 = vcombine.low %v543_v31, %v547_v58 }
  0x88   :  { %v1425_v13 = vadd.f32 %v1424_v22, %v1423_v24  ;;  %v1144_v10 = vcombine.high %v1142_v46, %v1142_v46  ;;  %v1145_v43 = vcombine.high %v1033_v49, %v1033_v49  ;;  %v1152_v25 = vrot.slane %v1033_v49, %v2623_v8 }
  0x89   :  { %v1430_v3 = vsel %vm1396_vm0, %v1143_v51, 0.0  ;;  %v1432_v42 = vsel %vm1396_vm0, %v1142_v46, 0.0  ;;  %v867_v16 = vrot.slane %v859_v20, %v2623_v8  ;;  %v874_v14 = vrot.slane %v860_v0, %v2623_v8 }
  0x8a   :  { %v1427_v60 = vadd.f32 %v1426_v30, %v1425_v13  ;;  %v1034_v1 = vmul.f32 %v858_v9, %v50_v40  ;;  %v1159_v5 = vrot.slane %v1145_v43, %v2623_v8  ;;  %v1160_v26 = vcombine.high %v1152_v25, %v1152_v25 }
  0x8b   :  { %v1434_v39 = vsel %vm1396_vm0, %v1144_v10, 0.0  ;;  %v1436_v31 = vsel %vm1396_vm0, %v1152_v25, 0.0  ;;  %v51_v22 = vunpack.c.h.bf16 %v39_v23  ;;  %v875_v58 = vcombine.low %v867_v16, %v874_v14 }
  0x8c   :  { %v1429_v63 = vadd.f32 %v1428_v50, %v1427_v60  ;;  %v1161_v32 = vcombine.high %v1159_v5, %v1159_v5  ;;  %v1162_v24 = vcombine.high %v1034_v1, %v1034_v1  ;;  %v1169_v49 = vrot.slane %v1034_v1, %v2623_v8 }
  0x8d   :  { %v1438_v46 = vsel %vm1396_vm0, %v1160_v26, 0.0  ;;  %v1440_v30 = vsel %vm1396_vm0, %v1159_v5, 0.0  ;;  %v1035_v40 = vmul.f32 %v875_v58, %v51_v22 }
  0x8e   :  { %v1431_v41 = vadd.f32 %v1430_v3, %v1429_v63  ;;  %v1176_v50 = vrot.slane %v1162_v24, %v2623_v8  ;;  %v1177_v9 = vcombine.high %v1169_v49, %v1169_v49  ;;  %v1442_v20 = vsel %vm1396_vm0, %v1161_v32, 0.0 }
  0x8f   :  { %v1444_v23 = vsel %vm1396_vm0, %v1169_v49, 0.0  ;;  %v1179_v43 = vcombine.high %v1035_v40, %v1035_v40  ;;  %v1186_v25 = vrot.slane %v1035_v40, %v2623_v8  ;;  %v2625_v49 = vld [vmem:[#allocation16_spill] sm:$0xff] }
  0x90   :  { %v1433_v55 = vadd.f32 %v1432_v42, %v1431_v41  ;;  %v1178_v10 = vcombine.high %v1176_v50, %v1176_v50  ;;  %v1446_v3 = vsel %vm1396_vm0, %v1177_v9, 0.0  ;;  %v1448_v42 = vsel %vm1396_vm0, %v1176_v50, 0.0 }
  0x91   :  { %v1193_v14 = vrot.slane %v1179_v43, %v2623_v8  ;;  %v1194_v41 = vcombine.high %v1186_v25, %v1186_v25  ;;  %v1452_v26 = vsel %vm1396_vm0, %v1186_v25, 0.0  ;;  %v1460_v8 = vsel %vm1396_vm0, %v2625_v49, 0.0 }
  0x92   :  { %v1435_v62 = vadd.f32 %v1434_v39, %v1433_v55  ;;  %v1450_v1 = vsel %vm1396_vm0, %v1178_v10, 0.0 }
  0x93   :  { %v1195_v55 = vcombine.high %v1193_v14, %v1193_v14  ;;  %v1456_v58 = vsel %vm1396_vm0, %v1193_v14, 0.0 }
  0x94   :  { %v1437_v51 = vadd.f32 %v1436_v31, %v1435_v62  ;;  %v1454_v31 = vsel %vm1396_vm0, %v1194_v41, 0.0 }
  0x95   :  { %v1458_v32 = vsel %vm1396_vm0, %v1195_v55, 0.0 }
  0x96   :  { %v1439_v13 = vadd.f32 %v1438_v46, %v1437_v51 }
  0x98   :  { %v1441_v0 = vadd.f32 %v1440_v30, %v1439_v13 }
  0x9a   :  { %v1443_v60 = vadd.f32 %v1442_v20, %v1441_v0 }
  0x9c   :  { %v1445_v63 = vadd.f32 %v1444_v23, %v1443_v60 }
  0x9e   :  { %v1447_v16 = vadd.f32 %v1446_v3, %v1445_v63 }
  0xa0   :  { %v1449_v5 = vadd.f32 %v1448_v42, %v1447_v16 }
  0xa2   :  { %v1451_v39 = vadd.f32 %v1450_v1, %v1449_v5 }
  0xa4   :  { %v1453_v22 = vadd.f32 %v1452_v26, %v1451_v39 }
  0xa6   :  { %v1455_v62 = vadd.f32 %v1454_v31, %v1453_v22 }
  0xa8   :  { %v1457_v24 = vadd.f32 %v1456_v58, %v1455_v62 }
  0xaa   :  { %v1459_v46 = vadd.f32 %v1458_v32, %v1457_v24 }
  0xac   :  { %v1461_v51 = vadd.f32 %v1460_v8, %v1459_v46 }
  0xae   :  { %v1463_v30 = vadd.f32 %v2340_v2, %v1461_v51 }
  0xb0   :  { %v1465_v13 = vadd.f32 %v2344_v28, %v1463_v30 }
  0xb2   :  { %v1467_v40 = vadd.f32 %v2347_v61, %v1465_v13 }
  0xb4   :  { %v1469_v50 = vadd.f32 %v2351_v56, %v1467_v40 }
  0xb6   :  { %v1471_v9 = vadd.f32 %v2354_v44, %v1469_v50 }
  0xb8   :  { %v1473_v20 = vadd.f32 %v2358_v48, %v1471_v9 }
  0xba   :  { %v1475_v0 = vadd.f32 %v2361_v53, %v1473_v20 }
  0xbc   :  { %v1477_v23 = vadd.f32 %v2365_v59, %v1475_v0 }
  0xbe   :  { %v1479_v60 = vadd.f32 %v2368_v4, %v1477_v23 }
  0xc0   :  { %v1481_v10 = vadd.f32 %v2372_v45, %v1479_v60 }
  0xc2   :  { %v1483_v2 = vadd.f32 %v2375_v34, %v1481_v10 }
  0xc4   :  { %v1485_v28 = vadd.f32 %v2379_v19, %v1483_v2 }
  0xc6   :  { %v1487_v61 = vadd.f32 %v2382_v15, %v1485_v28 }
  0xc8   :  { %v1489_v56 = vadd.f32 %v2386_v21, %v1487_v61 }
  0xca   :  { %v1491_v44 = vadd.f32 %v2389_v18, %v1489_v56 }
  0xcc   :  { %v1493_v48 = vadd.f32 %v2393_v29, %v1491_v44 }
  0xce   :  { %v1495_v53 = vadd.f32 %v2396_v17, %v1493_v48 }
  0xd0   :  { %v1497_v59 = vadd.f32 %v2400_v27, %v1495_v53 }
  0xd2   :  { %v1499_v4 = vadd.f32 %v2403_v6, %v1497_v59 }
  0xd4   :  { %v1501_v45 = vadd.f32 %v2407_v38, %v1499_v4 }
  0xd6   :  { %v1503_v34 = vadd.f32 %v2410_v47, %v1501_v45 }
  0xd8   :  { %v1505_v19 = vadd.f32 %v2414_v57, %v1503_v34 }
  0xda   :  { %v1507_v15 = vadd.f32 %v2417_v52, %v1505_v19 }
  0xdc   :  { %v1509_v21 = vadd.f32 %v2421_v37, %v1507_v15 }
  0xde   :  { %v1511_v18 = vadd.f32 %v2424_v35, %v1509_v21 }
  0xe0   :  { %v1513_v29 = vadd.f32 %v2428_v54, %v1511_v18 }
  0xe2   :  { %v1515_v17 = vadd.f32 %v2431_v11, %v1513_v29 }
  0xe4   :  { %v1517_v27 = vadd.f32 %v2435_v12, %v1515_v17 }
  0xe6   :  { %v1519_v6 = vadd.f32 %v2438_v7, %v1517_v27 }
  0xe8   :  { %v1521_v38 = vadd.f32 %v2442_v33, %v1519_v6 }
  0xea   :  { %v1523_v47 = vadd.f32 %v2448_v36, %v1521_v38 }
  0xec   :  { %1524 = vadd.xlane.f32.xlu0 %v1523_v47 }
 0x179   :  { %v1525_v57 = vpop.xlane.xlu0 %1524 }
 0x17a   :  { %v1526_v43 = vmul.f32 0.5, %v1525_v57 }
 0x17c   :  { %1552 = vtanh.f32 %v1526_v43 }
 0x186   :  { %v1553_v52 = vpop.eup %1552 }
 0x187   :  { %v1528_v37 = vadd.f32 1.0, %v1553_v52 }
 0x189   :  { %v1529_v35 = vmul.f32 0.5, %v1528_v37 }
 0x18b   :  { %1531 = vst.msk [vmem:[#allocation7] sm:$0x3] %vm1530_vm1, %v1529_v35 }
 0x18c   :  { %1609 = shalt.err (!%p1606_p6)
}
 0x18d   :  { %s1610_s8 = scalar_lea.hbm %s2555_s2, 32 }
 0x18e   :  { %p1611_p7 = scmp.ne.s32.totalorder %s2555_s2, %s1610_s8  ;;  %p1614_p8 = scmp.lt.u32.totalorder %s1610_s8, %s2555_s2 }
 0x190   :  { %p1616_p9 = pnand %p1614_p8, %p1611_p7 }
 0x192   :  { %1619 = shalt.err (!%p1616_p9)
}
 0x193   :  { %1541 = dma.vmem_to_hbm [thread:$0]  %s1539_s4, 32, %s2555_s2, [#allocation4]  }
 0x194   :  { %1624 = dma.done.wait [#allocation4], 32  }
 0x195   :  { %1625 = vsyncadd [#allocation4], 4294967264 }
 0x196   :  { %1545 = vsyncpa [#allocation3], 1 }
 0x197   :  { %1546 = vsyncpa [#allocation6], 1 }
 0x198   :  { %1547 = vsyncpa [#allocation4], 1 }

</bundles_post_ra>
